<compile_context>
chip_gen: v7x
topology: tpu7x:2x2x1
jax: 0.10.0
libtpu: 0.0.40
codegen_flags: <defaults>
</compile_context>

<pallas_src>
import functools

import jax
import jax.numpy as jnp
from jax import lax
from jax.experimental import pallas as pl
from jax.experimental.pallas import tpu as pltpu


def _mul_conv1x1_kernel(x_ref, s_ref, w_ref, o_ref, *, precision):
    # x_ref: (1, Cin, M)       channel-major pixels for one batch element
    # s_ref: (1, Cin)          per-channel scale
    # w_ref: (Cout_blk, Cin)   1x1 conv weight (possibly a Cout slice)
    # o_ref: (1, Cout_blk, M)
    # Fold the scale into the small weight (VPU, free under DMA slack),
    # then one MXU matmul with f32 accumulation.
    ws = w_ref[...] * s_ref[...]                               # (Cout_blk, Cin)
    o_ref[0] = jnp.dot(
        ws, x_ref[0],
        preferred_element_type=jnp.float32,
        precision=precision,
    ).astype(o_ref.dtype)


def mul_conv1x1(x_nchw, scale_nc11, weight_oi11, *, use_bf16=False, split_cout=1):
    """Fused (x * scale) -> 1x1 conv (no bias), channel-major inside.

    x_nchw:      (N, Cin, H, W)    float32
    scale_nc11:  (1, Cin, 1, 1)    float32
    weight_oi11: (Cout, Cin, 1, 1) float32 (PyTorch Conv2d weight layout)
    use_bf16:    cast inputs/weight to bf16 (halves DMA bytes; f32 accumulate)
    split_cout:  1 (default) or 2 (v7x-only: engage the second TensorCore)
    returns:     (N, Cout, H, W)   float32
    """
    N, Cin, H, W = x_nchw.shape
    Cout = weight_oi11.shape[0]
    M = H * W
    assert Cout % split_cout == 0
    co_blk = Cout // split_cout
    assert split_cout == 1 or co_blk % 8 == 0, "Cout block must be sublane-aligned"

    out_dtype = x_nchw.dtype

    # All free reshapes (no transposes / HBM round-trips).
    x3d = x_nchw.reshape(N, Cin, M)
    s2d = scale_nc11.reshape(1, Cin)
    w2d = weight_oi11.reshape(Cout, Cin)

    if use_bf16:
        x3d = x3d.astype(jnp.bfloat16)
        s2d = s2d.astype(jnp.bfloat16)
        w2d = w2d.astype(jnp.bfloat16)
        precision = lax.Precision.DEFAULT          # bf16 in, f32 accumulate
    else:
        precision = lax.Precision.HIGHEST          # true f32 matmul for parity

    in_item = jnp.dtype(x3d.dtype).itemsize
    out_item = jnp.dtype(out_dtype).itemsize
    cost = pl.CostEstimate(
        flops=2 * N * Cout * Cin * M,
        bytes_accessed=int(N * Cin * M * in_item            # x
                           + Cout * Cin * in_item           # W
                           + Cin * in_item                  # s
                           + N * Cout * M * out_item),      # out
        transcendentals=0,
    )

    kernel = functools.partial(_mul_conv1x1_kernel, precision=precision)

    out3d = pl.pallas_call(
        kernel,
        out_shape=jax.ShapeDtypeStruct((N, Cout, M), out_dtype),
        grid=(N, split_cout),
        in_specs=[
            # x block index is constant across the Cout split -> stays resident.
            pl.BlockSpec((1, Cin, M), lambda n, co: (n, 0, 0)),
            pl.BlockSpec((1, Cin), lambda n, co: (0, 0)),
            pl.BlockSpec((co_blk, Cin), lambda n, co: (co, 0)),
        ],
        out_specs=pl.BlockSpec((1, co_blk, M), lambda n, co: (n, co, 0)),
        compiler_params=pltpu.CompilerParams(
            dimension_semantics=("parallel", "parallel"),
        ),
        cost_estimate=cost,
    )(x3d, s2d, w2d)

    # (N, Cout, H*W) -> (N, Cout, H, W): free reshape, already NCHW.
    return out3d.reshape(N, Cout, H, W)


if __name__ == "__main__":
    key = jax.random.PRNGKey(0)
    k1, k2, k3 = jax.random.split(key, 3)

    # Shapes match the PyTorch module exactly (they are already small).
    N, Cin, H, W, Cout = 1, 960, 14, 14, 160

    x387 = jax.random.normal(k1, (N, Cin, H, W), dtype=jnp.float32)
    x392 = jax.random.normal(k2, (1, Cin, 1, 1), dtype=jnp.float32)
    # Deterministic synthetic Conv2d weight (Cout, Cin, 1, 1), no bias.
    conv_w = jax.random.normal(k3, (Cout, Cin, 1, 1), dtype=jnp.float32) * 0.02

    # Reference (same math as the PyTorch module), f32-accurate.
    ref = jnp.einsum(
        "nchw,oc->nohw", x387 * x392, conv_w.reshape(Cout, Cin),
        precision=lax.Precision.HIGHEST,
    )

    # Default path: f32 operands, HIGHEST-precision MXU matmul.
    out = jax.block_until_ready(mul_conv1x1(x387, x392, conv_w))
    assert out.shape == (N, Cout, H, W)
    assert jnp.allclose(out, ref, atol=1e-4, rtol=1e-4)

    # v7x dual-TensorCore variant (Cout split); correct (just sequential) on v5e/v6e.
    out_split = jax.block_until_ready(
        mul_conv1x1(x387, x392, conv_w, split_cout=2))
    assert jnp.allclose(out_split, ref, atol=1e-4, rtol=1e-4)

    # bf16 byte-reduction variant (looser tolerance by construction).
    out_bf16 = jax.block_until_ready(
        mul_conv1x1(x387, x392, conv_w, use_bf16=True))
    assert jnp.allclose(out_bf16, ref, atol=5e-2, rtol=5e-2)

    print("KERNEL_OK")
</pallas_src>

<mosaic_0001>
module attributes {stable_mosaic.version = 11 : i64} {
  func.func @_mul_conv1x1_kernel(%arg0: i32, %arg1: i32, %arg2: memref<1x960x196xf32, #tpu.memory_space<vmem>>, %arg3: memref<1x960xf32, #tpu.memory_space<vmem>>, %arg4: memref<160x960xf32, #tpu.memory_space<vmem>>, %arg5: memref<1x160x196xf32, #tpu.memory_space<vmem>>) attributes {dimension_semantics = [#tpu.dimension_semantics<parallel>, #tpu.dimension_semantics<parallel>], iteration_bounds = array<i64: 1, 1>, scalar_prefetch = 0 : i64, scratch_operands = 0 : i64, tpu.core_type = #tpu.core_type<tc>, window_params = [{transform_indices = @transform_0, window_bounds = array<i64: 1, 960, 196>}, {pipeline_mode = #tpu.pipeline_mode<synchronous>, transform_indices = @transform_1, window_bounds = array<i64: 1, 960>}, {transform_indices = @transform_2, window_bounds = array<i64: 160, 960>}, {transform_indices = @transform_3, window_bounds = array<i64: 1, 160, 196>}]} {
    %c0 = arith.constant 0 : index
    %c0_0 = arith.constant 0 : index
    %0 = vector.load %arg4[%c0, %c0_0] : memref<160x960xf32, #tpu.memory_space<vmem>>, vector<160x960xf32>
    %c0_1 = arith.constant 0 : index
    %c0_2 = arith.constant 0 : index
    %1 = vector.load %arg3[%c0_1, %c0_2] : memref<1x960xf32, #tpu.memory_space<vmem>>, vector<1x960xf32>
    %2 = vector.broadcast %1 : vector<1x960xf32> to vector<160x960xf32>
    %3 = arith.mulf %0, %2 : vector<160x960xf32>
    %c0_3 = arith.constant 0 : index
    %c0_4 = arith.constant 0 : index
    %c0_5 = arith.constant 0 : index
    %4 = vector.load %arg2[%c0_3, %c0_4, %c0_5] : memref<1x960x196xf32, #tpu.memory_space<vmem>>, vector<1x960x196xf32>
    %5 = vector.shape_cast %4 : vector<1x960x196xf32> to vector<960x196xf32>
    %cst = arith.constant dense<0.000000e+00> : vector<160x196xf32>
    %6 = tpu.matmul %3, %5, %cst {dimension_numbers = #tpu.dot_dimension_numbers<[1], [0], [0], [1], [0, 0, 1, 1], [], []>, precision = #tpu.contract_precision<fp32>} : vector<160x960xf32>, vector<960x196xf32>, vector<160x196xf32> -> vector<160x196xf32>
    %c0_6 = arith.constant 0 : index
    %c0_7 = arith.constant 0 : index
    %c0_8 = arith.constant 0 : index
    %7 = vector.load %arg5[%c0_6, %c0_7, %c0_8] : memref<1x160x196xf32, #tpu.memory_space<vmem>>, vector<1x160x196xf32>
    %8 = vector.shape_cast %7 : vector<1x160x196xf32> to vector<160x196xf32>
    %9 = vector.shape_cast %6 : vector<160x196xf32> to vector<1x160x196xf32>
    tpu.vector_store %arg5[%c0_6, %c0_7, %c0_8], %9 {strides = array<i32>} : memref<1x160x196xf32, #tpu.memory_space<vmem>>, vector<1x160x196xf32>,
    return
  }
  func.func @transform_0(%arg0: i32, %arg1: i32) -> (i32, i32, i32) {
    %c0_i32 = arith.constant 0 : i32
    %c0_i32_0 = arith.constant 0 : i32
    %c0_i32_1 = arith.constant 0 : i32
    return %arg0, %c0_i32, %c0_i32_0 : i32, i32, i32
  }
  func.func @transform_1(%arg0: i32, %arg1: i32) -> (i32, i32) {
    %c0_i32 = arith.constant 0 : i32
    %c0_i32_0 = arith.constant 0 : i32
    %c0_i32_1 = arith.constant 0 : i32
    return %c0_i32, %c0_i32_0 : i32, i32
  }
  func.func @transform_2(%arg0: i32, %arg1: i32) -> (i32, i32) {
    %c0_i32 = arith.constant 0 : i32
    %c0_i32_0 = arith.constant 0 : i32
    return %arg1, %c0_i32 : i32, i32
  }
  func.func @transform_3(%arg0: i32, %arg1: i32) -> (i32, i32, i32) {
    %c0_i32 = arith.constant 0 : i32
    %c0_i32_0 = arith.constant 0 : i32
    return %arg0, %arg1, %c0_i32 : i32, i32, i32
  }
}

</mosaic_0001>

<bundles_post_ra>
// kernel: tpu_custom_call.1
= control target key start
LH: loop header
LB: loop body
LE: loop exit
PB: predicated region body
PF: predicated region fallthrough
CT: control target
= control target key end

     0   :  { %s20344_s0 = inlined_call_operand.vmem [shape: f32[1,960,196], index: 0, kind: input, shape index: {}]   ;;  %s20345_s1 = inlined_call_operand.vmem [shape: f32[1,960], index: 1, kind: input, shape index: {}]   ;;  %s20346_s2 = inlined_call_operand.vmem [shape: f32[160,960], index: 2, kind: input, shape index: {}]   ;;  %s20347_s3 = inlined_call_operand.hbm [shape: f32[1,160,196], index: 3, kind: output, shape index: {}]  }
   0x1   :  { %v378_v0 = vld [vmem:[%s20344_s0 + $0x8] sm:$0xff]  ;;  %v380_v1 = vld [vmem:[%s20344_s0 + $0x18] sm:$0xff]  ;;  %v377_v7 = vld [vmem:[%s20344_s0] sm:$0xff] }
   0x2   :  { %v506_v2 = vld [vmem:[%s20344_s0 + $0x408] sm:$0xff]  ;;  %v678_v3 = vand.u32 4294901760, %v378_v0  ;;  %v682_v4 = vand.u32 4294901760, %v380_v1  ;;  %v508_v5 = vld [vmem:[%s20344_s0 + $0x418] sm:$0xff]  ;;  %v379_v8 = vld [vmem:[%s20344_s0 + $0x10] sm:$0xff]  ;;  %v680_v10 = vand.u32 4294901760, %v377_v7 }
   0x3   :  { %v5602_v6 = vand.u32 4294901760, %v506_v2  ;;  %v5606_v9 = vand.u32 4294901760, %v508_v5  ;;  %v684_v11 = vand.u32 4294901760, %v379_v8  ;;  %v505_v12 = vld [vmem:[%s20344_s0 + $0x400] sm:$0xff]  ;;  %v507_v13 = vld [vmem:[%s20344_s0 + $0x410] sm:$0xff]  ;;  %v382_v14 = vld [vmem:[%s20344_s0 + $0x28] sm:$0xff] }
   0x4   :  { %v12813_v16 = vpack.c.bf16 %v682_v4, %v678_v3  ;;  %v12815_v17 = vsub.f32 %v378_v0, %v678_v3  ;;  %v12817_v18 = vsub.f32 %v380_v1, %v682_v4  ;;  %v384_v20 = vld [vmem:[%s20344_s0 + $0x38] sm:$0xff]  ;;  %v510_v21 = vld [vmem:[%s20344_s0 + $0x428] sm:$0xff]  ;;  %v12836_v26 = vsub.f32 %v377_v7, %v680_v10  ;;  %v381_v27 = vld [vmem:[%s20344_s0 + $0x20] sm:$0xff] }
   0x5   :  { %v12819_v19 = vsub.f32 %v506_v2, %v5602_v6  ;;  %v512_v22 = vld [vmem:[%s20344_s0 + $0x438] sm:$0xff]  ;;  %v12830_v23 = vpack.c.bf16 %v5606_v9, %v5602_v6  ;;  %v12832_v24 = vsub.f32 %v508_v5, %v5606_v9  ;;  %v12834_v25 = vpack.c.bf16 %v684_v11, %v680_v10  ;;  %v383_v32 = vld [vmem:[%s20344_s0 + $0x30] sm:$0xff]  ;;  %v509_v37 = vld [vmem:[%s20344_s0 + $0x420] sm:$0xff] }
   0x6   :  { %21950 = vst [vmem:[#allocation5_spill] sm:$0xff] %v12813_v16  ;;  %21951 = vst [vmem:[#allocation6_spill] sm:$0xff] %v12815_v17  ;;  %10376 = vmatprep.subr.bf16.mxu1 %v12813_v16  ;;  %v12842_v28 = vsub.f32 %v379_v8, %v684_v11  ;;  %v5604_v29 = vand.u32 4294901760, %v505_v12  ;;  %v5608_v30 = vand.u32 4294901760, %v507_v13  ;;  %v686_v31 = vand.u32 4294901760, %v382_v14  ;;  %v511_v38 = vld [vmem:[%s20344_s0 + $0x430] sm:$0xff] }
   0x7   :  { %21952 = vst [vmem:[#allocation7_spill] sm:$0xff] %v12817_v18  ;;  %21953 = vst [vmem:[#allocation8_spill] sm:$0xff] %v12819_v19  ;;  %11144 = vmatprep.subr.bf16.mxu0 %v12830_v23  ;;  %10378 = vmatpush1.bf16.msra.mxu1 %v12834_v25  ;;  %v690_v33 = vand.u32 4294901760, %v384_v20  ;;  %v5610_v34 = vand.u32 4294901760, %v510_v21  ;;  %v5614_v35 = vand.u32 4294901760, %v512_v22  ;;  %v688_v36 = vand.u32 4294901760, %v381_v27 }
   0x8   :  { %21954 = vst [vmem:[#allocation9_spill] sm:$0xff] %v12830_v23  ;;  %21955 = vst [vmem:[#allocation10_spill] sm:$0xff] %v12832_v24  ;;  %v12855_v39 = vpack.c.bf16 %v5608_v30, %v5604_v29  ;;  %v12857_v40 = vsub.f32 %v505_v12, %v5604_v29  ;;  %v12859_v41 = vsub.f32 %v507_v13, %v5608_v30  ;;  %v386_v43 = vld [vmem:[%s20344_s0 + $0x48] sm:$0xff]  ;;  %v388_v44 = vld [vmem:[%s20344_s0 + $0x58] sm:$0xff]  ;;  %v692_v52 = vand.u32 4294901760, %v383_v32 }
   0x9   :  { %21956 = vst [vmem:[#allocation11_spill] sm:$0xff] %v12834_v25  ;;  %21957 = vst [vmem:[#allocation12_spill] sm:$0xff] %v12836_v26  ;;  %v12861_v42 = vsub.f32 %v382_v14, %v686_v31  ;;  %v514_v45 = vld [vmem:[%s20344_s0 + $0x448] sm:$0xff]  ;;  %v12872_v46 = vpack.c.bf16 %v690_v33, %v686_v31  ;;  %v12874_v47 = vsub.f32 %v384_v20, %v690_v33  ;;  %v516_v50 = vld [vmem:[%s20344_s0 + $0x458] sm:$0xff]  ;;  %v5612_v54 = vand.u32 4294901760, %v509_v37 }
   0xa   :  { %21958 = vst [vmem:[#allocation13_spill] sm:$0xff] %v12842_v28  ;;  %21959 = vst [vmem:[#allocation14_spill] sm:$0xff] %v12855_v39  ;;  %v12876_v48 = vpack.c.bf16 %v5614_v35, %v5610_v34  ;;  %v12878_v49 = vsub.f32 %v510_v21, %v5610_v34  ;;  %11146 = vmatpush1.bf16.msra.mxu0 %v12855_v39  ;;  %v12884_v51 = vsub.f32 %v512_v22, %v5614_v35  ;;  %v385_v59 = vld [vmem:[%s20344_s0 + $0x40] sm:$0xff]  ;;  %v387_v60 = vld [vmem:[%s20344_s0 + $0x50] sm:$0xff] }
   0xb   :  { %21960 = vst [vmem:[#allocation15_spill] sm:$0xff] %v12857_v40  ;;  %21961 = vst [vmem:[#allocation16_spill] sm:$0xff] %v12859_v41  ;;  %v12886_v53 = vsub.f32 %v381_v27, %v688_v36  ;;  %10380 = vmatprep.subr.bf16.mxu1 %v12872_v46  ;;  %v5616_v55 = vand.u32 4294901760, %v511_v38  ;;  %v694_v56 = vand.u32 4294901760, %v386_v43  ;;  %v698_v57 = vand.u32 4294901760, %v388_v44  ;;  %v513_v1 = vld [vmem:[%s20344_s0 + $0x440] sm:$0xff] }
   0xc   :  { %21962 = vst [vmem:[#allocation17_spill] sm:$0xff] %v12872_v46  ;;  %21963 = vst [vmem:[#allocation18_spill] sm:$0xff] %v12876_v48  ;;  %11148 = vmatprep.subr.bf16.mxu0 %v12876_v48  ;;  %v5618_v58 = vand.u32 4294901760, %v514_v45  ;;  %v12896_v61 = vpack.c.bf16 %v692_v52, %v688_v36  ;;  %v12898_v62 = vsub.f32 %v383_v32, %v692_v52  ;;  %v5622_v0 = vand.u32 4294901760, %v516_v50  ;;  %v515_v2 = vld [vmem:[%s20344_s0 + $0x450] sm:$0xff]  ;;  %v390_v3 = vld [vmem:[%s20344_s0 + $0x68] sm:$0xff] }
   0xd   :  { %v12900_v63 = vsub.f32 %v509_v37, %v5612_v54  ;;  %v12911_v4 = vpack.c.bf16 %v5616_v55, %v5612_v54  ;;  %v12913_v5 = vsub.f32 %v511_v38, %v5616_v55  ;;  %v12915_v6 = vpack.c.bf16 %v698_v57, %v694_v56  ;;  %v392_v8 = vld [vmem:[%s20344_s0 + $0x78] sm:$0xff]  ;;  %v518_v9 = vld [vmem:[%s20344_s0 + $0x468] sm:$0xff]  ;;  %v389_v33 = vld [vmem:[%s20344_s0 + $0x60] sm:$0xff] }
   0xe   :  { %21964 = vst [vmem:[#allocation19_spill] sm:$0xff] %v12896_v61  ;;  %v12917_v7 = vsub.f32 %v386_v43, %v694_v56  ;;  %v520_v10 = vld [vmem:[%s20344_s0 + $0x478] sm:$0xff]  ;;  %10382 = vmatpush1.bf16.msra.mxu1 %v12896_v61  ;;  %v12929_v11 = vsub.f32 %v388_v44, %v698_v57  ;;  %v12931_v12 = vpack.c.bf16 %v5622_v0, %v5618_v58  ;;  %v696_v20 = vand.u32 4294901760, %v385_v59  ;;  %v391_v38 = vld [vmem:[%s20344_s0 + $0x70] sm:$0xff]  ;;  %v517_v43 = vld [vmem:[%s20344_s0 + $0x460] sm:$0xff] }
   0xf   :  { %21965 = vst [vmem:[#allocation20_spill] sm:$0xff] %v12911_v4  ;;  %21966 = vst [vmem:[#allocation21_spill] sm:$0xff] %v12915_v6  ;;  %v12933_v13 = vsub.f32 %v514_v45, %v5618_v58  ;;  %v12935_v14 = vsub.f32 %v516_v50, %v5622_v0  ;;  %11150 = vmatpush1.bf16.msra.mxu0 %v12911_v4  ;;  %10384 = vmatprep.subr.bf16.mxu1 %v12915_v6  ;;  %v700_v21 = vand.u32 4294901760, %v387_v60  ;;  %v519_v44 = vld [vmem:[%s20344_s0 + $0x470] sm:$0xff]  ;;  %v394_v55 = vld [vmem:[%s20344_s0 + $0x88] sm:$0xff] }
  0x10   :  { %21967 = vst [vmem:[#allocation22_spill] sm:$0xff] %v12931_v12  ;;  %v5620_v22 = vand.u32 4294901760, %v513_v1  ;;  %v5624_v27 = vand.u32 4294901760, %v515_v2  ;;  %11152 = vmatprep.subr.bf16.mxu0 %v12931_v12  ;;  %v702_v29 = vand.u32 4294901760, %v390_v3  ;;  %v706_v30 = vand.u32 4294901760, %v392_v8  ;;  %v396_v56 = vld [vmem:[%s20344_s0 + $0x98] sm:$0xff] }
  0x11   :  { %21968 = vst [vmem:[#allocation23_spill] sm:$0xff] %v12933_v13  ;;  %21969 = vst [vmem:[#allocation24_spill] sm:$0xff] %v12935_v14  ;;  %v5626_v31 = vand.u32 4294901760, %v518_v9  ;;  %v5630_v32 = vand.u32 4294901760, %v520_v10  ;;  %v12943_v34 = vpack.c.bf16 %v700_v21, %v696_v20  ;;  %v12945_v35 = vsub.f32 %v385_v59, %v696_v20  ;;  %v522_v57 = vld [vmem:[%s20344_s0 + $0x488] sm:$0xff]  ;;  %v525_v48 = vld [vmem:[%s20344_s0 + $0x4a0] sm:$0xff] }
  0x12   :  { %v12947_v36 = vsub.f32 %v387_v60, %v700_v21  ;;  %v12949_v37 = vpack.c.bf16 %v5624_v27, %v5620_v22  ;;  %v12960_v45 = vsub.f32 %v513_v1, %v5620_v22  ;;  %v12962_v50 = vsub.f32 %v515_v2, %v5624_v27  ;;  %v524_v21 = vld [vmem:[%s20344_s0 + $0x498] sm:$0xff]  ;;  %v402_v39 = vld [vmem:[%s20344_s0 + $0xc8] sm:$0xff] }
  0x13   :  { %21970 = vst [vmem:[#allocation25_spill] sm:$0xff] %v12943_v34  ;;  %21971 = vst [vmem:[#allocation26_spill] sm:$0xff] %v12945_v35  ;;  %v12964_v52 = vpack.c.bf16 %v706_v30, %v702_v29  ;;  %v12966_v54 = vsub.f32 %v390_v3, %v702_v29  ;;  %10386 = vmatpush1.bf16.msra.mxu1 %v12943_v34  ;;  %v12979_v58 = vsub.f32 %v392_v8, %v706_v30  ;;  %v393_v29 = vld [vmem:[%s20344_s0 + $0x80] sm:$0xff]  ;;  %v404_v46 = vld [vmem:[%s20344_s0 + $0xd8] sm:$0xff] }
  0x14   :  { %21972 = vst [vmem:[#allocation27_spill] sm:$0xff] %v12947_v36  ;;  %21973 = vst [vmem:[#allocation28_spill] sm:$0xff] %v12949_v37  ;;  %11154 = vmatpush1.bf16.msra.mxu0 %v12949_v37  ;;  %v12981_v59 = vpack.c.bf16 %v5630_v32, %v5626_v31  ;;  %v12983_v60 = vsub.f32 %v518_v9, %v5626_v31  ;;  %v704_v0 = vand.u32 4294901760, %v389_v33  ;;  %v708_v2 = vand.u32 4294901760, %v391_v38  ;;  %v521_v30 = vld [vmem:[%s20344_s0 + $0x480] sm:$0xff]  ;;  %v398_v37 = vld [vmem:[%s20344_s0 + $0xa8] sm:$0xff] }
  0x15   :  { %21974 = vst [vmem:[#allocation29_spill] sm:$0xff] %v12960_v45  ;;  %21975 = vst [vmem:[#allocation30_spill] sm:$0xff] %v12962_v50  ;;  %10388 = vmatprep.subr.bf16.mxu1 %v12964_v52  ;;  %v12986_v1 = vsub.f32 %v520_v10, %v5630_v32  ;;  %v5628_v3 = vand.u32 4294901760, %v517_v43  ;;  %v5632_v20 = vand.u32 4294901760, %v519_v44  ;;  %v710_v22 = vand.u32 4294901760, %v394_v55  ;;  %v395_v10 = vld [vmem:[%s20344_s0 + $0x90] sm:$0xff] }
  0x16   :  { %21976 = vst [vmem:[#allocation31_spill] sm:$0xff] %v12964_v52  ;;  %21977 = vst [vmem:[#allocation32_spill] sm:$0xff] %v12966_v54  ;;  %11156 = vmatprep.subr.bf16.mxu0 %v12981_v59  ;;  %v12992_v8 = vsub.f32 %v389_v33, %v704_v0  ;;  %v714_v27 = vand.u32 4294901760, %v396_v56  ;;  %v5634_v9 = vand.u32 4294901760, %v522_v57  ;;  %v13003_v31 = vpack.c.bf16 %v708_v2, %v704_v0  ;;  %v400_v52 = vld [vmem:[%s20344_s0 + $0xb8] sm:$0xff] }
  0x17   :  { %21978 = vst [vmem:[#allocation33_spill] sm:$0xff] %v12979_v58  ;;  %21979 = vst [vmem:[#allocation34_spill] sm:$0xff] %v12981_v59  ;;  %v13005_v32 = vsub.f32 %v391_v38, %v708_v2  ;;  %v13007_v33 = vpack.c.bf16 %v5632_v20, %v5628_v3  ;;  %v13009_v15 = vsub.f32 %v517_v43, %v5628_v3  ;;  %v523_v59 = vld [vmem:[%s20344_s0 + $0x490] sm:$0xff]  ;;  %v5638_v3 = vand.u32 4294901760, %v524_v21 }
  0x18   :  { %21980 = vst [vmem:[#allocation35_spill] sm:$0xff] %v12983_v60  ;;  %21981 = vst [vmem:[#allocation36_spill] sm:$0xff] %v12986_v1  ;;  %v13020_v0 = vsub.f32 %v519_v44, %v5632_v20  ;;  %v13022_v38 = vpack.c.bf16 %v714_v27, %v710_v22  ;;  %v13024_v2 = vsub.f32 %v394_v55, %v710_v22  ;;  %10390 = vmatpush1.bf16.msra.mxu1 %v13003_v31  ;;  %v526_v55 = vld [vmem:[%s20344_s0 + $0x4a8] sm:$0xff] }
  0x19   :  { %21982 = vst [vmem:[#allocation37_spill] sm:$0xff] %v12992_v8  ;;  %21983 = vst [vmem:[#allocation38_spill] sm:$0xff] %v13003_v31  ;;  %v13026_v43 = vsub.f32 %v396_v56, %v714_v27  ;;  %11158 = vmatpush1.bf16.msra.mxu0 %v13007_v33  ;;  %v13030_v34 = vsub.f32 %v522_v57, %v5634_v9  ;;  %v712_v12 = vand.u32 4294901760, %v393_v29  ;;  %v716_v4 = vand.u32 4294901760, %v395_v10  ;;  %v528_v56 = vld [vmem:[%s20344_s0 + $0x4b8] sm:$0xff]  ;;  %v399_v31 = vld [vmem:[%s20344_s0 + $0xb0] sm:$0xff] }
  0x1a   :  { %21984 = vst [vmem:[#allocation39_spill] sm:$0xff] %v13005_v32  ;;  %21985 = vst [vmem:[#allocation40_spill] sm:$0xff] %v13007_v33  ;;  %10392 = vmatprep.subr.bf16.mxu1 %v13022_v38  ;;  %v5636_v6 = vand.u32 4294901760, %v521_v30  ;;  %v5640_v44 = vand.u32 4294901760, %v523_v59  ;;  %v718_v20 = vand.u32 4294901760, %v398_v37  ;;  %v722_v61 = vand.u32 4294901760, %v400_v52 }
  0x1b   :  { %21986 = vst [vmem:[#allocation41_spill] sm:$0xff] %v13009_v15  ;;  %21987 = vst [vmem:[#allocation42_spill] sm:$0xff] %v13020_v0  ;;  %v13039_v22 = vpack.c.bf16 %v5638_v3, %v5634_v9  ;;  %v13041_v57 = vsub.f32 %v524_v21, %v5638_v3  ;;  %v13043_v27 = vpack.c.bf16 %v716_v4, %v712_v12  ;;  %v724_v25 = vand.u32 4294901760, %v399_v31 }
  0x1c   :  { %21988 = vst [vmem:[#allocation43_spill] sm:$0xff] %v13022_v38  ;;  %21989 = vst [vmem:[#allocation44_spill] sm:$0xff] %v13024_v2  ;;  %v13045_v33 = vsub.f32 %v393_v29, %v712_v12  ;;  %v397_v38 = vld [vmem:[%s20344_s0 + $0xa0] sm:$0xff]  ;;  %v13056_v9 = vsub.f32 %v395_v10, %v716_v4  ;;  %v13058_v21 = vpack.c.bf16 %v5640_v44, %v5636_v6  ;;  %v527_v29 = vld [vmem:[%s20344_s0 + $0x4b0] sm:$0xff]  ;;  %v5642_v10 = vand.u32 4294901760, %v526_v55 }
  0x1d   :  { %21990 = vst [vmem:[#allocation45_spill] sm:$0xff] %v13026_v43  ;;  %21991 = vst [vmem:[#allocation46_spill] sm:$0xff] %v13030_v34  ;;  %v13060_v3 = vsub.f32 %v521_v30, %v5636_v6  ;;  %v13062_v12 = vsub.f32 %v523_v59, %v5640_v44  ;;  %11160 = vmatprep.subr.bf16.mxu0 %v13039_v22  ;;  %10394 = vmatpush1.bf16.msra.mxu1 %v13043_v27  ;;  %v5646_v30 = vand.u32 4294901760, %v528_v56 }
  0x1e   :  { %21992 = vst [vmem:[#allocation47_spill] sm:$0xff] %v13039_v22  ;;  %21993 = vst [vmem:[#allocation48_spill] sm:$0xff] %v13041_v57  ;;  %v13075_v4 = vpack.c.bf16 %v722_v61, %v718_v20  ;;  %v13077_v6 = vsub.f32 %v398_v37, %v718_v20  ;;  %v13079_v59 = vsub.f32 %v400_v52, %v722_v61  ;;  %11162 = vmatpush1.bf16.msra.mxu0 %v13058_v21  ;;  %v530_v37 = vld [vmem:[%s20344_s0 + $0x4c8] sm:$0xff]  ;;  %v532_v61 = vld [vmem:[%s20344_s0 + $0x4d8] sm:$0xff] }
  0x1f   :  { %21994 = vst [vmem:[#allocation49_spill] sm:$0xff] %v13043_v27  ;;  %21995 = vst [vmem:[#allocation50_spill] sm:$0xff] %v13045_v33  ;;  %v720_v44 = vand.u32 4294901760, %v397_v38  ;;  %v5644_v23 = vand.u32 4294901760, %v525_v48  ;;  %v13083_v16 = vsub.f32 %v526_v55, %v5642_v10  ;;  %v5648_v22 = vand.u32 4294901760, %v527_v29  ;;  %v401_v55 = vld [vmem:[%s20344_s0 + $0xc0] sm:$0xff] }
  0x20   :  { %21996 = vst [vmem:[#allocation51_spill] sm:$0xff] %v13056_v9  ;;  %21997 = vst [vmem:[#allocation52_spill] sm:$0xff] %v13058_v21  ;;  %10396 = vmatprep.subr.bf16.mxu1 %v13075_v4  ;;  %v730_v27 = vand.u32 4294901760, %v404_v46  ;;  %v13091_v52 = vpack.c.bf16 %v5646_v30, %v5642_v10  ;;  %v13093_v20 = vsub.f32 %v528_v56, %v5646_v30 }
  0x21   :  { %21998 = vst [vmem:[#allocation53_spill] sm:$0xff] %v13060_v3  ;;  %21999 = vst [vmem:[#allocation54_spill] sm:$0xff] %v13062_v12  ;;  %v726_v12 = vand.u32 4294901760, %v402_v39  ;;  %v13095_v21 = vpack.c.bf16 %v724_v25, %v720_v44  ;;  %v13108_v10 = vsub.f32 %v399_v31, %v724_v25  ;;  %v13110_v56 = vpack.c.bf16 %v5648_v22, %v5644_v23 }
  0x22   :  { %22000 = vst [vmem:[#allocation55_spill] sm:$0xff] %v13075_v4  ;;  %22001 = vst [vmem:[#allocation56_spill] sm:$0xff] %v13077_v6  ;;  %v13097_v4 = vsub.f32 %v397_v38, %v720_v44  ;;  %v13112_v30 = vsub.f32 %v525_v48, %v5644_v23  ;;  %v13114_v38 = vsub.f32 %v527_v29, %v5648_v22  ;;  %v531_v44 = vld [vmem:[%s20344_s0 + $0x4d0] sm:$0xff]  ;;  %11164 = vmatprep.subr.bf16.mxu0 %v13091_v52 }
  0x23   :  { %22002 = vst [vmem:[#allocation57_spill] sm:$0xff] %v13079_v59  ;;  %22003 = vst [vmem:[#allocation58_spill] sm:$0xff] %v13083_v16  ;;  %v403_v16 = vld [vmem:[%s20344_s0 + $0xd0] sm:$0xff]  ;;  %v529_v59 = vld [vmem:[%s20344_s0 + $0x4c0] sm:$0xff]  ;;  %10398 = vmatpush1.bf16.msra.mxu1 %v13095_v21  ;;  %v13127_v23 = vpack.c.bf16 %v730_v27, %v726_v12  ;;  %v13129_v25 = vsub.f32 %v402_v39, %v726_v12  ;;  %v13131_v48 = vsub.f32 %v404_v46, %v730_v27 }
  0x24   :  { %22004 = vst [vmem:[#allocation59_spill] sm:$0xff] %v13091_v52  ;;  %22005 = vst [vmem:[#allocation60_spill] sm:$0xff] %v13093_v20  ;;  %v408_v20 = vld [vmem:[%s20344_s0 + $0xf8] sm:$0xff]  ;;  %v5650_v31 = vand.u32 4294901760, %v530_v37  ;;  %11166 = vmatpush1.bf16.msra.mxu0 %v13110_v56  ;;  %v5654_v22 = vand.u32 4294901760, %v532_v61  ;;  %v728_v29 = vand.u32 4294901760, %v401_v55 }
  0x25   :  { %22006 = vst [vmem:[#allocation61_spill] sm:$0xff] %v13095_v21  ;;  %22007 = vst [vmem:[#allocation62_spill] sm:$0xff] %v13097_v4  ;;  %v406_v4 = vld [vmem:[%s20344_s0 + $0xe8] sm:$0xff]  ;;  %10400 = vmatprep.subr.bf16.mxu1 %v13127_v23  ;;  %v5656_v52 = vand.u32 4294901760, %v531_v44  ;;  %v738_v21 = vand.u32 4294901760, %v408_v20  ;;  %v536_v46 = vld [vmem:[%s20344_s0 + $0x4f8] sm:$0xff] }
  0x26   :  { %22008 = vst [vmem:[#allocation63_spill] sm:$0xff] %v13108_v10  ;;  %22009 = vst [vmem:[#allocation64_spill] sm:$0xff] %v13110_v56  ;;  %v13135_v10 = vsub.f32 %v530_v37, %v5650_v31  ;;  %v734_v6 = vand.u32 4294901760, %v406_v4  ;;  %v534_v39 = vld [vmem:[%s20344_s0 + $0x4e8] sm:$0xff]  ;;  %v13143_v27 = vpack.c.bf16 %v5654_v22, %v5650_v31  ;;  %v13145_v12 = vsub.f32 %v532_v61, %v5654_v22  ;;  %v405_v37 = vld [vmem:[%s20344_s0 + $0xe0] sm:$0xff] }
  0x27   :  { %22010 = vst [vmem:[#allocation65_spill] sm:$0xff] %v13112_v30  ;;  %22011 = vst [vmem:[#allocation66_spill] sm:$0xff] %v13114_v38  ;;  %v732_v38 = vand.u32 4294901760, %v403_v16  ;;  %v5652_v30 = vand.u32 4294901760, %v529_v59 }
  0x28   :  { %22012 = vst [vmem:[#allocation67_spill] sm:$0xff] %v13127_v23  ;;  %22013 = vst [vmem:[#allocation68_spill] sm:$0xff] %v13129_v25  ;;  %v13149_v23 = vsub.f32 %v401_v55, %v728_v29  ;;  %v13166_v55 = vsub.f32 %v531_v44, %v5656_v52  ;;  %11168 = vmatprep.subr.bf16.mxu0 %v13143_v27  ;;  %v736_v44 = vand.u32 4294901760, %v405_v37 }
  0x29   :  { %22014 = vst [vmem:[#allocation69_spill] sm:$0xff] %v13131_v48  ;;  %22015 = vst [vmem:[#allocation70_spill] sm:$0xff] %v13135_v10  ;;  %v13147_v56 = vpack.c.bf16 %v732_v38, %v728_v29  ;;  %v407_v10 = vld [vmem:[%s20344_s0 + $0xf0] sm:$0xff]  ;;  %v533_v48 = vld [vmem:[%s20344_s0 + $0x4e0] sm:$0xff]  ;;  %v13160_v31 = vsub.f32 %v403_v16, %v732_v38  ;;  %v13162_v61 = vpack.c.bf16 %v5656_v52, %v5652_v30  ;;  %v5662_v38 = vand.u32 4294901760, %v536_v46 }
  0x2a   :  { %22016 = vst [vmem:[#allocation71_spill] sm:$0xff] %v13143_v27  ;;  %22017 = vst [vmem:[#allocation72_spill] sm:$0xff] %v13145_v12  ;;  %v13164_v22 = vsub.f32 %v529_v59, %v5652_v30  ;;  %v535_v29 = vld [vmem:[%s20344_s0 + $0x4f0] sm:$0xff]  ;;  %v412_v12 = vld [vmem:[%s20344_s0 + $0x118] sm:$0xff]  ;;  %v13179_v16 = vpack.c.bf16 %v738_v21, %v734_v6  ;;  %v13181_v59 = vsub.f32 %v406_v4, %v734_v6  ;;  %v5658_v30 = vand.u32 4294901760, %v534_v39 }
  0x2b   :  { %22018 = vst [vmem:[#allocation73_spill] sm:$0xff] %v13147_v56  ;;  %22019 = vst [vmem:[#allocation74_spill] sm:$0xff] %v13149_v23  ;;  %v410_v23 = vld [vmem:[%s20344_s0 + $0x108] sm:$0xff]  ;;  %10402 = vmatpush1.bf16.msra.mxu1 %v13147_v56  ;;  %v13183_v52 = vsub.f32 %v408_v20, %v738_v21  ;;  %11170 = vmatpush1.bf16.msra.mxu0 %v13162_v61  ;;  %v5664_v27 = vand.u32 4294901760, %v535_v29  ;;  %v746_v56 = vand.u32 4294901760, %v412_v12  ;;  %v540_v21 = vld [vmem:[%s20344_s0 + $0x518] sm:$0xff] }
  0x2c   :  { %22020 = vst [vmem:[#allocation75_spill] sm:$0xff] %v13160_v31  ;;  %22021 = vst [vmem:[#allocation76_spill] sm:$0xff] %v13162_v61  ;;  %10404 = vmatprep.subr.bf16.mxu1 %v13179_v16  ;;  %v13187_v31 = vsub.f32 %v534_v39, %v5658_v30  ;;  %v742_v25 = vand.u32 4294901760, %v410_v23  ;;  %v538_v4 = vld [vmem:[%s20344_s0 + $0x508] sm:$0xff]  ;;  %v13195_v6 = vpack.c.bf16 %v5662_v38, %v5658_v30  ;;  %v409_v39 = vld [vmem:[%s20344_s0 + $0x100] sm:$0xff] }
  0x2d   :  { %22022 = vst [vmem:[#allocation77_spill] sm:$0xff] %v13164_v22  ;;  %22023 = vst [vmem:[#allocation78_spill] sm:$0xff] %v13166_v55  ;;  %v740_v55 = vand.u32 4294901760, %v407_v10  ;;  %v5660_v22 = vand.u32 4294901760, %v533_v48  ;;  %v13197_v20 = vsub.f32 %v536_v46, %v5662_v38 }
  0x2e   :  { %22024 = vst [vmem:[#allocation79_spill] sm:$0xff] %v13179_v16  ;;  %22025 = vst [vmem:[#allocation80_spill] sm:$0xff] %v13181_v59  ;;  %v13201_v16 = vsub.f32 %v405_v37, %v736_v44  ;;  %v13218_v37 = vsub.f32 %v535_v29, %v5664_v27  ;;  %11172 = vmatprep.subr.bf16.mxu0 %v13195_v6  ;;  %v744_v29 = vand.u32 4294901760, %v409_v39 }
  0x2f   :  { %22026 = vst [vmem:[#allocation81_spill] sm:$0xff] %v13183_v52  ;;  %22027 = vst [vmem:[#allocation82_spill] sm:$0xff] %v13187_v31  ;;  %v13199_v61 = vpack.c.bf16 %v740_v55, %v736_v44  ;;  %v411_v31 = vld [vmem:[%s20344_s0 + $0x110] sm:$0xff]  ;;  %v537_v52 = vld [vmem:[%s20344_s0 + $0x500] sm:$0xff]  ;;  %v13212_v30 = vsub.f32 %v407_v10, %v740_v55  ;;  %v13214_v46 = vpack.c.bf16 %v5664_v27, %v5660_v22  ;;  %v5670_v55 = vand.u32 4294901760, %v540_v21 }
  0x30   :  { %22028 = vst [vmem:[#allocation83_spill] sm:$0xff] %v13195_v6  ;;  %22029 = vst [vmem:[#allocation84_spill] sm:$0xff] %v13197_v20  ;;  %v13216_v38 = vsub.f32 %v533_v48, %v5660_v22  ;;  %v539_v44 = vld [vmem:[%s20344_s0 + $0x510] sm:$0xff]  ;;  %v416_v20 = vld [vmem:[%s20344_s0 + $0x138] sm:$0xff]  ;;  %v13231_v10 = vpack.c.bf16 %v746_v56, %v742_v25  ;;  %v13233_v48 = vsub.f32 %v410_v23, %v742_v25  ;;  %v5666_v22 = vand.u32 4294901760, %v538_v4 }
  0x31   :  { %22030 = vst [vmem:[#allocation85_spill] sm:$0xff] %v13199_v61  ;;  %22031 = vst [vmem:[#allocation86_spill] sm:$0xff] %v13201_v16  ;;  %v414_v16 = vld [vmem:[%s20344_s0 + $0x128] sm:$0xff]  ;;  %10406 = vmatpush1.bf16.msra.mxu1 %v13199_v61  ;;  %v13235_v27 = vsub.f32 %v412_v12, %v746_v56  ;;  %11174 = vmatpush1.bf16.msra.mxu0 %v13214_v46  ;;  %v5672_v6 = vand.u32 4294901760, %v539_v44  ;;  %v754_v61 = vand.u32 4294901760, %v416_v20  ;;  %v544_v56 = vld [vmem:[%s20344_s0 + $0x538] sm:$0xff] }
  0x32   :  { %22032 = vst [vmem:[#allocation87_spill] sm:$0xff] %v13212_v30  ;;  %22033 = vst [vmem:[#allocation88_spill] sm:$0xff] %v13214_v46  ;;  %10408 = vmatprep.subr.bf16.mxu1 %v13231_v10  ;;  %v13239_v30 = vsub.f32 %v538_v4, %v5666_v22  ;;  %v750_v59 = vand.u32 4294901760, %v414_v16  ;;  %v542_v23 = vld [vmem:[%s20344_s0 + $0x528] sm:$0xff]  ;;  %v13247_v25 = vpack.c.bf16 %v5670_v55, %v5666_v22  ;;  %v413_v4 = vld [vmem:[%s20344_s0 + $0x120] sm:$0xff] }
  0x33   :  { %22034 = vst [vmem:[#allocation89_spill] sm:$0xff] %v13216_v38  ;;  %22035 = vst [vmem:[#allocation90_spill] sm:$0xff] %v13218_v37  ;;  %v748_v37 = vand.u32 4294901760, %v411_v31  ;;  %v5668_v38 = vand.u32 4294901760, %v537_v52  ;;  %v13249_v12 = vsub.f32 %v540_v21, %v5670_v55 }
  0x34   :  { %22036 = vst [vmem:[#allocation91_spill] sm:$0xff] %v13231_v10  ;;  %22037 = vst [vmem:[#allocation92_spill] sm:$0xff] %v13233_v48  ;;  %v13253_v10 = vsub.f32 %v409_v39, %v744_v29  ;;  %v13270_v39 = vsub.f32 %v539_v44, %v5672_v6  ;;  %11176 = vmatprep.subr.bf16.mxu0 %v13247_v25  ;;  %v752_v44 = vand.u32 4294901760, %v413_v4 }
  0x35   :  { %22038 = vst [vmem:[#allocation93_spill] sm:$0xff] %v13235_v27  ;;  %22039 = vst [vmem:[#allocation94_spill] sm:$0xff] %v13239_v30  ;;  %v13251_v46 = vpack.c.bf16 %v748_v37, %v744_v29  ;;  %v415_v30 = vld [vmem:[%s20344_s0 + $0x130] sm:$0xff]  ;;  %v541_v27 = vld [vmem:[%s20344_s0 + $0x520] sm:$0xff]  ;;  %v13264_v22 = vsub.f32 %v411_v31, %v748_v37  ;;  %v13266_v21 = vpack.c.bf16 %v5672_v6, %v5668_v38  ;;  %v5678_v37 = vand.u32 4294901760, %v544_v56 }
  0x36   :  { %22040 = vst [vmem:[#allocation95_spill] sm:$0xff] %v13247_v25  ;;  %22041 = vst [vmem:[#allocation96_spill] sm:$0xff] %v13249_v12  ;;  %v13268_v55 = vsub.f32 %v537_v52, %v5668_v38  ;;  %v543_v29 = vld [vmem:[%s20344_s0 + $0x530] sm:$0xff]  ;;  %v420_v12 = vld [vmem:[%s20344_s0 + $0x158] sm:$0xff]  ;;  %v13283_v31 = vpack.c.bf16 %v754_v61, %v750_v59  ;;  %v13285_v52 = vsub.f32 %v414_v16, %v750_v59  ;;  %v5674_v38 = vand.u32 4294901760, %v542_v23 }
  0x37   :  { %22042 = vst [vmem:[#allocation97_spill] sm:$0xff] %v13251_v46  ;;  %22043 = vst [vmem:[#allocation98_spill] sm:$0xff] %v13253_v10  ;;  %v418_v10 = vld [vmem:[%s20344_s0 + $0x148] sm:$0xff]  ;;  %10410 = vmatpush1.bf16.msra.mxu1 %v13251_v46  ;;  %v13287_v6 = vsub.f32 %v416_v20, %v754_v61  ;;  %11178 = vmatpush1.bf16.msra.mxu0 %v13266_v21  ;;  %v5680_v25 = vand.u32 4294901760, %v543_v29  ;;  %v762_v46 = vand.u32 4294901760, %v420_v12  ;;  %v548_v61 = vld [vmem:[%s20344_s0 + $0x558] sm:$0xff] }
  0x38   :  { %22044 = vst [vmem:[#allocation99_spill] sm:$0xff] %v13264_v22  ;;  %22045 = vst [vmem:[#allocation100_spill] sm:$0xff] %v13266_v21  ;;  %10412 = vmatprep.subr.bf16.mxu1 %v13283_v31  ;;  %v13291_v22 = vsub.f32 %v542_v23, %v5674_v38  ;;  %v758_v48 = vand.u32 4294901760, %v418_v10  ;;  %v546_v16 = vld [vmem:[%s20344_s0 + $0x548] sm:$0xff]  ;;  %v13299_v59 = vpack.c.bf16 %v5678_v37, %v5674_v38  ;;  %v417_v23 = vld [vmem:[%s20344_s0 + $0x140] sm:$0xff] }
  0x39   :  { %22046 = vst [vmem:[#allocation101_spill] sm:$0xff] %v13268_v55  ;;  %22047 = vst [vmem:[#allocation102_spill] sm:$0xff] %v13270_v39  ;;  %v756_v39 = vand.u32 4294901760, %v415_v30  ;;  %v5676_v55 = vand.u32 4294901760, %v541_v27  ;;  %v13301_v20 = vsub.f32 %v544_v56, %v5678_v37 }
  0x3a   :  { %22048 = vst [vmem:[#allocation103_spill] sm:$0xff] %v13283_v31  ;;  %22049 = vst [vmem:[#allocation104_spill] sm:$0xff] %v13285_v52  ;;  %v13305_v31 = vsub.f32 %v413_v4, %v752_v44  ;;  %v13322_v4 = vsub.f32 %v543_v29, %v5680_v25  ;;  %11180 = vmatprep.subr.bf16.mxu0 %v13299_v59  ;;  %v760_v29 = vand.u32 4294901760, %v417_v23 }
  0x3b   :  { %22050 = vst [vmem:[#allocation105_spill] sm:$0xff] %v13287_v6  ;;  %22051 = vst [vmem:[#allocation106_spill] sm:$0xff] %v13291_v22  ;;  %v13303_v21 = vpack.c.bf16 %v756_v39, %v752_v44  ;;  %v419_v22 = vld [vmem:[%s20344_s0 + $0x150] sm:$0xff]  ;;  %v545_v6 = vld [vmem:[%s20344_s0 + $0x540] sm:$0xff]  ;;  %v13316_v38 = vsub.f32 %v415_v30, %v756_v39  ;;  %v13318_v56 = vpack.c.bf16 %v5680_v25, %v5676_v55  ;;  %v5686_v39 = vand.u32 4294901760, %v548_v61 }
  0x3c   :  { %22052 = vst [vmem:[#allocation107_spill] sm:$0xff] %v13299_v59  ;;  %22053 = vst [vmem:[#allocation108_spill] sm:$0xff] %v13301_v20  ;;  %v13320_v37 = vsub.f32 %v541_v27, %v5676_v55  ;;  %v547_v44 = vld [vmem:[%s20344_s0 + $0x550] sm:$0xff]  ;;  %v424_v20 = vld [vmem:[%s20344_s0 + $0x178] sm:$0xff]  ;;  %v13335_v30 = vpack.c.bf16 %v762_v46, %v758_v48  ;;  %v13337_v27 = vsub.f32 %v418_v10, %v758_v48  ;;  %v5682_v55 = vand.u32 4294901760, %v546_v16 }
  0x3d   :  { %22054 = vst [vmem:[#allocation109_spill] sm:$0xff] %v13303_v21  ;;  %22055 = vst [vmem:[#allocation110_spill] sm:$0xff] %v13305_v31  ;;  %v422_v31 = vld [vmem:[%s20344_s0 + $0x168] sm:$0xff]  ;;  %10414 = vmatpush1.bf16.msra.mxu1 %v13303_v21  ;;  %v13339_v25 = vsub.f32 %v420_v12, %v762_v46  ;;  %11182 = vmatpush1.bf16.msra.mxu0 %v13318_v56  ;;  %v5688_v59 = vand.u32 4294901760, %v547_v44  ;;  %v770_v21 = vand.u32 4294901760, %v424_v20  ;;  %v552_v46 = vld [vmem:[%s20344_s0 + $0x578] sm:$0xff] }
  0x3e   :  { %22056 = vst [vmem:[#allocation111_spill] sm:$0xff] %v13316_v38  ;;  %22057 = vst [vmem:[#allocation112_spill] sm:$0xff] %v13318_v56  ;;  %10416 = vmatprep.subr.bf16.mxu1 %v13335_v30  ;;  %v13343_v38 = vsub.f32 %v546_v16, %v5682_v55  ;;  %v766_v52 = vand.u32 4294901760, %v422_v31  ;;  %v550_v10 = vld [vmem:[%s20344_s0 + $0x568] sm:$0xff]  ;;  %v13351_v48 = vpack.c.bf16 %v5686_v39, %v5682_v55  ;;  %v421_v16 = vld [vmem:[%s20344_s0 + $0x160] sm:$0xff] }
  0x3f   :  { %22058 = vst [vmem:[#allocation113_spill] sm:$0xff] %v13320_v37  ;;  %22059 = vst [vmem:[#allocation114_spill] sm:$0xff] %v13322_v4  ;;  %v764_v4 = vand.u32 4294901760, %v419_v22  ;;  %v5684_v37 = vand.u32 4294901760, %v545_v6  ;;  %v13353_v12 = vsub.f32 %v548_v61, %v5686_v39 }
  0x40   :  { %22060 = vst [vmem:[#allocation115_spill] sm:$0xff] %v13335_v30  ;;  %22061 = vst [vmem:[#allocation116_spill] sm:$0xff] %v13337_v27  ;;  %v13357_v30 = vsub.f32 %v417_v23, %v760_v29  ;;  %v13374_v23 = vsub.f32 %v547_v44, %v5688_v59  ;;  %11184 = vmatprep.subr.bf16.mxu0 %v13351_v48  ;;  %v768_v44 = vand.u32 4294901760, %v421_v16 }
  0x41   :  { %22062 = vst [vmem:[#allocation117_spill] sm:$0xff] %v13339_v25  ;;  %22063 = vst [vmem:[#allocation118_spill] sm:$0xff] %v13343_v38  ;;  %v13355_v56 = vpack.c.bf16 %v764_v4, %v760_v29  ;;  %v423_v38 = vld [vmem:[%s20344_s0 + $0x170] sm:$0xff]  ;;  %v549_v25 = vld [vmem:[%s20344_s0 + $0x560] sm:$0xff]  ;;  %v13368_v55 = vsub.f32 %v419_v22, %v764_v4  ;;  %v13370_v61 = vpack.c.bf16 %v5688_v59, %v5684_v37  ;;  %v5694_v4 = vand.u32 4294901760, %v552_v46 }
  0x42   :  { %22064 = vst [vmem:[#allocation119_spill] sm:$0xff] %v13351_v48  ;;  %22065 = vst [vmem:[#allocation120_spill] sm:$0xff] %v13353_v12  ;;  %v13372_v39 = vsub.f32 %v545_v6, %v5684_v37  ;;  %v551_v29 = vld [vmem:[%s20344_s0 + $0x570] sm:$0xff]  ;;  %v428_v12 = vld [vmem:[%s20344_s0 + $0x198] sm:$0xff]  ;;  %v13387_v22 = vpack.c.bf16 %v770_v21, %v766_v52  ;;  %v13389_v6 = vsub.f32 %v422_v31, %v766_v52  ;;  %v5690_v37 = vand.u32 4294901760, %v550_v10 }
  0x43   :  { %22066 = vst [vmem:[#allocation121_spill] sm:$0xff] %v13355_v56  ;;  %22067 = vst [vmem:[#allocation122_spill] sm:$0xff] %v13357_v30  ;;  %v426_v30 = vld [vmem:[%s20344_s0 + $0x188] sm:$0xff]  ;;  %10418 = vmatpush1.bf16.msra.mxu1 %v13355_v56  ;;  %v13391_v59 = vsub.f32 %v424_v20, %v770_v21  ;;  %11186 = vmatpush1.bf16.msra.mxu0 %v13370_v61  ;;  %v5696_v48 = vand.u32 4294901760, %v551_v29  ;;  %v778_v56 = vand.u32 4294901760, %v428_v12  ;;  %v556_v21 = vld [vmem:[%s20344_s0 + $0x598] sm:$0xff] }
  0x44   :  { %22068 = vst [vmem:[#allocation123_spill] sm:$0xff] %v13368_v55  ;;  %22069 = vst [vmem:[#allocation124_spill] sm:$0xff] %v13370_v61  ;;  %10420 = vmatprep.subr.bf16.mxu1 %v13387_v22  ;;  %v13395_v55 = vsub.f32 %v550_v10, %v5690_v37  ;;  %v774_v27 = vand.u32 4294901760, %v426_v30  ;;  %v554_v31 = vld [vmem:[%s20344_s0 + $0x588] sm:$0xff]  ;;  %v425_v52 = vld [vmem:[%s20344_s0 + $0x180] sm:$0xff]  ;;  %v13406_v20 = vpack.c.bf16 %v5694_v4, %v5690_v37 }
  0x45   :  { %22070 = vst [vmem:[#allocation125_spill] sm:$0xff] %v13372_v39  ;;  %22071 = vst [vmem:[#allocation126_spill] sm:$0xff] %v13374_v23  ;;  %v772_v23 = vand.u32 4294901760, %v423_v38  ;;  %v5692_v39 = vand.u32 4294901760, %v549_v25  ;;  %v13408_v61 = vsub.f32 %v552_v46, %v5694_v4 }
  0x46   :  { %22072 = vst [vmem:[#allocation127_spill] sm:$0xff] %v13387_v22  ;;  %22073 = vst [vmem:[#allocation128_spill] sm:$0xff] %v13389_v6  ;;  %v13412_v22 = vsub.f32 %v421_v16, %v768_v44 }
  0x47   :  { %22074 = vst [vmem:[#allocation129_spill] sm:$0xff] %v13391_v59  ;;  %22075 = vst [vmem:[#allocation130_spill] sm:$0xff] %v13395_v55  ;;  %v13410_v10 = vpack.c.bf16 %v772_v23, %v768_v44  ;;  %v427_v55 = vld [vmem:[%s20344_s0 + $0x190] sm:$0xff]  ;;  %v553_v59 = vld [vmem:[%s20344_s0 + $0x580] sm:$0xff] }
  0x48   :  { %22076 = vst [vmem:[#allocation131_spill] sm:$0xff] %v13406_v20  ;;  %22077 = vst [vmem:[#allocation132_spill] sm:$0xff] %v13408_v61 }
  0x49   :  { %22078 = vst [vmem:[#allocation133_spill] sm:$0xff] %v13410_v10  ;;  %22079 = vst [vmem:[#allocation134_spill] sm:$0xff] %v13412_v22 }
  0x4a   :  { %8 = vsyncpa [#allocation3], 0  ;;  %v13420_v6 = vsub.f32 %v423_v38, %v772_v23  ;;  %v13422_v3 = vpack.c.bf16 %v5696_v48, %v5692_v39  ;;  %v13424_v37 = vsub.f32 %v549_v25, %v5692_v39  ;;  %v13426_v46 = vsub.f32 %v551_v29, %v5696_v48  ;;  %v555_v16 = vld [vmem:[%s20344_s0 + $0x590] sm:$0xff]  ;;  %v430_v4 = vld [vmem:[%s20344_s0 + $0x1a8] sm:$0xff]  ;;  %11188 = vmatprep.subr.bf16.mxu0 %v13406_v20 }
  0x4b   :  { %v432_v44 = vld [vmem:[%s20344_s0 + $0x1b8] sm:$0xff]  ;;  %10422 = vmatpush1.bf16.msra.mxu1 %v13410_v10  ;;  %v13439_v38 = vpack.c.bf16 %v778_v56, %v774_v27  ;;  %v13441_v25 = vsub.f32 %v426_v30, %v774_v27  ;;  %v13443_v48 = vsub.f32 %v428_v12, %v778_v56  ;;  %v5698_v39 = vand.u32 4294901760, %v554_v31  ;;  %v558_v30 = vld [vmem:[%s20344_s0 + $0x5a8] sm:$0xff] }
  0x4c   :  { %22080 = vst [vmem:[#allocation135_spill] sm:$0xff] %v13420_v6  ;;  %22081 = vst [vmem:[#allocation136_spill] sm:$0xff] %v13422_v3  ;;  %11190 = vmatpush1.bf16.msra.mxu0 %v13422_v3  ;;  %v5702_v23 = vand.u32 4294901760, %v556_v21  ;;  %v776_v29 = vand.u32 4294901760, %v425_v52  ;;  %v5704_v20 = vand.u32 4294901760, %v555_v16  ;;  %v782_v22 = vand.u32 4294901760, %v430_v4 }
  0x4d   :  { %22082 = vst [vmem:[#allocation137_spill] sm:$0xff] %v13424_v37  ;;  %22083 = vst [vmem:[#allocation138_spill] sm:$0xff] %v13426_v46  ;;  %v780_v46 = vand.u32 4294901760, %v427_v55  ;;  %v5700_v37 = vand.u32 4294901760, %v553_v59  ;;  %10424 = vmatprep.subr.bf16.mxu1 %v13439_v38  ;;  %v13447_v6 = vsub.f32 %v554_v31, %v5698_v39  ;;  %v786_v10 = vand.u32 4294901760, %v432_v44  ;;  %v560_v56 = vld [vmem:[%s20344_s0 + $0x5b8] sm:$0xff] }
  0x4e   :  { %22084 = vst [vmem:[#allocation139_spill] sm:$0xff] %v13439_v38  ;;  %22085 = vst [vmem:[#allocation140_spill] sm:$0xff] %v13441_v25  ;;  %v13455_v27 = vpack.c.bf16 %v5702_v23, %v5698_v39  ;;  %v13457_v12 = vsub.f32 %v556_v21, %v5702_v23  ;;  %v13461_v38 = vsub.f32 %v425_v52, %v776_v29  ;;  %v429_v31 = vld [vmem:[%s20344_s0 + $0x1a0] sm:$0xff]  ;;  %vm617_vm0 = vcmask 523264  }
  0x4f   :  { %22086 = vst [vmem:[#allocation141_spill] sm:$0xff] %v13443_v48  ;;  %22087 = vst [vmem:[#allocation142_spill] sm:$0xff] %v13447_v6  ;;  %v13459_v3 = vpack.c.bf16 %v780_v46, %v776_v29  ;;  %v431_v6 = vld [vmem:[%s20344_s0 + $0x1b0] sm:$0xff]  ;;  %v557_v48 = vld [vmem:[%s20344_s0 + $0x5a0] sm:$0xff]  ;;  %v13472_v39 = vsub.f32 %v427_v55, %v780_v46  ;;  %v13474_v21 = vpack.c.bf16 %v5704_v20, %v5700_v37  ;;  %v5710_v46 = vand.u32 4294901760, %v560_v56 }
  0x50   :  { %22088 = vst [vmem:[#allocation143_spill] sm:$0xff] %v13455_v27  ;;  %22089 = vst [vmem:[#allocation144_spill] sm:$0xff] %v13457_v12  ;;  %v13476_v23 = vsub.f32 %v553_v59, %v5700_v37  ;;  %v13478_v52 = vsub.f32 %v555_v16, %v5704_v20  ;;  %v559_v29 = vld [vmem:[%s20344_s0 + $0x5b0] sm:$0xff]  ;;  %v436_v12 = vld [vmem:[%s20344_s0 + $0x1d8] sm:$0xff]  ;;  %11192 = vmatprep.subr.bf16.mxu0 %v13455_v27  ;;  %v13491_v55 = vpack.c.bf16 %v786_v10, %v782_v22  ;;  %vm10319_vm1 = vcmask 556032  }
  0x51   :  { %22090 = vst [vmem:[#allocation145_spill] sm:$0xff] %v13459_v3  ;;  %22091 = vst [vmem:[#allocation146_spill] sm:$0xff] %v13461_v38  ;;  %v434_v38 = vld [vmem:[%s20344_s0 + $0x1c8] sm:$0xff]  ;;  %10426 = vmatpush1.bf16.msra.mxu1 %v13459_v3  ;;  %v13493_v59 = vsub.f32 %v430_v4, %v782_v22  ;;  %v13495_v20 = vsub.f32 %v432_v44, %v786_v10  ;;  %v5706_v37 = vand.u32 4294901760, %v558_v30  ;;  %11194 = vmatpush1.bf16.msra.mxu0 %v13474_v21  ;;  %v564_v10 = vld [vmem:[%s20344_s0 + $0x5d8] sm:$0xff] }
  0x52   :  { %22092 = vst [vmem:[#allocation147_spill] sm:$0xff] %v13472_v39  ;;  %22093 = vst [vmem:[#allocation148_spill] sm:$0xff] %v13474_v21  ;;  %v784_v16 = vand.u32 4294901760, %v429_v31  ;;  %10428 = vmatprep.subr.bf16.mxu1 %v13491_v55  ;;  %v5712_v27 = vand.u32 4294901760, %v559_v29  ;;  %v790_v25 = vand.u32 4294901760, %v434_v38  ;;  %v794_v3 = vand.u32 4294901760, %v436_v12 }
  0x53   :  { %22094 = vst [vmem:[#allocation149_spill] sm:$0xff] %v13476_v23  ;;  %22095 = vst [vmem:[#allocation150_spill] sm:$0xff] %v13478_v52  ;;  %v788_v52 = vand.u32 4294901760, %v431_v6  ;;  %v5708_v23 = vand.u32 4294901760, %v557_v48  ;;  %v13499_v39 = vsub.f32 %v558_v30, %v5706_v37  ;;  %v562_v22 = vld [vmem:[%s20344_s0 + $0x5c8] sm:$0xff]  ;;  %v13507_v4 = vpack.c.bf16 %v5710_v46, %v5706_v37  ;;  %v433_v30 = vld [vmem:[%s20344_s0 + $0x1c0] sm:$0xff] }
  0x54   :  { %22096 = vst [vmem:[#allocation151_spill] sm:$0xff] %v13491_v55  ;;  %22097 = vst [vmem:[#allocation152_spill] sm:$0xff] %v13493_v59  ;;  %v13509_v44 = vsub.f32 %v560_v56, %v5710_v46  ;;  %v13513_v55 = vsub.f32 %v429_v31, %v784_v16  ;;  %v13530_v31 = vsub.f32 %v559_v29, %v5712_v27  ;;  %v792_v29 = vand.u32 4294901760, %v433_v30 }
  0x55   :  { %22098 = vst [vmem:[#allocation153_spill] sm:$0xff] %v13495_v20  ;;  %22099 = vst [vmem:[#allocation154_spill] sm:$0xff] %v13499_v39  ;;  %v13511_v21 = vpack.c.bf16 %v788_v52, %v784_v16  ;;  %v435_v39 = vld [vmem:[%s20344_s0 + $0x1d0] sm:$0xff]  ;;  %v561_v20 = vld [vmem:[%s20344_s0 + $0x5c0] sm:$0xff]  ;;  %v13524_v37 = vsub.f32 %v431_v6, %v788_v52  ;;  %v13526_v56 = vpack.c.bf16 %v5712_v27, %v5708_v23  ;;  %11196 = vmatprep.subr.bf16.mxu0 %v13507_v4 }
  0x56   :  { %22100 = vst [vmem:[#allocation155_spill] sm:$0xff] %v13507_v4  ;;  %22101 = vst [vmem:[#allocation156_spill] sm:$0xff] %v13509_v44  ;;  %v13528_v46 = vsub.f32 %v557_v48, %v5708_v23  ;;  %v563_v16 = vld [vmem:[%s20344_s0 + $0x5d0] sm:$0xff]  ;;  %v440_v44 = vld [vmem:[%s20344_s0 + $0x1f8] sm:$0xff]  ;;  %v13543_v6 = vpack.c.bf16 %v794_v3, %v790_v25  ;;  %v13545_v48 = vsub.f32 %v434_v38, %v790_v25  ;;  %v5714_v23 = vand.u32 4294901760, %v562_v22 }
  0x57   :  { %22102 = vst [vmem:[#allocation157_spill] sm:$0xff] %v13511_v21  ;;  %22103 = vst [vmem:[#allocation158_spill] sm:$0xff] %v13513_v55  ;;  %v438_v55 = vld [vmem:[%s20344_s0 + $0x1e8] sm:$0xff]  ;;  %10430 = vmatpush1.bf16.msra.mxu1 %v13511_v21  ;;  %v13547_v27 = vsub.f32 %v436_v12, %v794_v3  ;;  %11198 = vmatpush1.bf16.msra.mxu0 %v13526_v56  ;;  %v5718_v52 = vand.u32 4294901760, %v564_v10  ;;  %v5720_v4 = vand.u32 4294901760, %v563_v16  ;;  %v802_v21 = vand.u32 4294901760, %v440_v44 }
  0x58   :  { %22104 = vst [vmem:[#allocation159_spill] sm:$0xff] %v13524_v37  ;;  %22105 = vst [vmem:[#allocation160_spill] sm:$0xff] %v13526_v56  ;;  %10432 = vmatprep.subr.bf16.mxu1 %v13543_v6  ;;  %v13551_v37 = vsub.f32 %v562_v22, %v5714_v23  ;;  %v798_v59 = vand.u32 4294901760, %v438_v55  ;;  %v566_v38 = vld [vmem:[%s20344_s0 + $0x5e8] sm:$0xff]  ;;  %v568_v3 = vld [vmem:[%s20344_s0 + $0x5f8] sm:$0xff] }
  0x59   :  { %22106 = vst [vmem:[#allocation161_spill] sm:$0xff] %v13528_v46  ;;  %22107 = vst [vmem:[#allocation162_spill] sm:$0xff] %v13530_v31  ;;  %v796_v31 = vand.u32 4294901760, %v435_v39  ;;  %v5716_v46 = vand.u32 4294901760, %v561_v20  ;;  %v13559_v25 = vpack.c.bf16 %v5718_v52, %v5714_v23  ;;  %v13561_v12 = vsub.f32 %v564_v10, %v5718_v52  ;;  %v437_v22 = vld [vmem:[%s20344_s0 + $0x1e0] sm:$0xff] }
  0x5a   :  { %22108 = vst [vmem:[#allocation163_spill] sm:$0xff] %v13543_v6  ;;  %22109 = vst [vmem:[#allocation164_spill] sm:$0xff] %v13545_v48  ;;  %v13565_v6 = vsub.f32 %v433_v30, %v792_v29  ;;  %v13582_v30 = vsub.f32 %v563_v16, %v5720_v4 }
  0x5b   :  { %22110 = vst [vmem:[#allocation165_spill] sm:$0xff] %v13547_v27  ;;  %22111 = vst [vmem:[#allocation166_spill] sm:$0xff] %v13551_v37  ;;  %v13563_v56 = vpack.c.bf16 %v796_v31, %v792_v29  ;;  %v439_v37 = vld [vmem:[%s20344_s0 + $0x1f0] sm:$0xff]  ;;  %v565_v27 = vld [vmem:[%s20344_s0 + $0x5e0] sm:$0xff]  ;;  %v13576_v23 = vsub.f32 %v435_v39, %v796_v31  ;;  %v13578_v10 = vpack.c.bf16 %v5720_v4, %v5716_v46  ;;  %11200 = vmatprep.subr.bf16.mxu0 %v13559_v25 }
  0x5c   :  { %22112 = vst [vmem:[#allocation167_spill] sm:$0xff] %v13559_v25  ;;  %22113 = vst [vmem:[#allocation168_spill] sm:$0xff] %v13561_v12  ;;  %v13580_v52 = vsub.f32 %v561_v20, %v5716_v46  ;;  %v567_v29 = vld [vmem:[%s20344_s0 + $0x5f0] sm:$0xff]  ;;  %v13591_v12 = vsub.f32 %v438_v55, %v798_v59  ;;  %v13593_v39 = vsub.f32 %v440_v44, %v802_v21  ;;  %v5722_v31 = vand.u32 4294901760, %v566_v38 }
  0x5d   :  { %22114 = vst [vmem:[#allocation169_spill] sm:$0xff] %v13563_v56  ;;  %22115 = vst [vmem:[#allocation170_spill] sm:$0xff] %v13565_v6  ;;  %10434 = vmatpush1.bf16.msra.mxu1 %v13563_v56  ;;  %v13589_v6 = vpack.c.bf16 %v802_v21, %v798_v59  ;;  %11202 = vmatpush1.bf16.msra.mxu0 %v13578_v10  ;;  %v5726_v20 = vand.u32 4294901760, %v568_v3  ;;  %v800_v4 = vand.u32 4294901760, %v437_v22  ;;  %v804_v46 = vand.u32 4294901760, %v439_v37 }
  0x5e   :  { %22116 = vst [vmem:[#allocation171_spill] sm:$0xff] %v13576_v23  ;;  %22117 = vst [vmem:[#allocation172_spill] sm:$0xff] %v13578_v10  ;;  %v5724_v16 = vand.u32 4294901760, %v565_v27  ;;  %v5728_v25 = vand.u32 4294901760, %v567_v29  ;;  %v20553_v55 = vand.u32 4294901760, %v12815_v17 }
  0x5f   :  { %22118 = vst [vmem:[#allocation173_spill] sm:$0xff] %v13580_v52  ;;  %22119 = vst [vmem:[#allocation174_spill] sm:$0xff] %v13582_v30  ;;  %10436 = vmatprep.subr.bf16.mxu1 %v13589_v6  ;;  %v13597_v30 = vsub.f32 %v566_v38, %v5722_v31  ;;  %v22124_v52 = vlaneseq  ;;  %v13603_v59 = vpack.c.bf16 %v5726_v20, %v5722_v31  ;;  %v13605_v21 = vsub.f32 %v568_v3, %v5726_v20  ;;  %v16_v3 = vld [vmem:[%s20346_s2 + $0x8] sm:$0xff]  ;;  %v15_v31 = vld [vmem:[%s20346_s2] sm:$0xff] }
  0x60   :  { %22120 = vst [vmem:[#allocation175_spill] sm:$0xff] %v13589_v6  ;;  %22121 = vst [vmem:[#allocation176_spill] sm:$0xff] %v13591_v12  ;;  %v13607_v44 = vpack.c.bf16 %v804_v46, %v800_v4  ;;  %v13609_v10 = vsub.f32 %v437_v22, %v800_v4  ;;  %v13613_v12 = vpack.c.bf16 %v5728_v25, %v5724_v16  ;;  %v20566_v20 = vand.u32 4294901760, %v12817_v18 }
  0x61   :  { %22122 = vst [vmem:[#allocation177_spill] sm:$0xff] %v13593_v39  ;;  %22123 = vst [vmem:[#allocation178_spill] sm:$0xff] %v13597_v30  ;;  %v13600_v56 = vshrl.u32 %v22124_v52, 7  ;;  %v13611_v39 = vsub.f32 %v439_v37, %v804_v46  ;;  %v13615_v38 = vsub.f32 %v565_v27, %v5724_v16  ;;  %v13617_v6 = vsub.f32 %v567_v29, %v5728_v25  ;;  %v175_v52 = vld [vmem:[%s20345_s1] sm:$0xff]  ;;  %v20_v29 = vld [vmem:[%s20346_s2 + $0x28] sm:$0xff] }
  0x62   :  { %22126 = vst [vmem:[#allocation180_spill] sm:$0xff] %v13603_v59  ;;  %22127 = vst [vmem:[#allocation181_spill] sm:$0xff] %v13605_v21  ;;  %11204 = vmatprep.subr.bf16.mxu0 %v13603_v59  ;;  %10438 = vmatpush1.bf16.msra.mxu1 %v13607_v44  ;;  %v1130_v25 = vsub.f32 %v12815_v17, %v20553_v55  ;;  %v20569_v46 = vand.u32 4294901760, %v12819_v19  ;;  %v20572_v16 = vand.u32 4294901760, %v12832_v24  ;;  %v19_v17 = vld [vmem:[%s20346_s2 + $0x20] sm:$0xff] }
  0x63   :  { %22125 = vst [vmem:[#allocation179_spill] sm:$0xff] %v13600_v56  ;;  %22128 = vst [vmem:[#allocation182_spill] sm:$0xff] %v13607_v44  ;;  %v183_v37 = vsub.s32 1, %v13600_v56  ;;  %v199_v22 = vsub.s32 5, %v13600_v56  ;;  %v179_v27 = vsub.s32 0, %v13600_v56  ;;  %11206 = vmatpush1.bf16.msra.mxu0 %v13613_v12  ;;  %v195_v4 = vsub.s32 4, %v13600_v56 }
  0x64   :  { %22129 = vst [vmem:[#allocation183_spill] sm:$0xff] %v13609_v10  ;;  %22130 = vst [vmem:[#allocation184_spill] sm:$0xff] %v13611_v39  ;;  %v1131_v59 = vand.u32 4294901760, %v1130_v25  ;;  %v20575_v39 = vand.u32 4294901760, %v12836_v26 }
  0x65   :  { %22131 = vst [vmem:[#allocation185_spill] sm:$0xff] %v13613_v12  ;;  %22132 = vst [vmem:[#allocation186_spill] sm:$0xff] %v13615_v38  ;;  %v13644_v44 = vrot.slane %v175_v52, %v183_v37  ;;  %v13646_v55 = vrot.slane %v175_v52, %v199_v22  ;;  %v13648_v12 = vrot.slane %v175_v52, %v179_v27 }
  0x66   :  { %22133 = vst [vmem:[#allocation187_spill] sm:$0xff] %v13617_v6  ;;  %v1142_v6 = vsub.f32 %v12817_v18, %v20566_v20  ;;  %v13656_v56 = vrot.slane %v175_v52, %v195_v4  ;;  %v6054_v37 = vsub.f32 %v12819_v19, %v20569_v46  ;;  %v6066_v22 = vsub.f32 %v12832_v24, %v20572_v16 }
  0x67   :  { %v218_v27 = vmul.f32 %v13644_v44, %v16_v3  ;;  %v222_v25 = vmul.f32 %v13646_v55, %v20_v29  ;;  %v217_v38 = vmul.f32 %v13648_v12, %v15_v31  ;;  %v1136_v3 = vsub.f32 %v12836_v26, %v20575_v39 }
  0x68   :  { %v1143_v10 = vand.u32 4294901760, %v1142_v6  ;;  %v221_v52 = vmul.f32 %v13656_v56, %v19_v17  ;;  %v6055_v4 = vand.u32 4294901760, %v6054_v37  ;;  %v6067_v20 = vand.u32 4294901760, %v6066_v22  ;;  %v24_v17 = vld [vmem:[%s20346_s2 + $0x48] sm:$0xff] }
  0x69   :  { %v13669_v18 = vand.u32 4294901760, %v218_v27  ;;  %v13671_v46 = vand.u32 4294901760, %v222_v25  ;;  %v13673_v19 = vand.u32 4294901760, %v217_v38  ;;  %v20576_v6 = vand.u32 4294901760, %v12842_v28 }
  0x6a   :  { %v10439_v29 = vpack.c.bf16 %v1143_v10, %v1131_v59  ;;  %v13678_v16 = vand.u32 4294901760, %v221_v52  ;;  %v11207_v31 = vpack.c.bf16 %v6067_v20, %v6055_v4  ;;  %v1137_v39 = vand.u32 4294901760, %v1136_v3 }
  0x6b   :  { %22134 = vst [vmem:[#allocation188_spill] sm:$0xff] %v13669_v18  ;;  %22135 = vst [vmem:[#allocation189_spill] sm:$0xff] %v13671_v46  ;;  %v13685_v37 = vsub.f32 %v218_v27, %v13669_v18  ;;  %v13688_v22 = vsub.f32 %v222_v25, %v13671_v46  ;;  %v13691_v24 = vsub.f32 %v217_v38, %v13673_v19  ;;  %v20579_v20 = vand.u32 4294901760, %v12857_v40 }
  0x6c   :  { %22136 = vst [vmem:[#allocation190_spill] sm:$0xff] %v13673_v19  ;;  %22137 = vst [vmem:[#allocation191_spill] sm:$0xff] %v13678_v16  ;;  %10440 = vmatprep.subr.bf16.mxu1 %v10439_v29  ;;  %v13694_v10 = vsub.f32 %v221_v52, %v13678_v16  ;;  %11208 = vmatprep.subr.bf16.mxu0 %v11207_v31  ;;  %v1148_v59 = vsub.f32 %v12842_v28, %v20576_v6  ;;  %v20580_v27 = vand.u32 4294901760, %v12859_v41 }
  0x6d   :  { %22138 = vst [vmem:[#allocation192_spill] sm:$0xff] %v13685_v37  ;;  %22139 = vst [vmem:[#allocation193_spill] sm:$0xff] %v13688_v22  ;;  %v20581_v25 = vand.u32 4294901760, %v13685_v37  ;;  %v20586_v4 = vand.u32 4294901760, %v13688_v22  ;;  %v226_v3 = vmul.f32 %v13644_v44, %v24_v17  ;;  %v6060_v31 = vsub.f32 %v12857_v40, %v20579_v20  ;;  %v28_v20 = vld [vmem:[%s20346_s2 + $0x68] sm:$0xff] }
  0x6e   :  { %22140 = vst [vmem:[#allocation194_spill] sm:$0xff] %v13691_v24  ;;  %22141 = vst [vmem:[#allocation195_spill] sm:$0xff] %v13694_v10  ;;  %v1149_v29 = vand.u32 4294901760, %v1148_v59  ;;  %v6072_v6 = vsub.f32 %v12859_v41, %v20580_v27  ;;  %v22142_v17 = vand.u32 4294901760, %v13691_v24  ;;  %v23_v27 = vld [vmem:[%s20346_s2 + $0x40] sm:$0xff]  ;;  %v230_v18 = vmul.f32 %v13646_v55, %v28_v20 }
  0x6f   :  { %v809_v16 = vsub.f32 %v13685_v37, %v20581_v25  ;;  %v5733_v38 = vsub.f32 %v13688_v22, %v20586_v4  ;;  %v13721_v52 = vand.u32 4294901760, %v226_v3  ;;  %v22144_v25 = vand.u32 4294901760, %v13694_v10 }
  0x70   :  { %v815_v59 = vsub.f32 %v13691_v24, %v22142_v17  ;;  %v10441_v41 = vpack.c.bf16 %v1149_v29, %v1137_v39  ;;  %v6061_v4 = vand.u32 4294901760, %v6060_v31  ;;  %v6073_v22 = vand.u32 4294901760, %v6072_v6  ;;  %v27_v17 = vld [vmem:[%s20346_s2 + $0x60] sm:$0xff] }
  0x71   :  { %22143 = vst [vmem:[#allocation196_spill] sm:$0xff] %v13721_v52  ;;  %v5739_v37 = vsub.f32 %v13694_v10, %v22144_v25  ;;  %v810_v24 = vand.u32 4294901760, %v809_v16  ;;  %v5734_v40 = vand.u32 4294901760, %v5733_v38  ;;  %v13736_v46 = vsub.f32 %v226_v3, %v13721_v52 }
  0x72   :  { %v816_v19 = vand.u32 4294901760, %v815_v59  ;;  %v11209_v26 = vpack.c.bf16 %v6073_v22, %v6061_v4  ;;  %v225_v21 = vmul.f32 %v13648_v12, %v23_v27  ;;  %v229_v6 = vmul.f32 %v13656_v56, %v27_v17 }
  0x73   :  { %22145 = vst [vmem:[#allocation197_spill] sm:$0xff] %v13736_v46  ;;  %v5740_v28 = vand.u32 4294901760, %v5739_v37  ;;  %811 = vmatprep.mubr.f32.mxu1 %v810_v24  ;;  %5735 = vmatprep.mubr.f32.mxu0 %v5734_v40  ;;  %v20604_v39 = vand.u32 4294901760, %v13736_v46  ;;  %v20607_v25 = vand.u32 4294901760, %v12861_v42  ;;  %v20605_v16 = vand.u32 4294901760, %v12874_v47 }
  0x74   :  { %817 = vmatmul.mubr.f32.vlgmr.msra.gmra.mrb[0].mxu1 %v816_v19  ;;  %v13744_v38 = vand.u32 4294901760, %v230_v18  ;;  %v13746_v37 = vand.u32 4294901760, %v225_v21  ;;  %v20606_v22 = vand.u32 4294901760, %v12878_v49  ;;  %v20608_v20 = vand.u32 4294901760, %v12884_v51 }
  0x75   :  { %5741 = vmatmul.mubr.f32.vlgmr.msra.gmra.mrb[0].mxu0 %v5740_v28  ;;  %10442 = vmatpush1.bf16.msra.mxu1 %v10441_v41  ;;  %v825_v24 = vsub.f32 %v13736_v46, %v20604_v39  ;;  %v13753_v40 = vand.u32 4294901760, %v229_v6  ;;  %v1154_v19 = vsub.f32 %v12861_v42, %v20607_v25  ;;  %v1166_v28 = vsub.f32 %v12874_v47, %v20605_v16 }
  0x76   :  { %22146 = vst [vmem:[#allocation198_spill] sm:$0xff] %v13744_v38  ;;  %22147 = vst [vmem:[#allocation199_spill] sm:$0xff] %v13746_v37  ;;  %11210 = vmatpush1.bf16.msra.mxu0 %v11209_v26  ;;  %v13762_v27 = vsub.f32 %v230_v18, %v13744_v38  ;;  %v13765_v41 = vsub.f32 %v225_v21, %v13746_v37  ;;  %v6078_v26 = vsub.f32 %v12878_v49, %v20606_v22 }
  0x77   :  { %22148 = vst [vmem:[#allocation200_spill] sm:$0xff] %v13753_v40  ;;  %v6090_v4 = vsub.f32 %v12884_v51, %v20608_v20  ;;  %v826_v3 = vand.u32 4294901760, %v825_v24  ;;  %v13774_v29 = vsub.f32 %v229_v6, %v13753_v40  ;;  %v1155_v31 = vand.u32 4294901760, %v1154_v19  ;;  %v32_v6 = vld [vmem:[%s20346_s2 + $0x88] sm:$0xff] }
  0x78   :  { %22149 = vst [vmem:[#allocation201_spill] sm:$0xff] %v13762_v27  ;;  %22150 = vst [vmem:[#allocation202_spill] sm:$0xff] %v13765_v41  ;;  %v1167_v59 = vand.u32 4294901760, %v1166_v28  ;;  %v20611_v18 = vand.u32 4294901760, %v13762_v27  ;;  %v20610_v17 = vand.u32 4294901760, %v13765_v41  ;;  %v6079_v21 = vand.u32 4294901760, %v6078_v26 }
  0x79   :  { %22151 = vst [vmem:[#allocation203_spill] sm:$0xff] %v13774_v29  ;;  %v6091_v39 = vand.u32 4294901760, %v6090_v4  ;;  %827 = vmatprep.mubr.f32.mxu1 %v826_v3  ;;  %v20609_v16 = vand.u32 4294901760, %v13774_v29  ;;  %v20613_v25 = vand.u32 4294901760, %v12886_v53  ;;  %v20612_v20 = vand.u32 4294901760, %v12898_v62 }
  0x7a   :  { %v10443_v22 = vpack.c.bf16 %v1167_v59, %v1155_v31  ;;  %v5749_v24 = vsub.f32 %v13762_v27, %v20611_v18  ;;  %v831_v19 = vsub.f32 %v13765_v41, %v20610_v17  ;;  %v20620_v26 = vand.u32 4294901760, %v12900_v63 }
  0x7b   :  { %v11211_v28 = vpack.c.bf16 %v6091_v39, %v6079_v21  ;;  %v5755_v4 = vsub.f32 %v13774_v29, %v20609_v16  ;;  %v1160_v3 = vsub.f32 %v12886_v53, %v20613_v25  ;;  %v1172_v31 = vsub.f32 %v12898_v62, %v20612_v20  ;;  %v36_v39 = vld [vmem:[%s20346_s2 + $0xa8] sm:$0xff]  ;;  %v31_v21 = vld [vmem:[%s20346_s2 + $0x80] sm:$0xff] }
  0x7c   :  { %10444 = vmatprep.subr.bf16.mxu1 %v10443_v22  ;;  %v5750_v16 = vand.u32 4294901760, %v5749_v24  ;;  %v832_v22 = vand.u32 4294901760, %v831_v19  ;;  %v6084_v17 = vsub.f32 %v12900_v63, %v20620_v26  ;;  %v234_v18 = vmul.f32 %v13644_v44, %v32_v6  ;;  %v35_v20 = vld [vmem:[%s20346_s2 + $0xa0] sm:$0xff] }
  0x7d   :  { %11212 = vmatprep.subr.bf16.mxu0 %v11211_v28  ;;  %v5756_v25 = vand.u32 4294901760, %v5755_v4  ;;  %v1161_v59 = vand.u32 4294901760, %v1160_v3  ;;  %v1173_v29 = vand.u32 4294901760, %v1172_v31  ;;  %v22152_v41 = vand.u32 4294901760, %v12913_v5 }
  0x7e   :  { %5751 = vmatprep.mubr.f32.mxu0 %v5750_v16  ;;  %833 = vmatmul.mubr.f32.gmra.mrb[2].mxu1 %v832_v22  ;;  %v6085_v24 = vand.u32 4294901760, %v6084_v17  ;;  %v13817_v19 = vand.u32 4294901760, %v234_v18  ;;  %v238_v28 = vmul.f32 %v13646_v55, %v36_v39  ;;  %v233_v6 = vmul.f32 %v13648_v12, %v31_v21 }
  0x7f   :  { %v6096_v27 = vsub.f32 %v12913_v5, %v22152_v41  ;;  %5757 = vmatmul.mubr.f32.gmra.mrb[2].mxu0 %v5756_v25  ;;  %v10445_v26 = vpack.c.bf16 %v1173_v29, %v1161_v59  ;;  %v237_v4 = vmul.f32 %v13656_v56, %v35_v20  ;;  %v20624_v3 = vand.u32 4294901760, %v12917_v7 }
  0x80   :  { %22153 = vst [vmem:[#allocation204_spill] sm:$0xff] %v13817_v19  ;;  %v13824_v31 = vsub.f32 %v234_v18, %v13817_v19  ;;  %v13826_v41 = vand.u32 4294901760, %v238_v28  ;;  %v13828_v16 = vand.u32 4294901760, %v233_v6  ;;  %v20623_v17 = vand.u32 4294901760, %v12929_v11 }
  0x81   :  { %v6097_v10 = vand.u32 4294901760, %v6096_v27  ;;  %10446 = vmatpush1.bf16.msra.mxu1 %v10445_v26  ;;  %v13831_v22 = vand.u32 4294901760, %v237_v4  ;;  %v1178_v25 = vsub.f32 %v12917_v7, %v20624_v3  ;;  %v20627_v20 = vand.u32 4294901760, %v12933_v13  ;;  %v40_v26 = vld [vmem:[%s20346_s2 + $0xc8] sm:$0xff] }
  0x82   :  { %22154 = vst [vmem:[#allocation205_spill] sm:$0xff] %v13824_v31  ;;  %22155 = vst [vmem:[#allocation206_spill] sm:$0xff] %v13826_v41  ;;  %v20632_v27 = vand.u32 4294901760, %v13824_v31  ;;  %v13839_v29 = vsub.f32 %v238_v28, %v13826_v41  ;;  %v13842_v18 = vsub.f32 %v233_v6, %v13828_v16  ;;  %v20633_v28 = vand.u32 4294901760, %v12935_v14 }
  0x83   :  { %22156 = vst [vmem:[#allocation207_spill] sm:$0xff] %v13828_v16  ;;  %v11213_v39 = vpack.c.bf16 %v6097_v10, %v6085_v24  ;;  %22157 = vst [vmem:[#allocation208_spill] sm:$0xff] %v13831_v22  ;;  %v1190_v10 = vsub.f32 %v12929_v11, %v20623_v17  ;;  %v13851_v59 = vsub.f32 %v237_v4, %v13831_v22  ;;  %v1179_v21 = vand.u32 4294901760, %v1178_v25  ;;  %v44_v22 = vld [vmem:[%s20346_s2 + $0xe8] sm:$0xff] }
  0x84   :  { %22158 = vst [vmem:[#allocation209_spill] sm:$0xff] %v13839_v29  ;;  %22159 = vst [vmem:[#allocation210_spill] sm:$0xff] %v13842_v18  ;;  %v6102_v24 = vsub.f32 %v12933_v13, %v20627_v20  ;;  %v841_v6 = vsub.f32 %v13824_v31, %v20632_v27  ;;  %v20640_v17 = vand.u32 4294901760, %v13839_v29  ;;  %v20644_v3 = vand.u32 4294901760, %v13842_v18 }
  0x85   :  { %11214 = vmatpush1.bf16.msra.mxu0 %v11213_v39  ;;  %22160 = vst [vmem:[#allocation211_spill] sm:$0xff] %v13851_v59  ;;  %v1191_v46 = vand.u32 4294901760, %v1190_v10  ;;  %v20643_v39 = vand.u32 4294901760, %v13851_v59  ;;  %v6114_v25 = vsub.f32 %v12935_v14, %v20633_v28  ;;  %v242_v20 = vmul.f32 %v13644_v44, %v40_v26 }
  0x86   :  { %v6103_v4 = vand.u32 4294901760, %v6102_v24  ;;  %v842_v16 = vand.u32 4294901760, %v841_v6  ;;  %v5765_v27 = vsub.f32 %v13839_v29, %v20640_v17  ;;  %v847_v10 = vsub.f32 %v13842_v18, %v20644_v3 }
  0x87   :  { %v10447_v24 = vpack.c.bf16 %v1191_v46, %v1179_v21  ;;  %v5771_v28 = vsub.f32 %v13851_v59, %v20643_v39  ;;  %v6115_v31 = vand.u32 4294901760, %v6114_v25  ;;  %v13879_v26 = vand.u32 4294901760, %v242_v20  ;;  %v39_v46 = vld [vmem:[%s20346_s2 + $0xc0] sm:$0xff] }
  0x88   :  { %v20646_v41 = vand.u32 4294901760, %v12945_v35  ;;  %843 = vmatprep.mubr.f32.mxu1 %v842_v16  ;;  %v5766_v6 = vand.u32 4294901760, %v5765_v27  ;;  %v848_v40 = vand.u32 4294901760, %v847_v10  ;;  %v20645_v17 = vand.u32 4294901760, %v12947_v36  ;;  %v43_v21 = vld [vmem:[%s20346_s2 + $0xe0] sm:$0xff] }
  0x89   :  { %22161 = vst [vmem:[#allocation212_spill] sm:$0xff] %v13879_v26  ;;  %10448 = vmatprep.subr.bf16.mxu1 %v10447_v24  ;;  %v246_v29 = vmul.f32 %v13646_v55, %v44_v22  ;;  %v5772_v25 = vand.u32 4294901760, %v5771_v28  ;;  %v11215_v39 = vpack.c.bf16 %v6115_v31, %v6103_v4  ;;  %v13891_v3 = vsub.f32 %v242_v20, %v13879_v26  ;;  %v48_v31 = vld [vmem:[%s20346_s2 + $0x108] sm:$0xff] }
  0x8a   :  { %v1184_v16 = vsub.f32 %v12945_v35, %v20646_v41  ;;  %5767 = vmatprep.mubr.f32.mxu0 %v5766_v6  ;;  %849 = vmatmul.mubr.f32.gmra.mrb[4].mxu1 %v848_v40  ;;  %v1196_v22 = vsub.f32 %v12947_v36, %v20645_v17  ;;  %v20651_v10 = vand.u32 4294901760, %v12960_v45  ;;  %v20652_v28 = vand.u32 4294901760, %v12962_v50 }
  0x8b   :  { %22162 = vst [vmem:[#allocation213_spill] sm:$0xff] %v13891_v3  ;;  %v13899_v27 = vand.u32 4294901760, %v246_v29  ;;  %5773 = vmatmul.mubr.f32.gmra.mrb[4].mxu0 %v5772_v25  ;;  %11216 = vmatprep.subr.bf16.mxu0 %v11215_v39  ;;  %v20655_v20 = vand.u32 4294901760, %v13891_v3  ;;  %v241_v40 = vmul.f32 %v13648_v12, %v39_v46  ;;  %v245_v24 = vmul.f32 %v13656_v56, %v43_v21 }
  0x8c   :  { %v1185_v4 = vand.u32 4294901760, %v1184_v16  ;;  %v1197_v6 = vand.u32 4294901760, %v1196_v22  ;;  %v6108_v41 = vsub.f32 %v12960_v45, %v20651_v10  ;;  %v6120_v25 = vsub.f32 %v12962_v50, %v20652_v28  ;;  %v52_v10 = vld [vmem:[%s20346_s2 + $0x128] sm:$0xff] }
  0x8d   :  { %22163 = vst [vmem:[#allocation214_spill] sm:$0xff] %v13899_v27  ;;  %v13910_v17 = vsub.f32 %v246_v29, %v13899_v27  ;;  %v857_v39 = vsub.f32 %v13891_v3, %v20655_v20  ;;  %v13921_v16 = vand.u32 4294901760, %v241_v40  ;;  %v13923_v46 = vand.u32 4294901760, %v245_v24 }
  0x8e   :  { %v250_v21 = vmul.f32 %v13644_v44, %v48_v31  ;;  %v10449_v29 = vpack.c.bf16 %v1197_v6, %v1185_v4  ;;  %v6109_v59 = vand.u32 4294901760, %v6108_v41  ;;  %v6121_v18 = vand.u32 4294901760, %v6120_v25 }
  0x8f   :  { %22164 = vst [vmem:[#allocation215_spill] sm:$0xff] %v13910_v17  ;;  %22165 = vst [vmem:[#allocation216_spill] sm:$0xff] %v13921_v16  ;;  %v20658_v22 = vand.u32 4294901760, %v13910_v17  ;;  %v858_v28 = vand.u32 4294901760, %v857_v39  ;;  %v13931_v27 = vsub.f32 %v241_v40, %v13921_v16  ;;  %v13934_v20 = vsub.f32 %v245_v24, %v13923_v46 }
  0x90   :  { %22166 = vst [vmem:[#allocation217_spill] sm:$0xff] %v13923_v46  ;;  %v13936_v3 = vand.u32 4294901760, %v250_v21  ;;  %10450 = vmatpush1.bf16.msra.mxu1 %v10449_v29  ;;  %v11217_v41 = vpack.c.bf16 %v6121_v18, %v6109_v59  ;;  %v20660_v4 = vand.u32 4294901760, %v12966_v54  ;;  %v20659_v6 = vand.u32 4294901760, %v12979_v58 }
  0x91   :  { %22167 = vst [vmem:[#allocation218_spill] sm:$0xff] %v13931_v27  ;;  %22168 = vst [vmem:[#allocation219_spill] sm:$0xff] %v13934_v20  ;;  %v5781_v31 = vsub.f32 %v13910_v17, %v20658_v22  ;;  %859 = vmatprep.mubr.f32.mxu1 %v858_v28  ;;  %v20663_v25 = vand.u32 4294901760, %v13931_v27  ;;  %v20668_v40 = vand.u32 4294901760, %v13934_v20  ;;  %v254_v39 = vmul.f32 %v13646_v55, %v52_v10 }
  0x92   :  { %22169 = vst [vmem:[#allocation220_spill] sm:$0xff] %v13936_v3  ;;  %v13946_v24 = vsub.f32 %v250_v21, %v13936_v3  ;;  %11218 = vmatpush1.bf16.msra.mxu0 %v11217_v41  ;;  %v1202_v18 = vsub.f32 %v12966_v54, %v20660_v4  ;;  %v1214_v59 = vsub.f32 %v12979_v58, %v20659_v6  ;;  %v20671_v28 = vand.u32 4294901760, %v12983_v60  ;;  %v47_v41 = vld [vmem:[%s20346_s2 + $0x100] sm:$0xff] }
  0x93   :  { %v5782_v29 = vand.u32 4294901760, %v5781_v31  ;;  %v863_v22 = vsub.f32 %v13931_v27, %v20663_v25  ;;  %v5787_v10 = vsub.f32 %v13934_v20, %v20668_v40  ;;  %v13963_v31 = vand.u32 4294901760, %v254_v39 }
  0x94   :  { %22170 = vst [vmem:[#allocation221_spill] sm:$0xff] %v13946_v24  ;;  %v20672_v21 = vand.u32 4294901760, %v13946_v24  ;;  %v1203_v6 = vand.u32 4294901760, %v1202_v18  ;;  %v1215_v4 = vand.u32 4294901760, %v1214_v59  ;;  %v6126_v17 = vsub.f32 %v12983_v60, %v20671_v28 }
  0x95   :  { %22171 = vst [vmem:[#allocation222_spill] sm:$0xff] %v13963_v31  ;;  %5783 = vmatprep.mubr.f32.mxu0 %v5782_v29  ;;  %v20682_v25 = vand.u32 4294901760, %v12986_v1  ;;  %v864_v27 = vand.u32 4294901760, %v863_v22  ;;  %v5788_v46 = vand.u32 4294901760, %v5787_v10  ;;  %v13976_v20 = vsub.f32 %v254_v39, %v13963_v31  ;;  %v51_v29 = vld [vmem:[%s20346_s2 + $0x120] sm:$0xff] }
  0x96   :  { %v873_v40 = vsub.f32 %v13946_v24, %v20672_v21  ;;  %v10451_v18 = vpack.c.bf16 %v1215_v4, %v1203_v6  ;;  %v6127_v59 = vand.u32 4294901760, %v6126_v17  ;;  %v249_v22 = vmul.f32 %v13648_v12, %v47_v41 }
  0x97   :  { %22172 = vst [vmem:[#allocation223_spill] sm:$0xff] %v13976_v20  ;;  %v6138_v28 = vsub.f32 %v12986_v1, %v20682_v25  ;;  %865 = vmatmul.mubr.f32.gmra.mrb[6].mxu1 %v864_v27  ;;  %5789 = vmatmul.mubr.f32.gmra.mrb[6].mxu0 %v5788_v46  ;;  %v20679_v21 = vand.u32 4294901760, %v13976_v20  ;;  %v20681_v39 = vand.u32 4294901760, %v12992_v8  ;;  %v20680_v24 = vand.u32 4294901760, %v13005_v32 }
  0x98   :  { %v874_v10 = vand.u32 4294901760, %v873_v40  ;;  %10452 = vmatprep.subr.bf16.mxu1 %v10451_v18  ;;  %v13988_v3 = vand.u32 4294901760, %v249_v22  ;;  %v253_v17 = vmul.f32 %v13656_v56, %v51_v29  ;;  %v20683_v4 = vand.u32 4294901760, %v13009_v15 }
  0x99   :  { %v6139_v31 = vand.u32 4294901760, %v6138_v28  ;;  %v5797_v27 = vsub.f32 %v13976_v20, %v20679_v21  ;;  %v1208_v46 = vsub.f32 %v12992_v8, %v20681_v39  ;;  %v1220_v6 = vsub.f32 %v13005_v32, %v20680_v24  ;;  %v56_v28 = vld [vmem:[%s20346_s2 + $0x148] sm:$0xff]  ;;  %v55_v24 = vld [vmem:[%s20346_s2 + $0x140] sm:$0xff] }
  0x9a   :  { %22173 = vst [vmem:[#allocation224_spill] sm:$0xff] %v13988_v3  ;;  %875 = vmatprep.mubr.f32.mxu1 %v874_v10  ;;  %v20692_v40 = vand.u32 4294901760, %v13020_v0  ;;  %v14006_v29 = vsub.f32 %v249_v22, %v13988_v3  ;;  %v14008_v18 = vand.u32 4294901760, %v253_v17  ;;  %v6132_v10 = vsub.f32 %v13009_v15, %v20683_v4  ;;  %v60_v21 = vld [vmem:[%s20346_s2 + $0x168] sm:$0xff] }
  0x9b   :  { %v11219_v41 = vpack.c.bf16 %v6139_v31, %v6127_v59  ;;  %v5798_v39 = vand.u32 4294901760, %v5797_v27  ;;  %v1209_v25 = vand.u32 4294901760, %v1208_v46  ;;  %v1221_v31 = vand.u32 4294901760, %v1220_v6 }
  0x9c   :  { %22174 = vst [vmem:[#allocation225_spill] sm:$0xff] %v14006_v29  ;;  %22175 = vst [vmem:[#allocation226_spill] sm:$0xff] %v14008_v18  ;;  %v6144_v59 = vsub.f32 %v13020_v0, %v20692_v40  ;;  %v20693_v22 = vand.u32 4294901760, %v14006_v29  ;;  %v14024_v4 = vsub.f32 %v253_v17, %v14008_v18  ;;  %v6133_v20 = vand.u32 4294901760, %v6132_v10  ;;  %v22369_v0 = vld [vmem:[#allocation161_spill] sm:$0xff] }
  0x9d   :  { %11220 = vmatprep.subr.bf16.mxu0 %v11219_v41  ;;  %v258_v3 = vmul.f32 %v13644_v44, %v56_v28  ;;  %5799 = vmatprep.mubr.f32.mxu0 %v5798_v39  ;;  %v10453_v16 = vpack.c.bf16 %v1221_v31, %v1209_v25  ;;  %v262_v27 = vmul.f32 %v13646_v55, %v60_v21  ;;  %v20697_v17 = vand.u32 4294901760, %v13024_v2  ;;  %v59_v39 = vld [vmem:[%s20346_s2 + $0x160] sm:$0xff] }
  0x9e   :  { %22176 = vst [vmem:[#allocation227_spill] sm:$0xff] %v14024_v4  ;;  %v6145_v15 = vand.u32 4294901760, %v6144_v59  ;;  %v257_v46 = vmul.f32 %v13648_v12, %v55_v24  ;;  %v879_v6 = vsub.f32 %v14006_v29, %v20693_v22  ;;  %v20694_v41 = vand.u32 4294901760, %v14024_v4 }
  0x9f   :  { %v14033_v40 = vand.u32 4294901760, %v258_v3  ;;  %10454 = vmatpush1.bf16.msra.mxu1 %v10453_v16  ;;  %v14039_v28 = vand.u32 4294901760, %v262_v27  ;;  %v20700_v24 = vand.u32 4294901760, %v13026_v43  ;;  %v1226_v22 = vsub.f32 %v13024_v2, %v20697_v17 }
  0xa0   :  { %v11221_v25 = vpack.c.bf16 %v6145_v15, %v6133_v20  ;;  %v14041_v21 = vand.u32 4294901760, %v257_v46  ;;  %v880_v10 = vand.u32 4294901760, %v879_v6  ;;  %v5803_v31 = vsub.f32 %v14024_v4, %v20694_v41 }
  0xa1   :  { %22177 = vst [vmem:[#allocation228_spill] sm:$0xff] %v14033_v40  ;;  %22178 = vst [vmem:[#allocation229_spill] sm:$0xff] %v14039_v28  ;;  %v14048_v59 = vsub.f32 %v258_v3, %v14033_v40  ;;  %v14054_v15 = vsub.f32 %v262_v27, %v14039_v28  ;;  %v1238_v16 = vsub.f32 %v13026_v43, %v20700_v24  ;;  %v1227_v4 = vand.u32 4294901760, %v1226_v22 }
  0xa2   :  { %22179 = vst [vmem:[#allocation230_spill] sm:$0xff] %v14041_v21  ;;  %11222 = vmatpush1.bf16.msra.mxu0 %v11221_v25  ;;  %v14057_v20 = vsub.f32 %v257_v46, %v14041_v21  ;;  %v261_v6 = vmul.f32 %v13656_v56, %v59_v39  ;;  %881 = vmatmul.mubr.f32.gmra.mrb[8].mxu1 %v880_v10  ;;  %v5804_v3 = vand.u32 4294901760, %v5803_v31  ;;  %v20706_v17 = vand.u32 4294901760, %v13030_v34 }
  0xa3   :  { %22180 = vst [vmem:[#allocation231_spill] sm:$0xff] %v14048_v59  ;;  %22181 = vst [vmem:[#allocation232_spill] sm:$0xff] %v14054_v15  ;;  %v20703_v41 = vand.u32 4294901760, %v14048_v59  ;;  %v20709_v25 = vand.u32 4294901760, %v14054_v15  ;;  %v1239_v29 = vand.u32 4294901760, %v1238_v16  ;;  %v20713_v22 = vand.u32 4294901760, %v13041_v57 }
  0xa4   :  { %22182 = vst [vmem:[#allocation233_spill] sm:$0xff] %v14057_v20  ;;  %v20712_v27 = vand.u32 4294901760, %v14057_v20  ;;  %v14067_v46 = vand.u32 4294901760, %v261_v6  ;;  %5805 = vmatmul.mubr.f32.gmra.mrb[8].mxu0 %v5804_v3  ;;  %v6150_v39 = vsub.f32 %v13030_v34, %v20706_v17  ;;  %v20714_v10 = vand.u32 4294901760, %v13045_v33 }
  0xa5   :  { %v889_v24 = vsub.f32 %v14048_v59, %v20703_v41  ;;  %v5813_v31 = vsub.f32 %v14054_v15, %v20709_v25  ;;  %v10455_v3 = vpack.c.bf16 %v1239_v29, %v1227_v4  ;;  %v6162_v17 = vsub.f32 %v13041_v57, %v20713_v22  ;;  %v64_v25 = vld [vmem:[%s20346_s2 + $0x188] sm:$0xff]  ;;  %v22185_v22 = vld [vmem:[#allocation53_spill] sm:$0xff] }
  0xa6   :  { %22183 = vst [vmem:[#allocation234_spill] sm:$0xff] %v14067_v46  ;;  %v895_v16 = vsub.f32 %v14057_v20, %v20712_v27  ;;  %v14084_v21 = vsub.f32 %v261_v6, %v14067_v46  ;;  %v6151_v59 = vand.u32 4294901760, %v6150_v39  ;;  %v1232_v28 = vsub.f32 %v13045_v33, %v20714_v10  ;;  %v22186_v20 = vld [vmem:[#allocation54_spill] sm:$0xff] }
  0xa7   :  { %v890_v41 = vand.u32 4294901760, %v889_v24  ;;  %v5814_v15 = vand.u32 4294901760, %v5813_v31  ;;  %10456 = vmatprep.subr.bf16.mxu1 %v10455_v3  ;;  %v20724_v29 = vand.u32 4294901760, %v13056_v9  ;;  %v68_v24 = vld [vmem:[%s20346_s2 + $0x1a8] sm:$0xff]  ;;  %v6163_v6 = vand.u32 4294901760, %v6162_v17  ;;  %v63_v31 = vld [vmem:[%s20346_s2 + $0x180] sm:$0xff] }
  0xa8   :  { %22184 = vst [vmem:[#allocation235_spill] sm:$0xff] %v14084_v21  ;;  %v896_v27 = vand.u32 4294901760, %v895_v16  ;;  %v20721_v4 = vand.u32 4294901760, %v14084_v21  ;;  %v1233_v39 = vand.u32 4294901760, %v1232_v28  ;;  %v266_v17 = vmul.f32 %v13644_v44, %v64_v25  ;;  %v67_v28 = vld [vmem:[%s20346_s2 + $0x1a0] sm:$0xff]  ;;  %v22187_v3 = vld [vmem:[#allocation56_spill] sm:$0xff] }
  0xa9   :  { %891 = vmatprep.mubr.f32.mxu1 %v890_v41  ;;  %5815 = vmatprep.mubr.f32.mxu0 %v5814_v15  ;;  %v1244_v41 = vsub.f32 %v13056_v9, %v20724_v29  ;;  %v11223_v10 = vpack.c.bf16 %v6163_v6, %v6151_v59  ;;  %v22188_v15 = vand.u32 4294901760, %v22185_v22  ;;  %v22189_v18 = vand.u32 4294901760, %v22186_v20 }
  0xaa   :  { %897 = vmatmul.mubr.f32.gmra.mrb[10].mxu1 %v896_v27  ;;  %v5819_v16 = vsub.f32 %v14084_v21, %v20721_v4  ;;  %v270_v21 = vmul.f32 %v13646_v55, %v68_v24  ;;  %v14123_v25 = vand.u32 4294901760, %v266_v17  ;;  %v265_v9 = vmul.f32 %v13648_v12, %v63_v31  ;;  %v22197_v31 = vld [vmem:[#allocation57_spill] sm:$0xff] }
  0xab   :  { %v6156_v27 = vsub.f32 %v22185_v22, %v22188_v15  ;;  %v6168_v4 = vsub.f32 %v22186_v20, %v22189_v18  ;;  %v1245_v40 = vand.u32 4294901760, %v1244_v41  ;;  %11224 = vmatprep.subr.bf16.mxu0 %v11223_v10  ;;  %v269_v6 = vmul.f32 %v13656_v56, %v67_v28 }
  0xac   :  { %v5820_v29 = vand.u32 4294901760, %v5819_v16  ;;  %22190 = vst [vmem:[#allocation236_spill] sm:$0xff] %v14123_v25  ;;  %v14126_v59 = vand.u32 4294901760, %v270_v21  ;;  %v14130_v22 = vsub.f32 %v266_v17, %v14123_v25  ;;  %v14132_v18 = vand.u32 4294901760, %v265_v9  ;;  %v22199_v17 = vld [vmem:[#allocation58_spill] sm:$0xff] }
  0xad   :  { %v6157_v33 = vand.u32 4294901760, %v6156_v27  ;;  %v6169_v46 = vand.u32 4294901760, %v6168_v4  ;;  %v10457_v15 = vpack.c.bf16 %v1245_v40, %v1233_v39  ;;  %v22194_v24 = vand.u32 4294901760, %v22187_v3 }
  0xae   :  { %22191 = vst [vmem:[#allocation237_spill] sm:$0xff] %v14126_v59  ;;  %5821 = vmatmul.mubr.f32.gmra.mrb[10].mxu0 %v5820_v29  ;;  %22192 = vst [vmem:[#allocation238_spill] sm:$0xff] %v14130_v22  ;;  %v14138_v10 = vsub.f32 %v270_v21, %v14126_v59  ;;  %v14140_v4 = vand.u32 4294901760, %v269_v6  ;;  %v20736_v27 = vand.u32 4294901760, %v22197_v31  ;;  %v20741_v40 = vand.u32 4294901760, %v14130_v22 }
  0xaf   :  { %22193 = vst [vmem:[#allocation239_spill] sm:$0xff] %v14132_v18  ;;  %v1250_v16 = vsub.f32 %v22187_v3, %v22194_v24  ;;  %v11225_v41 = vpack.c.bf16 %v6169_v46, %v6157_v33  ;;  %10458 = vmatpush1.bf16.msra.mxu1 %v10457_v15  ;;  %v14145_v29 = vsub.f32 %v265_v9, %v14132_v18  ;;  %v20745_v28 = vand.u32 4294901760, %v22199_v17  ;;  %v22201_v46 = vld [vmem:[#allocation60_spill] sm:$0xff]  ;;  %v22202_v24 = vld [vmem:[#allocation62_spill] sm:$0xff] }
  0xb0   :  { %22195 = vst [vmem:[#allocation240_spill] sm:$0xff] %v14138_v10  ;;  %22196 = vst [vmem:[#allocation241_spill] sm:$0xff] %v14140_v4  ;;  %v14150_v33 = vsub.f32 %v269_v6, %v14140_v4  ;;  %v1262_v21 = vsub.f32 %v22197_v31, %v20736_v27  ;;  %v20748_v15 = vand.u32 4294901760, %v22201_v46  ;;  %v905_v9 = vsub.f32 %v14130_v22, %v20741_v40 }
  0xb1   :  { %22198 = vst [vmem:[#allocation242_spill] sm:$0xff] %v14145_v29  ;;  %v1251_v39 = vand.u32 4294901760, %v1250_v16  ;;  %11226 = vmatpush1.bf16.msra.mxu0 %v11225_v41  ;;  %v20749_v16 = vand.u32 4294901760, %v14145_v29  ;;  %v6174_v41 = vsub.f32 %v22199_v17, %v20745_v28  ;;  %v20750_v18 = vand.u32 4294901760, %v22202_v24 }
  0xb2   :  { %22200 = vst [vmem:[#allocation243_spill] sm:$0xff] %v14150_v33  ;;  %v22203_v6 = vand.u32 4294901760, %v14138_v10  ;;  %v1263_v59 = vand.u32 4294901760, %v1262_v21  ;;  %v6186_v25 = vsub.f32 %v22201_v46, %v20748_v15  ;;  %v906_v40 = vand.u32 4294901760, %v905_v9 }
  0xb3   :  { %v911_v22 = vsub.f32 %v14145_v29, %v20749_v16  ;;  %v6175_v20 = vand.u32 4294901760, %v6174_v41  ;;  %v1256_v28 = vsub.f32 %v22202_v24, %v20750_v18  ;;  %v22204_v21 = vand.u32 4294901760, %v14150_v33  ;;  %v76_v16 = vld [vmem:[%s20346_s2 + $0x1e8] sm:$0xff]  ;;  %v71_v41 = vld [vmem:[%s20346_s2 + $0x1c0] sm:$0xff]  ;;  %v22205_v24 = vld [vmem:[#allocation63_spill] sm:$0xff] }
  0xb4   :  { %v5829_v4 = vsub.f32 %v14138_v10, %v22203_v6  ;;  %v72_v6 = vld [vmem:[%s20346_s2 + $0x1c8] sm:$0xff]  ;;  %v10459_v15 = vpack.c.bf16 %v1263_v59, %v1251_v39  ;;  %v6187_v9 = vand.u32 4294901760, %v6186_v25  ;;  %907 = vmatprep.mubr.f32.mxu1 %v906_v40  ;;  %v20759_v46 = vand.u32 4294901760, %v22205_v24  ;;  %v75_v59 = vld [vmem:[%s20346_s2 + $0x1e0] sm:$0xff] }
  0xb5   :  { %v5835_v10 = vsub.f32 %v14150_v33, %v22204_v21  ;;  %v912_v18 = vand.u32 4294901760, %v911_v22  ;;  %v1257_v29 = vand.u32 4294901760, %v1256_v28  ;;  %v22207_v21 = vld [vmem:[#allocation66_spill] sm:$0xff]  ;;  %v274_v31 = vmul.f32 %v13644_v44, %v72_v6 }
  0xb6   :  { %v5830_v27 = vand.u32 4294901760, %v5829_v4  ;;  %v22206_v4 = vld [vmem:[#allocation65_spill] sm:$0xff]  ;;  %10460 = vmatprep.subr.bf16.mxu1 %v10459_v15  ;;  %v11227_v39 = vpack.c.bf16 %v6187_v9, %v6175_v20  ;;  %v20762_v33 = vand.u32 4294901760, %v22207_v21  ;;  %v1268_v22 = vsub.f32 %v22205_v24, %v20759_v46  ;;  %v22209_v15 = vld [vmem:[#allocation68_spill] sm:$0xff] }
  0xb7   :  { %v20761_v17 = vand.u32 4294901760, %v22206_v4  ;;  %v5836_v25 = vand.u32 4294901760, %v5835_v10  ;;  %913 = vmatmul.mubr.f32.gmra.mrb[12].mxu1 %v912_v18  ;;  %v278_v28 = vmul.f32 %v13646_v55, %v76_v16  ;;  %v14207_v10 = vand.u32 4294901760, %v274_v31 }
  0xb8   :  { %5831 = vmatprep.mubr.f32.mxu0 %v5830_v27  ;;  %v273_v27 = vmul.f32 %v13648_v12, %v71_v41  ;;  %11228 = vmatprep.subr.bf16.mxu0 %v11227_v39  ;;  %v6192_v20 = vsub.f32 %v22207_v21, %v20762_v33  ;;  %v277_v18 = vmul.f32 %v13656_v56, %v75_v59  ;;  %v20767_v6 = vand.u32 4294901760, %v22209_v15 }
  0xb9   :  { %v6180_v40 = vsub.f32 %v22206_v4, %v20761_v17  ;;  %5837 = vmatmul.mubr.f32.gmra.mrb[12].mxu0 %v5836_v25  ;;  %22208 = vst [vmem:[#allocation244_spill] sm:$0xff] %v14207_v10  ;;  %v1269_v9 = vand.u32 4294901760, %v1268_v22  ;;  %v14211_v24 = vand.u32 4294901760, %v278_v28  ;;  %v14216_v41 = vsub.f32 %v274_v31, %v14207_v10  ;;  %v80_v31 = vld [vmem:[%s20346_s2 + $0x208] sm:$0xff] }
  0xba   :  { %v14213_v17 = vand.u32 4294901760, %v273_v27  ;;  %v6193_v16 = vand.u32 4294901760, %v6192_v20  ;;  %v14218_v25 = vand.u32 4294901760, %v277_v18  ;;  %v1274_v39 = vsub.f32 %v22209_v15, %v20767_v6 }
  0xbb   :  { %v6181_v46 = vand.u32 4294901760, %v6180_v40  ;;  %22210 = vst [vmem:[#allocation245_spill] sm:$0xff] %v14211_v24  ;;  %22212 = vst [vmem:[#allocation247_spill] sm:$0xff] %v14216_v41  ;;  %v10461_v33 = vpack.c.bf16 %v1269_v9, %v1257_v29  ;;  %v14224_v59 = vsub.f32 %v278_v28, %v14211_v24  ;;  %v22216_v40 = vld [vmem:[#allocation69_spill] sm:$0xff]  ;;  %v20775_v10 = vand.u32 4294901760, %v14216_v41  ;;  %v22218_v9 = vld [vmem:[#allocation70_spill] sm:$0xff] }
  0xbc   :  { %22211 = vst [vmem:[#allocation246_spill] sm:$0xff] %v14213_v17  ;;  %22213 = vst [vmem:[#allocation248_spill] sm:$0xff] %v14218_v25  ;;  %v14227_v22 = vsub.f32 %v273_v27, %v14213_v17  ;;  %v20772_v21 = vand.u32 4294901760, %v22216_v40  ;;  %v14235_v4 = vsub.f32 %v277_v18, %v14218_v25  ;;  %v1275_v6 = vand.u32 4294901760, %v1274_v39 }
  0xbd   :  { %22214 = vst [vmem:[#allocation249_spill] sm:$0xff] %v14224_v59  ;;  %v11229_v20 = vpack.c.bf16 %v6193_v16, %v6181_v46  ;;  %10462 = vmatpush1.bf16.msra.mxu1 %v10461_v33  ;;  %v20779_v29 = vand.u32 4294901760, %v14224_v59  ;;  %v921_v46 = vsub.f32 %v14216_v41, %v20775_v10  ;;  %v22219_v16 = vld [vmem:[#allocation72_spill] sm:$0xff]  ;;  %v282_v33 = vmul.f32 %v13644_v44, %v80_v31 }
  0xbe   :  { %22215 = vst [vmem:[#allocation250_spill] sm:$0xff] %v14227_v22  ;;  %22217 = vst [vmem:[#allocation251_spill] sm:$0xff] %v14235_v4  ;;  %v1286_v27 = vsub.f32 %v22216_v40, %v20772_v21  ;;  %v20784_v18 = vand.u32 4294901760, %v14235_v4  ;;  %v22220_v25 = vand.u32 4294901760, %v14227_v22  ;;  %v22222_v31 = vand.u32 4294901760, %v22219_v16 }
  0xbf   :  { %11230 = vmatpush1.bf16.msra.mxu0 %v11229_v20  ;;  %v5845_v28 = vsub.f32 %v14224_v59, %v20779_v29  ;;  %v22221_v20 = vand.u32 4294901760, %v22218_v9  ;;  %v922_v10 = vand.u32 4294901760, %v921_v46  ;;  %v14264_v40 = vand.u32 4294901760, %v282_v33  ;;  %v79_v46 = vld [vmem:[%s20346_s2 + $0x200] sm:$0xff] }
  0xc0   :  { %v927_v21 = vsub.f32 %v14227_v22, %v22220_v25  ;;  %v1287_v17 = vand.u32 4294901760, %v1286_v27  ;;  %v5851_v39 = vsub.f32 %v14235_v4, %v20784_v18  ;;  %v6210_v41 = vsub.f32 %v22219_v16, %v22222_v31  ;;  %v84_v25 = vld [vmem:[%s20346_s2 + $0x228] sm:$0xff] }
  0xc1   :  { %v6198_v24 = vsub.f32 %v22218_v9, %v22221_v20  ;;  %22223 = vst [vmem:[#allocation252_spill] sm:$0xff] %v14264_v40  ;;  %v5846_v27 = vand.u32 4294901760, %v5845_v28  ;;  %923 = vmatprep.mubr.f32.mxu1 %v922_v10  ;;  %v14273_v4 = vsub.f32 %v282_v33, %v14264_v40  ;;  %v22225_v31 = vld [vmem:[#allocation74_spill] sm:$0xff]  ;;  %v22226_v9 = vld [vmem:[#allocation75_spill] sm:$0xff]  ;;  %v83_v10 = vld [vmem:[%s20346_s2 + $0x220] sm:$0xff]  ;;  %v281_v33 = vmul.f32 %v13648_v12, %v79_v46 }
  0xc2   :  { %v928_v29 = vand.u32 4294901760, %v927_v21  ;;  %v10463_v22 = vpack.c.bf16 %v1287_v17, %v1275_v6  ;;  %v5852_v20 = vand.u32 4294901760, %v5851_v39  ;;  %v6211_v18 = vand.u32 4294901760, %v6210_v41  ;;  %v22227_v17 = vld [vmem:[#allocation77_spill] sm:$0xff]  ;;  %v22228_v6 = vld [vmem:[#allocation78_spill] sm:$0xff] }
  0xc3   :  { %v6199_v59 = vand.u32 4294901760, %v6198_v24  ;;  %22224 = vst [vmem:[#allocation253_spill] sm:$0xff] %v14273_v4  ;;  %v20791_v16 = vand.u32 4294901760, %v22225_v31  ;;  %5847 = vmatprep.mubr.f32.mxu0 %v5846_v27  ;;  %v20790_v15 = vand.u32 4294901760, %v22226_v9  ;;  %v286_v21 = vmul.f32 %v13646_v55, %v84_v25 }
  0xc4   :  { %929 = vmatmul.mubr.f32.gmra.mrb[14].mxu1 %v928_v29  ;;  %v20794_v24 = vand.u32 4294901760, %v22227_v17  ;;  %v20796_v28 = vand.u32 4294901760, %v22228_v6  ;;  %5853 = vmatmul.mubr.f32.gmra.mrb[14].mxu0 %v5852_v20  ;;  %v20800_v39 = vand.u32 4294901760, %v14273_v4  ;;  %v21071_v26 = vand.u32 4294901760, %v22369_v0 }
  0xc5   :  { %10464 = vmatprep.subr.bf16.mxu1 %v10463_v22  ;;  %v11231_v41 = vpack.c.bf16 %v6211_v18, %v6199_v59  ;;  %v1280_v29 = vsub.f32 %v22225_v31, %v20791_v16  ;;  %v1292_v25 = vsub.f32 %v22226_v9, %v20790_v15  ;;  %v14291_v27 = vand.u32 4294901760, %v286_v21  ;;  %v88_v22 = vld [vmem:[%s20346_s2 + $0x248] sm:$0xff] }
  0xc6   :  { %v6204_v20 = vsub.f32 %v22227_v17, %v20794_v24  ;;  %v6216_v59 = vsub.f32 %v22228_v6, %v20796_v28  ;;  %v937_v18 = vsub.f32 %v14273_v4, %v20800_v39  ;;  %v14305_v15 = vand.u32 4294901760, %v281_v33 }
  0xc7   :  { %22229 = vst [vmem:[#allocation254_spill] sm:$0xff] %v14291_v27  ;;  %11232 = vmatprep.subr.bf16.mxu0 %v11231_v41  ;;  %v1281_v46 = vand.u32 4294901760, %v1280_v29  ;;  %v285_v16 = vmul.f32 %v13656_v56, %v83_v10  ;;  %v1293_v40 = vand.u32 4294901760, %v1292_v25  ;;  %v14309_v24 = vsub.f32 %v286_v21, %v14291_v27  ;;  %v92_v29 = vld [vmem:[%s20346_s2 + $0x268] sm:$0xff]  ;;  %v22234_v21 = vld [vmem:[#allocation80_spill] sm:$0xff] }
  0xc8   :  { %22230 = vst [vmem:[#allocation255_spill] sm:$0xff] %v14305_v15  ;;  %v6205_v17 = vand.u32 4294901760, %v6204_v20  ;;  %v6217_v28 = vand.u32 4294901760, %v6216_v59  ;;  %v938_v6 = vand.u32 4294901760, %v937_v18  ;;  %v14312_v9 = vsub.f32 %v281_v33, %v14305_v15  ;;  %v22237_v18 = vld [vmem:[#allocation81_spill] sm:$0xff] }
  0xc9   :  { %22231 = vst [vmem:[#allocation256_spill] sm:$0xff] %v14309_v24  ;;  %v14314_v41 = vand.u32 4294901760, %v285_v16  ;;  %v290_v31 = vmul.f32 %v13644_v44, %v88_v22  ;;  %v10465_v39 = vpack.c.bf16 %v1293_v40, %v1281_v46  ;;  %v20803_v10 = vand.u32 4294901760, %v14309_v24 }
  0xca   :  { %22232 = vst [vmem:[#allocation257_spill] sm:$0xff] %v14312_v9  ;;  %v11233_v25 = vpack.c.bf16 %v6217_v28, %v6205_v17  ;;  %v20804_v4 = vand.u32 4294901760, %v22234_v21  ;;  %939 = vmatprep.mubr.f32.mxu1 %v938_v6  ;;  %v20809_v20 = vand.u32 4294901760, %v14312_v9  ;;  %v294_v6 = vmul.f32 %v13646_v55, %v92_v29  ;;  %v22238_v28 = vld [vmem:[#allocation82_spill] sm:$0xff] }
  0xcb   :  { %22233 = vst [vmem:[#allocation258_spill] sm:$0xff] %v14314_v41  ;;  %v14324_v33 = vsub.f32 %v285_v16, %v14314_v41  ;;  %v14326_v59 = vand.u32 4294901760, %v290_v31  ;;  %10466 = vmatpush1.bf16.msra.mxu1 %v10465_v39  ;;  %v5861_v40 = vsub.f32 %v14309_v24, %v20803_v10  ;;  %v22240_v10 = vand.u32 4294901760, %v22237_v18 }
  0xcc   :  { %11234 = vmatpush1.bf16.msra.mxu0 %v11233_v25  ;;  %v1298_v17 = vsub.f32 %v22234_v21, %v20804_v4  ;;  %v943_v16 = vsub.f32 %v14312_v9, %v20809_v20  ;;  %v87_v4 = vld [vmem:[%s20346_s2 + $0x240] sm:$0xff]  ;;  %v14350_v46 = vand.u32 4294901760, %v294_v6  ;;  %v22242_v41 = vand.u32 4294901760, %v22238_v28 }
  0xcd   :  { %22235 = vst [vmem:[#allocation259_spill] sm:$0xff] %v14324_v33  ;;  %22236 = vst [vmem:[#allocation260_spill] sm:$0xff] %v14326_v59  ;;  %v14342_v39 = vsub.f32 %v290_v31, %v14326_v59  ;;  %v1310_v25 = vsub.f32 %v22237_v18, %v22240_v10  ;;  %v5862_v29 = vand.u32 4294901760, %v5861_v40  ;;  %v22243_v31 = vand.u32 4294901760, %v14324_v33 }
  0xce   :  { %v1299_v24 = vand.u32 4294901760, %v1298_v17  ;;  %22241 = vst [vmem:[#allocation262_spill] sm:$0xff] %v14350_v46  ;;  %v6222_v20 = vsub.f32 %v22238_v28, %v22242_v41  ;;  %v944_v22 = vand.u32 4294901760, %v943_v16  ;;  %v14360_v15 = vsub.f32 %v294_v6, %v14350_v46  ;;  %v22245_v17 = vld [vmem:[#allocation84_spill] sm:$0xff]  ;;  %v91_v41 = vld [vmem:[%s20346_s2 + $0x260] sm:$0xff]  ;;  %v22248_v46 = vld [vmem:[#allocation87_spill] sm:$0xff] }
  0xcf   :  { %22239 = vst [vmem:[#allocation261_spill] sm:$0xff] %v14342_v39  ;;  %v5867_v9 = vsub.f32 %v14324_v33, %v22243_v31  ;;  %v20824_v59 = vand.u32 4294901760, %v14342_v39  ;;  %v1311_v10 = vand.u32 4294901760, %v1310_v25  ;;  %5863 = vmatprep.mubr.f32.mxu0 %v5862_v29  ;;  %v20827_v27 = vand.u32 4294901760, %v22245_v17  ;;  %v22246_v29 = vld [vmem:[#allocation86_spill] sm:$0xff] }
  0xd0   :  { %22244 = vst [vmem:[#allocation263_spill] sm:$0xff] %v14360_v15  ;;  %v6223_v40 = vand.u32 4294901760, %v6222_v20  ;;  %v289_v18 = vmul.f32 %v13648_v12, %v87_v4  ;;  %945 = vmatmul.mubr.f32.gmra.mrb[16].mxu1 %v944_v22  ;;  %v20830_v33 = vand.u32 4294901760, %v22246_v29  ;;  %v20829_v6 = vand.u32 4294901760, %v14360_v15 }
  0xd1   :  { %v5868_v16 = vand.u32 4294901760, %v5867_v9  ;;  %v953_v31 = vsub.f32 %v14342_v39, %v20824_v59  ;;  %v10467_v25 = vpack.c.bf16 %v1311_v10, %v1299_v24  ;;  %v6234_v20 = vsub.f32 %v22245_v17, %v20827_v27  ;;  %v22249_v10 = vld [vmem:[#allocation89_spill] sm:$0xff] }
  0xd2   :  { %v14375_v4 = vand.u32 4294901760, %v289_v18  ;;  %v20833_v28 = vand.u32 4294901760, %v22248_v46  ;;  %v1304_v9 = vsub.f32 %v22246_v29, %v20830_v33  ;;  %v293_v24 = vmul.f32 %v13656_v56, %v91_v41 }
  0xd3   :  { %5869 = vmatmul.mubr.f32.gmra.mrb[16].mxu0 %v5868_v16  ;;  %v954_v22 = vand.u32 4294901760, %v953_v31  ;;  %10468 = vmatprep.subr.bf16.mxu1 %v10467_v25  ;;  %v20838_v59 = vand.u32 4294901760, %v22249_v10  ;;  %v5877_v39 = vsub.f32 %v14360_v15, %v20829_v6  ;;  %v6235_v27 = vand.u32 4294901760, %v6234_v20  ;;  %v96_v31 = vld [vmem:[%s20346_s2 + $0x288] sm:$0xff] }
  0xd4   :  { %22247 = vst [vmem:[#allocation264_spill] sm:$0xff] %v14375_v4  ;;  %v14387_v17 = vsub.f32 %v289_v18, %v14375_v4  ;;  %v1316_v16 = vsub.f32 %v22248_v46, %v20833_v28  ;;  %v1305_v41 = vand.u32 4294901760, %v1304_v9  ;;  %v14395_v25 = vand.u32 4294901760, %v293_v24  ;;  %v22252_v20 = vld [vmem:[#allocation90_spill] sm:$0xff] }
  0xd5   :  { %955 = vmatprep.mubr.f32.mxu1 %v954_v22  ;;  %v6228_v6 = vsub.f32 %v22249_v10, %v20838_v59  ;;  %v20843_v33 = vand.u32 4294901760, %v22252_v20  ;;  %v100_v18 = vld [vmem:[%s20346_s2 + $0x2a8] sm:$0xff]  ;;  %v5878_v15 = vand.u32 4294901760, %v5877_v39  ;;  %v11235_v28 = vpack.c.bf16 %v6235_v27, %v6223_v40  ;;  %v95_v22 = vld [vmem:[%s20346_s2 + $0x280] sm:$0xff] }
  0xd6   :  { %22250 = vst [vmem:[#allocation265_spill] sm:$0xff] %v14387_v17  ;;  %22251 = vst [vmem:[#allocation266_spill] sm:$0xff] %v14395_v25  ;;  %v20844_v4 = vand.u32 4294901760, %v14387_v17  ;;  %v1317_v46 = vand.u32 4294901760, %v1316_v16  ;;  %v14409_v9 = vsub.f32 %v293_v24, %v14395_v25  ;;  %v298_v10 = vmul.f32 %v13644_v44, %v96_v31  ;;  %v22254_v16 = vld [vmem:[#allocation92_spill] sm:$0xff] }
  0xd7   :  { %v6229_v29 = vand.u32 4294901760, %v6228_v6  ;;  %v6240_v59 = vsub.f32 %v22252_v20, %v20843_v33  ;;  %5879 = vmatprep.mubr.f32.mxu0 %v5878_v15  ;;  %11236 = vmatprep.subr.bf16.mxu0 %v11235_v28  ;;  %v302_v40 = vmul.f32 %v13646_v55, %v100_v18  ;;  %v20847_v21 = vand.u32 4294901760, %v22254_v16  ;;  %v99_v15 = vld [vmem:[%s20346_s2 + $0x2a0] sm:$0xff] }
  0xd8   :  { %22253 = vst [vmem:[#allocation267_spill] sm:$0xff] %v14409_v9  ;;  %v959_v27 = vsub.f32 %v14387_v17, %v20844_v4  ;;  %v10469_v39 = vpack.c.bf16 %v1317_v46, %v1305_v41  ;;  %v20850_v24 = vand.u32 4294901760, %v14409_v9  ;;  %v14421_v25 = vand.u32 4294901760, %v298_v10  ;;  %v22257_v41 = vld [vmem:[#allocation93_spill] sm:$0xff] }
  0xd9   :  { %v6241_v6 = vand.u32 4294901760, %v6240_v59  ;;  %v297_v33 = vmul.f32 %v13648_v12, %v95_v22  ;;  %v14427_v31 = vand.u32 4294901760, %v302_v40  ;;  %v1322_v46 = vsub.f32 %v22254_v16, %v20847_v21 }
  0xda   :  { %22255 = vst [vmem:[#allocation268_spill] sm:$0xff] %v14421_v25  ;;  %v960_v28 = vand.u32 4294901760, %v959_v27  ;;  %10470 = vmatpush1.bf16.msra.mxu1 %v10469_v39  ;;  %v20855_v18 = vand.u32 4294901760, %v22257_v41  ;;  %v5883_v59 = vsub.f32 %v14409_v9, %v20850_v24  ;;  %v14437_v22 = vsub.f32 %v298_v10, %v14421_v25 }
  0xdb   :  { %22256 = vst [vmem:[#allocation269_spill] sm:$0xff] %v14427_v31  ;;  %v11237_v4 = vpack.c.bf16 %v6241_v6, %v6229_v29  ;;  %v14439_v17 = vand.u32 4294901760, %v297_v33  ;;  %v14442_v27 = vsub.f32 %v302_v40, %v14427_v31  ;;  %v1323_v39 = vand.u32 4294901760, %v1322_v46  ;;  %v22262_v6 = vld [vmem:[#allocation94_spill] sm:$0xff]  ;;  %v22264_v46 = vld [vmem:[#allocation96_spill] sm:$0xff] }
  0xdc   :  { %22258 = vst [vmem:[#allocation270_spill] sm:$0xff] %v14437_v22  ;;  %961 = vmatmul.mubr.f32.gmra.mrb[18].mxu1 %v960_v28  ;;  %v1334_v21 = vsub.f32 %v22257_v41, %v20855_v18  ;;  %v301_v20 = vmul.f32 %v13656_v56, %v99_v15  ;;  %v5884_v16 = vand.u32 4294901760, %v5883_v59  ;;  %v20858_v29 = vand.u32 4294901760, %v14437_v22  ;;  %v22265_v59 = vld [vmem:[#allocation98_spill] sm:$0xff] }
  0xdd   :  { %22259 = vst [vmem:[#allocation271_spill] sm:$0xff] %v14439_v17  ;;  %22260 = vst [vmem:[#allocation272_spill] sm:$0xff] %v14442_v27  ;;  %11238 = vmatpush1.bf16.msra.mxu0 %v11237_v4  ;;  %v14450_v10 = vsub.f32 %v297_v33, %v14439_v17  ;;  %v20863_v24 = vand.u32 4294901760, %v22262_v6  ;;  %v20865_v28 = vand.u32 4294901760, %v14442_v27  ;;  %v20867_v18 = vand.u32 4294901760, %v22265_v59 }
  0xde   :  { %v1335_v40 = vand.u32 4294901760, %v1334_v21  ;;  %v14454_v9 = vand.u32 4294901760, %v301_v20  ;;  %5885 = vmatmul.mubr.f32.gmra.mrb[18].mxu0 %v5884_v16  ;;  %v969_v15 = vsub.f32 %v14437_v22, %v20858_v29  ;;  %v22267_v16 = vand.u32 4294901760, %v22264_v46 }
  0xdf   :  { %22261 = vst [vmem:[#allocation273_spill] sm:$0xff] %v14450_v10  ;;  %v20866_v4 = vand.u32 4294901760, %v14450_v10  ;;  %v6246_v33 = vsub.f32 %v22262_v6, %v20863_v24  ;;  %v5893_v21 = vsub.f32 %v14442_v27, %v20865_v28  ;;  %v1328_v6 = vsub.f32 %v22265_v59, %v20867_v18  ;;  %v22269_v27 = vld [vmem:[#allocation101_spill] sm:$0xff] }
  0xe0   :  { %22263 = vst [vmem:[#allocation274_spill] sm:$0xff] %v14454_v9  ;;  %v10471_v17 = vpack.c.bf16 %v1335_v40, %v1323_v39  ;;  %v14469_v31 = vsub.f32 %v301_v20, %v14454_v9  ;;  %v6258_v29 = vsub.f32 %v22264_v46, %v22267_v16  ;;  %v970_v22 = vand.u32 4294901760, %v969_v15  ;;  %v104_v39 = vld [vmem:[%s20346_s2 + $0x2c8] sm:$0xff]  ;;  %v22268_v16 = vld [vmem:[#allocation99_spill] sm:$0xff] }
  0xe1   :  { %v975_v25 = vsub.f32 %v14450_v10, %v20866_v4  ;;  %v6247_v24 = vand.u32 4294901760, %v6246_v33  ;;  %v5894_v20 = vand.u32 4294901760, %v5893_v21  ;;  %v108_v4 = vld [vmem:[%s20346_s2 + $0x2e8] sm:$0xff]  ;;  %v103_v33 = vld [vmem:[%s20346_s2 + $0x2c0] sm:$0xff]  ;;  %v1329_v10 = vand.u32 4294901760, %v1328_v6 }
  0xe2   :  { %22266 = vst [vmem:[#allocation275_spill] sm:$0xff] %v14469_v31  ;;  %10472 = vmatprep.subr.bf16.mxu1 %v10471_v17  ;;  %v20877_v40 = vand.u32 4294901760, %v14469_v31  ;;  %v6259_v28 = vand.u32 4294901760, %v6258_v29  ;;  %971 = vmatprep.mubr.f32.mxu1 %v970_v22  ;;  %v20881_v9 = vand.u32 4294901760, %v22269_v27  ;;  %v22270_v21 = vld [vmem:[#allocation102_spill] sm:$0xff]  ;;  %v107_v29 = vld [vmem:[%s20346_s2 + $0x2e0] sm:$0xff]  ;;  %v310_v41 = vmul.f32 %v13646_v55, %v108_v4 }
  0xe3   :  { %v976_v18 = vand.u32 4294901760, %v975_v25  ;;  %v20883_v17 = vand.u32 4294901760, %v22270_v21  ;;  %5895 = vmatprep.mubr.f32.mxu0 %v5894_v20  ;;  %v22271_v46 = vand.u32 4294901760, %v22268_v16  ;;  %v306_v25 = vmul.f32 %v13644_v44, %v104_v39 }
  0xe4   :  { %v5899_v15 = vsub.f32 %v14469_v31, %v20877_v40  ;;  %v11239_v59 = vpack.c.bf16 %v6259_v28, %v6247_v24  ;;  %v6252_v6 = vsub.f32 %v22269_v27, %v20881_v9  ;;  %v305_v40 = vmul.f32 %v13648_v12, %v103_v33 }
  0xe5   :  { %v1340_v22 = vsub.f32 %v22268_v16, %v22271_v46  ;;  %977 = vmatmul.mubr.f32.gmra.mrb[20].mxu1 %v976_v18  ;;  %v6264_v20 = vsub.f32 %v22270_v21, %v20883_v17  ;;  %v14511_v31 = vand.u32 4294901760, %v306_v25  ;;  %v309_v46 = vmul.f32 %v13656_v56, %v107_v29 }
  0xe6   :  { %v5900_v24 = vand.u32 4294901760, %v5899_v15  ;;  %11240 = vmatprep.subr.bf16.mxu0 %v11239_v59  ;;  %v6253_v18 = vand.u32 4294901760, %v6252_v6  ;;  %v14514_v16 = vand.u32 4294901760, %v310_v41  ;;  %v14516_v9 = vand.u32 4294901760, %v305_v40  ;;  %v22277_v15 = vld [vmem:[#allocation104_spill] sm:$0xff]  ;;  %v22280_v6 = vld [vmem:[#allocation105_spill] sm:$0xff] }
  0xe7   :  { %v1341_v28 = vand.u32 4294901760, %v1340_v22  ;;  %22272 = vst [vmem:[#allocation276_spill] sm:$0xff] %v14511_v31  ;;  %v6265_v39 = vand.u32 4294901760, %v6264_v20  ;;  %v14519_v17 = vsub.f32 %v306_v25, %v14511_v31  ;;  %v14521_v4 = vand.u32 4294901760, %v309_v46 }
  0xe8   :  { %22273 = vst [vmem:[#allocation277_spill] sm:$0xff] %v14514_v16  ;;  %22274 = vst [vmem:[#allocation278_spill] sm:$0xff] %v14516_v9  ;;  %5901 = vmatmul.mubr.f32.gmra.mrb[20].mxu0 %v5900_v24  ;;  %v20888_v59 = vand.u32 4294901760, %v22277_v15  ;;  %v14525_v22 = vsub.f32 %v310_v41, %v14514_v16  ;;  %v14528_v29 = vsub.f32 %v305_v40, %v14516_v9  ;;  %v20891_v20 = vand.u32 4294901760, %v22280_v6 }
  0xe9   :  { %v10473_v27 = vpack.c.bf16 %v1341_v28, %v1329_v10  ;;  %22275 = vst [vmem:[#allocation279_spill] sm:$0xff] %v14519_v17  ;;  %22276 = vst [vmem:[#allocation280_spill] sm:$0xff] %v14521_v4  ;;  %v11241_v33 = vpack.c.bf16 %v6265_v39, %v6253_v18  ;;  %v14533_v10 = vsub.f32 %v309_v46, %v14521_v4  ;;  %v22282_v28 = vld [vmem:[#allocation106_spill] sm:$0xff]  ;;  %v22283_v39 = vld [vmem:[#allocation108_spill] sm:$0xff]  ;;  %v22284_v46 = vand.u32 4294901760, %v14519_v17 }
  0xea   :  { %22278 = vst [vmem:[#allocation281_spill] sm:$0xff] %v14525_v22  ;;  %22279 = vst [vmem:[#allocation282_spill] sm:$0xff] %v14528_v29  ;;  %v1346_v25 = vsub.f32 %v22277_v15, %v20888_v59  ;;  %v20897_v18 = vand.u32 4294901760, %v22282_v28  ;;  %v20899_v41 = vand.u32 4294901760, %v14525_v22  ;;  %v22285_v16 = vand.u32 4294901760, %v14528_v29 }
  0xeb   :  { %10474 = vmatpush1.bf16.msra.mxu1 %v10473_v27  ;;  %22281 = vst [vmem:[#allocation283_spill] sm:$0xff] %v14533_v10  ;;  %11242 = vmatpush1.bf16.msra.mxu0 %v11241_v33  ;;  %v1358_v27 = vsub.f32 %v22280_v6, %v20891_v20  ;;  %v985_v4 = vsub.f32 %v14519_v17, %v22284_v46  ;;  %v20904_v9 = vand.u32 4294901760, %v14533_v10  ;;  %v22286_v31 = vand.u32 4294901760, %v22283_v39  ;;  %v22289_v6 = vld [vmem:[#allocation113_spill] sm:$0xff] }
  0xec   :  { %v1347_v59 = vand.u32 4294901760, %v1346_v25  ;;  %v6270_v33 = vsub.f32 %v22282_v28, %v20897_v18  ;;  %v5909_v40 = vsub.f32 %v14525_v22, %v20899_v41  ;;  %v991_v20 = vsub.f32 %v14528_v29, %v22285_v16  ;;  %v22287_v18 = vld [vmem:[#allocation110_spill] sm:$0xff] }
  0xed   :  { %v1359_v24 = vand.u32 4294901760, %v1358_v27  ;;  %v6282_v46 = vsub.f32 %v22283_v39, %v22286_v31  ;;  %v986_v17 = vand.u32 4294901760, %v985_v4  ;;  %v5915_v25 = vsub.f32 %v14533_v10, %v20904_v9  ;;  %v112_v41 = vld [vmem:[%s20346_s2 + $0x308] sm:$0xff]  ;;  %v111_v4 = vld [vmem:[%s20346_s2 + $0x300] sm:$0xff]  ;;  %v22288_v10 = vld [vmem:[#allocation111_spill] sm:$0xff] }
  0xee   :  { %v6271_v21 = vand.u32 4294901760, %v6270_v33  ;;  %v20910_v28 = vand.u32 4294901760, %v22287_v18  ;;  %v116_v16 = vld [vmem:[%s20346_s2 + $0x328] sm:$0xff]  ;;  %v5910_v27 = vand.u32 4294901760, %v5909_v40  ;;  %v992_v29 = vand.u32 4294901760, %v991_v20  ;;  %v115_v20 = vld [vmem:[%s20346_s2 + $0x320] sm:$0xff] }
  0xef   :  { %v10475_v22 = vpack.c.bf16 %v1359_v24, %v1347_v59  ;;  %v6283_v31 = vand.u32 4294901760, %v6282_v46  ;;  %987 = vmatprep.mubr.f32.mxu1 %v986_v17  ;;  %v5916_v33 = vand.u32 4294901760, %v5915_v25  ;;  %v20912_v39 = vand.u32 4294901760, %v22288_v10  ;;  %v22290_v24 = vld [vmem:[#allocation114_spill] sm:$0xff] }
  0xf0   :  { %v1352_v9 = vsub.f32 %v22287_v18, %v20910_v28  ;;  %v20913_v15 = vand.u32 4294901760, %v22289_v6  ;;  %5911 = vmatprep.mubr.f32.mxu0 %v5910_v27  ;;  %993 = vmatmul.mubr.f32.gmra.mrb[22].mxu1 %v992_v29  ;;  %v20914_v40 = vand.u32 4294901760, %v22290_v24  ;;  %v314_v17 = vmul.f32 %v13644_v44, %v112_v41 }
  0xf1   :  { %v11243_v59 = vpack.c.bf16 %v6283_v31, %v6271_v21  ;;  %v318_v46 = vmul.f32 %v13646_v55, %v116_v16  ;;  %5917 = vmatmul.mubr.f32.gmra.mrb[22].mxu0 %v5916_v33  ;;  %10476 = vmatprep.subr.bf16.mxu1 %v10475_v22  ;;  %v1364_v28 = vsub.f32 %v22288_v10, %v20912_v39  ;;  %v22294_v33 = vld [vmem:[#allocation116_spill] sm:$0xff] }
  0xf2   :  { %v1353_v25 = vand.u32 4294901760, %v1352_v9  ;;  %v6276_v18 = vsub.f32 %v22289_v6, %v20913_v15  ;;  %v313_v29 = vmul.f32 %v13648_v12, %v111_v4  ;;  %v6288_v21 = vsub.f32 %v22290_v24, %v20914_v40 }
  0xf3   :  { %11244 = vmatprep.subr.bf16.mxu0 %v11243_v59  ;;  %v14595_v41 = vand.u32 4294901760, %v314_v17  ;;  %v14597_v16 = vand.u32 4294901760, %v318_v46  ;;  %v317_v9 = vmul.f32 %v13656_v56, %v115_v20  ;;  %v1365_v22 = vand.u32 4294901760, %v1364_v28 }
  0xf4   :  { %v6277_v27 = vand.u32 4294901760, %v6276_v18  ;;  %v14600_v31 = vand.u32 4294901760, %v313_v29  ;;  %v20918_v39 = vand.u32 4294901760, %v22294_v33  ;;  %v6289_v15 = vand.u32 4294901760, %v6288_v21  ;;  %v22299_v18 = vld [vmem:[#allocation117_spill] sm:$0xff] }
  0xf5   :  { %22291 = vst [vmem:[#allocation284_spill] sm:$0xff] %v14595_v41  ;;  %22292 = vst [vmem:[#allocation285_spill] sm:$0xff] %v14597_v16  ;;  %v14604_v4 = vsub.f32 %v314_v17, %v14595_v41  ;;  %v14607_v59 = vsub.f32 %v318_v46, %v14597_v16  ;;  %v14609_v40 = vand.u32 4294901760, %v317_v9  ;;  %v10477_v24 = vpack.c.bf16 %v1365_v22, %v1353_v25  ;;  %v120_v25 = vld [vmem:[%s20346_s2 + $0x348] sm:$0xff] }
  0xf6   :  { %22293 = vst [vmem:[#allocation286_spill] sm:$0xff] %v14600_v31  ;;  %v14612_v6 = vsub.f32 %v313_v29, %v14600_v31  ;;  %v1370_v28 = vsub.f32 %v22294_v33, %v20918_v39  ;;  %v20925_v20 = vand.u32 4294901760, %v22299_v18  ;;  %v11245_v10 = vpack.c.bf16 %v6289_v15, %v6277_v27  ;;  %v22301_v15 = vld [vmem:[#allocation118_spill] sm:$0xff]  ;;  %v22302_v31 = vld [vmem:[#allocation120_spill] sm:$0xff] }
  0xf7   :  { %22295 = vst [vmem:[#allocation287_spill] sm:$0xff] %v14604_v4  ;;  %22296 = vst [vmem:[#allocation288_spill] sm:$0xff] %v14607_v59  ;;  %v20928_v21 = vand.u32 4294901760, %v14604_v4  ;;  %v20931_v17 = vand.u32 4294901760, %v14607_v59  ;;  %v14621_v46 = vsub.f32 %v317_v9, %v14609_v40  ;;  %10478 = vmatpush1.bf16.msra.mxu1 %v10477_v24  ;;  %v20937_v27 = vand.u32 4294901760, %v22301_v15 }
  0xf8   :  { %22297 = vst [vmem:[#allocation289_spill] sm:$0xff] %v14609_v40  ;;  %22298 = vst [vmem:[#allocation290_spill] sm:$0xff] %v14612_v6  ;;  %v1371_v22 = vand.u32 4294901760, %v1370_v28  ;;  %v1382_v39 = vsub.f32 %v22299_v18, %v20925_v20  ;;  %11246 = vmatpush1.bf16.msra.mxu0 %v11245_v10  ;;  %v20941_v29 = vand.u32 4294901760, %v22302_v31  ;;  %v22303_v28 = vand.u32 4294901760, %v14612_v6 }
  0xf9   :  { %22300 = vst [vmem:[#allocation291_spill] sm:$0xff] %v14621_v46  ;;  %v1001_v9 = vsub.f32 %v14604_v4, %v20928_v21  ;;  %v5925_v40 = vsub.f32 %v14607_v59, %v20931_v17  ;;  %v20938_v24 = vand.u32 4294901760, %v14621_v46  ;;  %v6294_v10 = vsub.f32 %v22301_v15, %v20937_v27  ;;  %v22309_v15 = vld [vmem:[#allocation126_spill] sm:$0xff] }
  0xfa   :  { %v1007_v16 = vsub.f32 %v14612_v6, %v22303_v28  ;;  %v1383_v20 = vand.u32 4294901760, %v1382_v39  ;;  %v322_v41 = vmul.f32 %v13644_v44, %v120_v25  ;;  %v6306_v59 = vsub.f32 %v22302_v31, %v20941_v29  ;;  %v124_v39 = vld [vmem:[%s20346_s2 + $0x368] sm:$0xff]  ;;  %v22306_v29 = vld [vmem:[#allocation123_spill] sm:$0xff] }
  0xfb   :  { %v1002_v21 = vand.u32 4294901760, %v1001_v9  ;;  %v5926_v4 = vand.u32 4294901760, %v5925_v40  ;;  %v5931_v17 = vsub.f32 %v14621_v46, %v20938_v24  ;;  %v6295_v18 = vand.u32 4294901760, %v6294_v10  ;;  %v119_v40 = vld [vmem:[%s20346_s2 + $0x340] sm:$0xff]  ;;  %v22305_v24 = vld [vmem:[#allocation122_spill] sm:$0xff] }
  0xfc   :  { %v1008_v28 = vand.u32 4294901760, %v1007_v16  ;;  %v10479_v6 = vpack.c.bf16 %v1383_v20, %v1371_v22  ;;  %v14655_v27 = vand.u32 4294901760, %v322_v41  ;;  %v6307_v9 = vand.u32 4294901760, %v6306_v59  ;;  %v22308_v22 = vld [vmem:[#allocation125_spill] sm:$0xff] }
  0xfd   :  { %1003 = vmatprep.mubr.f32.mxu1 %v1002_v21  ;;  %5927 = vmatprep.mubr.f32.mxu0 %v5926_v4  ;;  %v5932_v25 = vand.u32 4294901760, %v5931_v17  ;;  %v20946_v46 = vand.u32 4294901760, %v22305_v24  ;;  %v20945_v31 = vand.u32 4294901760, %v22306_v29  ;;  %v326_v20 = vmul.f32 %v13646_v55, %v124_v39  ;;  %v123_v4 = vld [vmem:[%s20346_s2 + $0x360] sm:$0xff] }
  0xfe   :  { %22304 = vst [vmem:[#allocation292_spill] sm:$0xff] %v14655_v27  ;;  %1009 = vmatmul.mubr.f32.gmra.mrb[24].mxu1 %v1008_v28  ;;  %10480 = vmatprep.subr.bf16.mxu1 %v10479_v6  ;;  %v14663_v16 = vsub.f32 %v322_v41, %v14655_v27  ;;  %v20949_v10 = vand.u32 4294901760, %v22308_v22  ;;  %v20951_v33 = vand.u32 4294901760, %v22309_v15  ;;  %v11247_v59 = vpack.c.bf16 %v6307_v9, %v6295_v18 }
  0xff   :  { %5933 = vmatmul.mubr.f32.gmra.mrb[24].mxu0 %v5932_v25  ;;  %v1376_v21 = vsub.f32 %v22305_v24, %v20946_v46  ;;  %v1388_v6 = vsub.f32 %v22306_v29, %v20945_v31  ;;  %v321_v41 = vmul.f32 %v13648_v12, %v119_v40  ;;  %v14679_v39 = vand.u32 4294901760, %v326_v20  ;;  %v128_v25 = vld [vmem:[%s20346_s2 + $0x388] sm:$0xff] }
 0x100   :  { %22307 = vst [vmem:[#allocation293_spill] sm:$0xff] %v14663_v16  ;;  %v20954_v17 = vand.u32 4294901760, %v14663_v16  ;;  %v6300_v28 = vsub.f32 %v22308_v22, %v20949_v10  ;;  %v6312_v18 = vsub.f32 %v22309_v15, %v20951_v33  ;;  %11248 = vmatprep.subr.bf16.mxu0 %v11247_v59  ;;  %v325_v46 = vmul.f32 %v13656_v56, %v123_v4  ;;  %v132_v4 = vld [vmem:[%s20346_s2 + $0x3a8] sm:$0xff] }
 0x101   :  { %22310 = vst [vmem:[#allocation294_spill] sm:$0xff] %v14679_v39  ;;  %v1377_v9 = vand.u32 4294901760, %v1376_v21  ;;  %v1389_v31 = vand.u32 4294901760, %v1388_v6  ;;  %v14690_v40 = vand.u32 4294901760, %v321_v41  ;;  %v14697_v10 = vsub.f32 %v326_v20, %v14679_v39  ;;  %v22315_v20 = vld [vmem:[#allocation128_spill] sm:$0xff] }
 0x102   :  { %v1017_v27 = vsub.f32 %v14663_v16, %v20954_v17  ;;  %v6301_v22 = vand.u32 4294901760, %v6300_v28  ;;  %v6313_v33 = vand.u32 4294901760, %v6312_v18  ;;  %v14702_v59 = vand.u32 4294901760, %v325_v46  ;;  %v22318_v18 = vld [vmem:[#allocation129_spill] sm:$0xff] }
 0x103   :  { %22311 = vst [vmem:[#allocation295_spill] sm:$0xff] %v14690_v40  ;;  %22312 = vst [vmem:[#allocation296_spill] sm:$0xff] %v14697_v10  ;;  %v10481_v15 = vpack.c.bf16 %v1389_v31, %v1377_v9  ;;  %v14700_v29 = vsub.f32 %v321_v41, %v14690_v40  ;;  %v330_v21 = vmul.f32 %v13644_v44, %v128_v25  ;;  %v20959_v17 = vand.u32 4294901760, %v14697_v10 }
 0x104   :  { %22314 = vst [vmem:[#allocation298_spill] sm:$0xff] %v14702_v59  ;;  %v1018_v6 = vand.u32 4294901760, %v1017_v27  ;;  %v11249_v16 = vpack.c.bf16 %v6313_v33, %v6301_v22  ;;  %v20960_v39 = vand.u32 4294901760, %v22315_v20  ;;  %v14712_v41 = vsub.f32 %v325_v46, %v14702_v59  ;;  %v22319_v22 = vld [vmem:[#allocation130_spill] sm:$0xff] }
 0x105   :  { %22313 = vst [vmem:[#allocation297_spill] sm:$0xff] %v14700_v29  ;;  %10482 = vmatpush1.bf16.msra.mxu1 %v10481_v15  ;;  %v20965_v31 = vand.u32 4294901760, %v14700_v29  ;;  %v14714_v28 = vand.u32 4294901760, %v330_v21  ;;  %v5941_v27 = vsub.f32 %v14697_v10, %v20959_v17  ;;  %v334_v15 = vmul.f32 %v13646_v55, %v132_v4 }
 0x106   :  { %22316 = vst [vmem:[#allocation299_spill] sm:$0xff] %v14712_v41  ;;  %1019 = vmatprep.mubr.f32.mxu1 %v1018_v6  ;;  %11250 = vmatpush1.bf16.msra.mxu0 %v11249_v16  ;;  %v1394_v33 = vsub.f32 %v22315_v20, %v20960_v39  ;;  %v22321_v17 = vand.u32 4294901760, %v22318_v18  ;;  %v127_v39 = vld [vmem:[%s20346_s2 + $0x380] sm:$0xff]  ;;  %v22323_v59 = vand.u32 4294901760, %v22319_v22 }
 0x107   :  { %22317 = vst [vmem:[#allocation300_spill] sm:$0xff] %v14714_v28  ;;  %v1023_v46 = vsub.f32 %v14700_v29, %v20965_v31  ;;  %v14730_v6 = vsub.f32 %v330_v21, %v14714_v28  ;;  %v5942_v4 = vand.u32 4294901760, %v5941_v27  ;;  %v14738_v9 = vand.u32 4294901760, %v334_v15 }
 0x108   :  { %v1406_v16 = vsub.f32 %v22318_v18, %v22321_v17  ;;  %v1395_v10 = vand.u32 4294901760, %v1394_v33  ;;  %v6318_v31 = vsub.f32 %v22319_v22, %v22323_v59  ;;  %v22324_v21 = vand.u32 4294901760, %v14712_v41  ;;  %v131_v59 = vld [vmem:[%s20346_s2 + $0x3a0] sm:$0xff] }
 0x109   :  { %22320 = vst [vmem:[#allocation301_spill] sm:$0xff] %v14730_v6  ;;  %22322 = vst [vmem:[#allocation302_spill] sm:$0xff] %v14738_v9  ;;  %v1024_v25 = vand.u32 4294901760, %v1023_v46  ;;  %v20978_v28 = vand.u32 4294901760, %v14730_v6  ;;  %5943 = vmatprep.mubr.f32.mxu0 %v5942_v4  ;;  %v14748_v40 = vsub.f32 %v334_v15, %v14738_v9  ;;  %v20981_v33 = vand.u32 4294901760, %v13408_v61  ;;  %v22326_v4 = vld [vmem:[#allocation134_spill] sm:$0xff] }
 0x10a   :  { %v5947_v29 = vsub.f32 %v14712_v41, %v22324_v21  ;;  %v1407_v17 = vand.u32 4294901760, %v1406_v16  ;;  %v6319_v27 = vand.u32 4294901760, %v6318_v31  ;;  %v329_v18 = vmul.f32 %v13648_v12, %v127_v39  ;;  %v22328_v9 = vld [vmem:[#allocation135_spill] sm:$0xff] }
 0x10b   :  { %22325 = vst [vmem:[#allocation303_spill] sm:$0xff] %v14748_v40  ;;  %1025 = vmatmul.mubr.f32.gmra.mrb[26].mxu1 %v1024_v25  ;;  %v1033_v21 = vsub.f32 %v14730_v6, %v20978_v28  ;;  %v20985_v41 = vand.u32 4294901760, %v22326_v4  ;;  %v20984_v15 = vand.u32 4294901760, %v14748_v40  ;;  %v6330_v31 = vsub.f32 %v13408_v61, %v20981_v33 }
 0x10c   :  { %v5948_v46 = vand.u32 4294901760, %v5947_v29  ;;  %v10483_v16 = vpack.c.bf16 %v1407_v17, %v1395_v10  ;;  %v14763_v39 = vand.u32 4294901760, %v329_v18  ;;  %v20988_v22 = vand.u32 4294901760, %v22328_v9  ;;  %v22329_v17 = vld [vmem:[#allocation137_spill] sm:$0xff] }
 0x10d   :  { %v1034_v25 = vand.u32 4294901760, %v1033_v21  ;;  %v1400_v29 = vsub.f32 %v22326_v4, %v20985_v41  ;;  %v333_v10 = vmul.f32 %v13656_v56, %v131_v59  ;;  %v20993_v28 = vand.u32 4294901760, %v22329_v17  ;;  %v136_v21 = vld [vmem:[%s20346_s2 + $0x3c8] sm:$0xff] }
 0x10e   :  { %22327 = vst [vmem:[#allocation304_spill] sm:$0xff] %v14763_v39  ;;  %5949 = vmatmul.mubr.f32.gmra.mrb[26].mxu0 %v5948_v46  ;;  %10484 = vmatprep.subr.bf16.mxu1 %v10483_v16  ;;  %v5957_v6 = vsub.f32 %v14748_v40, %v20984_v15  ;;  %v6331_v33 = vand.u32 4294901760, %v6330_v31  ;;  %v14775_v61 = vsub.f32 %v329_v18, %v14763_v39  ;;  %v22332_v31 = vld [vmem:[#allocation138_spill] sm:$0xff] }
 0x10f   :  { %v1412_v46 = vsub.f32 %v22328_v9, %v20988_v22  ;;  %1035 = vmatprep.mubr.f32.mxu1 %v1034_v25  ;;  %v1401_v59 = vand.u32 4294901760, %v1400_v29  ;;  %v14783_v16 = vand.u32 4294901760, %v333_v10  ;;  %v6324_v15 = vsub.f32 %v22329_v17, %v20993_v28  ;;  %v140_v18 = vld [vmem:[%s20346_s2 + $0x3e8] sm:$0xff]  ;;  %v135_v25 = vld [vmem:[%s20346_s2 + $0x3c0] sm:$0xff] }
 0x110   :  { %22330 = vst [vmem:[#allocation305_spill] sm:$0xff] %v14775_v61  ;;  %v20998_v41 = vand.u32 4294901760, %v22332_v31  ;;  %v5958_v40 = vand.u32 4294901760, %v5957_v6  ;;  %v11251_v22 = vpack.c.bf16 %v6331_v33, %v6319_v27  ;;  %v20999_v39 = vand.u32 4294901760, %v14775_v61 }
 0x111   :  { %22331 = vst [vmem:[#allocation306_spill] sm:$0xff] %v14783_v16  ;;  %v1413_v9 = vand.u32 4294901760, %v1412_v46  ;;  %v14797_v29 = vsub.f32 %v333_v10, %v14783_v16  ;;  %v6325_v4 = vand.u32 4294901760, %v6324_v15  ;;  %v338_v17 = vmul.f32 %v13644_v44, %v136_v21  ;;  %v22334_v46 = vld [vmem:[#allocation140_spill] sm:$0xff] }
 0x112   :  { %v6336_v28 = vsub.f32 %v22332_v31, %v20998_v41  ;;  %5959 = vmatprep.mubr.f32.mxu0 %v5958_v40  ;;  %11252 = vmatprep.subr.bf16.mxu0 %v11251_v22  ;;  %v1039_v6 = vsub.f32 %v14775_v61, %v20999_v39  ;;  %v342_v33 = vmul.f32 %v13646_v55, %v140_v18  ;;  %v21002_v20 = vand.u32 4294901760, %v22334_v46  ;;  %v139_v40 = vld [vmem:[%s20346_s2 + $0x3e0] sm:$0xff] }
 0x113   :  { %22333 = vst [vmem:[#allocation307_spill] sm:$0xff] %v14797_v29  ;;  %v10485_v27 = vpack.c.bf16 %v1413_v9, %v1401_v59  ;;  %v21005_v10 = vand.u32 4294901760, %v14797_v29  ;;  %v14809_v16 = vand.u32 4294901760, %v338_v17  ;;  %v337_v41 = vmul.f32 %v13648_v12, %v135_v25  ;;  %v22337_v59 = vld [vmem:[#allocation141_spill] sm:$0xff] }
 0x114   :  { %v6337_v15 = vand.u32 4294901760, %v6336_v28  ;;  %v1040_v22 = vand.u32 4294901760, %v1039_v6  ;;  %v14815_v21 = vand.u32 4294901760, %v342_v33  ;;  %v1418_v9 = vsub.f32 %v22334_v46, %v21002_v20 }
 0x115   :  { %22335 = vst [vmem:[#allocation308_spill] sm:$0xff] %v14809_v16  ;;  %10486 = vmatpush1.bf16.msra.mxu1 %v10485_v27  ;;  %v21010_v18 = vand.u32 4294901760, %v22337_v59  ;;  %v5963_v28 = vsub.f32 %v14797_v29, %v21005_v10  ;;  %v14825_v25 = vsub.f32 %v338_v17, %v14809_v16  ;;  %v14827_v61 = vand.u32 4294901760, %v337_v41 }
 0x116   :  { %22336 = vst [vmem:[#allocation309_spill] sm:$0xff] %v14815_v21  ;;  %v11253_v39 = vpack.c.bf16 %v6337_v15, %v6325_v4  ;;  %1041 = vmatmul.mubr.f32.gmra.mrb[28].mxu1 %v1040_v22  ;;  %v14830_v6 = vsub.f32 %v342_v33, %v14815_v21  ;;  %v1419_v27 = vand.u32 4294901760, %v1418_v9  ;;  %v341_v31 = vmul.f32 %v13656_v56, %v139_v40  ;;  %v22342_v15 = vld [vmem:[#allocation142_spill] sm:$0xff]  ;;  %v22344_v9 = vld [vmem:[#allocation144_spill] sm:$0xff] }
 0x117   :  { %22338 = vst [vmem:[#allocation310_spill] sm:$0xff] %v14825_v25  ;;  %22339 = vst [vmem:[#allocation311_spill] sm:$0xff] %v14827_v61  ;;  %v1430_v20 = vsub.f32 %v22337_v59, %v21010_v18  ;;  %v5964_v46 = vand.u32 4294901760, %v5963_v28  ;;  %v21013_v4 = vand.u32 4294901760, %v14825_v25  ;;  %v14838_v17 = vsub.f32 %v337_v41, %v14827_v61  ;;  %v22345_v28 = vld [vmem:[#allocation146_spill] sm:$0xff] }
 0x118   :  { %22340 = vst [vmem:[#allocation312_spill] sm:$0xff] %v14830_v6  ;;  %11254 = vmatpush1.bf16.msra.mxu0 %v11253_v39  ;;  %v21018_v10 = vand.u32 4294901760, %v22342_v15  ;;  %v21020_v22 = vand.u32 4294901760, %v14830_v6  ;;  %v14842_v29 = vand.u32 4294901760, %v341_v31  ;;  %v21022_v18 = vand.u32 4294901760, %v22345_v28 }
 0x119   :  { %22341 = vst [vmem:[#allocation313_spill] sm:$0xff] %v14838_v17  ;;  %v1431_v33 = vand.u32 4294901760, %v1430_v20  ;;  %5965 = vmatmul.mubr.f32.gmra.mrb[28].mxu0 %v5964_v46  ;;  %v1049_v40 = vsub.f32 %v14825_v25, %v21013_v4  ;;  %v21021_v39 = vand.u32 4294901760, %v14838_v17  ;;  %v22347_v46 = vand.u32 4294901760, %v22344_v9 }
 0x11a   :  { %22343 = vst [vmem:[#allocation314_spill] sm:$0xff] %v14842_v29  ;;  %v6342_v41 = vsub.f32 %v22342_v15, %v21018_v10  ;;  %v5973_v20 = vsub.f32 %v14830_v6, %v21020_v22  ;;  %v14857_v21 = vsub.f32 %v341_v31, %v14842_v29  ;;  %v1424_v15 = vsub.f32 %v22345_v28, %v21022_v18  ;;  %v22349_v6 = vld [vmem:[#allocation149_spill] sm:$0xff] }
 0x11b   :  { %v10487_v61 = vpack.c.bf16 %v1431_v33, %v1419_v27  ;;  %v6354_v4 = vsub.f32 %v22344_v9, %v22347_v46  ;;  %v1050_v25 = vand.u32 4294901760, %v1049_v40  ;;  %v1055_v16 = vsub.f32 %v14838_v17, %v21021_v39  ;;  %v144_v27 = vld [vmem:[%s20346_s2 + $0x408] sm:$0xff]  ;;  %v22348_v46 = vld [vmem:[#allocation147_spill] sm:$0xff] }
 0x11c   :  { %22346 = vst [vmem:[#allocation315_spill] sm:$0xff] %v14857_v21  ;;  %v6343_v10 = vand.u32 4294901760, %v6342_v41  ;;  %v5974_v31 = vand.u32 4294901760, %v5973_v20  ;;  %v21032_v33 = vand.u32 4294901760, %v14857_v21  ;;  %v148_v39 = vld [vmem:[%s20346_s2 + $0x428] sm:$0xff]  ;;  %v143_v41 = vld [vmem:[%s20346_s2 + $0x400] sm:$0xff] }
 0x11d   :  { %10488 = vmatprep.subr.bf16.mxu1 %v10487_v61  ;;  %v6355_v22 = vand.u32 4294901760, %v6354_v4  ;;  %1051 = vmatprep.mubr.f32.mxu1 %v1050_v25  ;;  %v1056_v18 = vand.u32 4294901760, %v1055_v16  ;;  %v1425_v17 = vand.u32 4294901760, %v1424_v15  ;;  %v21036_v29 = vand.u32 4294901760, %v22349_v6  ;;  %v22350_v20 = vld [vmem:[#allocation150_spill] sm:$0xff]  ;;  %v147_v4 = vld [vmem:[%s20346_s2 + $0x420] sm:$0xff] }
 0x11e   :  { %v21038_v61 = vand.u32 4294901760, %v22350_v20  ;;  %5975 = vmatprep.mubr.f32.mxu0 %v5974_v31  ;;  %v5979_v40 = vsub.f32 %v14857_v21, %v21032_v33  ;;  %v22351_v9 = vand.u32 4294901760, %v22348_v46  ;;  %v346_v16 = vmul.f32 %v13644_v44, %v144_v27 }
 0x11f   :  { %v11255_v28 = vpack.c.bf16 %v6355_v22, %v6343_v10  ;;  %1057 = vmatmul.mubr.f32.gmra.mrb[30].mxu1 %v1056_v18  ;;  %v6348_v15 = vsub.f32 %v22349_v6, %v21036_v29  ;;  %v350_v59 = vmul.f32 %v13646_v55, %v148_v39  ;;  %v345_v33 = vmul.f32 %v13648_v12, %v143_v41 }
 0x120   :  { %v1436_v25 = vsub.f32 %v22348_v46, %v22351_v9  ;;  %v6360_v31 = vsub.f32 %v22350_v20, %v21038_v61  ;;  %v5980_v10 = vand.u32 4294901760, %v5979_v40  ;;  %v14899_v21 = vand.u32 4294901760, %v346_v16  ;;  %v22357_v40 = vld [vmem:[#allocation152_spill] sm:$0xff] }
 0x121   :  { %11256 = vmatprep.subr.bf16.mxu0 %v11255_v28  ;;  %v349_v9 = vmul.f32 %v13656_v56, %v147_v4  ;;  %v6349_v18 = vand.u32 4294901760, %v6348_v15  ;;  %v14902_v46 = vand.u32 4294901760, %v350_v59  ;;  %v14904_v29 = vand.u32 4294901760, %v345_v33  ;;  %v22360_v15 = vld [vmem:[#allocation153_spill] sm:$0xff] }
 0x122   :  { %v1437_v22 = vand.u32 4294901760, %v1436_v25  ;;  %22352 = vst [vmem:[#allocation316_spill] sm:$0xff] %v14899_v21  ;;  %v6361_v27 = vand.u32 4294901760, %v6360_v31  ;;  %5981 = vmatmul.mubr.f32.gmra.mrb[30].mxu0 %v5980_v10  ;;  %v14907_v61 = vsub.f32 %v346_v16, %v14899_v21  ;;  %v21043_v28 = vand.u32 4294901760, %v22357_v40 }
 0x123   :  { %22353 = vst [vmem:[#allocation317_spill] sm:$0xff] %v14902_v46  ;;  %22354 = vst [vmem:[#allocation318_spill] sm:$0xff] %v14904_v29  ;;  %v14909_v39 = vand.u32 4294901760, %v349_v9  ;;  %v14913_v25 = vsub.f32 %v350_v59, %v14902_v46  ;;  %v14916_v4 = vsub.f32 %v345_v33, %v14904_v29  ;;  %v21046_v31 = vand.u32 4294901760, %v22360_v15 }
 0x124   :  { %v10489_v24 = vpack.c.bf16 %v1437_v22, %v1425_v17  ;;  %22355 = vst [vmem:[#allocation319_spill] sm:$0xff] %v14907_v61  ;;  %v11257_v41 = vpack.c.bf16 %v6361_v27, %v6349_v18  ;;  %v1442_v16 = vsub.f32 %v22357_v40, %v21043_v28  ;;  %v22362_v22 = vld [vmem:[#allocation154_spill] sm:$0xff]  ;;  %v22363_v27 = vld [vmem:[#allocation156_spill] sm:$0xff] }
 0x125   :  { %22356 = vst [vmem:[#allocation320_spill] sm:$0xff] %v14909_v39  ;;  %22358 = vst [vmem:[#allocation321_spill] sm:$0xff] %v14913_v25  ;;  %v14921_v17 = vsub.f32 %v349_v9, %v14909_v39  ;;  %v21052_v18 = vand.u32 4294901760, %v22362_v22  ;;  %v21055_v59 = vand.u32 4294901760, %v14913_v25  ;;  %v22364_v9 = vand.u32 4294901760, %v14907_v61 }
 0x126   :  { %22359 = vst [vmem:[#allocation322_spill] sm:$0xff] %v14916_v4  ;;  %10490 = vmatpush1.bf16.msra.mxu1 %v10489_v24  ;;  %11258 = vmatpush1.bf16.msra.mxu0 %v11257_v41  ;;  %v1454_v24 = vsub.f32 %v22360_v15, %v21046_v31  ;;  %v1443_v28 = vand.u32 4294901760, %v1442_v16  ;;  %v22365_v46 = vand.u32 4294901760, %v14916_v4  ;;  %v22366_v21 = vand.u32 4294901760, %v22363_v27 }
 0x127   :  { %22361 = vst [vmem:[#allocation323_spill] sm:$0xff] %v14921_v17  ;;  %v1065_v39 = vsub.f32 %v14907_v61, %v22364_v9  ;;  %v21060_v29 = vand.u32 4294901760, %v14921_v17  ;;  %v6366_v41 = vsub.f32 %v22362_v22, %v21052_v18  ;;  %v5989_v33 = vsub.f32 %v14913_v25, %v21055_v59  ;;  %v22367_v18 = vld [vmem:[#allocation158_spill] sm:$0xff] }
 0x128   :  { %v1071_v31 = vsub.f32 %v14916_v4, %v22365_v46  ;;  %v1455_v10 = vand.u32 4294901760, %v1454_v24  ;;  %v6378_v9 = vsub.f32 %v22363_v27, %v22366_v21  ;;  %v21069_v57 = vand.u32 4294901760, %v22367_v18  ;;  %v152_v59 = vld [vmem:[%s20346_s2 + $0x448] sm:$0xff] }
 0x129   :  { %v1066_v61 = vand.u32 4294901760, %v1065_v39  ;;  %v5995_v16 = vsub.f32 %v14921_v17, %v21060_v29  ;;  %v6367_v3 = vand.u32 4294901760, %v6366_v41  ;;  %v156_v46 = vld [vmem:[%s20346_s2 + $0x468] sm:$0xff]  ;;  %v5990_v24 = vand.u32 4294901760, %v5989_v33  ;;  %v151_v39 = vld [vmem:[%s20346_s2 + $0x440] sm:$0xff]  ;;  %v22368_v17 = vld [vmem:[#allocation159_spill] sm:$0xff] }
 0x12a   :  { %v1072_v4 = vand.u32 4294901760, %v1071_v31  ;;  %v10491_v25 = vpack.c.bf16 %v1455_v10, %v1443_v28  ;;  %v6379_v21 = vand.u32 4294901760, %v6378_v9  ;;  %v1448_v29 = vsub.f32 %v22367_v18, %v21069_v57  ;;  %v155_v31 = vld [vmem:[%s20346_s2 + $0x460] sm:$0xff]  ;;  %v22370_v10 = vld [vmem:[#allocation162_spill] sm:$0xff] }
 0x12b   :  { %1067 = vmatprep.mubr.f32.mxu1 %v1066_v61  ;;  %v5996_v41 = vand.u32 4294901760, %v5995_v16  ;;  %v21073_v34 = vand.u32 4294901760, %v22368_v17  ;;  %5991 = vmatprep.mubr.f32.mxu0 %v5990_v24  ;;  %v21072_v33 = vand.u32 4294901760, %v22370_v10  ;;  %v354_v61 = vmul.f32 %v13644_v44, %v152_v59 }
 0x12c   :  { %1073 = vmatmul.mubr.f32.gmra.mrb[32].mxu1 %v1072_v4  ;;  %v11259_v28 = vpack.c.bf16 %v6379_v21, %v6367_v3  ;;  %v358_v9 = vmul.f32 %v13646_v55, %v156_v46  ;;  %10492 = vmatprep.subr.bf16.mxu1 %v10491_v25  ;;  %v1449_v16 = vand.u32 4294901760, %v1448_v29  ;;  %v6372_v18 = vsub.f32 %v22369_v0, %v21071_v26 }
 0x12d   :  { %5997 = vmatmul.mubr.f32.gmra.mrb[32].mxu0 %v5996_v41  ;;  %v1460_v57 = vsub.f32 %v22368_v17, %v21073_v34  ;;  %v353_v4 = vmul.f32 %v13648_v12, %v151_v39  ;;  %v6384_v3 = vsub.f32 %v22370_v10, %v21072_v33  ;;  %v14983_v59 = vand.u32 4294901760, %v354_v61 }
 0x12e   :  { %11260 = vmatprep.subr.bf16.mxu0 %v11259_v28  ;;  %v14985_v46 = vand.u32 4294901760, %v358_v9  ;;  %v357_v29 = vmul.f32 %v13656_v56, %v155_v31  ;;  %v6373_v24 = vand.u32 4294901760, %v6372_v18  ;;  %v21076_v41 = vand.u32 4294901760, %v13545_v48  ;;  %v22378_v18 = vld [vmem:[#allocation165_spill] sm:$0xff] }
 0x12f   :  { %22371 = vst [vmem:[#allocation324_spill] sm:$0xff] %v14983_v59  ;;  %v1461_v25 = vand.u32 4294901760, %v1460_v57  ;;  %v14988_v21 = vand.u32 4294901760, %v353_v4  ;;  %v6385_v26 = vand.u32 4294901760, %v6384_v3  ;;  %v14992_v39 = vsub.f32 %v354_v61, %v14983_v59 }
 0x130   :  { %22372 = vst [vmem:[#allocation325_spill] sm:$0xff] %v14985_v46  ;;  %v14995_v28 = vsub.f32 %v358_v9, %v14985_v46  ;;  %v14997_v33 = vand.u32 4294901760, %v357_v29  ;;  %v1466_v57 = vsub.f32 %v13545_v48, %v21076_v41  ;;  %v21083_v31 = vand.u32 4294901760, %v22378_v18 }
 0x131   :  { %22373 = vst [vmem:[#allocation326_spill] sm:$0xff] %v14988_v21  ;;  %22374 = vst [vmem:[#allocation327_spill] sm:$0xff] %v14992_v39  ;;  %v10493_v34 = vpack.c.bf16 %v1461_v25, %v1449_v16  ;;  %v15000_v10 = vsub.f32 %v353_v4, %v14988_v21  ;;  %v11261_v0 = vpack.c.bf16 %v6385_v26, %v6373_v24  ;;  %v21086_v3 = vand.u32 4294901760, %v14992_v39  ;;  %v160_v16 = vld [vmem:[%s20346_s2 + $0x488] sm:$0xff]  ;;  %v22381_v21 = vld [vmem:[#allocation168_spill] sm:$0xff] }
 0x132   :  { %22375 = vst [vmem:[#allocation328_spill] sm:$0xff] %v14995_v28  ;;  %22376 = vst [vmem:[#allocation329_spill] sm:$0xff] %v14997_v33  ;;  %v21089_v61 = vand.u32 4294901760, %v14995_v28  ;;  %v15009_v9 = vsub.f32 %v357_v29, %v14997_v33  ;;  %v1467_v25 = vand.u32 4294901760, %v1466_v57  ;;  %v1478_v41 = vsub.f32 %v22378_v18, %v21083_v31  ;;  %v22380_v26 = vld [vmem:[#allocation166_spill] sm:$0xff] }
 0x133   :  { %22377 = vst [vmem:[#allocation330_spill] sm:$0xff] %v15000_v10  ;;  %10494 = vmatpush1.bf16.msra.mxu1 %v10493_v34  ;;  %v21095_v24 = vand.u32 4294901760, %v22380_v26  ;;  %11262 = vmatpush1.bf16.msra.mxu0 %v11261_v0  ;;  %v1081_v29 = vsub.f32 %v14992_v39, %v21086_v3  ;;  %v21099_v4 = vand.u32 4294901760, %v22381_v21  ;;  %v22382_v57 = vand.u32 4294901760, %v15000_v10 }
 0x134   :  { %22379 = vst [vmem:[#allocation331_spill] sm:$0xff] %v15009_v9  ;;  %v6005_v33 = vsub.f32 %v14995_v28, %v21089_v61  ;;  %v21096_v34 = vand.u32 4294901760, %v15009_v9  ;;  %v1479_v31 = vand.u32 4294901760, %v1478_v41  ;;  %v362_v59 = vmul.f32 %v13644_v44, %v160_v16  ;;  %v164_v41 = vld [vmem:[%s20346_s2 + $0x4a8] sm:$0xff] }
 0x135   :  { %v1087_v46 = vsub.f32 %v15000_v10, %v22382_v57  ;;  %v6390_v0 = vsub.f32 %v22380_v26, %v21095_v24  ;;  %v1082_v3 = vand.u32 4294901760, %v1081_v29  ;;  %v6402_v28 = vsub.f32 %v22381_v21, %v21099_v4  ;;  %v22387_v21 = vld [vmem:[#allocation174_spill] sm:$0xff] }
 0x136   :  { %v6006_v39 = vand.u32 4294901760, %v6005_v33  ;;  %v6011_v61 = vsub.f32 %v15009_v9, %v21096_v34  ;;  %v10495_v10 = vpack.c.bf16 %v1479_v31, %v1467_v25  ;;  %v15043_v24 = vand.u32 4294901760, %v362_v59  ;;  %v159_v33 = vld [vmem:[%s20346_s2 + $0x480] sm:$0xff]  ;;  %v22384_v34 = vld [vmem:[#allocation170_spill] sm:$0xff] }
 0x137   :  { %v1088_v57 = vand.u32 4294901760, %v1087_v46  ;;  %v6391_v18 = vand.u32 4294901760, %v6390_v0  ;;  %1083 = vmatprep.mubr.f32.mxu1 %v1082_v3  ;;  %v6403_v29 = vand.u32 4294901760, %v6402_v28  ;;  %v21103_v9 = vand.u32 4294901760, %v22384_v34  ;;  %v22386_v25 = vld [vmem:[#allocation173_spill] sm:$0xff] }
 0x138   :  { %22383 = vst [vmem:[#allocation332_spill] sm:$0xff] %v15043_v24  ;;  %6007 = vmatprep.mubr.f32.mxu0 %v6006_v39  ;;  %v6012_v16 = vand.u32 4294901760, %v6011_v61  ;;  %v21102_v4 = vand.u32 4294901760, %v13576_v23  ;;  %10496 = vmatprep.subr.bf16.mxu1 %v10495_v10  ;;  %v15051_v46 = vsub.f32 %v362_v59, %v15043_v24  ;;  %v366_v31 = vmul.f32 %v13646_v55, %v164_v41  ;;  %v163_v39 = vld [vmem:[%s20346_s2 + $0x4a0] sm:$0xff] }
 0x139   :  { %1089 = vmatmul.mubr.f32.gmra.mrb[34].mxu1 %v1088_v57  ;;  %v21106_v0 = vand.u32 4294901760, %v22386_v25  ;;  %v21108_v26 = vand.u32 4294901760, %v22387_v21  ;;  %v11263_v28 = vpack.c.bf16 %v6403_v29, %v6391_v18  ;;  %v1472_v3 = vsub.f32 %v22384_v34, %v21103_v9 }
 0x13a   :  { %22385 = vst [vmem:[#allocation333_spill] sm:$0xff] %v15051_v46  ;;  %6013 = vmatmul.mubr.f32.gmra.mrb[34].mxu0 %v6012_v16  ;;  %v1484_v10 = vsub.f32 %v13576_v23, %v21102_v4  ;;  %v361_v59 = vmul.f32 %v13648_v12, %v159_v33  ;;  %v21112_v61 = vand.u32 4294901760, %v15051_v46  ;;  %v15067_v41 = vand.u32 4294901760, %v366_v31  ;;  %v168_v16 = vld [vmem:[%s20346_s2 + $0x4c8] sm:$0xff] }
 0x13b   :  { %v6396_v57 = vsub.f32 %v22386_v25, %v21106_v0  ;;  %v6408_v18 = vsub.f32 %v22387_v21, %v21108_v26  ;;  %11264 = vmatprep.subr.bf16.mxu0 %v11263_v28  ;;  %v1473_v29 = vand.u32 4294901760, %v1472_v3  ;;  %v365_v9 = vmul.f32 %v13656_v56, %v163_v39  ;;  %v172_v39 = vld [vmem:[%s20346_s2 + $0x4e8] sm:$0xff] }
 0x13c   :  { %22388 = vst [vmem:[#allocation334_spill] sm:$0xff] %v15067_v41  ;;  %v1485_v4 = vand.u32 4294901760, %v1484_v10  ;;  %v15078_v33 = vand.u32 4294901760, %v361_v59  ;;  %v1097_v24 = vsub.f32 %v15051_v46, %v21112_v61  ;;  %v15085_v0 = vsub.f32 %v366_v31, %v15067_v41  ;;  %v22393_v31 = vld [vmem:[#allocation176_spill] sm:$0xff] }
 0x13d   :  { %v6397_v25 = vand.u32 4294901760, %v6396_v57  ;;  %v6409_v26 = vand.u32 4294901760, %v6408_v18  ;;  %v15090_v28 = vand.u32 4294901760, %v365_v9  ;;  %v370_v3 = vmul.f32 %v13644_v44, %v168_v16  ;;  %v22396_v18 = vld [vmem:[#allocation177_spill] sm:$0xff] }
 0x13e   :  { %22389 = vst [vmem:[#allocation335_spill] sm:$0xff] %v15078_v33  ;;  %22390 = vst [vmem:[#allocation336_spill] sm:$0xff] %v15085_v0  ;;  %v10497_v21 = vpack.c.bf16 %v1485_v4, %v1473_v29  ;;  %v15088_v23 = vsub.f32 %v361_v59, %v15078_v33  ;;  %v1098_v10 = vand.u32 4294901760, %v1097_v24  ;;  %v21117_v61 = vand.u32 4294901760, %v15085_v0 }
 0x13f   :  { %22392 = vst [vmem:[#allocation338_spill] sm:$0xff] %v15090_v28  ;;  %v11265_v46 = vpack.c.bf16 %v6409_v26, %v6397_v25  ;;  %v21119_v41 = vand.u32 4294901760, %v22393_v31  ;;  %v15100_v59 = vsub.f32 %v365_v9, %v15090_v28  ;;  %v15102_v57 = vand.u32 4294901760, %v370_v3 }
 0x140   :  { %22391 = vst [vmem:[#allocation337_spill] sm:$0xff] %v15088_v23  ;;  %10498 = vmatpush1.bf16.msra.mxu1 %v10497_v21  ;;  %v21118_v4 = vand.u32 4294901760, %v15088_v23  ;;  %v21122_v44 = vand.u32 4294901760, %v22396_v18  ;;  %1099 = vmatprep.mubr.f32.mxu1 %v1098_v10  ;;  %v6021_v24 = vsub.f32 %v15085_v0, %v21117_v61  ;;  %v374_v21 = vmul.f32 %v13646_v55, %v172_v39  ;;  %v167_v10 = vld [vmem:[%s20346_s2 + $0x4c0] sm:$0xff] }
 0x141   :  { %22394 = vst [vmem:[#allocation339_spill] sm:$0xff] %v15100_v59  ;;  %22395 = vst [vmem:[#allocation340_spill] sm:$0xff] %v15102_v57  ;;  %11266 = vmatpush1.bf16.msra.mxu0 %v11265_v46  ;;  %v1490_v26 = vsub.f32 %v22393_v31, %v21119_v41  ;;  %v21129_v25 = vand.u32 4294901760, %v13597_v30  ;;  %v21130_v16 = vand.u32 4294901760, %v15100_v59  ;;  %v15118_v29 = vsub.f32 %v370_v3, %v15102_v57 }
 0x142   :  { %v1103_v9 = vsub.f32 %v15088_v23, %v21118_v4  ;;  %v1502_v46 = vsub.f32 %v22396_v18, %v21122_v44  ;;  %v6022_v55 = vand.u32 4294901760, %v6021_v24  ;;  %v15126_v61 = vand.u32 4294901760, %v374_v21 }
 0x143   :  { %22397 = vst [vmem:[#allocation341_spill] sm:$0xff] %v15118_v29  ;;  %v1491_v39 = vand.u32 4294901760, %v1490_v26  ;;  %v6414_v4 = vsub.f32 %v13597_v30, %v21129_v25  ;;  %v6027_v3 = vsub.f32 %v15100_v59, %v21130_v16  ;;  %v21135_v23 = vand.u32 4294901760, %v15118_v29  ;;  %v22400_v26 = vld [vmem:[#allocation181_spill] sm:$0xff] }
 0x144   :  { %22398 = vst [vmem:[#allocation342_spill] sm:$0xff] %v15126_v61  ;;  %v1104_v41 = vand.u32 4294901760, %v1103_v9  ;;  %v1503_v44 = vand.u32 4294901760, %v1502_v46  ;;  %6023 = vmatprep.mubr.f32.mxu0 %v6022_v55  ;;  %v15136_v0 = vsub.f32 %v374_v21, %v15126_v61  ;;  %v21138_v28 = vand.u32 4294901760, %v22400_v26  ;;  %v171_v9 = vld [vmem:[%s20346_s2 + $0x4e0] sm:$0xff]  ;;  %v22401_v55 = vld [vmem:[#allocation183_spill] sm:$0xff] }
 0x145   :  { %v6415_v24 = vand.u32 4294901760, %v6414_v4  ;;  %v369_v57 = vmul.f32 %v13648_v12, %v167_v10  ;;  %v6028_v25 = vand.u32 4294901760, %v6027_v3  ;;  %v1113_v16 = vsub.f32 %v15118_v29, %v21135_v23  ;;  %v22403_v10 = vld [vmem:[#allocation184_spill] sm:$0xff] }
 0x146   :  { %22399 = vst [vmem:[#allocation343_spill] sm:$0xff] %v15136_v0  ;;  %1105 = vmatmul.mubr.f32.gmra.mrb[36].mxu1 %v1104_v41  ;;  %v10499_v46 = vpack.c.bf16 %v1503_v44, %v1491_v39  ;;  %v21141_v59 = vand.u32 4294901760, %v22401_v55  ;;  %v21143_v21 = vand.u32 4294901760, %v15136_v0  ;;  %v6426_v4 = vsub.f32 %v22400_v26, %v21138_v28  ;;  %v22404_v39 = vld [vmem:[#allocation186_spill] sm:$0xff] }
 0x147   :  { %v15151_v12 = vand.u32 4294901760, %v369_v57  ;;  %v21148_v61 = vand.u32 4294901760, %v22403_v10  ;;  %6029 = vmatmul.mubr.f32.gmra.mrb[36].mxu0 %v6028_v25  ;;  %v1114_v41 = vand.u32 4294901760, %v1113_v16  ;;  %v373_v44 = vmul.f32 %v13656_v56, %v171_v9  ;;  %v22407_v9 = vld [vmem:[#allocation187_spill] sm:$0xff] }
 0x148   :  { %10500 = vmatprep.subr.bf16.mxu1 %v10499_v46  ;;  %v1496_v3 = vsub.f32 %v22401_v55, %v21141_v59  ;;  %v21150_v23 = vand.u32 4294901760, %v22404_v39  ;;  %v6037_v29 = vsub.f32 %v15136_v0, %v21143_v21  ;;  %v6427_v28 = vand.u32 4294901760, %v6426_v4 }
 0x149   :  { %22402 = vst [vmem:[#allocation344_spill] sm:$0xff] %v15151_v12  ;;  %v15163_v33 = vsub.f32 %v369_v57, %v15151_v12  ;;  %v1508_v25 = vsub.f32 %v22403_v10, %v21148_v61  ;;  %1115 = vmatprep.mubr.f32.mxu1 %v1114_v41  ;;  %v15168_v46 = vand.u32 4294901760, %v373_v44  ;;  %v21153_v59 = vand.u32 4294901760, %v22407_v9  ;;  %v22410_v61 = vld [vmem:[#allocation7_spill] sm:$0xff] }
 0x14a   :  { %v1497_v16 = vand.u32 4294901760, %v1496_v3  ;;  %v6420_v56 = vsub.f32 %v22404_v39, %v21150_v23  ;;  %v6038_v55 = vand.u32 4294901760, %v6037_v29  ;;  %v11267_v21 = vpack.c.bf16 %v6427_v28, %v6415_v24  ;;  %v22409_v3 = vld [vmem:[#allocation6_spill] sm:$0xff] }
 0x14b   :  { %22405 = vst [vmem:[#allocation345_spill] sm:$0xff] %v15163_v33  ;;  %22406 = vst [vmem:[#allocation346_spill] sm:$0xff] %v15168_v46  ;;  %v21154_v4 = vand.u32 4294901760, %v15163_v33  ;;  %v1509_v57 = vand.u32 4294901760, %v1508_v25  ;;  %v15176_v0 = vsub.f32 %v373_v44, %v15168_v46  ;;  %v6432_v41 = vsub.f32 %v22407_v9, %v21153_v59  ;;  %v22412_v23 = vld [vmem:[#allocation10_spill] sm:$0xff] }
 0x14c   :  { %v6421_v12 = vand.u32 4294901760, %v6420_v56  ;;  %v10503_v10 = vpack.c.bf16 %v22410_v61, %v22409_v3  ;;  %6039 = vmatprep.mubr.f32.mxu0 %v6038_v55  ;;  %11268 = vmatprep.subr.bf16.mxu0 %v11267_v21  ;;  %v22411_v56 = vld [vmem:[#allocation8_spill] sm:$0xff] }
 0x14d   :  { %22408 = vst [vmem:[#allocation347_spill] sm:$0xff] %v15176_v0  ;;  %v1119_v28 = vsub.f32 %v15163_v33, %v21154_v4  ;;  %v10501_v29 = vpack.c.bf16 %v1509_v57, %v1497_v16  ;;  %v21155_v24 = vand.u32 4294901760, %v15176_v0  ;;  %v6433_v25 = vand.u32 4294901760, %v6432_v41  ;;  %v22413_v21 = vld [vmem:[#allocation188_spill] sm:$0xff]  ;;  %v22415_v57 = vld [vmem:[#allocation13_spill] sm:$0xff] }
 0x14e   :  { %v11271_v46 = vpack.c.bf16 %v22412_v23, %v22411_v56  ;;  %v22414_v16 = vld [vmem:[#allocation12_spill] sm:$0xff]  ;;  %v10507_v41 = vpack.c.bf16 %v12874_v47, %v12861_v42 }
 0x14f   :  { %v1120_v44 = vand.u32 4294901760, %v1119_v28  ;;  %10502 = vmatpush1.bf16.msra.mxu1 %v10501_v29  ;;  %v6043_v59 = vsub.f32 %v15176_v0, %v21155_v24  ;;  %v11269_v61 = vpack.c.bf16 %v6433_v25, %v6421_v12  ;;  %v10505_v4 = vpack.c.bf16 %v22415_v57, %v22414_v16  ;;  %v22416_v28 = vld [vmem:[#allocation189_spill] sm:$0xff]  ;;  %v22417_v29 = vld [vmem:[#allocation190_spill] sm:$0xff]  ;;  %v22418_v24 = vld [vmem:[#allocation15_spill] sm:$0xff] }
 0x150   :  { %10504 = vmatprep.subr.bf16.mxu1 %v10503_v10  ;;  %v22419_v12 = vld [vmem:[#allocation16_spill] sm:$0xff]  ;;  %v10511_v25 = vpack.c.bf16 %v12929_v11, %v12917_v7 }
 0x151   :  { %1121 = vmatmul.mubr.f32.gmra.mrb[38].mxu1 %v1120_v44  ;;  %v6044_v55 = vand.u32 4294901760, %v6043_v59  ;;  %11270 = vmatpush1.bf16.msra.mxu0 %v11269_v61  ;;  %v11273_v10 = vpack.c.bf16 %v22419_v12, %v22418_v24  ;;  %v11275_v61 = vpack.c.bf16 %v12884_v51, %v12878_v49  ;;  %v10509_v59 = vpack.c.bf16 %v12898_v62, %v12886_v53 }
 0x152   :  { %1512 = vmatprep.mubr.f32.mxu1 %v22413_v21  ;;  %11272 = vmatprep.subr.bf16.mxu0 %v11271_v46  ;;  %v22420_v46 = vld [vmem:[#allocation191_spill] sm:$0xff]  ;;  %v11279_v44 = vpack.c.bf16 %v12935_v14, %v12933_v13  ;;  %v22442_v21 = vld [vmem:[#allocation48_spill] sm:$0xff]  ;;  %v22449_v14 = vld [vmem:[#allocation222_spill] sm:$0xff] }
 0x153   :  { %6045 = vmatmul.mubr.f32.gmra.mrb[38].mxu0 %v6044_v55  ;;  %v10513_v55 = vpack.c.bf16 %v12947_v36, %v12945_v35  ;;  %v22443_v36 = vld [vmem:[#allocation220_spill] sm:$0xff]  ;;  %v22446_v35 = vld [vmem:[#allocation217_spill] sm:$0xff] }
 0x154   :  { %6436 = vmatprep.mubr.f32.mxu0 %v22416_v28  ;;  %v22425_v28 = vld [vmem:[#allocation161_spill] sm:$0xff]  ;;  %v22452_v13 = vld [vmem:[#allocation224_spill] sm:$0xff] }
 0x155   :  { %1514 = vmatmul.mubr.f32.vlgmr.msra.gmra.mrb[0].mxu1 %v22417_v29  ;;  %v22424_v29 = vld [vmem:[#allocation158_spill] sm:$0xff] }
 0x156   :  { %10506 = vmatpush1.bf16.msra.mxu1 %v10505_v4  ;;  %1520 = vmatprep.mubr.f32.mxu1 %v13721_v52  ;;  %v11277_v4 = vpack.c.bf16 %v12913_v5, %v12900_v63  ;;  %v22433_v52 = vld [vmem:[#allocation173_spill] sm:$0xff] }
 0x157   :  { %10508 = vmatprep.subr.bf16.mxu1 %v10507_v41  ;;  %6438 = vmatmul.mubr.f32.vlgmr.msra.gmra.mrb[0].mxu0 %v22420_v46  ;;  %v11281_v41 = vpack.c.bf16 %v12962_v50, %v12960_v45  ;;  %v22428_v46 = vld [vmem:[#allocation165_spill] sm:$0xff]  ;;  %v22438_v45 = vld [vmem:[#allocation183_spill] sm:$0xff] }
 0x158   :  { %11274 = vmatpush1.bf16.msra.mxu0 %v11273_v10  ;;  %6444 = vmatprep.mubr.f32.mxu0 %v13744_v38  ;;  %v22421_v10 = vld [vmem:[#allocation200_spill] sm:$0xff]  ;;  %v10515_v38 = vpack.c.bf16 %v12979_v58, %v12966_v54  ;;  %v22448_v58 = vld [vmem:[#allocation57_spill] sm:$0xff] }
 0x159   :  { %1522 = vmatmul.mubr.f32.gmra.mrb[2].mxu1 %v13746_v37  ;;  %11276 = vmatprep.subr.bf16.mxu0 %v11275_v61  ;;  %v11283_v61 = vpack.c.bf16 %v12986_v1, %v12983_v60  ;;  %v10519_v37 = vpack.c.bf16 %v13026_v43, %v13024_v2  ;;  %v22429_v2 = vld [vmem:[#allocation166_spill] sm:$0xff]  ;;  %v22432_v1 = vld [vmem:[#allocation208_spill] sm:$0xff]  ;;  %v22436_v43 = vld [vmem:[#allocation41_spill] sm:$0xff] }
 0x15a   :  { %10510 = vmatpush1.bf16.msra.mxu1 %v10509_v59  ;;  %1528 = vmatprep.mubr.f32.mxu1 %v13817_v19  ;;  %v10517_v59 = vpack.c.bf16 %v13005_v32, %v12992_v8  ;;  %v22422_v19 = vld [vmem:[#allocation206_spill] sm:$0xff]  ;;  %v22427_v32 = vld [vmem:[#allocation212_spill] sm:$0xff] }
 0x15b   :  { %6446 = vmatmul.mubr.f32.gmra.mrb[2].mxu0 %v22421_v10  ;;  %10512 = vmatprep.subr.bf16.mxu1 %v10511_v25  ;;  %v22423_v10 = vld [vmem:[#allocation207_spill] sm:$0xff]  ;;  %v22430_v25 = vld [vmem:[#allocation168_spill] sm:$0xff]  ;;  %v22437_v8 = vld [vmem:[#allocation42_spill] sm:$0xff] }
 0x15c   :  { %11278 = vmatpush1.bf16.msra.mxu0 %v11277_v4  ;;  %6452 = vmatprep.mubr.f32.mxu0 %v22422_v19  ;;  %v22426_v19 = vld [vmem:[#allocation162_spill] sm:$0xff]  ;;  %v11285_v50 = vpack.c.bf16 %v22437_v8, %v22436_v43  ;;  %v22447_v8 = vld [vmem:[#allocation56_spill] sm:$0xff] }
 0x15d   :  { %1530 = vmatmul.mubr.f32.gmra.mrb[4].mxu1 %v22423_v10  ;;  %11280 = vmatprep.subr.bf16.mxu0 %v11279_v44  ;;  %v22431_v44 = vld [vmem:[#allocation171_spill] sm:$0xff]  ;;  %v22434_v4 = vld [vmem:[#allocation174_spill] sm:$0xff]  ;;  %v22439_v10 = vld [vmem:[#allocation184_spill] sm:$0xff]  ;;  %v10523_v43 = vpack.c.bf16 %v22448_v58, %v22447_v8 }
 0x15e   :  { %1536 = vmatprep.mubr.f32.mxu1 %v22427_v32  ;;  %10514 = vmatpush1.bf16.msra.mxu1 %v10513_v55  ;;  %v22435_v32 = vld [vmem:[#allocation214_spill] sm:$0xff]  ;;  %v22461_v8 = vld [vmem:[#allocation229_spill] sm:$0xff] }
 0x15f   :  { %6454 = vmatmul.mubr.f32.gmra.mrb[4].mxu0 %v22432_v1  ;;  %10516 = vmatprep.subr.bf16.mxu1 %v10515_v38  ;;  %v22440_v1 = vld [vmem:[#allocation216_spill] sm:$0xff]  ;;  %v22441_v60 = vld [vmem:[#allocation46_spill] sm:$0xff]  ;;  %v22450_v38 = vld [vmem:[#allocation53_spill] sm:$0xff] }
 0x160   :  { %6460 = vmatprep.mubr.f32.mxu0 %v22435_v32  ;;  %11282 = vmatpush1.bf16.msra.mxu0 %v11281_v41  ;;  %v11287_v54 = vpack.c.bf16 %v22442_v21, %v22441_v60  ;;  %v22444_v55 = vld [vmem:[#allocation50_spill] sm:$0xff]  ;;  %v22445_v41 = vld [vmem:[#allocation51_spill] sm:$0xff]  ;;  %v22455_v60 = vld [vmem:[#allocation228_spill] sm:$0xff] }
 0x161   :  { %1538 = vmatmul.mubr.f32.gmra.mrb[6].mxu1 %v22440_v1  ;;  %11284 = vmatprep.subr.bf16.mxu0 %v11283_v61  ;;  %v10521_v32 = vpack.c.bf16 %v22445_v41, %v22444_v55  ;;  %v22451_v61 = vld [vmem:[#allocation54_spill] sm:$0xff] }
 0x162   :  { %1544 = vmatprep.mubr.f32.mxu1 %v22443_v36  ;;  %10518 = vmatpush1.bf16.msra.mxu1 %v10517_v59  ;;  %v11289_v1 = vpack.c.bf16 %v22451_v61, %v22450_v38  ;;  %v22453_v36 = vld [vmem:[#allocation58_spill] sm:$0xff]  ;;  %v22454_v59 = vld [vmem:[#allocation60_spill] sm:$0xff] }
 0x163   :  { %6462 = vmatmul.mubr.f32.gmra.mrb[6].mxu0 %v22446_v35  ;;  %10520 = vmatprep.subr.bf16.mxu1 %v10519_v37  ;;  %v11291_v21 = vpack.c.bf16 %v22454_v59, %v22453_v36  ;;  %v22456_v35 = vld [vmem:[#allocation62_spill] sm:$0xff]  ;;  %v22457_v37 = vld [vmem:[#allocation63_spill] sm:$0xff]  ;;  %v22467_v36 = vld [vmem:[#allocation236_spill] sm:$0xff] }
 0x164   :  { %6468 = vmatprep.mubr.f32.mxu0 %v22449_v14  ;;  %11286 = vmatpush1.bf16.msra.mxu0 %v11285_v50  ;;  %v10525_v41 = vpack.c.bf16 %v22457_v37, %v22456_v35  ;;  %v22458_v55 = vld [vmem:[#allocation226_spill] sm:$0xff]  ;;  %v22459_v14 = vld [vmem:[#allocation68_spill] sm:$0xff]  ;;  %v22460_v50 = vld [vmem:[#allocation69_spill] sm:$0xff] }
 0x165   :  { %1546 = vmatmul.mubr.f32.gmra.mrb[8].mxu1 %v22452_v13  ;;  %11288 = vmatprep.subr.bf16.mxu0 %v11287_v54  ;;  %v10527_v58 = vpack.c.bf16 %v22460_v50, %v22459_v14  ;;  %v22462_v13 = vld [vmem:[#allocation65_spill] sm:$0xff]  ;;  %v22463_v54 = vld [vmem:[#allocation66_spill] sm:$0xff] }
 0x166   :  { %1552 = vmatprep.mubr.f32.mxu1 %v22455_v60  ;;  %10522 = vmatpush1.bf16.msra.mxu1 %v10521_v32  ;;  %v11293_v61 = vpack.c.bf16 %v22463_v54, %v22462_v13  ;;  %v22464_v38 = vld [vmem:[#allocation230_spill] sm:$0xff]  ;;  %v22466_v32 = vld [vmem:[#allocation72_spill] sm:$0xff]  ;;  %v22473_v14 = vld [vmem:[#allocation237_spill] sm:$0xff] }
 0x167   :  { %6470 = vmatmul.mubr.f32.gmra.mrb[8].mxu0 %v22458_v55  ;;  %10524 = vmatprep.subr.bf16.mxu1 %v10523_v43  ;;  %v22465_v60 = vld [vmem:[#allocation70_spill] sm:$0xff]  ;;  %v22469_v43 = vld [vmem:[#allocation75_spill] sm:$0xff] }
 0x168   :  { %6476 = vmatprep.mubr.f32.mxu0 %v22461_v8  ;;  %11290 = vmatpush1.bf16.msra.mxu0 %v11289_v1  ;;  %v11295_v59 = vpack.c.bf16 %v22466_v32, %v22465_v60  ;;  %v22468_v55 = vld [vmem:[#allocation74_spill] sm:$0xff]  ;;  %v22471_v8 = vld [vmem:[#allocation80_spill] sm:$0xff]  ;;  %v22472_v1 = vld [vmem:[#allocation81_spill] sm:$0xff] }
 0x169   :  { %1554 = vmatmul.mubr.f32.gmra.mrb[10].mxu1 %v22464_v38  ;;  %11292 = vmatprep.subr.bf16.mxu0 %v11291_v21  ;;  %v10529_v37 = vpack.c.bf16 %v22469_v43, %v22468_v55  ;;  %v22470_v35 = vld [vmem:[#allocation234_spill] sm:$0xff]  ;;  %v10531_v50 = vpack.c.bf16 %v22472_v1, %v22471_v8  ;;  %v22474_v38 = vld [vmem:[#allocation77_spill] sm:$0xff]  ;;  %v22476_v13 = vld [vmem:[#allocation239_spill] sm:$0xff] }
 0x16a   :  { %1560 = vmatprep.mubr.f32.mxu1 %v22467_v36  ;;  %10526 = vmatpush1.bf16.msra.mxu1 %v10525_v41  ;;  %v22475_v21 = vld [vmem:[#allocation78_spill] sm:$0xff]  ;;  %v22478_v41 = vld [vmem:[#allocation84_spill] sm:$0xff]  ;;  %v22482_v55 = vld [vmem:[#allocation241_spill] sm:$0xff] }
 0x16b   :  { %6478 = vmatmul.mubr.f32.gmra.mrb[10].mxu0 %v22470_v35  ;;  %10528 = vmatprep.subr.bf16.mxu1 %v10527_v58  ;;  %v11297_v54 = vpack.c.bf16 %v22475_v21, %v22474_v38  ;;  %v22477_v36 = vld [vmem:[#allocation82_spill] sm:$0xff]  ;;  %v22479_v60 = vld [vmem:[#allocation244_spill] sm:$0xff]  ;;  %v22481_v58 = vld [vmem:[#allocation87_spill] sm:$0xff] }
 0x16c   :  { %6484 = vmatprep.mubr.f32.mxu0 %v22473_v14  ;;  %11294 = vmatpush1.bf16.msra.mxu0 %v11293_v61  ;;  %v11299_v32 = vpack.c.bf16 %v22478_v41, %v22477_v36  ;;  %v22480_v35 = vld [vmem:[#allocation86_spill] sm:$0xff]  ;;  %v22483_v14 = vld [vmem:[#allocation92_spill] sm:$0xff]  ;;  %v22484_v61 = vld [vmem:[#allocation93_spill] sm:$0xff] }
 0x16d   :  { %1562 = vmatmul.mubr.f32.gmra.mrb[12].mxu1 %v22476_v13  ;;  %11296 = vmatprep.subr.bf16.mxu0 %v11295_v59  ;;  %v10533_v43 = vpack.c.bf16 %v22481_v58, %v22480_v35  ;;  %v10535_v1 = vpack.c.bf16 %v22484_v61, %v22483_v14  ;;  %v22485_v8 = vld [vmem:[#allocation245_spill] sm:$0xff]  ;;  %v22487_v59 = vld [vmem:[#allocation90_spill] sm:$0xff]  ;;  %v22491_v36 = vld [vmem:[#allocation252_spill] sm:$0xff] }
 0x16e   :  { %1568 = vmatprep.mubr.f32.mxu1 %v22479_v60  ;;  %10530 = vmatpush1.bf16.msra.mxu1 %v10529_v37  ;;  %v22486_v13 = vld [vmem:[#allocation89_spill] sm:$0xff]  ;;  %v22488_v38 = vld [vmem:[#allocation246_spill] sm:$0xff]  ;;  %v22490_v37 = vld [vmem:[#allocation96_spill] sm:$0xff] }
 0x16f   :  { %6486 = vmatmul.mubr.f32.gmra.mrb[12].mxu0 %v22482_v55  ;;  %10532 = vmatprep.subr.bf16.mxu1 %v10531_v50  ;;  %v11301_v21 = vpack.c.bf16 %v22487_v59, %v22486_v13  ;;  %v22489_v60 = vld [vmem:[#allocation94_spill] sm:$0xff]  ;;  %v22493_v50 = vld [vmem:[#allocation99_spill] sm:$0xff]  ;;  %v22494_v35 = vld [vmem:[#allocation248_spill] sm:$0xff] }
 0x170   :  { %6492 = vmatprep.mubr.f32.mxu0 %v22485_v8  ;;  %11298 = vmatpush1.bf16.msra.mxu0 %v11297_v54  ;;  %v11303_v41 = vpack.c.bf16 %v22490_v37, %v22489_v60  ;;  %v22492_v55 = vld [vmem:[#allocation98_spill] sm:$0xff]  ;;  %v22495_v8 = vld [vmem:[#allocation104_spill] sm:$0xff]  ;;  %v22496_v54 = vld [vmem:[#allocation105_spill] sm:$0xff] }
 0x171   :  { %1570 = vmatmul.mubr.f32.gmra.mrb[14].mxu1 %v22488_v38  ;;  %11300 = vmatprep.subr.bf16.mxu0 %v11299_v32  ;;  %v10537_v58 = vpack.c.bf16 %v22493_v50, %v22492_v55  ;;  %v10539_v61 = vpack.c.bf16 %v22496_v54, %v22495_v8  ;;  %v22497_v14 = vld [vmem:[#allocation254_spill] sm:$0xff]  ;;  %v22498_v38 = vld [vmem:[#allocation101_spill] sm:$0xff]  ;;  %v22500_v13 = vld [vmem:[#allocation255_spill] sm:$0xff] }
 0x172   :  { %1576 = vmatprep.mubr.f32.mxu1 %v22491_v36  ;;  %10534 = vmatpush1.bf16.msra.mxu1 %v10533_v43  ;;  %v22499_v32 = vld [vmem:[#allocation102_spill] sm:$0xff]  ;;  %v22502_v43 = vld [vmem:[#allocation108_spill] sm:$0xff] }
 0x173   :  { %6494 = vmatmul.mubr.f32.gmra.mrb[14].mxu0 %v22494_v35  ;;  %10536 = vmatprep.subr.bf16.mxu1 %v10535_v1  ;;  %v11305_v59 = vpack.c.bf16 %v22499_v32, %v22498_v38  ;;  %v22501_v36 = vld [vmem:[#allocation106_spill] sm:$0xff]  ;;  %v22503_v60 = vld [vmem:[#allocation260_spill] sm:$0xff]  ;;  %v22505_v1 = vld [vmem:[#allocation111_spill] sm:$0xff] }
 0x174   :  { %6500 = vmatprep.mubr.f32.mxu0 %v22497_v14  ;;  %11302 = vmatpush1.bf16.msra.mxu0 %v11301_v21  ;;  %v11307_v37 = vpack.c.bf16 %v22502_v43, %v22501_v36  ;;  %v22504_v35 = vld [vmem:[#allocation110_spill] sm:$0xff]  ;;  %v22507_v14 = vld [vmem:[#allocation116_spill] sm:$0xff]  ;;  %v22508_v21 = vld [vmem:[#allocation117_spill] sm:$0xff] }
 0x175   :  { %1578 = vmatmul.mubr.f32.gmra.mrb[16].mxu1 %v22500_v13  ;;  %11304 = vmatprep.subr.bf16.mxu0 %v11303_v41  ;;  %v10541_v50 = vpack.c.bf16 %v22505_v1, %v22504_v35  ;;  %v22506_v55 = vld [vmem:[#allocation258_spill] sm:$0xff]  ;;  %v10543_v54 = vpack.c.bf16 %v22508_v21, %v22507_v14  ;;  %v22510_v13 = vld [vmem:[#allocation113_spill] sm:$0xff]  ;;  %v22512_v38 = vld [vmem:[#allocation264_spill] sm:$0xff] }
 0x176   :  { %1584 = vmatprep.mubr.f32.mxu1 %v22503_v60  ;;  %10538 = vmatpush1.bf16.msra.mxu1 %v10537_v58  ;;  %v22509_v8 = vld [vmem:[#allocation262_spill] sm:$0xff]  ;;  %v22514_v58 = vld [vmem:[#allocation120_spill] sm:$0xff]  ;;  %v22521_v14 = vld [vmem:[#allocation269_spill] sm:$0xff] }
 0x177   :  { %6502 = vmatmul.mubr.f32.gmra.mrb[16].mxu0 %v22506_v55  ;;  %10540 = vmatprep.subr.bf16.mxu1 %v10539_v61  ;;  %v22511_v41 = vld [vmem:[#allocation114_spill] sm:$0xff]  ;;  %v22515_v36 = vld [vmem:[#allocation268_spill] sm:$0xff]  ;;  %v22517_v61 = vld [vmem:[#allocation123_spill] sm:$0xff] }
 0x178   :  { %6508 = vmatprep.mubr.f32.mxu0 %v22509_v8  ;;  %11306 = vmatpush1.bf16.msra.mxu0 %v11305_v59  ;;  %v11309_v32 = vpack.c.bf16 %v22511_v41, %v22510_v13  ;;  %v22513_v60 = vld [vmem:[#allocation118_spill] sm:$0xff]  ;;  %v22519_v8 = vld [vmem:[#allocation128_spill] sm:$0xff]  ;;  %v22520_v59 = vld [vmem:[#allocation129_spill] sm:$0xff] }
 0x179   :  { %1586 = vmatmul.mubr.f32.gmra.mrb[18].mxu1 %v22512_v38  ;;  %11308 = vmatprep.subr.bf16.mxu0 %v11307_v37  ;;  %v11311_v43 = vpack.c.bf16 %v22514_v58, %v22513_v60  ;;  %v22516_v55 = vld [vmem:[#allocation122_spill] sm:$0xff]  ;;  %v10547_v21 = vpack.c.bf16 %v22520_v59, %v22519_v8  ;;  %v22522_v38 = vld [vmem:[#allocation125_spill] sm:$0xff]  ;;  %v22524_v13 = vld [vmem:[#allocation271_spill] sm:$0xff] }
 0x17a   :  { %1592 = vmatprep.mubr.f32.mxu1 %v22515_v36  ;;  %10542 = vmatpush1.bf16.msra.mxu1 %v10541_v50  ;;  %v10545_v1 = vpack.c.bf16 %v22517_v61, %v22516_v55  ;;  %v22518_v35 = vld [vmem:[#allocation266_spill] sm:$0xff]  ;;  %v22526_v50 = vld [vmem:[#allocation132_spill] sm:$0xff]  ;;  %v22533_v8 = vld [vmem:[#allocation277_spill] sm:$0xff] }
 0x17b   :  { %6510 = vmatmul.mubr.f32.gmra.mrb[18].mxu0 %v22518_v35  ;;  %10544 = vmatprep.subr.bf16.mxu1 %v10543_v54  ;;  %v22523_v37 = vld [vmem:[#allocation126_spill] sm:$0xff]  ;;  %v22527_v60 = vld [vmem:[#allocation276_spill] sm:$0xff]  ;;  %v22529_v54 = vld [vmem:[#allocation135_spill] sm:$0xff] }
 0x17c   :  { %6516 = vmatprep.mubr.f32.mxu0 %v22521_v14  ;;  %11310 = vmatpush1.bf16.msra.mxu0 %v11309_v32  ;;  %v11313_v41 = vpack.c.bf16 %v22523_v37, %v22522_v38  ;;  %v22525_v36 = vld [vmem:[#allocation130_spill] sm:$0xff]  ;;  %v22531_v14 = vld [vmem:[#allocation140_spill] sm:$0xff]  ;;  %v22532_v32 = vld [vmem:[#allocation141_spill] sm:$0xff] }
 0x17d   :  { %1594 = vmatmul.mubr.f32.gmra.mrb[20].mxu1 %v22524_v13  ;;  %11312 = vmatprep.subr.bf16.mxu0 %v11311_v43  ;;  %v11315_v58 = vpack.c.bf16 %v22526_v50, %v22525_v36  ;;  %v22528_v35 = vld [vmem:[#allocation134_spill] sm:$0xff]  ;;  %v10551_v59 = vpack.c.bf16 %v22532_v32, %v22531_v14  ;;  %v22534_v13 = vld [vmem:[#allocation137_spill] sm:$0xff]  ;;  %v22539_v36 = vld [vmem:[#allocation284_spill] sm:$0xff] }
 0x17e   :  { %1600 = vmatprep.mubr.f32.mxu1 %v22527_v60  ;;  %10546 = vmatpush1.bf16.msra.mxu1 %v10545_v1  ;;  %v10549_v61 = vpack.c.bf16 %v22529_v54, %v22528_v35  ;;  %v22530_v55 = vld [vmem:[#allocation274_spill] sm:$0xff]  ;;  %v22538_v1 = vld [vmem:[#allocation144_spill] sm:$0xff]  ;;  %v22657_v32 = vld [vmem:[#allocation97_spill] sm:$0xff] }
 0x17f   :  { %6518 = vmatmul.mubr.f32.gmra.mrb[20].mxu0 %v22530_v55  ;;  %10548 = vmatprep.subr.bf16.mxu1 %v10547_v21  ;;  %v22535_v43 = vld [vmem:[#allocation138_spill] sm:$0xff]  ;;  %v22541_v21 = vld [vmem:[#allocation147_spill] sm:$0xff]  ;;  %v22542_v35 = vld [vmem:[#allocation280_spill] sm:$0xff] }
 0x180   :  { %6524 = vmatprep.mubr.f32.mxu0 %v22533_v8  ;;  %11314 = vmatpush1.bf16.msra.mxu0 %v11313_v41  ;;  %v11317_v37 = vpack.c.bf16 %v22535_v43, %v22534_v13  ;;  %v22536_v38 = vld [vmem:[#allocation278_spill] sm:$0xff]  ;;  %v22543_v8 = vld [vmem:[#allocation285_spill] sm:$0xff]  ;;  %v22659_v14 = vld [vmem:[#allocation103_spill] sm:$0xff] }
 0x181   :  { %1602 = vmatmul.mubr.f32.gmra.mrb[22].mxu1 %v22536_v38  ;;  %11316 = vmatprep.subr.bf16.mxu0 %v11315_v58  ;;  %v22537_v60 = vld [vmem:[#allocation142_spill] sm:$0xff]  ;;  %v22545_v38 = vld [vmem:[#allocation292_spill] sm:$0xff]  ;;  %v22546_v58 = vld [vmem:[#allocation289_spill] sm:$0xff] }
 0x182   :  { %v11319_v50 = vpack.c.bf16 %v22538_v1, %v22537_v60  ;;  %1608 = vmatprep.mubr.f32.mxu1 %v22539_v36  ;;  %10550 = vmatpush1.bf16.msra.mxu1 %v10549_v61  ;;  %v22540_v55 = vld [vmem:[#allocation146_spill] sm:$0xff]  ;;  %v22547_v61 = vpack.c.bf16 %v22360_v15, %v22357_v40  ;;  %v22641_v15 = vld [vmem:[#allocation73_spill] sm:$0xff]  ;;  %v22643_v40 = vld [vmem:[#allocation79_spill] sm:$0xff] }
 0x183   :  { %v10553_v54 = vpack.c.bf16 %v22541_v21, %v22540_v55  ;;  %6526 = vmatmul.mubr.f32.gmra.mrb[22].mxu0 %v22542_v35  ;;  %10552 = vmatprep.subr.bf16.mxu1 %v10551_v59  ;;  %v22544_v41 = vld [vmem:[#allocation286_spill] sm:$0xff]  ;;  %v22549_v59 = vpack.c.bf16 %v22350_v20, %v22349_v6  ;;  %v22581_v35 = vld [vmem:[#allocation329_spill] sm:$0xff]  ;;  %v22645_v20 = vld [vmem:[#allocation76_spill] sm:$0xff] }
 0x184   :  { %6532 = vmatprep.mubr.f32.mxu0 %v22543_v8  ;;  %11318 = vmatpush1.bf16.msra.mxu0 %v11317_v37  ;;  %v22548_v36 = vld [vmem:[#allocation294_spill] sm:$0xff]  ;;  %v22550_v8 = vld [vmem:[#allocation295_spill] sm:$0xff]  ;;  %v22551_v37 = vpack.c.bf16 %v22363_v27, %v22362_v22  ;;  %v22637_v27 = vld [vmem:[#allocation64_spill] sm:$0xff] }
 0x185   :  { %1610 = vmatmul.mubr.f32.gmra.mrb[24].mxu1 %v22544_v41  ;;  %11320 = vmatprep.subr.bf16.mxu0 %v11319_v50  ;;  %v22552_v50 = vld [vmem:[#allocation300_spill] sm:$0xff]  ;;  %v22578_v41 = vld [vmem:[#allocation325_spill] sm:$0xff]  ;;  %v22639_v22 = vld [vmem:[#allocation71_spill] sm:$0xff] }
 0x186   :  { %1616 = vmatprep.mubr.f32.mxu1 %v22545_v38  ;;  %10554 = vmatpush1.bf16.msra.mxu1 %v10553_v54  ;;  %v22553_v54 = vpack.c.bf16 %v22368_v17, %v22424_v29  ;;  %v22575_v38 = vld [vmem:[#allocation9_spill] sm:$0xff]  ;;  %v22635_v29 = vld [vmem:[#allocation67_spill] sm:$0xff]  ;;  %v22653_v1 = vld [vmem:[#allocation88_spill] sm:$0xff] }
 0x187   :  { %6534 = vmatmul.mubr.f32.gmra.mrb[24].mxu0 %v22546_v58  ;;  %10556 = vmatprep.subr.bf16.mxu1 %v22547_v61  ;;  %v22554_v58 = vld [vmem:[#allocation298_spill] sm:$0xff]  ;;  %v22555_v61 = vpack.c.bf16 %v22428_v46, %v13545_v48  ;;  %v22629_v46 = vld [vmem:[#allocation52_spill] sm:$0xff]  ;;  %v22631_v48 = vld [vmem:[#allocation59_spill] sm:$0xff] }
 0x188   :  { %6540 = vmatprep.mubr.f32.mxu0 %v22548_v36  ;;  %11322 = vmatpush1.bf16.msra.mxu0 %v22549_v59  ;;  %v22556_v36 = vld [vmem:[#allocation302_spill] sm:$0xff]  ;;  %v22557_v59 = vpack.c.bf16 %v22426_v19, %v22425_v28  ;;  %v22625_v19 = vld [vmem:[#allocation49_spill] sm:$0xff]  ;;  %v22627_v28 = vld [vmem:[#allocation55_spill] sm:$0xff] }
 0x189   :  { %1618 = vmatmul.mubr.f32.gmra.mrb[26].mxu1 %v22550_v8  ;;  %11324 = vmatprep.subr.bf16.mxu0 %v22551_v37  ;;  %v22558_v8 = vld [vmem:[#allocation304_spill] sm:$0xff]  ;;  %v22559_v37 = vpack.c.bf16 %v22430_v25, %v22429_v2  ;;  %v22623_v2 = vld [vmem:[#allocation47_spill] sm:$0xff]  ;;  %v22633_v17 = vld [vmem:[#allocation61_spill] sm:$0xff] }
 0x18a   :  { %1624 = vmatprep.mubr.f32.mxu1 %v22552_v50  ;;  %10558 = vmatpush1.bf16.msra.mxu1 %v22553_v54  ;;  %v22560_v50 = vld [vmem:[#allocation308_spill] sm:$0xff]  ;;  %v22561_v54 = vpack.c.bf16 %v22431_v44, %v22384_v34  ;;  %v22617_v44 = vld [vmem:[#allocation38_spill] sm:$0xff]  ;;  %v22619_v34 = vld [vmem:[#allocation43_spill] sm:$0xff] }
 0x18b   :  { %6542 = vmatmul.mubr.f32.gmra.mrb[26].mxu0 %v22554_v58  ;;  %10560 = vmatprep.subr.bf16.mxu1 %v22555_v61  ;;  %v22562_v58 = vld [vmem:[#allocation306_spill] sm:$0xff]  ;;  %v22563_v61 = vpack.c.bf16 %v22396_v18, %v22393_v31  ;;  %v22609_v18 = vld [vmem:[#allocation25_spill] sm:$0xff]  ;;  %v22612_v31 = vld [vmem:[#allocation215_spill] sm:$0xff] }
 0x18c   :  { %6548 = vmatprep.mubr.f32.mxu0 %v22556_v36  ;;  %11326 = vmatpush1.bf16.msra.mxu0 %v22557_v59  ;;  %v22564_v36 = vld [vmem:[#allocation309_spill] sm:$0xff]  ;;  %v22565_v59 = vpack.c.bf16 %v22434_v4, %v22433_v52  ;;  %v22613_v4 = vld [vmem:[#allocation28_spill] sm:$0xff]  ;;  %v22647_v6 = vld [vmem:[#allocation83_spill] sm:$0xff] }
 0x18d   :  { %1626 = vmatmul.mubr.f32.gmra.mrb[28].mxu1 %v22558_v8  ;;  %11328 = vmatprep.subr.bf16.mxu0 %v22559_v37  ;;  %v22566_v8 = vld [vmem:[#allocation311_spill] sm:$0xff]  ;;  %v22567_v37 = vpack.c.bf16 %v22400_v26, %v13597_v30  ;;  %v22605_v26 = vld [vmem:[#allocation209_spill] sm:$0xff]  ;;  %v22621_v25 = vld [vmem:[#allocation40_spill] sm:$0xff] }
 0x18e   :  { %1632 = vmatprep.mubr.f32.mxu1 %v22560_v50  ;;  %10562 = vmatpush1.bf16.msra.mxu1 %v22561_v54  ;;  %v22568_v50 = vld [vmem:[#allocation316_spill] sm:$0xff]  ;;  %v22569_v54 = vpack.c.bf16 %v22439_v10, %v22438_v45  ;;  %v22602_v10 = vld [vmem:[#allocation203_spill] sm:$0xff]  ;;  %v22608_v30 = vld [vmem:[#allocation213_spill] sm:$0xff] }
 0x18f   :  { %6550 = vmatmul.mubr.f32.gmra.mrb[28].mxu0 %v22562_v58  ;;  %10564 = vmatprep.subr.bf16.mxu1 %v22563_v61  ;;  %v22570_v58 = vld [vmem:[#allocation314_spill] sm:$0xff]  ;;  %v22571_v61 = vld [vmem:[#allocation5_spill] sm:$0xff]  ;;  %v22604_v45 = vld [vmem:[#allocation20_spill] sm:$0xff] }
 0x190   :  { %6556 = vmatprep.mubr.f32.mxu0 %v22564_v36  ;;  %11330 = vmatpush1.bf16.msra.mxu0 %v22565_v59  ;;  %v22572_v36 = vld [vmem:[#allocation317_spill] sm:$0xff]  ;;  %v22573_v59 = vpack.c.bf16 %v22407_v9, %v22404_v39  ;;  %v22599_v9 = vld [vmem:[#allocation18_spill] sm:$0xff]  ;;  %v22651_v55 = vld [vmem:[#allocation91_spill] sm:$0xff] }
 0x191   :  { %1634 = vmatmul.mubr.f32.gmra.mrb[30].mxu1 %v22566_v8  ;;  %11332 = vmatprep.subr.bf16.mxu0 %v22567_v37  ;;  %v22574_v8 = vld [vmem:[#allocation318_spill] sm:$0xff]  ;;  %v22576_v37 = vld [vmem:[#allocation324_spill] sm:$0xff]  ;;  %v22601_v39 = vld [vmem:[#allocation205_spill] sm:$0xff] }
 0x192   :  { %1640 = vmatprep.mubr.f32.mxu1 %v22568_v50  ;;  %10566 = vmatpush1.bf16.msra.mxu1 %v22569_v54  ;;  %v22577_v50 = vld [vmem:[#allocation320_spill] sm:$0xff]  ;;  %v22579_v54 = vld [vmem:[#allocation326_spill] sm:$0xff]  ;;  %v22616_v52 = vld [vmem:[#allocation221_spill] sm:$0xff] }
 0x193   :  { %6558 = vmatmul.mubr.f32.gmra.mrb[30].mxu0 %v22570_v58  ;;  %10568 = vmatprep.subr.bf16.mxu1 %v22571_v61  ;;  %v22580_v58 = vld [vmem:[#allocation332_spill] sm:$0xff]  ;;  %v22583_v61 = vld [vmem:[#allocation335_spill] sm:$0xff]  ;;  %v22649_v21 = vld [vmem:[#allocation85_spill] sm:$0xff] }
 0x194   :  { %6564 = vmatprep.mubr.f32.mxu0 %v22572_v36  ;;  %11334 = vmatpush1.bf16.msra.mxu0 %v22573_v59  ;;  %v22582_v36 = vld [vmem:[#allocation334_spill] sm:$0xff]  ;;  %v22584_v59 = vld [vmem:[#allocation340_spill] sm:$0xff]  ;;  %v22655_v60 = vld [vmem:[#allocation95_spill] sm:$0xff] }
 0x195   :  { %1642 = vmatmul.mubr.f32.gmra.mrb[32].mxu1 %v22574_v8  ;;  %11336 = vmatprep.subr.bf16.mxu0 %v22575_v38  ;;  %v22585_v8 = vld [vmem:[#allocation338_spill] sm:$0xff]  ;;  %v22661_v43 = vld [vmem:[#allocation100_spill] sm:$0xff]  ;;  %v22663_v13 = vld [vmem:[#allocation107_spill] sm:$0xff] }
 0x196   :  { %1648 = vmatprep.mubr.f32.mxu1 %v22576_v37  ;;  %v22586_v38 = vld [vmem:[#allocation342_spill] sm:$0xff]  ;;  %v22587_v37 = vld [vmem:[#allocation344_spill] sm:$0xff] }
 0x197   :  { %6566 = vmatmul.mubr.f32.gmra.mrb[32].mxu0 %v22577_v50  ;;  %v22588_v50 = vld [vmem:[#allocation192_spill] sm:$0xff] }
 0x198   :  { %6572 = vmatprep.mubr.f32.mxu0 %v22578_v41  ;;  %v22589_v41 = vld [vmem:[#allocation346_spill] sm:$0xff] }
 0x199   :  { %1650 = vmatmul.mubr.f32.gmra.mrb[34].mxu1 %v22579_v54  ;;  %v22590_v54 = vld [vmem:[#allocation193_spill] sm:$0xff] }
 0x19a   :  { %1656 = vmatprep.mubr.f32.mxu1 %v22580_v58  ;;  %v22591_v58 = vld [vmem:[#allocation194_spill] sm:$0xff] }
 0x19b   :  { %6574 = vmatmul.mubr.f32.gmra.mrb[34].mxu0 %v22581_v35  ;;  %v22592_v35 = vld [vmem:[#allocation11_spill] sm:$0xff] }
 0x19c   :  { %6580 = vmatprep.mubr.f32.mxu0 %v22582_v36  ;;  %v22593_v36 = vld [vmem:[#allocation197_spill] sm:$0xff] }
 0x19d   :  { %1658 = vmatmul.mubr.f32.gmra.mrb[36].mxu1 %v22583_v61  ;;  %v22594_v61 = vld [vmem:[#allocation195_spill] sm:$0xff] }
 0x19e   :  { %1664 = vmatprep.mubr.f32.mxu1 %v22584_v59  ;;  %v22595_v59 = vld [vmem:[#allocation17_spill] sm:$0xff] }
 0x19f   :  { %6582 = vmatmul.mubr.f32.gmra.mrb[36].mxu0 %v22585_v8  ;;  %v22596_v8 = vld [vmem:[#allocation14_spill] sm:$0xff] }
 0x1a0   :  { %6588 = vmatprep.mubr.f32.mxu0 %v22586_v38  ;;  %v22597_v38 = vld [vmem:[#allocation201_spill] sm:$0xff] }
 0x1a1   :  { %1666 = vmatmul.mubr.f32.gmra.mrb[38].mxu1 %v22587_v37  ;;  %v22598_v37 = vld [vmem:[#allocation202_spill] sm:$0xff] }
 0x1a2   :  { %1866 = vmatprep.mubr.f32.mxu1 %v22588_v50 }
 0x1a3   :  { %6590 = vmatmul.mubr.f32.gmra.mrb[38].mxu0 %v22589_v41  ;;  %v22600_v41 = vld [vmem:[#allocation19_spill] sm:$0xff] }
 0x1a4   :  { %6790 = vmatprep.mubr.f32.mxu0 %v22590_v54 }
 0x1a5   :  { %1869 = vmatmul.mubr.f32.vlgmr.msra.gmra.mrb[0].mxu1 %v22591_v58 }
 0x1a6   :  { %10570 = vmatpush1.bf16.msra.mxu1 %v22592_v35  ;;  %1876 = vmatprep.mubr.f32.mxu1 %v22593_v36  ;;  %v22603_v35 = vld [vmem:[#allocation21_spill] sm:$0xff] }
 0x1a7   :  { %6793 = vmatmul.mubr.f32.vlgmr.msra.gmra.mrb[0].mxu0 %v22594_v61  ;;  %10572 = vmatprep.subr.bf16.mxu1 %v22595_v59  ;;  %v22606_v59 = vld [vmem:[#allocation210_spill] sm:$0xff] }
 0x1a8   :  { %11338 = vmatpush1.bf16.msra.mxu0 %v22596_v8  ;;  %6800 = vmatprep.mubr.f32.mxu0 %v22597_v38  ;;  %v22607_v8 = vld [vmem:[#allocation22_spill] sm:$0xff] }
 0x1a9   :  { %1879 = vmatmul.mubr.f32.gmra.mrb[2].mxu1 %v22598_v37  ;;  %11340 = vmatprep.subr.bf16.mxu0 %v22599_v9  ;;  %v22610_v9 = vld [vmem:[#allocation211_spill] sm:$0xff] }
 0x1aa   :  { %10574 = vmatpush1.bf16.msra.mxu1 %v22600_v41  ;;  %1886 = vmatprep.mubr.f32.mxu1 %v22601_v39  ;;  %v22611_v41 = vld [vmem:[#allocation31_spill] sm:$0xff] }
 0x1ab   :  { %6803 = vmatmul.mubr.f32.gmra.mrb[2].mxu0 %v22602_v10  ;;  %10576 = vmatprep.subr.bf16.mxu1 %v22603_v35  ;;  %v22614_v35 = vld [vmem:[#allocation218_spill] sm:$0xff] }
 0x1ac   :  { %11342 = vmatpush1.bf16.msra.mxu0 %v22604_v45  ;;  %6810 = vmatprep.mubr.f32.mxu0 %v22605_v26  ;;  %v22615_v45 = vld [vmem:[#allocation34_spill] sm:$0xff] }
 0x1ad   :  { %1889 = vmatmul.mubr.f32.gmra.mrb[4].mxu1 %v22606_v59  ;;  %11344 = vmatprep.subr.bf16.mxu0 %v22607_v8  ;;  %v22618_v8 = vld [vmem:[#allocation219_spill] sm:$0xff] }
 0x1ae   :  { %1896 = vmatprep.mubr.f32.mxu1 %v22608_v30  ;;  %10578 = vmatpush1.bf16.msra.mxu1 %v22609_v18  ;;  %v22620_v18 = vld [vmem:[#allocation223_spill] sm:$0xff] }
 0x1af   :  { %6813 = vmatmul.mubr.f32.gmra.mrb[4].mxu0 %v22610_v9  ;;  %10580 = vmatprep.subr.bf16.mxu1 %v22611_v41  ;;  %v22622_v41 = vld [vmem:[#allocation225_spill] sm:$0xff] }
 0x1b0   :  { %6820 = vmatprep.mubr.f32.mxu0 %v22612_v31  ;;  %11346 = vmatpush1.bf16.msra.mxu0 %v22613_v4  ;;  %v22624_v4 = vld [vmem:[#allocation231_spill] sm:$0xff] }
 0x1b1   :  { %1899 = vmatmul.mubr.f32.gmra.mrb[6].mxu1 %v22614_v35  ;;  %11348 = vmatprep.subr.bf16.mxu0 %v22615_v45  ;;  %v22626_v45 = vld [vmem:[#allocation227_spill] sm:$0xff] }
 0x1b2   :  { %1906 = vmatprep.mubr.f32.mxu1 %v22616_v52  ;;  %10582 = vmatpush1.bf16.msra.mxu1 %v22617_v44  ;;  %v22628_v44 = vld [vmem:[#allocation232_spill] sm:$0xff] }
 0x1b3   :  { %6823 = vmatmul.mubr.f32.gmra.mrb[6].mxu0 %v22618_v8  ;;  %10584 = vmatprep.subr.bf16.mxu1 %v22619_v34  ;;  %v22630_v34 = vld [vmem:[#allocation233_spill] sm:$0xff] }
 0x1b4   :  { %6830 = vmatprep.mubr.f32.mxu0 %v22620_v18  ;;  %11350 = vmatpush1.bf16.msra.mxu0 %v22621_v25  ;;  %v22632_v25 = vld [vmem:[#allocation238_spill] sm:$0xff] }
 0x1b5   :  { %1909 = vmatmul.mubr.f32.gmra.mrb[8].mxu1 %v22622_v41  ;;  %11352 = vmatprep.subr.bf16.mxu0 %v22623_v2  ;;  %v22634_v2 = vld [vmem:[#allocation235_spill] sm:$0xff] }
 0x1b6   :  { %1916 = vmatprep.mubr.f32.mxu1 %v22624_v4  ;;  %10586 = vmatpush1.bf16.msra.mxu1 %v22625_v19  ;;  %v22636_v19 = vld [vmem:[#allocation240_spill] sm:$0xff] }
 0x1b7   :  { %6833 = vmatmul.mubr.f32.gmra.mrb[8].mxu0 %v22626_v45  ;;  %10588 = vmatprep.subr.bf16.mxu1 %v22627_v28  ;;  %v22638_v28 = vld [vmem:[#allocation242_spill] sm:$0xff] }
 0x1b8   :  { %6840 = vmatprep.mubr.f32.mxu0 %v22628_v44  ;;  %11354 = vmatpush1.bf16.msra.mxu0 %v22629_v46  ;;  %v22640_v46 = vld [vmem:[#allocation247_spill] sm:$0xff] }
 0x1b9   :  { %1919 = vmatmul.mubr.f32.gmra.mrb[10].mxu1 %v22630_v34  ;;  %11356 = vmatprep.subr.bf16.mxu0 %v22631_v48  ;;  %v22642_v48 = vld [vmem:[#allocation243_spill] sm:$0xff] }
 0x1ba   :  { %1926 = vmatprep.mubr.f32.mxu1 %v22632_v25  ;;  %10590 = vmatpush1.bf16.msra.mxu1 %v22633_v17  ;;  %v22644_v17 = vld [vmem:[#allocation249_spill] sm:$0xff] }
 0x1bb   :  { %6843 = vmatmul.mubr.f32.gmra.mrb[10].mxu0 %v22634_v2  ;;  %10592 = vmatprep.subr.bf16.mxu1 %v22635_v29  ;;  %v22646_v29 = vld [vmem:[#allocation250_spill] sm:$0xff] }
 0x1bc   :  { %6850 = vmatprep.mubr.f32.mxu0 %v22636_v19  ;;  %11358 = vmatpush1.bf16.msra.mxu0 %v22637_v27  ;;  %v22648_v27 = vld [vmem:[#allocation253_spill] sm:$0xff] }
 0x1bd   :  { %1929 = vmatmul.mubr.f32.gmra.mrb[12].mxu1 %v22638_v28  ;;  %11360 = vmatprep.subr.bf16.mxu0 %v22639_v22  ;;  %v22650_v22 = vld [vmem:[#allocation251_spill] sm:$0xff] }
 0x1be   :  { %1936 = vmatprep.mubr.f32.mxu1 %v22640_v46  ;;  %10594 = vmatpush1.bf16.msra.mxu1 %v22641_v15  ;;  %v22652_v15 = vld [vmem:[#allocation256_spill] sm:$0xff] }
 0x1bf   :  { %6853 = vmatmul.mubr.f32.gmra.mrb[12].mxu0 %v22642_v48  ;;  %10596 = vmatprep.subr.bf16.mxu1 %v22643_v40  ;;  %v22654_v40 = vld [vmem:[#allocation257_spill] sm:$0xff] }
 0x1c0   :  { %6860 = vmatprep.mubr.f32.mxu0 %v22644_v17  ;;  %11362 = vmatpush1.bf16.msra.mxu0 %v22645_v20  ;;  %v22656_v20 = vld [vmem:[#allocation261_spill] sm:$0xff] }
 0x1c1   :  { %1939 = vmatmul.mubr.f32.gmra.mrb[14].mxu1 %v22646_v29  ;;  %11364 = vmatprep.subr.bf16.mxu0 %v22647_v6  ;;  %v22658_v6 = vld [vmem:[#allocation259_spill] sm:$0xff] }
 0x1c2   :  { %1946 = vmatprep.mubr.f32.mxu1 %v22648_v27  ;;  %10598 = vmatpush1.bf16.msra.mxu1 %v22649_v21  ;;  %v22660_v21 = vld [vmem:[#allocation263_spill] sm:$0xff] }
 0x1c3   :  { %6863 = vmatmul.mubr.f32.gmra.mrb[14].mxu0 %v22650_v22  ;;  %10600 = vmatprep.subr.bf16.mxu1 %v22651_v55  ;;  %v22662_v55 = vld [vmem:[#allocation265_spill] sm:$0xff]  ;;  %v22717_v22 = vld [vmem:[#allocation319_spill] sm:$0xff] }
 0x1c4   :  { %6870 = vmatprep.mubr.f32.mxu0 %v22652_v15  ;;  %11366 = vmatpush1.bf16.msra.mxu0 %v22653_v1  ;;  %v22664_v1 = vld [vmem:[#allocation270_spill] sm:$0xff] }
 0x1c5   :  { %1949 = vmatmul.mubr.f32.gmra.mrb[16].mxu1 %v22654_v40  ;;  %11368 = vmatprep.subr.bf16.mxu0 %v22655_v60  ;;  %v22665_v40 = vld [vmem:[#allocation109_spill] sm:$0xff]  ;;  %v22666_v60 = vld [vmem:[#allocation267_spill] sm:$0xff] }
 0x1c6   :  { %1956 = vmatprep.mubr.f32.mxu1 %v22656_v20  ;;  %10602 = vmatpush1.bf16.msra.mxu1 %v22657_v32  ;;  %v22667_v20 = vld [vmem:[#allocation115_spill] sm:$0xff]  ;;  %v22668_v32 = vld [vmem:[#allocation272_spill] sm:$0xff] }
 0x1c7   :  { %6873 = vmatmul.mubr.f32.gmra.mrb[16].mxu0 %v22658_v6  ;;  %10604 = vmatprep.subr.bf16.mxu1 %v22659_v14  ;;  %v22669_v6 = vld [vmem:[#allocation112_spill] sm:$0xff]  ;;  %v22670_v14 = vld [vmem:[#allocation273_spill] sm:$0xff] }
 0x1c8   :  { %6880 = vmatprep.mubr.f32.mxu0 %v22660_v21  ;;  %11370 = vmatpush1.bf16.msra.mxu0 %v22661_v43  ;;  %v22671_v21 = vld [vmem:[#allocation119_spill] sm:$0xff] }
 0x1c9   :  { %1959 = vmatmul.mubr.f32.gmra.mrb[18].mxu1 %v22662_v55  ;;  %11372 = vmatprep.subr.bf16.mxu0 %v22663_v13  ;;  %v22672_v43 = vld [vmem:[#allocation279_spill] sm:$0xff]  ;;  %v22673_v55 = vld [vmem:[#allocation121_spill] sm:$0xff] }
 0x1ca   :  { %1966 = vmatprep.mubr.f32.mxu1 %v22664_v1  ;;  %10606 = vmatpush1.bf16.msra.mxu1 %v22665_v40  ;;  %v22674_v13 = vld [vmem:[#allocation275_spill] sm:$0xff]  ;;  %v22676_v40 = vld [vmem:[#allocation281_spill] sm:$0xff] }
 0x1cb   :  { %6883 = vmatmul.mubr.f32.gmra.mrb[18].mxu0 %v22666_v60  ;;  %10608 = vmatprep.subr.bf16.mxu1 %v22667_v20  ;;  %v22675_v1 = vld [vmem:[#allocation127_spill] sm:$0xff]  ;;  %v22677_v60 = vld [vmem:[#allocation124_spill] sm:$0xff]  ;;  %v22678_v20 = vld [vmem:[#allocation282_spill] sm:$0xff] }
 0x1cc   :  { %6890 = vmatprep.mubr.f32.mxu0 %v22668_v32  ;;  %11374 = vmatpush1.bf16.msra.mxu0 %v22669_v6  ;;  %v22679_v32 = vld [vmem:[#allocation131_spill] sm:$0xff] }
 0x1cd   :  { %1969 = vmatmul.mubr.f32.gmra.mrb[20].mxu1 %v22670_v14  ;;  %11376 = vmatprep.subr.bf16.mxu0 %v22671_v21  ;;  %v22680_v6 = vld [vmem:[#allocation287_spill] sm:$0xff]  ;;  %v22681_v14 = vld [vmem:[#allocation133_spill] sm:$0xff] }
 0x1ce   :  { %1976 = vmatprep.mubr.f32.mxu1 %v22672_v43  ;;  %10610 = vmatpush1.bf16.msra.mxu1 %v22673_v55  ;;  %v22682_v21 = vld [vmem:[#allocation283_spill] sm:$0xff]  ;;  %v22684_v55 = vld [vmem:[#allocation288_spill] sm:$0xff] }
 0x1cf   :  { %6893 = vmatmul.mubr.f32.gmra.mrb[20].mxu0 %v22674_v13  ;;  %10612 = vmatprep.subr.bf16.mxu1 %v22675_v1  ;;  %v22683_v43 = vld [vmem:[#allocation139_spill] sm:$0xff]  ;;  %v22685_v13 = vld [vmem:[#allocation136_spill] sm:$0xff]  ;;  %v22686_v1 = vld [vmem:[#allocation290_spill] sm:$0xff] }
 0x1d0   :  { %6900 = vmatprep.mubr.f32.mxu0 %v22676_v40  ;;  %11378 = vmatpush1.bf16.msra.mxu0 %v22677_v60  ;;  %v22687_v40 = vld [vmem:[#allocation143_spill] sm:$0xff]  ;;  %v22688_v60 = vld [vmem:[#allocation293_spill] sm:$0xff] }
 0x1d1   :  { %1979 = vmatmul.mubr.f32.gmra.mrb[22].mxu1 %v22678_v20  ;;  %11380 = vmatprep.subr.bf16.mxu0 %v22679_v32  ;;  %v22689_v20 = vld [vmem:[#allocation145_spill] sm:$0xff]  ;;  %v22690_v32 = vld [vmem:[#allocation291_spill] sm:$0xff] }
 0x1d2   :  { %1986 = vmatprep.mubr.f32.mxu1 %v22680_v6  ;;  %10614 = vmatpush1.bf16.msra.mxu1 %v22681_v14  ;;  %v22691_v6 = vld [vmem:[#allocation151_spill] sm:$0xff]  ;;  %v22692_v14 = vld [vmem:[#allocation296_spill] sm:$0xff] }
 0x1d3   :  { %6903 = vmatmul.mubr.f32.gmra.mrb[22].mxu0 %v22682_v21  ;;  %10616 = vmatprep.subr.bf16.mxu1 %v22683_v43  ;;  %v22693_v21 = vld [vmem:[#allocation148_spill] sm:$0xff]  ;;  %v22694_v43 = vld [vmem:[#allocation297_spill] sm:$0xff] }
 0x1d4   :  { %6910 = vmatprep.mubr.f32.mxu0 %v22684_v55  ;;  %11382 = vmatpush1.bf16.msra.mxu0 %v22685_v13  ;;  %v22695_v55 = vld [vmem:[#allocation155_spill] sm:$0xff]  ;;  %v22696_v13 = vld [vmem:[#allocation301_spill] sm:$0xff] }
 0x1d5   :  { %1989 = vmatmul.mubr.f32.gmra.mrb[24].mxu1 %v22686_v1  ;;  %11384 = vmatprep.subr.bf16.mxu0 %v22687_v40  ;;  %v22697_v1 = vld [vmem:[#allocation157_spill] sm:$0xff]  ;;  %v22698_v40 = vld [vmem:[#allocation299_spill] sm:$0xff] }
 0x1d6   :  { %1996 = vmatprep.mubr.f32.mxu1 %v22688_v60  ;;  %10618 = vmatpush1.bf16.msra.mxu1 %v22689_v20  ;;  %v22699_v60 = vld [vmem:[#allocation163_spill] sm:$0xff] }
 0x1d7   :  { %6913 = vmatmul.mubr.f32.gmra.mrb[24].mxu0 %v22690_v32  ;;  %10620 = vmatprep.subr.bf16.mxu1 %v22691_v6  ;;  %v22700_v20 = vld [vmem:[#allocation303_spill] sm:$0xff]  ;;  %v22701_v32 = vld [vmem:[#allocation160_spill] sm:$0xff]  ;;  %v22702_v6 = vld [vmem:[#allocation305_spill] sm:$0xff] }
 0x1d8   :  { %6920 = vmatprep.mubr.f32.mxu0 %v22692_v14  ;;  %11386 = vmatpush1.bf16.msra.mxu0 %v22693_v21  ;;  %v22703_v14 = vld [vmem:[#allocation167_spill] sm:$0xff]  ;;  %v22704_v21 = vld [vmem:[#allocation310_spill] sm:$0xff] }
 0x1d9   :  { %1999 = vmatmul.mubr.f32.gmra.mrb[26].mxu1 %v22694_v43  ;;  %11388 = vmatprep.subr.bf16.mxu0 %v22695_v55  ;;  %v22705_v43 = vld [vmem:[#allocation169_spill] sm:$0xff]  ;;  %v22706_v55 = vld [vmem:[#allocation307_spill] sm:$0xff] }
 0x1da   :  { %2006 = vmatprep.mubr.f32.mxu1 %v22696_v13  ;;  %10622 = vmatpush1.bf16.msra.mxu1 %v22697_v1  ;;  %v22707_v13 = vld [vmem:[#allocation175_spill] sm:$0xff]  ;;  %v22708_v1 = vand.u32 4294901760, %v22409_v3 }
 0x1db   :  { %6923 = vmatmul.mubr.f32.gmra.mrb[26].mxu0 %v22698_v40  ;;  %10624 = vmatprep.subr.bf16.mxu1 %v22699_v60  ;;  %v22709_v40 = vld [vmem:[#allocation7_spill] sm:$0xff] }
 0x1dc   :  { %6930 = vmatprep.mubr.f32.mxu0 %v22700_v20  ;;  %11390 = vmatpush1.bf16.msra.mxu0 %v22701_v32  ;;  %v22710_v60 = vand.u32 4294901760, %v22709_v40  ;;  %v22711_v20 = vld [vmem:[#allocation312_spill] sm:$0xff]  ;;  %v22719_v3 = vld [vmem:[#allocation315_spill] sm:$0xff]  ;;  %v22721_v40 = vld [vmem:[#allocation185_spill] sm:$0xff] }
 0x1dd   :  { %2009 = vmatmul.mubr.f32.gmra.mrb[28].mxu1 %v22702_v6  ;;  %11392 = vmatprep.subr.bf16.mxu0 %v22703_v14  ;;  %v22712_v32 = vld [vmem:[#allocation172_spill] sm:$0xff]  ;;  %v22713_v6 = vld [vmem:[#allocation313_spill] sm:$0xff] }
 0x1de   :  { %2016 = vmatprep.mubr.f32.mxu1 %v22704_v21  ;;  %10626 = vmatpush1.bf16.msra.mxu1 %v22705_v43  ;;  %v10631_v15 = vpack.c.bf16 %v22710_v60, %v22708_v1  ;;  %v22714_v14 = vld [vmem:[#allocation180_spill] sm:$0xff]  ;;  %v22715_v21 = vand.u32 4294901760, %v22411_v56  ;;  %v22716_v43 = vand.u32 4294901760, %v22412_v23  ;;  %v22720_v60 = vld [vmem:[#allocation321_spill] sm:$0xff]  ;;  %v22722_v1 = vld [vmem:[#allocation322_spill] sm:$0xff] }
 0x1df   :  { %6933 = vmatmul.mubr.f32.gmra.mrb[28].mxu0 %v22706_v55  ;;  %10628 = vmatprep.subr.bf16.mxu1 %v22707_v13  ;;  %v22718_v13 = vld [vmem:[#allocation182_spill] sm:$0xff]  ;;  %v22724_v56 = vld [vmem:[#allocation323_spill] sm:$0xff]  ;;  %v22725_v23 = vld [vmem:[#allocation328_spill] sm:$0xff] }
 0x1e0   :  { %6940 = vmatprep.mubr.f32.mxu0 %v22711_v20  ;;  %11394 = vmatpush1.bf16.msra.mxu0 %v22712_v32  ;;  %v11399_v55 = vpack.c.bf16 %v22716_v43, %v22715_v21  ;;  %v22726_v43 = vld [vmem:[#allocation330_spill] sm:$0xff]  ;;  %v22727_v21 = vld [vmem:[#allocation333_spill] sm:$0xff] }
 0x1e1   :  { %2019 = vmatmul.mubr.f32.gmra.mrb[30].mxu1 %v22713_v6  ;;  %11396 = vmatprep.subr.bf16.mxu0 %v22714_v14  ;;  %v22723_v14 = vld [vmem:[#allocation327_spill] sm:$0xff]  ;;  %v22730_v32 = vld [vmem:[#allocation337_spill] sm:$0xff] }
 0x1e2   :  { %2026 = vmatprep.mubr.f32.mxu1 %v22717_v22  ;;  %10630 = vmatpush1.bf16.msra.mxu1 %v22718_v13  ;;  %v22728_v13 = vld [vmem:[#allocation331_spill] sm:$0xff] }
 0x1e3   :  { %6943 = vmatmul.mubr.f32.gmra.mrb[30].mxu0 %v22719_v3  ;;  %10632 = vmatprep.subr.bf16.mxu1 %v10631_v15  ;;  %v22729_v15 = vld [vmem:[#allocation336_spill] sm:$0xff] }
 0x1e4   :  { %6950 = vmatprep.mubr.f32.mxu0 %v22720_v60  ;;  %11398 = vmatpush1.bf16.msra.mxu0 %v22721_v40  ;;  %v22731_v40 = vld [vmem:[#allocation341_spill] sm:$0xff] }
 0x1e5   :  { %2029 = vmatmul.mubr.f32.gmra.mrb[32].mxu1 %v22722_v1  ;;  %11400 = vmatprep.subr.bf16.mxu0 %v11399_v55  ;;  %v22732_v1 = vld [vmem:[#allocation339_spill] sm:$0xff] }
 0x1e6   :  { %2036 = vmatprep.mubr.f32.mxu1 %v22723_v14  ;;  %v22733_v55 = vld [vmem:[#allocation343_spill] sm:$0xff] }
 0x1e7   :  { %6953 = vmatmul.mubr.f32.gmra.mrb[32].mxu0 %v22724_v56 }
 0x1e8   :  { %6960 = vmatprep.mubr.f32.mxu0 %v22725_v23  ;;  %v22734_v23 = vand.u32 4294901760, %v22588_v50  ;;  %v22741_v50 = vand.u32 4294901760, %v22419_v12  ;;  %v22748_v12 = vand.u32 4294901760, %v22594_v61  ;;  %v22755_v61 = vld [vmem:[#allocation23_spill] sm:$0xff] }
 0x1e9   :  { %2039 = vmatmul.mubr.f32.gmra.mrb[34].mxu1 %v22726_v43  ;;  %v22735_v43 = vand.u32 4294901760, %v22414_v16  ;;  %v22742_v16 = vand.u32 4294901760, %v22591_v58 }
 0x1ea   :  { %2046 = vmatprep.mubr.f32.mxu1 %v22727_v21  ;;  %v22736_v21 = vand.u32 4294901760, %v22415_v57  ;;  %v22743_v57 = vand.u32 4294901760, %v12878_v49  ;;  %v22750_v49 = vand.u32 4294901760, %v12929_v11  ;;  %v22759_v11 = vand.u32 4294901760, %v22601_v39  ;;  %v22770_v39 = vld [vmem:[#allocation29_spill] sm:$0xff] }
 0x1eb   :  { %6963 = vmatmul.mubr.f32.gmra.mrb[34].mxu0 %v22728_v13 }
 0x1ec   :  { %6970 = vmatprep.mubr.f32.mxu0 %v22729_v15  ;;  %v10633_v13 = vpack.c.bf16 %v22736_v21, %v22735_v43  ;;  %v22744_v43 = vand.u32 4294901760, %v12884_v51  ;;  %v22751_v51 = vand.u32 4294901760, %v22597_v38  ;;  %v22760_v38 = vld [vmem:[#allocation26_spill] sm:$0xff] }
 0x1ed   :  { %2049 = vmatmul.mubr.f32.gmra.mrb[36].mxu1 %v22730_v32  ;;  %v22737_v32 = vand.u32 4294901760, %v12861_v42  ;;  %v22745_v42 = vand.u32 4294901760, %v22593_v36 }
 0x1ee   :  { %2056 = vmatprep.mubr.f32.mxu1 %v22731_v40  ;;  %v22738_v40 = vand.u32 4294901760, %v12874_v47  ;;  %v11403_v21 = vpack.c.bf16 %v22744_v43, %v22743_v57  ;;  %v22746_v47 = vand.u32 4294901760, %v12886_v53  ;;  %v22753_v53 = vand.u32 4294901760, %v12913_v5  ;;  %v22767_v57 = vld [vmem:[#allocation33_spill] sm:$0xff] }
 0x1ef   :  { %6973 = vmatmul.mubr.f32.gmra.mrb[36].mxu0 %v22732_v1  ;;  %v22739_v1 = vand.u32 4294901760, %v22590_v54  ;;  %v22756_v54 = vand.u32 4294901760, %v22755_v61  ;;  %v22764_v5 = vand.u32 4294901760, %v22602_v10  ;;  %v22768_v43 = vand.u32 4294901760, %v22767_v57  ;;  %v22775_v10 = vld [vmem:[#allocation35_spill] sm:$0xff]  ;;  %v22797_v57 = vld [vmem:[#allocation48_spill] sm:$0xff] }
 0x1f0   :  { %6980 = vmatprep.mubr.f32.mxu0 %v22733_v55  ;;  %v10635_v15 = vpack.c.bf16 %v22738_v40, %v22737_v32  ;;  %v22747_v32 = vand.u32 4294901760, %v12898_v62  ;;  %v22754_v62 = vand.u32 4294901760, %v22598_v37  ;;  %v22757_v40 = vld [vmem:[#allocation24_spill] sm:$0xff] }
 0x1f1   :  { %2059 = vmatmul.mubr.f32.gmra.mrb[38].mxu1 %v15163_v33  ;;  %v22740_v33 = vand.u32 4294901760, %v22418_v24  ;;  %v22765_v37 = vld [vmem:[#allocation32_spill] sm:$0xff] }
 0x1f2   :  { %2196 = vmatprep.mubr.f32.mxu1 %v22734_v23  ;;  %v10637_v24 = vpack.c.bf16 %v22747_v32, %v22746_v47  ;;  %v22771_v47 = vand.u32 4294901760, %v22770_v39  ;;  %v22772_v32 = vld [vmem:[#allocation30_spill] sm:$0xff] }
 0x1f3   :  { %6983 = vmatmul.mubr.f32.gmra.mrb[38].mxu0 %v15176_v0  ;;  %v11401_v23 = vpack.c.bf16 %v22741_v50, %v22740_v33  ;;  %v22749_v33 = vand.u32 4294901760, %v12917_v7  ;;  %v22758_v7 = vand.u32 4294901760, %v22757_v40  ;;  %v22762_v50 = vld [vmem:[#allocation27_spill] sm:$0xff]  ;;  %v22784_v40 = vand.u32 4294901760, %v22610_v9  ;;  %v22795_v9 = vld [vmem:[#allocation46_spill] sm:$0xff] }
 0x1f4   :  { %7120 = vmatprep.mubr.f32.mxu0 %v22739_v1 }
 0x1f5   :  { %2200 = vmatmul.mubr.f32.vlgmr.msra.gmra.mrb[0].mxu1 %v22742_v16  ;;  %v10639_v58 = vpack.c.bf16 %v22750_v49, %v22749_v33  ;;  %v11407_v1 = vpack.c.bf16 %v22758_v7, %v22756_v54  ;;  %v22766_v16 = vand.u32 4294901760, %v22765_v37  ;;  %v22774_v33 = vand.u32 4294901760, %v22606_v59  ;;  %v22785_v59 = vld [vmem:[#allocation44_spill] sm:$0xff] }
 0x1f6   :  { %10634 = vmatpush1.bf16.msra.mxu1 %v10633_v13  ;;  %2208 = vmatprep.mubr.f32.mxu1 %v22745_v42  ;;  %v22752_v13 = vand.u32 4294901760, %v12900_v63  ;;  %v22763_v63 = vand.u32 4294901760, %v22762_v50  ;;  %v22769_v42 = vand.u32 4294901760, %v22605_v26  ;;  %v22776_v49 = vand.u32 4294901760, %v22775_v10  ;;  %v22780_v26 = vld [vmem:[#allocation37_spill] sm:$0xff] }
 0x1f7   :  { %7124 = vmatmul.mubr.f32.vlgmr.msra.gmra.mrb[0].mxu0 %v22748_v12  ;;  %10636 = vmatprep.subr.bf16.mxu1 %v10635_v15  ;;  %v22761_v15 = vand.u32 4294901760, %v22760_v38  ;;  %v22786_v7 = vand.u32 4294901760, %v22785_v59  ;;  %v22794_v37 = vand.u32 4294901760, %v22614_v35  ;;  %v22805_v35 = vld [vmem:[#allocation56_spill] sm:$0xff]  ;;  %v22807_v10 = vld [vmem:[#allocation57_spill] sm:$0xff] }
 0x1f8   :  { %11402 = vmatpush1.bf16.msra.mxu0 %v11401_v23  ;;  %7132 = vmatprep.mubr.f32.mxu0 %v22751_v51  ;;  %v11405_v36 = vpack.c.bf16 %v22753_v53, %v22752_v13  ;;  %v22779_v53 = vand.u32 4294901760, %v22608_v30  ;;  %v22790_v30 = vld [vmem:[#allocation41_spill] sm:$0xff] }
 0x1f9   :  { %2212 = vmatmul.mubr.f32.gmra.mrb[2].mxu1 %v22754_v62  ;;  %11404 = vmatprep.subr.bf16.mxu0 %v11403_v21  ;;  %v10641_v23 = vpack.c.bf16 %v22763_v63, %v22761_v15  ;;  %v10643_v21 = vpack.c.bf16 %v22768_v43, %v22766_v16  ;;  %v22782_v62 = vld [vmem:[#allocation39_spill] sm:$0xff]  ;;  %v22789_v15 = vand.u32 4294901760, %v22612_v31  ;;  %v22791_v50 = vand.u32 4294901760, %v22790_v30  ;;  %v22792_v63 = vld [vmem:[#allocation42_spill] sm:$0xff] }
 0x1fa   :  { %10638 = vmatpush1.bf16.msra.mxu1 %v10637_v24  ;;  %2220 = vmatprep.mubr.f32.mxu1 %v22759_v11  ;;  %v22773_v24 = vand.u32 4294901760, %v22772_v32  ;;  %v22783_v61 = vand.u32 4294901760, %v22782_v62  ;;  %v22796_v16 = vand.u32 4294901760, %v22795_v9  ;;  %v22798_v43 = vand.u32 4294901760, %v22797_v57  ;;  %v22800_v31 = vld [vmem:[#allocation50_spill] sm:$0xff] }
 0x1fb   :  { %7136 = vmatmul.mubr.f32.gmra.mrb[2].mxu0 %v22764_v5  ;;  %10640 = vmatprep.subr.bf16.mxu1 %v10639_v58  ;;  %v22777_v58 = vld [vmem:[#allocation36_spill] sm:$0xff]  ;;  %v22801_v39 = vand.u32 4294901760, %v22800_v31  ;;  %v22814_v62 = vand.u32 4294901760, %v22622_v41  ;;  %v22824_v30 = vand.u32 4294901760, %v22626_v45  ;;  %v22835_v45 = vld [vmem:[#allocation70_spill] sm:$0xff] }
 0x1fc   :  { %11406 = vmatpush1.bf16.msra.mxu0 %v11405_v36  ;;  %7144 = vmatprep.mubr.f32.mxu0 %v22769_v42  ;;  %v11409_v12 = vpack.c.bf16 %v22773_v24, %v22771_v47  ;;  %v22778_v51 = vand.u32 4294901760, %v22777_v58  ;;  %v22781_v36 = vand.u32 4294901760, %v22780_v26  ;;  %v22799_v42 = vand.u32 4294901760, %v22616_v52  ;;  %v22802_v47 = vld [vmem:[#allocation51_spill] sm:$0xff]  ;;  %v22810_v52 = vld [vmem:[#allocation53_spill] sm:$0xff]  ;;  %v22825_v41 = vld [vmem:[#allocation68_spill] sm:$0xff] }
 0x1fd   :  { %2224 = vmatmul.mubr.f32.gmra.mrb[4].mxu1 %v22774_v33  ;;  %11408 = vmatprep.subr.bf16.mxu0 %v11407_v1  ;;  %v22787_v1 = vld [vmem:[#allocation45_spill] sm:$0xff]  ;;  %v22803_v32 = vand.u32 4294901760, %v22802_v47  ;;  %v22806_v33 = vand.u32 4294901760, %v22805_v35  ;;  %v22837_v31 = vld [vmem:[#allocation72_spill] sm:$0xff] }
 0x1fe   :  { %v11411_v13 = vpack.c.bf16 %v22778_v51, %v22776_v49  ;;  %2232 = vmatprep.mubr.f32.mxu1 %v22779_v53  ;;  %10642 = vmatpush1.bf16.msra.mxu1 %v10641_v23  ;;  %v10645_v54 = vpack.c.bf16 %v22783_v61, %v22781_v36  ;;  %v22788_v11 = vand.u32 4294901760, %v22787_v1  ;;  %v22793_v23 = vand.u32 4294901760, %v22792_v63  ;;  %v22812_v53 = vld [vmem:[#allocation54_spill] sm:$0xff]  ;;  %v22827_v63 = vld [vmem:[#allocation69_spill] sm:$0xff] }
 0x1ff   :  { %7148 = vmatmul.mubr.f32.gmra.mrb[4].mxu0 %v22784_v40  ;;  %10644 = vmatprep.subr.bf16.mxu1 %v10643_v21  ;;  %v11415_v21 = vpack.c.bf16 %v22798_v43, %v22796_v16  ;;  %v10649_v24 = vpack.c.bf16 %v22803_v32, %v22801_v39  ;;  %v22808_v49 = vand.u32 4294901760, %v22807_v10  ;;  %v22809_v51 = vand.u32 4294901760, %v22620_v18  ;;  %v22820_v18 = vld [vmem:[#allocation62_spill] sm:$0xff] }
 0x200   :  { %v10647_v38 = vpack.c.bf16 %v22788_v11, %v22786_v7  ;;  %7156 = vmatprep.mubr.f32.mxu0 %v22789_v15  ;;  %11410 = vmatpush1.bf16.msra.mxu0 %v11409_v12  ;;  %v11413_v5 = vpack.c.bf16 %v22793_v23, %v22791_v50  ;;  %v22804_v12 = vand.u32 4294901760, %v22618_v8  ;;  %v22813_v26 = vand.u32 4294901760, %v22812_v53  ;;  %v22815_v8 = vld [vmem:[#allocation58_spill] sm:$0xff]  ;;  %v22822_v11 = vld [vmem:[#allocation63_spill] sm:$0xff] }
 0x201   :  { %2236 = vmatmul.mubr.f32.gmra.mrb[6].mxu1 %v22794_v37  ;;  %11412 = vmatprep.subr.bf16.mxu0 %v11411_v13  ;;  %v10651_v58 = vpack.c.bf16 %v22808_v49, %v22806_v33  ;;  %v22811_v13 = vand.u32 4294901760, %v22810_v52  ;;  %v22816_v61 = vand.u32 4294901760, %v22815_v8  ;;  %v22819_v7 = vand.u32 4294901760, %v22624_v4  ;;  %v22830_v4 = vld [vmem:[#allocation65_spill] sm:$0xff]  ;;  %v22832_v16 = vld [vmem:[#allocation66_spill] sm:$0xff] }
 0x202   :  { %2244 = vmatprep.mubr.f32.mxu1 %v22799_v42  ;;  %10646 = vmatpush1.bf16.msra.mxu1 %v10645_v54  ;;  %v22817_v54 = vld [vmem:[#allocation60_spill] sm:$0xff]  ;;  %v22821_v1 = vand.u32 4294901760, %v22820_v18  ;;  %v22826_v50 = vand.u32 4294901760, %v22825_v41  ;;  %v22828_v23 = vand.u32 4294901760, %v22827_v63  ;;  %v22829_v37 = vand.u32 4294901760, %v22628_v44  ;;  %v22840_v44 = vld [vmem:[#allocation74_spill] sm:$0xff] }
 0x203   :  { %7160 = vmatmul.mubr.f32.gmra.mrb[6].mxu0 %v22804_v12  ;;  %10648 = vmatprep.subr.bf16.mxu1 %v10647_v38  ;;  %v11417_v36 = vpack.c.bf16 %v22813_v26, %v22811_v13  ;;  %v22818_v40 = vand.u32 4294901760, %v22817_v54  ;;  %v22823_v38 = vand.u32 4294901760, %v22822_v11  ;;  %v22831_v9 = vand.u32 4294901760, %v22830_v4  ;;  %v22842_v12 = vld [vmem:[#allocation75_spill] sm:$0xff]  ;;  %v22852_v26 = vld [vmem:[#allocation78_spill] sm:$0xff]  ;;  %v22857_v54 = vld [vmem:[#allocation84_spill] sm:$0xff] }
 0x204   :  { %7168 = vmatprep.mubr.f32.mxu0 %v22809_v51  ;;  %11414 = vmatpush1.bf16.msra.mxu0 %v11413_v5  ;;  %v10655_v5 = vpack.c.bf16 %v22828_v23, %v22826_v50  ;;  %v22833_v57 = vand.u32 4294901760, %v22832_v16  ;;  %v22836_v42 = vand.u32 4294901760, %v22835_v45  ;;  %v22838_v39 = vand.u32 4294901760, %v22837_v31  ;;  %v22867_v41 = vld [vmem:[#allocation93_spill] sm:$0xff] }
 0x205   :  { %2248 = vmatmul.mubr.f32.gmra.mrb[8].mxu1 %v22814_v62  ;;  %11416 = vmatprep.subr.bf16.mxu0 %v11415_v21  ;;  %v11419_v59 = vpack.c.bf16 %v22818_v40, %v22816_v61  ;;  %v10653_v15 = vpack.c.bf16 %v22823_v38, %v22821_v1  ;;  %v22834_v21 = vand.u32 4294901760, %v22630_v34  ;;  %v22839_v32 = vand.u32 4294901760, %v22632_v25  ;;  %v22845_v34 = vld [vmem:[#allocation80_spill] sm:$0xff]  ;;  %v22850_v25 = vld [vmem:[#allocation77_spill] sm:$0xff]  ;;  %v22862_v1 = vld [vmem:[#allocation87_spill] sm:$0xff] }
 0x206   :  { %2256 = vmatprep.mubr.f32.mxu1 %v22819_v7  ;;  %10650 = vmatpush1.bf16.msra.mxu1 %v10649_v24  ;;  %v11421_v43 = vpack.c.bf16 %v22833_v57, %v22831_v9  ;;  %v11423_v47 = vpack.c.bf16 %v22838_v39, %v22836_v42  ;;  %v22841_v24 = vand.u32 4294901760, %v22840_v44  ;;  %v22843_v35 = vand.u32 4294901760, %v22842_v12  ;;  %v22882_v39 = vld [vmem:[#allocation99_spill] sm:$0xff] }
 0x207   :  { %7172 = vmatmul.mubr.f32.gmra.mrb[8].mxu0 %v22824_v30  ;;  %10652 = vmatprep.subr.bf16.mxu1 %v10651_v58  ;;  %v22844_v10 = vand.u32 4294901760, %v22634_v2  ;;  %v22846_v49 = vand.u32 4294901760, %v22845_v34  ;;  %v22847_v58 = vld [vmem:[#allocation81_spill] sm:$0xff]  ;;  %v22849_v13 = vand.u32 4294901760, %v22636_v19  ;;  %v22851_v53 = vand.u32 4294901760, %v22850_v25  ;;  %v22855_v2 = vld [vmem:[#allocation82_spill] sm:$0xff] }
 0x208   :  { %7180 = vmatprep.mubr.f32.mxu0 %v22829_v37  ;;  %11418 = vmatpush1.bf16.msra.mxu0 %v11417_v36  ;;  %v10657_v33 = vpack.c.bf16 %v22843_v35, %v22841_v24  ;;  %v22848_v51 = vand.u32 4294901760, %v22847_v58  ;;  %v22853_v36 = vand.u32 4294901760, %v22852_v26  ;;  %v22854_v8 = vand.u32 4294901760, %v22638_v28  ;;  %v22860_v19 = vld [vmem:[#allocation86_spill] sm:$0xff]  ;;  %v22865_v28 = vld [vmem:[#allocation92_spill] sm:$0xff]  ;;  %v22884_v44 = vld [vmem:[#allocation251_spill] sm:$0xff] }
 0x209   :  { %2260 = vmatmul.mubr.f32.gmra.mrb[10].mxu1 %v22834_v21  ;;  %11420 = vmatprep.subr.bf16.mxu0 %v11419_v59  ;;  %v22856_v61 = vand.u32 4294901760, %v22855_v2  ;;  %v22858_v40 = vand.u32 4294901760, %v22857_v54  ;;  %v22859_v7 = vand.u32 4294901760, %v22640_v46  ;;  %v22861_v18 = vand.u32 4294901760, %v22860_v19  ;;  %v22870_v46 = vld [vmem:[#allocation89_spill] sm:$0xff]  ;;  %v22872_v37 = vld [vmem:[#allocation90_spill] sm:$0xff] }
 0x20a   :  { %2268 = vmatprep.mubr.f32.mxu1 %v22839_v32  ;;  %10654 = vmatpush1.bf16.msra.mxu1 %v10653_v15  ;;  %v10659_v52 = vpack.c.bf16 %v22848_v51, %v22846_v49  ;;  %v11425_v62 = vpack.c.bf16 %v22853_v36, %v22851_v53  ;;  %v22863_v11 = vand.u32 4294901760, %v22862_v1  ;;  %v22864_v15 = vand.u32 4294901760, %v22642_v48  ;;  %v22875_v48 = vld [vmem:[#allocation94_spill] sm:$0xff]  ;;  %v22888_v35 = vld [vmem:[#allocation105_spill] sm:$0xff]  ;;  %v22890_v34 = vld [vmem:[#allocation256_spill] sm:$0xff] }
 0x20b   :  { %7184 = vmatmul.mubr.f32.gmra.mrb[10].mxu0 %v22844_v10  ;;  %10656 = vmatprep.subr.bf16.mxu1 %v10655_v5  ;;  %v11427_v59 = vpack.c.bf16 %v22858_v40, %v22856_v61  ;;  %v22866_v30 = vand.u32 4294901760, %v22865_v28  ;;  %v22868_v50 = vand.u32 4294901760, %v22867_v41  ;;  %v22869_v23 = vand.u32 4294901760, %v22644_v17  ;;  %v22880_v17 = vld [vmem:[#allocation98_spill] sm:$0xff]  ;;  %v22896_v25 = vld [vmem:[#allocation257_spill] sm:$0xff]  ;;  %v15809_v54 = vld [vmem:[%s20344_s0 + $0x218] sm:$0xff] }
 0x20c   :  { %7192 = vmatprep.mubr.f32.mxu0 %v22849_v13  ;;  %11422 = vmatpush1.bf16.msra.mxu0 %v11421_v43  ;;  %v10661_v38 = vpack.c.bf16 %v22863_v11, %v22861_v18  ;;  %v22871_v5 = vand.u32 4294901760, %v22870_v46  ;;  %v22873_v4 = vand.u32 4294901760, %v22872_v37  ;;  %v22874_v16 = vand.u32 4294901760, %v22646_v29  ;;  %v22877_v43 = vld [vmem:[#allocation96_spill] sm:$0xff]  ;;  %v22894_v51 = vld [vmem:[#allocation102_spill] sm:$0xff]  ;;  %v22902_v40 = vld [vmem:[#allocation261_spill] sm:$0xff] }
 0x20d   :  { %2272 = vmatmul.mubr.f32.gmra.mrb[12].mxu1 %v22854_v8  ;;  %11424 = vmatprep.subr.bf16.mxu0 %v11423_v47  ;;  %v10663_v63 = vpack.c.bf16 %v22868_v50, %v22866_v30  ;;  %v22876_v57 = vand.u32 4294901760, %v22875_v48  ;;  %v22878_v21 = vand.u32 4294901760, %v22877_v43  ;;  %v22879_v42 = vand.u32 4294901760, %v22648_v27  ;;  %v22886_v29 = vld [vmem:[#allocation104_spill] sm:$0xff]  ;;  %v22892_v27 = vld [vmem:[#allocation101_spill] sm:$0xff]  ;;  %v22898_v26 = vld [vmem:[#allocation106_spill] sm:$0xff] }
 0x20e   :  { %2280 = vmatprep.mubr.f32.mxu1 %v22859_v7  ;;  %10658 = vmatpush1.bf16.msra.mxu1 %v10657_v33  ;;  %v11429_v9 = vpack.c.bf16 %v22873_v4, %v22871_v5  ;;  %v22881_v31 = vand.u32 4294901760, %v22880_v17  ;;  %v22883_v47 = vand.u32 4294901760, %v22882_v39  ;;  %v22885_v24 = vand.u32 4294901760, %v22884_v44  ;;  %v15804_v61 = vld [vmem:[%s20344_s0 + $0x208] sm:$0xff]  ;;  %v22906_v18 = vld [vmem:[#allocation111_spill] sm:$0xff]  ;;  %v22910_v41 = vld [vmem:[#allocation116_spill] sm:$0xff] }
 0x20f   :  { %7196 = vmatmul.mubr.f32.gmra.mrb[12].mxu0 %v22864_v15  ;;  %10660 = vmatprep.subr.bf16.mxu1 %v10659_v52  ;;  %v11431_v45 = vpack.c.bf16 %v22878_v21, %v22876_v57  ;;  %v22887_v12 = vand.u32 4294901760, %v22886_v29  ;;  %v22889_v33 = vand.u32 4294901760, %v22888_v35  ;;  %v22891_v49 = vand.u32 4294901760, %v22890_v34  ;;  %v22904_v7 = vld [vmem:[#allocation110_spill] sm:$0xff]  ;;  %v22908_v28 = vld [vmem:[#allocation259_spill] sm:$0xff]  ;;  %v15828_v5 = vld [vmem:[%s20344_s0 + $0x200] sm:$0xff] }
 0x210   :  { %7204 = vmatprep.mubr.f32.mxu0 %v22869_v23  ;;  %11426 = vmatpush1.bf16.msra.mxu0 %v11425_v62  ;;  %v10665_v32 = vpack.c.bf16 %v22883_v47, %v22881_v31  ;;  %v22893_v58 = vand.u32 4294901760, %v22892_v27  ;;  %v22895_v52 = vand.u32 4294901760, %v22894_v51  ;;  %v22897_v53 = vand.u32 4294901760, %v22896_v25  ;;  %v22900_v62 = vld [vmem:[#allocation108_spill] sm:$0xff]  ;;  %v22914_v37 = vld [vmem:[#allocation263_spill] sm:$0xff]  ;;  %v22918_v48 = vld [vmem:[#allocation114_spill] sm:$0xff] }
 0x211   :  { %2284 = vmatmul.mubr.f32.gmra.mrb[14].mxu1 %v22874_v16  ;;  %11428 = vmatprep.subr.bf16.mxu0 %v11427_v59  ;;  %v10667_v10 = vpack.c.bf16 %v22889_v33, %v22887_v12  ;;  %v22899_v36 = vand.u32 4294901760, %v22898_v26  ;;  %v22901_v8 = vand.u32 4294901760, %v22900_v62  ;;  %v22903_v59 = vand.u32 4294901760, %v22902_v40  ;;  %v15854_v17 = vld [vmem:[%s20344_s0 + $0x600] sm:$0xff]  ;;  %v15859_v31 = vld [vmem:[%s20344_s0 + $0x610] sm:$0xff]  ;;  %v22928_v35 = vld [vmem:[#allocation270_spill] sm:$0xff] }
 0x212   :  { %2292 = vmatprep.mubr.f32.mxu1 %v22879_v42  ;;  %10662 = vmatpush1.bf16.msra.mxu1 %v10661_v38  ;;  %v11433_v13 = vpack.c.bf16 %v22895_v52, %v22893_v58  ;;  %v22905_v19 = vand.u32 4294901760, %v22904_v7  ;;  %v22907_v1 = vand.u32 4294901760, %v22906_v18  ;;  %v21219_v38 = vand.u32 4294901760, %v15804_v61  ;;  %v15849_v42 = vld [vmem:[%s20344_s0 + $0x210] sm:$0xff]  ;;  %v22922_v39 = vld [vmem:[#allocation265_spill] sm:$0xff]  ;;  %v22944_v18 = vld [vmem:[#allocation130_spill] sm:$0xff] }
 0x213   :  { %7208 = vmatmul.mubr.f32.gmra.mrb[14].mxu0 %v22885_v24  ;;  %10664 = vmatprep.subr.bf16.mxu1 %v10663_v63  ;;  %v11435_v2 = vpack.c.bf16 %v22901_v8, %v22899_v36  ;;  %v21218_v15 = vand.u32 4294901760, %v15809_v54  ;;  %v22909_v30 = vand.u32 4294901760, %v22908_v28  ;;  %v22911_v50 = vand.u32 4294901760, %v22910_v41  ;;  %v22912_v63 = vld [vmem:[#allocation117_spill] sm:$0xff]  ;;  %v22926_v24 = vld [vmem:[#allocation120_spill] sm:$0xff]  ;;  %v22938_v62 = vld [vmem:[#allocation267_spill] sm:$0xff] }
 0x214   :  { %7216 = vmatprep.mubr.f32.mxu0 %v22891_v49  ;;  %11430 = vmatpush1.bf16.msra.mxu0 %v11429_v9  ;;  %v10669_v11 = vpack.c.bf16 %v22907_v1, %v22905_v19  ;;  %v22913_v23 = vand.u32 4294901760, %v22912_v63  ;;  %v22915_v4 = vand.u32 4294901760, %v22914_v37  ;;  %v22916_v9 = vld [vmem:[#allocation113_spill] sm:$0xff]  ;;  %v22919_v57 = vand.u32 4294901760, %v22918_v48  ;;  %v22932_v49 = vld [vmem:[#allocation123_spill] sm:$0xff]  ;;  %v15894_v63 = vld [vmem:[%s20344_s0 + $0x228] sm:$0xff] }
 0x215   :  { %2296 = vmatmul.mubr.f32.gmra.mrb[16].mxu1 %v22897_v53  ;;  %11432 = vmatprep.subr.bf16.mxu0 %v11431_v45  ;;  %v22917_v16 = vand.u32 4294901760, %v22916_v9  ;;  %v15839_v21 = vsub.f32 %v15804_v61, %v21219_v38  ;;  %v15844_v45 = vsub.f32 %v15809_v54, %v21218_v15  ;;  %v22923_v47 = vand.u32 4294901760, %v22922_v39  ;;  %v22934_v51 = vld [vmem:[#allocation125_spill] sm:$0xff]  ;;  %v22948_v37 = vld [vmem:[#allocation272_spill] sm:$0xff]  ;;  %v22950_v9 = vld [vmem:[#allocation134_spill] sm:$0xff] }
 0x216   :  { %2304 = vmatprep.mubr.f32.mxu1 %v22903_v59  ;;  %10666 = vmatpush1.bf16.msra.mxu1 %v10665_v32  ;;  %v10671_v46 = vpack.c.bf16 %v22913_v23, %v22911_v50  ;;  %v22924_v32 = vld [vmem:[#allocation118_spill] sm:$0xff]  ;;  %v22927_v29 = vand.u32 4294901760, %v22926_v24  ;;  %v22929_v33 = vand.u32 4294901760, %v22928_v35  ;;  %v22933_v27 = vand.u32 4294901760, %v22932_v49  ;;  %v22942_v59 = vld [vmem:[#allocation129_spill] sm:$0xff]  ;;  %v15899_v23 = vld [vmem:[%s20344_s0 + $0x238] sm:$0xff] }
 0x217   :  { %7220 = vmatmul.mubr.f32.gmra.mrb[16].mxu0 %v22909_v30  ;;  %10668 = vmatprep.subr.bf16.mxu1 %v10667_v10  ;;  %v11437_v43 = vpack.c.bf16 %v22919_v57, %v22917_v16  ;;  %22920 = vst [vmem:[#allocation6_spill] sm:$0xff] %v15839_v21  ;;  %22921 = vst [vmem:[#allocation8_spill] sm:$0xff] %v15844_v45  ;;  %v22925_v44 = vand.u32 4294901760, %v22924_v32  ;;  %v22930_v10 = vld [vmem:[#allocation122_spill] sm:$0xff]  ;;  %v22935_v52 = vand.u32 4294901760, %v22934_v51  ;;  %v21217_v26 = vand.u32 4294901760, %v15828_v5 }
 0x218   :  { %7228 = vmatprep.mubr.f32.mxu0 %v22915_v4  ;;  %11434 = vmatpush1.bf16.msra.mxu0 %v11433_v13  ;;  %v22931_v34 = vand.u32 4294901760, %v22930_v10  ;;  %v22936_v13 = vld [vmem:[#allocation126_spill] sm:$0xff]  ;;  %v21213_v36 = vand.u32 4294901760, %v15849_v42  ;;  %v22939_v8 = vand.u32 4294901760, %v22938_v62  ;;  %v22943_v7 = vand.u32 4294901760, %v22942_v59  ;;  %v22952_v48 = vld [vmem:[#allocation135_spill] sm:$0xff] }
 0x219   :  { %2308 = vmatmul.mubr.f32.gmra.mrb[18].mxu1 %v22923_v47  ;;  %11436 = vmatprep.subr.bf16.mxu0 %v11435_v2  ;;  %v11439_v12 = vpack.c.bf16 %v22927_v29, %v22925_v44  ;;  %v22937_v25 = vand.u32 4294901760, %v22936_v13  ;;  %v22940_v2 = vld [vmem:[#allocation128_spill] sm:$0xff]  ;;  %v22945_v1 = vand.u32 4294901760, %v22944_v18  ;;  %v21211_v41 = vand.u32 4294901760, %v15854_v17  ;;  %v15931_v24 = vld [vmem:[%s20344_s0 + $0x628] sm:$0xff]  ;;  %v22956_v35 = vld [vmem:[#allocation273_spill] sm:$0xff] }
 0x21a   :  { %2316 = vmatprep.mubr.f32.mxu1 %v22929_v33  ;;  %10670 = vmatpush1.bf16.msra.mxu1 %v10669_v11  ;;  %v10673_v58 = vpack.c.bf16 %v22933_v27, %v22931_v34  ;;  %v22941_v40 = vand.u32 4294901760, %v22940_v2  ;;  %v22946_v11 = vld [vmem:[#allocation132_spill] sm:$0xff]  ;;  %v21210_v50 = vand.u32 4294901760, %v15859_v31  ;;  %v22949_v4 = vand.u32 4294901760, %v22948_v37  ;;  %v22960_v51 = vld [vmem:[#allocation279_spill] sm:$0xff]  ;;  %v22962_v13 = vld [vmem:[#allocation137_spill] sm:$0xff] }
 0x21b   :  { %v11441_v53 = vpack.c.bf16 %v22937_v25, %v22935_v52  ;;  %7232 = vmatmul.mubr.f32.gmra.mrb[18].mxu0 %v22939_v8  ;;  %10672 = vmatprep.subr.bf16.mxu1 %v10671_v46  ;;  %v22947_v28 = vand.u32 4294901760, %v22946_v11  ;;  %v15904_v46 = vld [vmem:[%s20344_s0 + $0x220] sm:$0xff]  ;;  %v22951_v16 = vand.u32 4294901760, %v22950_v9  ;;  %v22953_v57 = vand.u32 4294901760, %v22952_v48  ;;  %v15936_v29 = vld [vmem:[%s20344_s0 + $0x638] sm:$0xff]  ;;  %v22964_v25 = vld [vmem:[#allocation138_spill] sm:$0xff] }
 0x21c   :  { %v10675_v19 = vpack.c.bf16 %v22943_v7, %v22941_v40  ;;  %7240 = vmatprep.mubr.f32.mxu0 %v22949_v4  ;;  %11438 = vmatpush1.bf16.msra.mxu0 %v11437_v43  ;;  %v15915_v47 = vsub.f32 %v15828_v5, %v21217_v26  ;;  %v15920_v32 = vsub.f32 %v15849_v42, %v21213_v36  ;;  %v21209_v44 = vand.u32 4294901760, %v15894_v63  ;;  %v15926_v43 = vld [vmem:[%s20344_s0 + $0x230] sm:$0xff]  ;;  %v22966_v2 = vld [vmem:[#allocation140_spill] sm:$0xff]  ;;  %v22968_v59 = vld [vmem:[#allocation141_spill] sm:$0xff] }
 0x21d   :  { %v11443_v30 = vpack.c.bf16 %v22947_v28, %v22945_v1  ;;  %v10677_v39 = vpack.c.bf16 %v22953_v57, %v22951_v16  ;;  %v22957_v33 = vand.u32 4294901760, %v22956_v35  ;;  %11440 = vmatprep.subr.bf16.mxu0 %v11439_v12  ;;  %v15943_v10 = vsub.f32 %v15854_v17, %v21211_v41  ;;  %v22971_v28 = vld [vmem:[#allocation275_spill] sm:$0xff]  ;;  %v15985_v48 = vld [vmem:[%s20344_s0 + $0x620] sm:$0xff]  ;;  %v15995_v57 = vld [vmem:[%s20344_s0 + $0x248] sm:$0xff] }
 0x21e   :  { %22954 = vst [vmem:[#allocation10_spill] sm:$0xff] %v15915_v47  ;;  %22955 = vst [vmem:[#allocation12_spill] sm:$0xff] %v15920_v32  ;;  %v15948_v34 = vsub.f32 %v15859_v31, %v21210_v50  ;;  %v21208_v49 = vand.u32 4294901760, %v15899_v23  ;;  %v21206_v27 = vand.u32 4294901760, %v15904_v46  ;;  %v22961_v52 = vand.u32 4294901760, %v22960_v51  ;;  %10674 = vmatpush1.bf16.msra.mxu1 %v10673_v58  ;;  %v22975_v35 = vld [vmem:[#allocation281_spill] sm:$0xff] }
 0x21f   :  { %2320 = vmatmul.mubr.f32.gmra.mrb[20].mxu1 %v22957_v33  ;;  %22958 = vst [vmem:[#allocation13_spill] sm:$0xff] %v15943_v10  ;;  %v22963_v12 = vand.u32 4294901760, %v22962_v13  ;;  %v22965_v62 = vand.u32 4294901760, %v22964_v25  ;;  %v22967_v40 = vand.u32 4294901760, %v22966_v2  ;;  %v22969_v7 = vand.u32 4294901760, %v22968_v59  ;;  %10676 = vmatprep.subr.bf16.mxu1 %v10675_v19  ;;  %v15990_v19 = vld [vmem:[%s20344_s0 + $0x630] sm:$0xff] }
 0x220   :  { %22959 = vst [vmem:[#allocation15_spill] sm:$0xff] %v15948_v34  ;;  %2328 = vmatprep.mubr.f32.mxu1 %v22961_v52  ;;  %v15965_v1 = vsub.f32 %v15894_v63, %v21209_v44  ;;  %v21205_v11 = vand.u32 4294901760, %v15926_v43  ;;  %v22972_v37 = vand.u32 4294901760, %v22971_v28  ;;  %v15973_v58 = vsub.f32 %v15899_v23, %v21208_v49  ;;  %11442 = vmatpush1.bf16.msra.mxu0 %v11441_v53  ;;  %v22977_v51 = vld [vmem:[#allocation142_spill] sm:$0xff]  ;;  %v22979_v13 = vld [vmem:[#allocation144_spill] sm:$0xff]  ;;  %v22998_v44 = vld [vmem:[#allocation153_spill] sm:$0xff] }
 0x221   :  { %v11445_v8 = vpack.c.bf16 %v22965_v62, %v22963_v12  ;;  %v10679_v18 = vpack.c.bf16 %v22969_v7, %v22967_v40  ;;  %v15978_v4 = vsub.f32 %v15904_v46, %v21206_v27  ;;  %v21207_v9 = vand.u32 4294901760, %v15931_v24  ;;  %v22981_v62 = vld [vmem:[#allocation146_spill] sm:$0xff]  ;;  %v22983_v40 = vld [vmem:[#allocation147_spill] sm:$0xff]  ;;  %v16016_v53 = vld [vmem:[%s20344_s0 + $0x258] sm:$0xff]  ;;  %11444 = vmatprep.subr.bf16.mxu0 %v11443_v30 }
 0x222   :  { %22970 = vst [vmem:[#allocation16_spill] sm:$0xff] %v15965_v1  ;;  %7244 = vmatmul.mubr.f32.gmra.mrb[20].mxu0 %v22972_v37  ;;  %22973 = vst [vmem:[#allocation192_spill] sm:$0xff] %v15973_v58  ;;  %v21212_v16 = vand.u32 4294901760, %v15936_v29  ;;  %v22976_v33 = vand.u32 4294901760, %v22975_v35  ;;  %v22978_v52 = vand.u32 4294901760, %v22977_v51  ;;  %v22980_v12 = vand.u32 4294901760, %v22979_v13  ;;  %10678 = vmatpush1.bf16.msra.mxu1 %v10677_v39 }
 0x223   :  { %22974 = vst [vmem:[#allocation193_spill] sm:$0xff] %v15978_v4  ;;  %v22982_v2 = vand.u32 4294901760, %v22981_v62  ;;  %v22984_v59 = vand.u32 4294901760, %v22983_v40  ;;  %v16010_v28 = vsub.f32 %v15926_v43, %v21205_v11  ;;  %v21216_v37 = vand.u32 4294901760, %v15985_v48  ;;  %v16021_v35 = vld [vmem:[%s20344_s0 + $0x240] sm:$0xff]  ;;  %v22986_v51 = vld [vmem:[#allocation282_spill] sm:$0xff]  ;;  %10680 = vmatprep.subr.bf16.mxu1 %v10679_v18 }
 0x224   :  { %7252 = vmatprep.mubr.f32.mxu0 %v22976_v33  ;;  %v11447_v25 = vpack.c.bf16 %v22980_v12, %v22978_v52  ;;  %v16026_v33 = vld [vmem:[%s20344_s0 + $0x250] sm:$0xff]  ;;  %v22987_v52 = vand.u32 4294901760, %v22986_v51  ;;  %v16033_v13 = vsub.f32 %v15931_v24, %v21207_v9  ;;  %v16038_v12 = vsub.f32 %v15936_v29, %v21212_v16  ;;  %v22992_v51 = vld [vmem:[#allocation149_spill] sm:$0xff]  ;;  %v22996_v9 = vld [vmem:[#allocation152_spill] sm:$0xff]  ;;  %11446 = vmatpush1.bf16.msra.mxu0 %v11445_v8 }
 0x225   :  { %v10681_v7 = vpack.c.bf16 %v22984_v59, %v22982_v2  ;;  %22985 = vst [vmem:[#allocation194_spill] sm:$0xff] %v16010_v28  ;;  %v21215_v62 = vand.u32 4294901760, %v15990_v19  ;;  %v21214_v2 = vand.u32 4294901760, %v15995_v57  ;;  %v22990_v40 = vld [vmem:[#allocation287_spill] sm:$0xff]  ;;  %v22993_v30 = vand.u32 4294901760, %v22992_v51  ;;  %v16080_v18 = vld [vmem:[%s20344_s0 + $0x658] sm:$0xff] }
 0x226   :  { %2332 = vmatmul.mubr.f32.gmra.mrb[22].mxu1 %v22987_v52  ;;  %22988 = vst [vmem:[#allocation197_spill] sm:$0xff] %v16033_v13  ;;  %22989 = vst [vmem:[#allocation195_spill] sm:$0xff] %v16038_v12  ;;  %v22991_v59 = vand.u32 4294901760, %v22990_v40  ;;  %v22994_v52 = vld [vmem:[#allocation150_spill] sm:$0xff]  ;;  %v22997_v49 = vand.u32 4294901760, %v22996_v9  ;;  %v22999_v50 = vand.u32 4294901760, %v22998_v44  ;;  %v16055_v16 = vsub.f32 %v15985_v48, %v21216_v37  ;;  %11448 = vmatprep.subr.bf16.mxu0 %v11447_v25 }
 0x227   :  { %v22995_v11 = vand.u32 4294901760, %v22994_v52  ;;  %v21221_v36 = vand.u32 4294901760, %v16016_v53  ;;  %v23001_v40 = vld [vmem:[#allocation283_spill] sm:$0xff]  ;;  %v16063_v39 = vsub.f32 %v15990_v19, %v21215_v62  ;;  %v16085_v9 = vld [vmem:[%s20344_s0 + $0x268] sm:$0xff]  ;;  %v23005_v51 = vld [vmem:[#allocation288_spill] sm:$0xff]  ;;  %10682 = vmatpush1.bf16.msra.mxu1 %v10681_v7  ;;  %v23032_v7 = vand.u32 4294901760, %v16080_v18 }
 0x228   :  { %2340 = vmatprep.mubr.f32.mxu1 %v22991_v59  ;;  %v10683_v41 = vpack.c.bf16 %v22999_v50, %v22997_v49  ;;  %23000 = vst [vmem:[#allocation201_spill] sm:$0xff] %v16055_v16  ;;  %v23002_v59 = vand.u32 4294901760, %v23001_v40  ;;  %v16068_v50 = vsub.f32 %v15995_v57, %v21214_v2  ;;  %v23007_v52 = vld [vmem:[#allocation154_spill] sm:$0xff]  ;;  %v23013_v15 = vld [vmem:[#allocation159_spill] sm:$0xff]  ;;  %v16106_v8 = vld [vmem:[%s20344_s0 + $0x278] sm:$0xff]  ;;  %v23092_v0 = vand.u32 4294901760, %v15804_v61 }
 0x229   :  { %v11449_v27 = vpack.c.bf16 %v22995_v11, %v22993_v30  ;;  %23003 = vst [vmem:[#allocation202_spill] sm:$0xff] %v16063_v39  ;;  %v16075_v11 = vld [vmem:[%s20344_s0 + $0x648] sm:$0xff]  ;;  %v23006_v30 = vand.u32 4294901760, %v23005_v51  ;;  %v23008_v40 = vand.u32 4294901760, %v23007_v52  ;;  %v23014_v38 = vand.u32 4294901760, %v23013_v15  ;;  %v16140_v25 = vld [vmem:[%s20344_s0 + $0x270] sm:$0xff] }
 0x22a   :  { %7256 = vmatmul.mubr.f32.gmra.mrb[22].mxu0 %v23002_v59  ;;  %23004 = vst [vmem:[#allocation205_spill] sm:$0xff] %v16068_v50  ;;  %v23009_v59 = vld [vmem:[#allocation156_spill] sm:$0xff]  ;;  %v23011_v37 = vld [vmem:[#allocation158_spill] sm:$0xff]  ;;  %v16100_v44 = vsub.f32 %v16016_v53, %v21221_v36  ;;  %v23026_v50 = vld [vmem:[#allocation165_spill] sm:$0xff]  ;;  %10684 = vmatprep.subr.bf16.mxu1 %v10683_v41  ;;  %v23093_v55 = vand.u32 4294901760, %v15809_v54 }
 0x22b   :  { %7264 = vmatprep.mubr.f32.mxu0 %v23006_v30  ;;  %v23010_v2 = vand.u32 4294901760, %v23009_v59  ;;  %v23012_v26 = vand.u32 4294901760, %v23011_v37  ;;  %v23016_v15 = vld [vmem:[#allocation290_spill] sm:$0xff]  ;;  %v23018_v37 = vand.u32 4294901760, %v16021_v35  ;;  %v23020_v30 = vand.u32 4294901760, %v16026_v33  ;;  %v23030_v16 = vld [vmem:[#allocation291_spill] sm:$0xff]  ;;  %11450 = vmatpush1.bf16.msra.mxu0 %v11449_v27 }
 0x22c   :  { %23015 = vst [vmem:[#allocation203_spill] sm:$0xff] %v16100_v44  ;;  %v23028_v59 = vand.u32 4294901760, %v16075_v11  ;;  %v23031_v12 = vand.u32 4294901760, %v23030_v16  ;;  %v23038_v16 = vld [vmem:[#allocation161_spill] sm:$0xff]  ;;  %v23046_v27 = vand.u32 4294901760, %v16106_v8  ;;  %v23090_v47 = vld [vmem:[#allocation187_spill] sm:$0xff] }
 0x22d   :  { %v11451_v62 = vpack.c.bf16 %v23010_v2, %v23008_v40  ;;  %v10685_v49 = vpack.c.bf16 %v23014_v38, %v23012_v26  ;;  %v16111_v2 = vld [vmem:[%s20344_s0 + $0x640] sm:$0xff]  ;;  %v16116_v38 = vld [vmem:[%s20344_s0 + $0x650] sm:$0xff]  ;;  %v23017_v26 = vand.u32 4294901760, %v23016_v15  ;;  %v16123_v51 = vsub.f32 %v16021_v35, %v23018_v37 }
 0x22e   :  { %v16128_v52 = vsub.f32 %v16026_v33, %v23020_v30  ;;  %v16135_v15 = vld [vmem:[%s20344_s0 + $0x260] sm:$0xff]  ;;  %v23024_v30 = vld [vmem:[#allocation164_spill] sm:$0xff]  ;;  %v23027_v40 = vand.u32 4294901760, %v23026_v50  ;;  %7268 = vmatmul.mubr.f32.gmra.mrb[24].mxu0 %v23031_v12  ;;  %v23039_v41 = vand.u32 4294901760, %v23038_v16  ;;  %v23040_v12 = vld [vmem:[#allocation162_spill] sm:$0xff]  ;;  %v23091_v45 = vand.u32 4294901760, %v23090_v47 }
 0x22f   :  { %2344 = vmatmul.mubr.f32.gmra.mrb[24].mxu1 %v23017_v26  ;;  %23019 = vst [vmem:[#allocation209_spill] sm:$0xff] %v16123_v51  ;;  %v23022_v26 = vld [vmem:[#allocation293_spill] sm:$0xff]  ;;  %v23025_v36 = vand.u32 4294901760, %v23024_v30  ;;  %v16151_v51 = vsub.f32 %v16075_v11, %v23028_v59  ;;  %v21233_v59 = vand.u32 4294901760, %v16135_v15  ;;  %v23041_v39 = vand.u32 4294901760, %v23040_v12  ;;  %11452 = vmatprep.subr.bf16.mxu0 %v11451_v62  ;;  %v16216_v62 = vld [vmem:[%s20344_s0 + $0x298] sm:$0xff] }
 0x230   :  { %23021 = vst [vmem:[#allocation210_spill] sm:$0xff] %v16128_v52  ;;  %v23023_v37 = vand.u32 4294901760, %v23022_v26  ;;  %v16160_v26 = vsub.f32 %v16080_v18, %v23032_v7  ;;  %v23042_v7 = vld [vmem:[#allocation166_spill] sm:$0xff]  ;;  %v23048_v16 = vld [vmem:[#allocation297_spill] sm:$0xff]  ;;  %23054 = vst [vmem:[#allocation225_spill] sm:$0xff] %v16216_v62  ;;  %10686 = vmatpush1.bf16.msra.mxu1 %v10685_v49 }
 0x231   :  { %v10687_v52 = vpack.c.bf16 %v23027_v40, %v23025_v36  ;;  %23029 = vst [vmem:[#allocation213_spill] sm:$0xff] %v16151_v51  ;;  %v23034_v36 = vand.u32 4294901760, %v16085_v9  ;;  %v21232_v40 = vand.u32 4294901760, %v16116_v38  ;;  %v11453_v44 = vpack.c.bf16 %v23041_v39, %v23039_v41  ;;  %v23044_v51 = vld [vmem:[#allocation168_spill] sm:$0xff]  ;;  %v23100_v54 = vld [vmem:[#allocation307_spill] sm:$0xff] }
 0x232   :  { %2352 = vmatprep.mubr.f32.mxu1 %v23023_v37  ;;  %23033 = vst [vmem:[#allocation211_spill] sm:$0xff] %v16160_v26  ;;  %v23036_v37 = vld [vmem:[#allocation296_spill] sm:$0xff]  ;;  %v23043_v26 = vand.u32 4294901760, %v23042_v7  ;;  %v23045_v13 = vand.u32 4294901760, %v23044_v51  ;;  %v23049_v41 = vand.u32 4294901760, %v23048_v16  ;;  %v16206_v12 = vsub.f32 %v16135_v15, %v21233_v59  ;;  %v16211_v7 = vld [vmem:[%s20344_s0 + $0x288] sm:$0xff] }
 0x233   :  { %v16165_v50 = vsub.f32 %v16085_v9, %v23034_v36  ;;  %v23037_v30 = vand.u32 4294901760, %v23036_v37  ;;  %v570_v36 = vld [vmem:[%s20344_s0 + $0x608] sm:$0xff]  ;;  %v572_v37 = vld [vmem:[%s20344_s0 + $0x618] sm:$0xff]  ;;  %10688 = vmatprep.subr.bf16.mxu1 %v10687_v52  ;;  %v16254_v52 = vld [vmem:[%s20344_s0 + $0x280] sm:$0xff]  ;;  %11454 = vmatpush1.bf16.msra.mxu0 %v11453_v44 }
 0x234   :  { %v11455_v28 = vpack.c.bf16 %v23045_v13, %v23043_v26  ;;  %2356 = vmatmul.mubr.f32.gmra.mrb[26].mxu1 %v23049_v41  ;;  %v23050_v13 = vand.u32 4294901760, %v16111_v2  ;;  %v16201_v26 = vsub.f32 %v16116_v38, %v21232_v40  ;;  %23053 = vst [vmem:[#allocation223_spill] sm:$0xff] %v16206_v12  ;;  %v23057_v41 = vld [vmem:[#allocation170_spill] sm:$0xff]  ;;  %v23059_v40 = vld [vmem:[#allocation171_spill] sm:$0xff]  ;;  %v23061_v12 = vand.u32 4294901760, %v16140_v25 }
 0x235   :  { %23035 = vst [vmem:[#allocation215_spill] sm:$0xff] %v16165_v50  ;;  %7276 = vmatprep.mubr.f32.mxu0 %v23037_v30  ;;  %v16188_v30 = vsub.f32 %v16106_v8, %v23046_v27  ;;  %v23055_v27 = vld [vmem:[#allocation301_spill] sm:$0xff]  ;;  %v23060_v39 = vand.u32 4294901760, %v23059_v40  ;;  %v23063_v50 = vld [vmem:[#allocation299_spill] sm:$0xff]  ;;  %v23069_v40 = vld [vmem:[#allocation176_spill] sm:$0xff] }
 0x236   :  { %v16196_v51 = vsub.f32 %v16111_v2, %v23050_v13  ;;  %23052 = vst [vmem:[#allocation219_spill] sm:$0xff] %v16201_v26  ;;  %v23056_v16 = vand.u32 4294901760, %v23055_v27  ;;  %v23058_v13 = vand.u32 4294901760, %v23057_v41  ;;  %v16227_v26 = vsub.f32 %v16140_v25, %v23061_v12  ;;  %v23065_v27 = vld [vmem:[#allocation173_spill] sm:$0xff]  ;;  %v16276_v44 = vld [vmem:[%s20344_s0 + $0x290] sm:$0xff]  ;;  %11456 = vmatprep.subr.bf16.mxu0 %v11455_v28 }
 0x237   :  { %23047 = vst [vmem:[#allocation218_spill] sm:$0xff] %v16188_v30  ;;  %v23064_v4 = vand.u32 4294901760, %v23063_v50  ;;  %v23066_v49 = vand.u32 4294901760, %v23065_v27  ;;  %v8064_v12 = vand.u32 4294901760, %v570_v36  ;;  %v16244_v30 = vld [vmem:[%s20344_s0 + $0x668] sm:$0xff]  ;;  %v23073_v50 = vld [vmem:[#allocation303_spill] sm:$0xff] }
 0x238   :  { %23051 = vst [vmem:[#allocation221_spill] sm:$0xff] %v16196_v51  ;;  %2364 = vmatprep.mubr.f32.mxu1 %v23056_v16  ;;  %v10689_v59 = vpack.c.bf16 %v23060_v39, %v23058_v13  ;;  %23062 = vst [vmem:[#allocation231_spill] sm:$0xff] %v16227_v26  ;;  %v21246_v51 = vand.u32 4294901760, %v16211_v7  ;;  %v23067_v16 = vld [vmem:[#allocation174_spill] sm:$0xff]  ;;  %v23070_v39 = vand.u32 4294901760, %v23069_v40  ;;  %v23071_v13 = vld [vmem:[#allocation177_spill] sm:$0xff] }
 0x239   :  { %7280 = vmatmul.mubr.f32.gmra.mrb[26].mxu0 %v23064_v4  ;;  %v23068_v41 = vand.u32 4294901760, %v23067_v16  ;;  %v23072_v1 = vand.u32 4294901760, %v23071_v13  ;;  %v8068_v26 = vand.u32 4294901760, %v572_v37  ;;  %v16249_v4 = vld [vmem:[%s20344_s0 + $0x678] sm:$0xff]  ;;  %v23074_v27 = vand.u32 4294901760, %v23073_v50  ;;  %v23077_v16 = vld [vmem:[#allocation181_spill] sm:$0xff] }
 0x23a   :  { %v23080_v13 = vand.u32 4294901760, %v16216_v62  ;;  %v16281_v50 = vld [vmem:[%s20344_s0 + $0x660] sm:$0xff]  ;;  %10690 = vmatpush1.bf16.msra.mxu1 %v10689_v59  ;;  %v21254_v61 = vand.u32 4294901760, %v16276_v44 }
 0x23b   :  { %v11457_v58 = vpack.c.bf16 %v23068_v41, %v23066_v49  ;;  %v10691_v34 = vpack.c.bf16 %v23072_v1, %v23070_v39  ;;  %7288 = vmatprep.mubr.f32.mxu0 %v23074_v27  ;;  %v23075_v1 = vld [vmem:[#allocation178_spill] sm:$0xff]  ;;  %v23078_v41 = vand.u32 4294901760, %v23077_v16  ;;  %v16265_v39 = vsub.f32 %v16211_v7, %v21246_v51  ;;  %v16286_v27 = vld [vmem:[%s20344_s0 + $0x670] sm:$0xff] }
 0x23c   :  { %v23076_v49 = vand.u32 4294901760, %v23075_v1  ;;  %v16270_v10 = vsub.f32 %v16216_v62, %v23080_v13  ;;  %v23082_v1 = vld [vmem:[#allocation305_spill] sm:$0xff]  ;;  %v23084_v16 = vld [vmem:[#allocation183_spill] sm:$0xff]  ;;  %v23086_v13 = vld [vmem:[#allocation184_spill] sm:$0xff]  ;;  %v16302_v62 = vpack.c.bf16 %v23093_v55, %v23092_v0  ;;  %v23101_v0 = vand.u32 4294901760, %v23100_v54 }
 0x23d   :  { %23079 = vst [vmem:[#allocation227_spill] sm:$0xff] %v16265_v39  ;;  %v23087_v51 = vand.u32 4294901760, %v23086_v13  ;;  %10692 = vmatprep.subr.bf16.mxu1 %v10691_v34  ;;  %v16318_v55 = vpack.c.bf16 %v8068_v26, %v8064_v12  ;;  %v21256_v59 = vand.u32 4294901760, %v16281_v50  ;;  %v16335_v34 = vld [vmem:[%s20344_s0 + $0x2b8] sm:$0xff]  ;;  %11458 = vmatpush1.bf16.msra.mxu0 %v11457_v58  ;;  %v16344_v13 = vsub.f32 %v572_v37, %v8068_v26  ;;  %v16365_v58 = vld [vmem:[%s20344_s0 + $0x688] sm:$0xff] }
 0x23e   :  { %v11459_v40 = vpack.c.bf16 %v23078_v41, %v23076_v49  ;;  %23081 = vst [vmem:[#allocation232_spill] sm:$0xff] %v16270_v10  ;;  %v23083_v49 = vand.u32 4294901760, %v23082_v1  ;;  %v23085_v41 = vand.u32 4294901760, %v23084_v16  ;;  %v23088_v10 = vld [vmem:[#allocation186_spill] sm:$0xff]  ;;  %23094 = vst [vmem:[#allocation233_spill] sm:$0xff] %v16302_v62  ;;  %v21257_v1 = vand.u32 4294901760, %v16249_v4  ;;  %7292 = vmatmul.mubr.f32.gmra.mrb[28].mxu0 %v23101_v0 }
 0x23f   :  { %v23089_v39 = vand.u32 4294901760, %v23088_v10  ;;  %v16307_v16 = vsub.f32 %v570_v36, %v8064_v12  ;;  %23102 = vst [vmem:[#allocation240_spill] sm:$0xff] %v16318_v55  ;;  %v21258_v36 = vand.u32 4294901760, %v16286_v27  ;;  %v16340_v12 = vld [vmem:[%s20344_s0 + $0x2a0] sm:$0xff]  ;;  %23105 = vst [vmem:[#allocation247_spill] sm:$0xff] %v16344_v13  ;;  %v16370_v37 = vld [vmem:[%s20344_s0 + $0x698] sm:$0xff]  ;;  %v16377_v54 = vsub.f32 %v16281_v50, %v21256_v59 }
 0x240   :  { %2368 = vmatmul.mubr.f32.gmra.mrb[28].mxu1 %v23083_v49  ;;  %v10693_v32 = vpack.c.bf16 %v23087_v51, %v23085_v41  ;;  %v23095_v49 = vld [vmem:[#allocation310_spill] sm:$0xff]  ;;  %v23098_v51 = vand.u32 4294901760, %v16244_v30  ;;  %v16323_v47 = vsub.f32 %v16249_v4, %v21257_v1  ;;  %v23104_v41 = vand.u32 4294901760, %v22711_v20  ;;  %v16360_v20 = vld [vmem:[%s20344_s0 + $0x2b0] sm:$0xff]  ;;  %11460 = vmatprep.subr.bf16.mxu0 %v11459_v40 }
 0x241   :  { %v11461_v21 = vpack.c.bf16 %v23091_v45, %v23089_v39  ;;  %v23096_v28 = vand.u32 4294901760, %v23095_v49  ;;  %23097 = vst [vmem:[#allocation238_spill] sm:$0xff] %v16307_v16  ;;  %v21255_v45 = vand.u32 4294901760, %v16254_v52  ;;  %v16330_v39 = vld [vmem:[%s20344_s0 + $0x2a8] sm:$0xff]  ;;  %v23108_v26 = vand.u32 4294901760, %v22713_v6  ;;  %23109 = vst [vmem:[#allocation250_spill] sm:$0xff] %v16377_v54 }
 0x242   :  { %v16312_v10 = vsub.f32 %v16244_v30, %v23098_v51  ;;  %23103 = vst [vmem:[#allocation242_spill] sm:$0xff] %v16323_v47  ;;  %7300 = vmatprep.mubr.f32.mxu0 %v23104_v41  ;;  %v21260_v51 = vand.u32 4294901760, %v16330_v39  ;;  %v16382_v0 = vsub.f32 %v16286_v27, %v21258_v36  ;;  %v21259_v41 = vand.u32 4294901760, %v16335_v34  ;;  %10694 = vmatpush1.bf16.msra.mxu1 %v10693_v32  ;;  %v23302_v54 = vld [vmem:[#allocation25_spill] sm:$0xff]  ;;  %v23385_v47 = vld [vmem:[#allocation83_spill] sm:$0xff] }
 0x243   :  { %2376 = vmatprep.mubr.f32.mxu1 %v23096_v28  ;;  %v16349_v49 = vsub.f32 %v16254_v52, %v21255_v45  ;;  %v16354_v28 = vsub.f32 %v16276_v44, %v21254_v61  ;;  %v23111_v45 = vand.u32 4294901760, %v22717_v22  ;;  %v23112_v6 = vand.u32 4294901760, %v15828_v5  ;;  %v23120_v5 = vld [vmem:[#allocation5_spill] sm:$0xff]  ;;  %11462 = vmatpush1.bf16.msra.mxu0 %v11461_v21  ;;  %v16459_v21 = vld [vmem:[%s20344_s0 + $0x2d8] sm:$0xff] }
 0x244   :  { %23099 = vst [vmem:[#allocation235_spill] sm:$0xff] %v16312_v10  ;;  %2380 = vmatmul.mubr.f32.gmra.mrb[30].mxu1 %v23108_v26  ;;  %23110 = vst [vmem:[#allocation253_spill] sm:$0xff] %v16382_v0  ;;  %v23113_v40 = vand.u32 4294901760, %v15849_v42  ;;  %v23115_v59 = vand.u32 4294901760, %v15854_v17  ;;  %v23116_v1 = vand.u32 4294901760, %v15859_v31  ;;  %v16403_v61 = vsub.f32 %v16330_v39, %v21260_v51  ;;  %10696 = vmatprep.subr.bf16.mxu1 %v23120_v5 }
 0x245   :  { %23106 = vst [vmem:[#allocation243_spill] sm:$0xff] %v16349_v49  ;;  %23107 = vst [vmem:[#allocation249_spill] sm:$0xff] %v16354_v28  ;;  %2388 = vmatprep.mubr.f32.mxu1 %v23111_v45  ;;  %v21261_v22 = vand.u32 4294901760, %v16360_v20  ;;  %v23119_v32 = vand.u32 4294901760, %v22719_v3  ;;  %v16412_v42 = vsub.f32 %v16335_v34, %v21259_v41  ;;  %v23122_v17 = vand.u32 4294901760, %v16340_v12  ;;  %v16424_v3 = vld [vmem:[%s20344_s0 + $0x680] sm:$0xff] }
 0x246   :  { %v16392_v26 = vpack.c.bf16 %v23113_v40, %v23112_v6  ;;  %v16398_v36 = vpack.c.bf16 %v23116_v1, %v23115_v59  ;;  %23118 = vst [vmem:[#allocation313_spill] sm:$0xff] %v16403_v61  ;;  %v16429_v59 = vld [vmem:[%s20344_s0 + $0x690] sm:$0xff]  ;;  %v16434_v6 = vld [vmem:[%s20344_s0 + $0x2c8] sm:$0xff]  ;;  %v23124_v40 = vand.u32 4294901760, %v22720_v60  ;;  %v23126_v5 = vand.u32 4294901760, %v15899_v23  ;;  %v23309_v49 = vld [vmem:[#allocation28_spill] sm:$0xff] }
 0x247   :  { %7304 = vmatmul.mubr.f32.gmra.mrb[30].mxu0 %v23119_v32  ;;  %23121 = vst [vmem:[#allocation319_spill] sm:$0xff] %v16412_v42  ;;  %v16417_v31 = vsub.f32 %v16340_v12, %v23122_v17  ;;  %v23125_v32 = vand.u32 4294901760, %v15894_v63  ;;  %v23128_v41 = vand.u32 4294901760, %v15904_v46  ;;  %v23129_v51 = vand.u32 4294901760, %v15926_v43  ;;  %v16464_v63 = vld [vmem:[%s20344_s0 + $0x2c0] sm:$0xff]  ;;  %v16469_v23 = vld [vmem:[%s20344_s0 + $0x2d0] sm:$0xff] }
 0x248   :  { %23114 = vst [vmem:[#allocation7_spill] sm:$0xff] %v16392_v26  ;;  %23117 = vst [vmem:[#allocation312_spill] sm:$0xff] %v16398_v36  ;;  %7312 = vmatprep.mubr.f32.mxu0 %v23124_v40  ;;  %v16453_v1 = vsub.f32 %v16360_v20, %v21261_v22  ;;  %v23132_v46 = vld [vmem:[#allocation322_spill] sm:$0xff]  ;;  %v23145_v60 = vand.u32 4294901760, %v22724_v56  ;;  %v23158_v22 = vand.u32 4294901760, %v16021_v35  ;;  %v16572_v35 = vld [vmem:[%s20344_s0 + $0x6b0] sm:$0xff] }
 0x249   :  { %23123 = vst [vmem:[#allocation315_spill] sm:$0xff] %v16417_v31  ;;  %v16442_v17 = vpack.c.bf16 %v23126_v5, %v23125_v32  ;;  %v16448_v45 = vpack.c.bf16 %v23129_v51, %v23128_v41  ;;  %v23133_v43 = vand.u32 4294901760, %v23132_v46  ;;  %v23134_v51 = vld [vmem:[#allocation9_spill] sm:$0xff]  ;;  %v23135_v41 = vand.u32 4294901760, %v16365_v58  ;;  %v16523_v56 = vld [vmem:[%s20344_s0 + $0x6a8] sm:$0xff]  ;;  %v23174_v31 = vld [vmem:[#allocation331_spill] sm:$0xff] }
 0x24a   :  { %23131 = vst [vmem:[#allocation323_spill] sm:$0xff] %v16453_v1  ;;  %11464 = vmatprep.subr.bf16.mxu0 %v23134_v51  ;;  %v23137_v32 = vand.u32 4294901760, %v16370_v37  ;;  %v23139_v1 = vand.u32 4294901760, %v22723_v14  ;;  %v23140_v46 = vand.u32 4294901760, %v15931_v24  ;;  %v23146_v14 = vand.u32 4294901760, %v15985_v48  ;;  %v16528_v48 = vld [vmem:[%s20344_s0 + $0x6b8] sm:$0xff] }
 0x24b   :  { %23127 = vst [vmem:[#allocation321_spill] sm:$0xff] %v16442_v17  ;;  %23130 = vst [vmem:[#allocation327_spill] sm:$0xff] %v16448_v45  ;;  %2392 = vmatmul.mubr.f32.gmra.mrb[32].mxu1 %v23133_v43  ;;  %v16477_v40 = vsub.f32 %v16365_v58, %v23135_v41  ;;  %v23141_v43 = vand.u32 4294901760, %v15936_v29  ;;  %v23143_v41 = vand.u32 4294901760, %v16424_v3  ;;  %7316 = vmatmul.mubr.f32.gmra.mrb[32].mxu0 %v23145_v60  ;;  %v23147_v24 = vand.u32 4294901760, %v15990_v19  ;;  %v16533_v19 = vld [vmem:[%s20344_s0 + $0x2e8] sm:$0xff] }
 0x24c   :  { %v16482_v5 = vsub.f32 %v16370_v37, %v23137_v32  ;;  %2400 = vmatprep.mubr.f32.mxu1 %v23139_v1  ;;  %v23149_v29 = vand.u32 4294901760, %v16429_v59  ;;  %v23153_v60 = vld [vmem:[#allocation328_spill] sm:$0xff]  ;;  %v23159_v32 = vand.u32 4294901760, %v16026_v33  ;;  %v23165_v33 = vld [vmem:[#allocation330_spill] sm:$0xff]  ;;  %v23187_v42 = vand.u32 4294901760, %v16111_v2  ;;  %v23211_v61 = vld [vmem:[#allocation339_spill] sm:$0xff] }
 0x24d   :  { %23136 = vst [vmem:[#allocation23_spill] sm:$0xff] %v16477_v40  ;;  %v16492_v51 = vpack.c.bf16 %v23141_v43, %v23140_v46  ;;  %v16497_v40 = vsub.f32 %v16424_v3, %v23143_v41  ;;  %v16507_v1 = vpack.c.bf16 %v23147_v24, %v23146_v14  ;;  %v23151_v43 = vand.u32 4294901760, %v16434_v6 }
 0x24e   :  { %23138 = vst [vmem:[#allocation24_spill] sm:$0xff] %v16482_v5  ;;  %v16512_v46 = vsub.f32 %v16429_v59, %v23149_v29  ;;  %v23154_v14 = vand.u32 4294901760, %v23153_v60  ;;  %v23155_v24 = vand.u32 4294901760, %v15995_v57  ;;  %v23156_v29 = vand.u32 4294901760, %v16016_v53  ;;  %v16562_v57 = vld [vmem:[%s20344_s0 + $0x2f8] sm:$0xff]  ;;  %v16567_v53 = vld [vmem:[%s20344_s0 + $0x6a0] sm:$0xff] }
 0x24f   :  { %23142 = vst [vmem:[#allocation26_spill] sm:$0xff] %v16492_v51  ;;  %23144 = vst [vmem:[#allocation27_spill] sm:$0xff] %v16497_v40  ;;  %v16517_v41 = vsub.f32 %v16434_v6, %v23151_v43  ;;  %v23163_v60 = vand.u32 4294901760, %v16464_v63  ;;  %v23197_v2 = vand.u32 4294901760, %v16140_v25  ;;  %v476_v25 = vld [vmem:[%s20344_s0 + $0x318] sm:$0xff]  ;;  %v23212_v0 = vand.u32 4294901760, %v23211_v61 }
 0x250   :  { %23148 = vst [vmem:[#allocation32_spill] sm:$0xff] %v16507_v1  ;;  %23150 = vst [vmem:[#allocation33_spill] sm:$0xff] %v16512_v46  ;;  %7324 = vmatprep.mubr.f32.mxu0 %v23154_v14  ;;  %v16541_v43 = vpack.c.bf16 %v23156_v29, %v23155_v24  ;;  %v23161_v46 = vand.u32 4294901760, %v16459_v21  ;;  %v23182_v24 = vld [vmem:[#allocation336_spill] sm:$0xff] }
 0x251   :  { %23152 = vst [vmem:[#allocation29_spill] sm:$0xff] %v16517_v41  ;;  %v16547_v41 = vpack.c.bf16 %v23159_v32, %v23158_v22  ;;  %v16557_v14 = vsub.f32 %v16464_v63, %v23163_v60  ;;  %v23166_v22 = vand.u32 4294901760, %v23165_v33  ;;  %v23167_v32 = vand.u32 4294901760, %v16469_v23 }
 0x252   :  { %23157 = vst [vmem:[#allocation30_spill] sm:$0xff] %v16541_v43  ;;  %v16552_v40 = vsub.f32 %v16459_v21, %v23161_v46  ;;  %v23171_v33 = vand.u32 4294901760, %v16075_v11  ;;  %v23176_v11 = vand.u32 4294901760, %v16523_v56 }
 0x253   :  { %23160 = vst [vmem:[#allocation35_spill] sm:$0xff] %v16547_v41  ;;  %23164 = vst [vmem:[#allocation37_spill] sm:$0xff] %v16557_v14  ;;  %2404 = vmatmul.mubr.f32.gmra.mrb[34].mxu1 %v23166_v22  ;;  %v16579_v46 = vsub.f32 %v16469_v23, %v23167_v32  ;;  %v16587_v14 = vld [vmem:[%s20344_s0 + $0x2e0] sm:$0xff]  ;;  %v23172_v22 = vand.u32 4294901760, %v16080_v18 }
 0x254   :  { %23162 = vst [vmem:[#allocation36_spill] sm:$0xff] %v16552_v40  ;;  %v23169_v40 = vld [vmem:[#allocation333_spill] sm:$0xff]  ;;  %v16610_v18 = vsub.f32 %v16523_v56, %v23176_v11  ;;  %v21276_v29 = vand.u32 4294901760, %v16587_v14  ;;  %v23185_v11 = vand.u32 4294901760, %v16106_v8 }
 0x255   :  { %23168 = vst [vmem:[#allocation39_spill] sm:$0xff] %v16579_v46  ;;  %v23170_v5 = vand.u32 4294901760, %v23169_v40  ;;  %v16595_v32 = vpack.c.bf16 %v23172_v22, %v23171_v33  ;;  %v16603_v46 = vld [vmem:[%s20344_s0 + $0x2f0] sm:$0xff]  ;;  %v23175_v40 = vand.u32 4294901760, %v23174_v31  ;;  %v23180_v22 = vand.u32 4294901760, %v16533_v19 }
 0x256   :  { %23177 = vst [vmem:[#allocation45_spill] sm:$0xff] %v16610_v18  ;;  %v23183_v31 = vand.u32 4294901760, %v23182_v24  ;;  %v23192_v24 = vand.u32 4294901760, %v16567_v53 }
 0x257   :  { %2412 = vmatprep.mubr.f32.mxu1 %v23170_v5  ;;  %23173 = vst [vmem:[#allocation44_spill] sm:$0xff] %v16595_v32  ;;  %7328 = vmatmul.mubr.f32.gmra.mrb[34].mxu0 %v23175_v40  ;;  %v23178_v5 = vand.u32 4294901760, %v16528_v48  ;;  %v16620_v60 = vsub.f32 %v16533_v19, %v23180_v22  ;;  %v23184_v40 = vand.u32 4294901760, %v16085_v9  ;;  %v23190_v22 = vand.u32 4294901760, %v16562_v57  ;;  %v23194_v9 = vld [vmem:[#allocation337_spill] sm:$0xff] }
 0x258   :  { %7336 = vmatprep.mubr.f32.mxu0 %v23183_v31  ;;  %v16645_v31 = vsub.f32 %v16567_v53, %v23192_v24  ;;  %v23195_v8 = vand.u32 4294901760, %v23194_v9  ;;  %v23202_v24 = vld [vmem:[#allocation341_spill] sm:$0xff] }
 0x259   :  { %v16615_v33 = vsub.f32 %v16528_v48, %v23178_v5  ;;  %23181 = vst [vmem:[#allocation42_spill] sm:$0xff] %v16620_v60  ;;  %v16629_v18 = vpack.c.bf16 %v23185_v11, %v23184_v40  ;;  %v23188_v5 = vand.u32 4294901760, %v16116_v38  ;;  %v16640_v60 = vsub.f32 %v16562_v57, %v23190_v22 }
 0x25a   :  { %23193 = vst [vmem:[#allocation51_spill] sm:$0xff] %v16645_v31  ;;  %2416 = vmatmul.mubr.f32.gmra.mrb[36].mxu1 %v23195_v8  ;;  %v23196_v40 = vand.u32 4294901760, %v16135_v15  ;;  %v16664_v22 = vsub.f32 %v16587_v14, %v21276_v29  ;;  %v474_v15 = vld [vmem:[%s20344_s0 + $0x308] sm:$0xff]  ;;  %v23203_v9 = vand.u32 4294901760, %v23202_v24  ;;  %v23204_v8 = vand.u32 4294901760, %v16211_v7 }
 0x25b   :  { %23179 = vst [vmem:[#allocation41_spill] sm:$0xff] %v16615_v33  ;;  %23186 = vst [vmem:[#allocation46_spill] sm:$0xff] %v16629_v18  ;;  %v16635_v33 = vpack.c.bf16 %v23188_v5, %v23187_v42  ;;  %v23199_v42 = vand.u32 4294901760, %v16572_v35  ;;  %v3202_v5 = vand.u32 4294901760, %v16603_v46  ;;  %v23208_v29 = vand.u32 4294901760, %v16244_v30  ;;  %7340 = vmatmul.mubr.f32.gmra.mrb[36].mxu0 %v23212_v0 }
 0x25c   :  { %23191 = vst [vmem:[#allocation50_spill] sm:$0xff] %v16640_v60  ;;  %v16653_v38 = vpack.c.bf16 %v23197_v2, %v23196_v40  ;;  %23201 = vst [vmem:[#allocation53_spill] sm:$0xff] %v16664_v22  ;;  %2424 = vmatprep.mubr.f32.mxu1 %v23203_v9  ;;  %v23205_v40 = vld [vmem:[#allocation225_spill] sm:$0xff]  ;;  %v23209_v22 = vand.u32 4294901760, %v16249_v4  ;;  %v3204_v31 = vand.u32 4294901760, %v474_v15  ;;  %v3208_v60 = vand.u32 4294901760, %v476_v25 }
 0x25d   :  { %23189 = vst [vmem:[#allocation48_spill] sm:$0xff] %v16635_v33  ;;  %v16658_v11 = vsub.f32 %v16572_v35, %v23199_v42  ;;  %v23206_v2 = vand.u32 4294901760, %v23205_v40  ;;  %v23213_v24 = vand.u32 4294901760, %v16254_v52  ;;  %v23214_v9 = vand.u32 4294901760, %v16276_v44  ;;  %v594_v52 = vld [vmem:[%s20344_s0 + $0x6c8] sm:$0xff]  ;;  %v596_v44 = vld [vmem:[%s20344_s0 + $0x6d8] sm:$0xff] }
 0x25e   :  { %23198 = vst [vmem:[#allocation56_spill] sm:$0xff] %v16653_v38  ;;  %v23217_v40 = vand.u32 4294901760, %v16286_v27  ;;  %v23219_v4 = vand.u32 4294901760, %v16330_v39  ;;  %v16707_v61 = vsub.f32 %v16603_v46, %v3202_v5  ;;  %v23223_v27 = vld [vmem:[#allocation343_spill] sm:$0xff]  ;;  %v23226_v0 = vand.u32 4294901760, %v16360_v20  ;;  %v23230_v20 = vld [vmem:[#allocation345_spill] sm:$0xff] }
 0x25f   :  { %23200 = vst [vmem:[#allocation57_spill] sm:$0xff] %v16658_v11  ;;  %v16678_v42 = vpack.c.bf16 %v23206_v2, %v23204_v8  ;;  %v16684_v11 = vpack.c.bf16 %v23209_v22, %v23208_v29  ;;  %v16692_v7 = vpack.c.bf16 %v23214_v9, %v23213_v24  ;;  %v23216_v8 = vand.u32 4294901760, %v16281_v50  ;;  %v16718_v50 = vld [vmem:[%s20344_s0 + $0x300] sm:$0xff] }
 0x260   :  { %v23220_v29 = vand.u32 4294901760, %v16335_v34  ;;  %23222 = vst [vmem:[#allocation68_spill] sm:$0xff] %v16707_v61  ;;  %v23224_v39 = vand.u32 4294901760, %v23223_v27  ;;  %v23225_v34 = vand.u32 4294901760, %v16340_v12  ;;  %v16728_v2 = vsub.f32 %v474_v15, %v3204_v31  ;;  %v16743_v12 = vld [vmem:[%s20344_s0 + $0x6d0] sm:$0xff] }
 0x261   :  { %23207 = vst [vmem:[#allocation54_spill] sm:$0xff] %v16678_v42  ;;  %23210 = vst [vmem:[#allocation58_spill] sm:$0xff] %v16684_v11  ;;  %v16698_v30 = vpack.c.bf16 %v23217_v40, %v23216_v8  ;;  %v16730_v24 = vsub.f32 %v476_v25, %v3208_v60  ;;  %v8112_v9 = vand.u32 4294901760, %v594_v52  ;;  %v475_v8 = vld [vmem:[%s20344_s0 + $0x310] sm:$0xff]  ;;  %v16738_v40 = vld [vmem:[%s20344_s0 + $0x6c0] sm:$0xff]  ;;  %v23231_v15 = vand.u32 4294901760, %v23230_v20 }
 0x262   :  { %23215 = vst [vmem:[#allocation60_spill] sm:$0xff] %v16692_v7  ;;  %v16704_v22 = vpack.c.bf16 %v23220_v29, %v23219_v4  ;;  %7348 = vmatprep.mubr.f32.mxu0 %v23224_v39  ;;  %v16726_v46 = vpack.c.bf16 %v23226_v0, %v23225_v34  ;;  %23228 = vst [vmem:[#allocation65_spill] sm:$0xff] %v16728_v2  ;;  %v23232_v25 = vand.u32 4294901760, %v16365_v58  ;;  %v23233_v4 = vand.u32 4294901760, %v16370_v37  ;;  %v23238_v2 = vld [vmem:[#allocation188_spill] sm:$0xff] }
 0x263   :  { %23218 = vst [vmem:[#allocation62_spill] sm:$0xff] %v16698_v30  ;;  %23229 = vst [vmem:[#allocation66_spill] sm:$0xff] %v16730_v24  ;;  %2428 = vmatmul.mubr.f32.gmra.mrb[38].mxu1 %v23231_v15  ;;  %v23235_v27 = vand.u32 4294901760, %v16424_v3  ;;  %v23236_v39 = vand.u32 4294901760, %v16429_v59  ;;  %v8116_v0 = vand.u32 4294901760, %v596_v44  ;;  %v3206_v24 = vand.u32 4294901760, %v16718_v50 }
 0x264   :  { %23221 = vst [vmem:[#allocation63_spill] sm:$0xff] %v16704_v22  ;;  %23227 = vst [vmem:[#allocation69_spill] sm:$0xff] %v16726_v46  ;;  %v16751_v29 = vpack.c.bf16 %v23233_v4, %v23232_v25  ;;  %2691 = vmatprep.mubr.f32.mxu1 %v23238_v2  ;;  %v16761_v61 = vsub.f32 %v594_v52, %v8112_v9  ;;  %v3210_v20 = vand.u32 4294901760, %v475_v8  ;;  %v8114_v58 = vand.u32 4294901760, %v16738_v40  ;;  %v23240_v15 = vld [vmem:[#allocation347_spill] sm:$0xff]  ;;  %v23308_v22 = vld [vmem:[#allocation214_spill] sm:$0xff] }
 0x265   :  { %v16757_v34 = vpack.c.bf16 %v23236_v39, %v23235_v27  ;;  %v8118_v37 = vand.u32 4294901760, %v16743_v12  ;;  %v23241_v25 = vand.u32 4294901760, %v23240_v15  ;;  %v23242_v3 = vand.u32 4294901760, %v16434_v6  ;;  %v478_v15 = vld [vmem:[%s20344_s0 + $0x328] sm:$0xff]  ;;  %v480_v6 = vld [vmem:[%s20344_s0 + $0x338] sm:$0xff] }
 0x266   :  { %23234 = vst [vmem:[#allocation70_spill] sm:$0xff] %v16751_v29  ;;  %23239 = vst [vmem:[#allocation74_spill] sm:$0xff] %v16761_v61  ;;  %v23243_v59 = vand.u32 4294901760, %v16459_v21  ;;  %v23245_v27 = vand.u32 4294901760, %v16464_v63  ;;  %v23246_v39 = vand.u32 4294901760, %v16469_v23  ;;  %v16779_v61 = vsub.f32 %v596_v44, %v8116_v0  ;;  %v477_v21 = vld [vmem:[%s20344_s0 + $0x320] sm:$0xff] }
 0x267   :  { %23237 = vst [vmem:[#allocation72_spill] sm:$0xff] %v16757_v34  ;;  %7352 = vmatmul.mubr.f32.gmra.mrb[38].mxu0 %v23241_v25  ;;  %v16782_v46 = vsub.f32 %v16718_v50, %v3206_v24  ;;  %v23250_v63 = vld [vmem:[#allocation189_spill] sm:$0xff]  ;;  %v23251_v23 = vand.u32 4294901760, %v16523_v56  ;;  %v23252_v44 = vand.u32 4294901760, %v16528_v48  ;;  %v16800_v25 = vsub.f32 %v475_v8, %v3210_v20  ;;  %v16814_v56 = vld [vmem:[%s20344_s0 + $0x6e8] sm:$0xff]  ;;  %v16819_v48 = vld [vmem:[%s20344_s0 + $0x6f8] sm:$0xff] }
 0x268   :  { %v16771_v4 = vpack.c.bf16 %v23243_v59, %v23242_v3  ;;  %v16777_v52 = vpack.c.bf16 %v23246_v39, %v23245_v27  ;;  %23248 = vst [vmem:[#allocation81_spill] sm:$0xff] %v16779_v61  ;;  %7615 = vmatprep.mubr.f32.mxu0 %v23250_v63  ;;  %v16803_v3 = vsub.f32 %v16738_v40, %v8114_v58  ;;  %v479_v27 = vld [vmem:[%s20344_s0 + $0x330] sm:$0xff]  ;;  %v23257_v8 = vld [vmem:[#allocation190_spill] sm:$0xff]  ;;  %v23258_v40 = vand.u32 4294901760, %v16533_v19  ;;  %v23265_v61 = vld [vmem:[#allocation196_spill] sm:$0xff] }
 0x269   :  { %23249 = vst [vmem:[#allocation77_spill] sm:$0xff] %v16782_v46  ;;  %v16798_v50 = vpack.c.bf16 %v23252_v44, %v23251_v23  ;;  %23254 = vst [vmem:[#allocation82_spill] sm:$0xff] %v16800_v25  ;;  %v16806_v59 = vsub.f32 %v16743_v12, %v8118_v37  ;;  %2693 = vmatmul.mubr.f32.vlgmr.msra.gmra.mrb[0].mxu1 %v23257_v8  ;;  %v23259_v12 = vand.u32 4294901760, %v16562_v57  ;;  %v23261_v23 = vand.u32 4294901760, %v16567_v53  ;;  %v23264_v46 = vld [vmem:[#allocation11_spill] sm:$0xff]  ;;  %v23270_v53 = vld [vmem:[#allocation17_spill] sm:$0xff] }
 0x26a   :  { %23244 = vst [vmem:[#allocation75_spill] sm:$0xff] %v16771_v4  ;;  %23247 = vst [vmem:[#allocation80_spill] sm:$0xff] %v16777_v52  ;;  %v23262_v44 = vand.u32 4294901760, %v16572_v35  ;;  %v3216_v25 = vand.u32 4294901760, %v480_v6  ;;  %10698 = vmatpush1.bf16.msra.mxu1 %v23264_v46  ;;  %2699 = vmatprep.mubr.f32.mxu1 %v23265_v61  ;;  %v23266_v52 = vand.u32 4294901760, %v16587_v14  ;;  %v16840_v19 = vpack.c.bf16 %v3208_v60, %v3204_v31  ;;  %v597_v14 = vld [vmem:[%s20344_s0 + $0x6e0] sm:$0xff] }
 0x26b   :  { %23253 = vst [vmem:[#allocation78_spill] sm:$0xff] %v16798_v50  ;;  %23255 = vst [vmem:[#allocation84_spill] sm:$0xff] %v16803_v3  ;;  %v16826_v39 = vpack.c.bf16 %v23259_v12, %v23258_v40  ;;  %v3212_v3 = vand.u32 4294901760, %v478_v15  ;;  %v3214_v57 = vand.u32 4294901760, %v477_v21  ;;  %v3218_v40 = vand.u32 4294901760, %v479_v27  ;;  %v23269_v12 = vld [vmem:[#allocation191_spill] sm:$0xff]  ;;  %10700 = vmatprep.subr.bf16.mxu1 %v23270_v53 }
 0x26c   :  { %23256 = vst [vmem:[#allocation86_spill] sm:$0xff] %v16806_v59  ;;  %v16832_v59 = vpack.c.bf16 %v23262_v44, %v23261_v23  ;;  %v16838_v4 = vpack.c.bf16 %v3202_v5, %v23266_v52  ;;  %23268 = vst [vmem:[#allocation89_spill] sm:$0xff] %v16840_v19  ;;  %7617 = vmatmul.mubr.f32.vlgmr.msra.gmra.mrb[0].mxu0 %v23269_v12  ;;  %v16846_v23 = vsub.f32 %v480_v6, %v3216_v25  ;;  %v599_v60 = vld [vmem:[%s20344_s0 + $0x6f0] sm:$0xff]  ;;  %v16859_v31 = vld [vmem:[%s20344_s0 + $0x348] sm:$0xff] }
 0x26d   :  { %23260 = vst [vmem:[#allocation87_spill] sm:$0xff] %v16826_v39  ;;  %v16844_v35 = vsub.f32 %v478_v15, %v3212_v3  ;;  %v8120_v46 = vand.u32 4294901760, %v16814_v56  ;;  %v8124_v44 = vand.u32 4294901760, %v16819_v48  ;;  %v23273_v5 = vld [vmem:[#allocation14_spill] sm:$0xff]  ;;  %v16863_v15 = vpack.c.bf16 %v8116_v0, %v8112_v9  ;;  %v481_v19 = vld [vmem:[%s20344_s0 + $0x340] sm:$0xff]  ;;  %v23284_v39 = vld [vmem:[#allocation204_spill] sm:$0xff] }
 0x26e   :  { %23263 = vst [vmem:[#allocation92_spill] sm:$0xff] %v16832_v59  ;;  %23267 = vst [vmem:[#allocation93_spill] sm:$0xff] %v16838_v4  ;;  %11466 = vmatpush1.bf16.msra.mxu0 %v23273_v5  ;;  %v23274_v52 = vld [vmem:[#allocation198_spill] sm:$0xff]  ;;  %v16865_v6 = vsub.f32 %v477_v21, %v3214_v57  ;;  %v16867_v53 = vsub.f32 %v479_v27, %v3218_v40  ;;  %v483_v5 = vld [vmem:[%s20344_s0 + $0x350] sm:$0xff]  ;;  %v16880_v0 = vpack.c.bf16 %v3210_v20, %v3206_v24 }
 0x26f   :  { %23271 = vst [vmem:[#allocation90_spill] sm:$0xff] %v16844_v35  ;;  %23272 = vst [vmem:[#allocation94_spill] sm:$0xff] %v16846_v23  ;;  %7623 = vmatprep.mubr.f32.mxu0 %v23274_v52  ;;  %v8122_v23 = vand.u32 4294901760, %v597_v14  ;;  %v484_v35 = vld [vmem:[%s20344_s0 + $0x358] sm:$0xff]  ;;  %v23278_v4 = vld [vmem:[#allocation199_spill] sm:$0xff]  ;;  %v16883_v21 = vsub.f32 %v16814_v56, %v8120_v46  ;;  %v16886_v27 = vsub.f32 %v16819_v48, %v8124_v44  ;;  %v3220_v50 = vand.u32 4294901760, %v16859_v31 }
 0x270   :  { %23275 = vst [vmem:[#allocation96_spill] sm:$0xff] %v16863_v15  ;;  %23276 = vst [vmem:[#allocation98_spill] sm:$0xff] %v16865_v6  ;;  %2701 = vmatmul.mubr.f32.gmra.mrb[2].mxu1 %v23278_v4  ;;  %v23279_v9 = vld [vmem:[#allocation18_spill] sm:$0xff]  ;;  %v23283_v6 = vld [vmem:[#allocation19_spill] sm:$0xff]  ;;  %v16890_v15 = vpack.c.bf16 %v8118_v37, %v8114_v58  ;;  %v16897_v56 = vpack.c.bf16 %v3216_v25, %v3212_v3  ;;  %v16912_v3 = vpack.c.bf16 %v3218_v40, %v3214_v57 }
 0x271   :  { %23277 = vst [vmem:[#allocation99_spill] sm:$0xff] %v16867_v53  ;;  %11468 = vmatprep.subr.bf16.mxu0 %v23279_v9  ;;  %23280 = vst [vmem:[#allocation251_spill] sm:$0xff] %v16880_v0  ;;  %v8126_v53 = vand.u32 4294901760, %v599_v60  ;;  %10702 = vmatpush1.bf16.msra.mxu1 %v23283_v6  ;;  %v16892_v59 = vsub.f32 %v597_v14, %v8122_v23  ;;  %v3224_v9 = vand.u32 4294901760, %v484_v35  ;;  %v23287_v24 = vld [vmem:[#allocation200_spill] sm:$0xff]  ;;  %v23288_v20 = vld [vmem:[#allocation21_spill] sm:$0xff] }
 0x272   :  { %23281 = vst [vmem:[#allocation104_spill] sm:$0xff] %v16883_v21  ;;  %23282 = vst [vmem:[#allocation105_spill] sm:$0xff] %v16886_v27  ;;  %2707 = vmatprep.mubr.f32.mxu1 %v23284_v39  ;;  %7625 = vmatmul.mubr.f32.gmra.mrb[2].mxu0 %v23287_v24  ;;  %v3222_v27 = vand.u32 4294901760, %v481_v19  ;;  %v3226_v21 = vand.u32 4294901760, %v483_v5  ;;  %v602_v58 = vld [vmem:[%s20344_s0 + $0x708] sm:$0xff]  ;;  %v604_v37 = vld [vmem:[%s20344_s0 + $0x718] sm:$0xff] }
 0x273   :  { %23285 = vst [vmem:[#allocation256_spill] sm:$0xff] %v16890_v15  ;;  %23286 = vst [vmem:[#allocation101_spill] sm:$0xff] %v16892_v59  ;;  %10704 = vmatprep.subr.bf16.mxu1 %v23288_v20  ;;  %v16899_v48 = vsub.f32 %v599_v60, %v8126_v53  ;;  %v486_v14 = vld [vmem:[%s20344_s0 + $0x368] sm:$0xff]  ;;  %v23291_v6 = vld [vmem:[#allocation20_spill] sm:$0xff]  ;;  %v16915_v60 = vsub.f32 %v16859_v31, %v3220_v50  ;;  %v16917_v20 = vsub.f32 %v484_v35, %v3224_v9 }
 0x274   :  { %23289 = vst [vmem:[#allocation102_spill] sm:$0xff] %v16897_v56  ;;  %11470 = vmatpush1.bf16.msra.mxu0 %v23291_v6  ;;  %v23292_v25 = vld [vmem:[#allocation206_spill] sm:$0xff]  ;;  %23293 = vst [vmem:[#allocation106_spill] sm:$0xff] %v16912_v3  ;;  %v488_v59 = vld [vmem:[%s20344_s0 + $0x378] sm:$0xff]  ;;  %v16930_v31 = vpack.c.bf16 %v8124_v44, %v8120_v46  ;;  %v16932_v35 = vsub.f32 %v481_v19, %v3222_v27  ;;  %v3228_v19 = vand.u32 4294901760, %v486_v14 }
 0x275   :  { %23290 = vst [vmem:[#allocation257_spill] sm:$0xff] %v16899_v48  ;;  %7631 = vmatprep.mubr.f32.mxu0 %v23292_v25  ;;  %23294 = vst [vmem:[#allocation108_spill] sm:$0xff] %v16915_v60  ;;  %v8128_v48 = vand.u32 4294901760, %v602_v58  ;;  %v601_v56 = vld [vmem:[%s20344_s0 + $0x700] sm:$0xff]  ;;  %v603_v6 = vld [vmem:[%s20344_s0 + $0x710] sm:$0xff]  ;;  %v8132_v60 = vand.u32 4294901760, %v604_v37  ;;  %10706 = vmatpush1.bf16.msra.mxu1 %v23302_v54  ;;  %v16954_v54 = vpack.c.bf16 %v3224_v9, %v3220_v50 }
 0x276   :  { %23295 = vst [vmem:[#allocation261_spill] sm:$0xff] %v16917_v20  ;;  %v23296_v57 = vld [vmem:[#allocation207_spill] sm:$0xff]  ;;  %v23297_v40 = vld [vmem:[#allocation22_spill] sm:$0xff]  ;;  %23298 = vst [vmem:[#allocation110_spill] sm:$0xff] %v16930_v31  ;;  %v16934_v20 = vsub.f32 %v483_v5, %v3226_v21  ;;  %v3232_v44 = vand.u32 4294901760, %v488_v59  ;;  %v8130_v31 = vand.u32 4294901760, %v601_v56 }
 0x277   :  { %2709 = vmatmul.mubr.f32.gmra.mrb[4].mxu1 %v23296_v57  ;;  %11472 = vmatprep.subr.bf16.mxu0 %v23297_v40  ;;  %23299 = vst [vmem:[#allocation111_spill] sm:$0xff] %v16932_v35  ;;  %v485_v3 = vld [vmem:[%s20344_s0 + $0x360] sm:$0xff]  ;;  %v487_v0 = vld [vmem:[%s20344_s0 + $0x370] sm:$0xff]  ;;  %v23301_v15 = vld [vmem:[#allocation212_spill] sm:$0xff]  ;;  %v16944_v40 = vpack.c.bf16 %v8126_v53, %v8122_v23  ;;  %v16946_v46 = vsub.f32 %v602_v58, %v8128_v48  ;;  %v8134_v34 = vand.u32 4294901760, %v603_v6 }
 0x278   :  { %23300 = vst [vmem:[#allocation259_spill] sm:$0xff] %v16934_v20  ;;  %2715 = vmatprep.mubr.f32.mxu1 %v23301_v15  ;;  %v23305_v5 = vld [vmem:[#allocation208_spill] sm:$0xff]  ;;  %v23306_v20 = vld [vmem:[#allocation31_spill] sm:$0xff]  ;;  %v16950_v35 = vsub.f32 %v604_v37, %v8132_v60  ;;  %v3230_v28 = vand.u32 4294901760, %v485_v3  ;;  %11474 = vmatpush1.bf16.msra.mxu0 %v23309_v49  ;;  %23310 = vst [vmem:[#allocation113_spill] sm:$0xff] %v16954_v54  ;;  %v16956_v23 = vsub.f32 %v486_v14, %v3228_v19 }
 0x279   :  { %23303 = vst [vmem:[#allocation116_spill] sm:$0xff] %v16944_v40  ;;  %23304 = vst [vmem:[#allocation117_spill] sm:$0xff] %v16946_v46  ;;  %7633 = vmatmul.mubr.f32.gmra.mrb[4].mxu0 %v23305_v5  ;;  %10708 = vmatprep.subr.bf16.mxu1 %v23306_v20  ;;  %v16958_v53 = vsub.f32 %v488_v59, %v3232_v44  ;;  %v3234_v58 = vand.u32 4294901760, %v487_v0  ;;  %v23313_v46 = vld [vmem:[#allocation216_spill] sm:$0xff]  ;;  %v23314_v40 = vld [vmem:[#allocation34_spill] sm:$0xff]  ;;  %v16962_v37 = vpack.c.bf16 %v3226_v21, %v3222_v27 }
 0x27a   :  { %23307 = vst [vmem:[#allocation263_spill] sm:$0xff] %v16950_v35  ;;  %7639 = vmatprep.mubr.f32.mxu0 %v23308_v22  ;;  %23311 = vst [vmem:[#allocation114_spill] sm:$0xff] %v16956_v23  ;;  %11476 = vmatprep.subr.bf16.mxu0 %v23314_v40  ;;  %v16964_v20 = vsub.f32 %v601_v56, %v8130_v31  ;;  %v16966_v35 = vsub.f32 %v603_v6, %v8134_v34  ;;  %v490_v49 = vld [vmem:[%s20344_s0 + $0x388] sm:$0xff]  ;;  %v492_v50 = vld [vmem:[%s20344_s0 + $0x398] sm:$0xff] }
 0x27b   :  { %23312 = vst [vmem:[#allocation265_spill] sm:$0xff] %v16958_v53  ;;  %2717 = vmatmul.mubr.f32.gmra.mrb[6].mxu1 %v23313_v46  ;;  %23315 = vst [vmem:[#allocation118_spill] sm:$0xff] %v16962_v37  ;;  %v23318_v59 = vld [vmem:[#allocation220_spill] sm:$0xff]  ;;  %v23319_v9 = vld [vmem:[#allocation38_spill] sm:$0xff]  ;;  %v16976_v14 = vpack.c.bf16 %v8132_v60, %v8128_v48  ;;  %v16978_v21 = vsub.f32 %v485_v3, %v3230_v28  ;;  %v16980_v27 = vsub.f32 %v487_v0, %v3234_v58 }
 0x27c   :  { %23316 = vst [vmem:[#allocation120_spill] sm:$0xff] %v16964_v20  ;;  %23317 = vst [vmem:[#allocation270_spill] sm:$0xff] %v16966_v35  ;;  %2723 = vmatprep.mubr.f32.mxu1 %v23318_v59  ;;  %10710 = vmatpush1.bf16.msra.mxu1 %v23319_v9  ;;  %v3236_v56 = vand.u32 4294901760, %v490_v49  ;;  %v23323_v6 = vld [vmem:[#allocation217_spill] sm:$0xff]  ;;  %v23324_v40 = vld [vmem:[#allocation43_spill] sm:$0xff]  ;;  %v16984_v35 = vpack.c.bf16 %v3232_v44, %v3228_v19  ;;  %v16986_v20 = vpack.c.bf16 %v8134_v34, %v8130_v31 }
 0x27d   :  { %23320 = vst [vmem:[#allocation122_spill] sm:$0xff] %v16976_v14  ;;  %23321 = vst [vmem:[#allocation123_spill] sm:$0xff] %v16978_v21  ;;  %7641 = vmatmul.mubr.f32.gmra.mrb[6].mxu0 %v23323_v6  ;;  %10712 = vmatprep.subr.bf16.mxu1 %v23324_v40  ;;  %v16988_v53 = vpack.c.bf16 %v3234_v58, %v3230_v28  ;;  %v3240_v23 = vand.u32 4294901760, %v492_v50  ;;  %v606_v48 = vld [vmem:[%s20344_s0 + $0x728] sm:$0xff]  ;;  %v608_v0 = vld [vmem:[%s20344_s0 + $0x738] sm:$0xff] }
 0x27e   :  { %23322 = vst [vmem:[#allocation125_spill] sm:$0xff] %v16980_v27  ;;  %23325 = vst [vmem:[#allocation126_spill] sm:$0xff] %v16984_v35  ;;  %v489_v3 = vld [vmem:[%s20344_s0 + $0x380] sm:$0xff]  ;;  %v23328_v60 = vld [vmem:[#allocation222_spill] sm:$0xff]  ;;  %v17001_v34 = vsub.f32 %v490_v49, %v3236_v56  ;;  %v8136_v28 = vand.u32 4294901760, %v606_v48  ;;  %v8140_v31 = vand.u32 4294901760, %v608_v0 }
 0x27f   :  { %23326 = vst [vmem:[#allocation267_spill] sm:$0xff] %v16986_v20  ;;  %23327 = vst [vmem:[#allocation128_spill] sm:$0xff] %v16988_v53  ;;  %7647 = vmatprep.mubr.f32.mxu0 %v23328_v60  ;;  %v23329_v19 = vld [vmem:[#allocation40_spill] sm:$0xff]  ;;  %v491_v44 = vld [vmem:[%s20344_s0 + $0x390] sm:$0xff]  ;;  %v3238_v58 = vand.u32 4294901760, %v489_v3  ;;  %v17014_v49 = vpack.c.bf16 %v3240_v23, %v3236_v56 }
 0x280   :  { %11478 = vmatpush1.bf16.msra.mxu0 %v23329_v19  ;;  %23330 = vst [vmem:[#allocation129_spill] sm:$0xff] %v17001_v34  ;;  %v605_v9 = vld [vmem:[%s20344_s0 + $0x720] sm:$0xff]  ;;  %v607_v40 = vld [vmem:[%s20344_s0 + $0x730] sm:$0xff]  ;;  %v23331_v27 = vld [vmem:[#allocation224_spill] sm:$0xff]  ;;  %v17016_v34 = vsub.f32 %v492_v50, %v3240_v23  ;;  %v3242_v21 = vand.u32 4294901760, %v491_v44  ;;  %v17020_v54 = vpack.c.bf16 %v8140_v31, %v8136_v28  ;;  %v17022_v20 = vsub.f32 %v606_v48, %v8136_v28 }
 0x281   :  { %2725 = vmatmul.mubr.f32.gmra.mrb[8].mxu1 %v23331_v27  ;;  %v23332_v19 = vld [vmem:[#allocation47_spill] sm:$0xff]  ;;  %23333 = vst [vmem:[#allocation130_spill] sm:$0xff] %v17014_v49  ;;  %v8138_v53 = vand.u32 4294901760, %v605_v9  ;;  %v23335_v35 = vld [vmem:[#allocation228_spill] sm:$0xff]  ;;  %v23336_v37 = vld [vmem:[#allocation49_spill] sm:$0xff]  ;;  %v17024_v14 = vsub.f32 %v608_v0, %v8140_v31  ;;  %v8142_v7 = vand.u32 4294901760, %v607_v40 }
 0x282   :  { %11480 = vmatprep.subr.bf16.mxu0 %v23332_v19  ;;  %23334 = vst [vmem:[#allocation132_spill] sm:$0xff] %v17016_v34  ;;  %2731 = vmatprep.mubr.f32.mxu1 %v23335_v35  ;;  %23337 = vst [vmem:[#allocation272_spill] sm:$0xff] %v17020_v54  ;;  %v494_v56 = vld [vmem:[%s20344_s0 + $0x3a8] sm:$0xff]  ;;  %v496_v23 = vld [vmem:[%s20344_s0 + $0x3b8] sm:$0xff]  ;;  %v17036_v34 = vsub.f32 %v489_v3, %v3238_v58  ;;  %v17038_v48 = vsub.f32 %v491_v44, %v3242_v21 }
 0x283   :  { %10714 = vmatpush1.bf16.msra.mxu1 %v23336_v37  ;;  %23338 = vst [vmem:[#allocation134_spill] sm:$0xff] %v17022_v20  ;;  %23339 = vst [vmem:[#allocation135_spill] sm:$0xff] %v17024_v14  ;;  %v23340_v50 = vld [vmem:[#allocation226_spill] sm:$0xff]  ;;  %v23341_v19 = vld [vmem:[#allocation55_spill] sm:$0xff]  ;;  %v17034_v37 = vpack.c.bf16 %v3242_v21, %v3238_v58  ;;  %v3244_v0 = vand.u32 4294901760, %v494_v56  ;;  %v17052_v3 = vsub.f32 %v607_v40, %v8142_v7  ;;  %v3248_v21 = vand.u32 4294901760, %v496_v23 }
 0x284   :  { %7649 = vmatmul.mubr.f32.gmra.mrb[8].mxu0 %v23340_v50  ;;  %10716 = vmatprep.subr.bf16.mxu1 %v23341_v19  ;;  %23343 = vst [vmem:[#allocation279_spill] sm:$0xff] %v17036_v34  ;;  %23344 = vst [vmem:[#allocation137_spill] sm:$0xff] %v17038_v48  ;;  %v493_v28 = vld [vmem:[%s20344_s0 + $0x3a0] sm:$0xff]  ;;  %v495_v31 = vld [vmem:[%s20344_s0 + $0x3b0] sm:$0xff]  ;;  %v17048_v19 = vpack.c.bf16 %v8142_v7, %v8138_v53 }
 0x285   :  { %23342 = vst [vmem:[#allocation273_spill] sm:$0xff] %v17034_v37  ;;  %v23345_v14 = vld [vmem:[#allocation229_spill] sm:$0xff]  ;;  %v23346_v20 = vld [vmem:[#allocation52_spill] sm:$0xff]  ;;  %v17050_v37 = vsub.f32 %v605_v9, %v8138_v53  ;;  %23349 = vst [vmem:[#allocation141_spill] sm:$0xff] %v17052_v3  ;;  %v3246_v49 = vand.u32 4294901760, %v493_v28  ;;  %v3250_v53 = vand.u32 4294901760, %v495_v31  ;;  %v17066_v3 = vpack.c.bf16 %v3248_v21, %v3244_v0 }
 0x286   :  { %7655 = vmatprep.mubr.f32.mxu0 %v23345_v14  ;;  %11482 = vmatpush1.bf16.msra.mxu0 %v23346_v20  ;;  %23347 = vst [vmem:[#allocation138_spill] sm:$0xff] %v17048_v19  ;;  %v610_v44 = vld [vmem:[%s20344_s0 + $0x748] sm:$0xff]  ;;  %v612_v58 = vld [vmem:[%s20344_s0 + $0x758] sm:$0xff]  ;;  %v23351_v34 = vld [vmem:[#allocation59_spill] sm:$0xff]  ;;  %v17062_v20 = vsub.f32 %v494_v56, %v3244_v0 }
 0x287   :  { %23348 = vst [vmem:[#allocation140_spill] sm:$0xff] %v17050_v37  ;;  %v23350_v48 = vld [vmem:[#allocation230_spill] sm:$0xff]  ;;  %11484 = vmatprep.subr.bf16.mxu0 %v23351_v34  ;;  %v8144_v9 = vand.u32 4294901760, %v610_v44  ;;  %v23353_v7 = vld [vmem:[#allocation236_spill] sm:$0xff]  ;;  %v23354_v40 = vld [vmem:[#allocation61_spill] sm:$0xff]  ;;  %v17068_v37 = vsub.f32 %v496_v23, %v3248_v21  ;;  %v8148_v19 = vand.u32 4294901760, %v612_v58  ;;  %v17081_v0 = vsub.f32 %v493_v28, %v3246_v49 }
 0x288   :  { %2733 = vmatmul.mubr.f32.gmra.mrb[10].mxu1 %v23350_v48  ;;  %23352 = vst [vmem:[#allocation275_spill] sm:$0xff] %v17062_v20  ;;  %23355 = vst [vmem:[#allocation281_spill] sm:$0xff] %v17066_v3  ;;  %v498_v54 = vld [vmem:[%s20344_s0 + $0x3c8] sm:$0xff]  ;;  %v500_v34 = vld [vmem:[%s20344_s0 + $0x3d8] sm:$0xff]  ;;  %v17083_v23 = vsub.f32 %v495_v31, %v3250_v53 }
 0x289   :  { %2739 = vmatprep.mubr.f32.mxu1 %v23353_v7  ;;  %10718 = vmatpush1.bf16.msra.mxu1 %v23354_v40  ;;  %23356 = vst [vmem:[#allocation142_spill] sm:$0xff] %v17068_v37  ;;  %v23357_v56 = vld [vmem:[#allocation179_spill] sm:$0xff]  ;;  %v23358_v48 = vld [vmem:[#allocation234_spill] sm:$0xff]  ;;  %v17079_v40 = vpack.c.bf16 %v3250_v53, %v3246_v49  ;;  %23361 = vst [vmem:[#allocation146_spill] sm:$0xff] %v17081_v0  ;;  %v3252_v3 = vand.u32 4294901760, %v498_v54  ;;  %v17096_v49 = vpack.c.bf16 %v8148_v19, %v8144_v9 }
 0x28a   :  { %v191_v20 = vsub.s32 3, %v23357_v56  ;;  %7657 = vmatmul.mubr.f32.gmra.mrb[10].mxu0 %v23358_v48  ;;  %v23359_v7 = vld [vmem:[#allocation67_spill] sm:$0xff]  ;;  %23362 = vst [vmem:[#allocation147_spill] sm:$0xff] %v17083_v23  ;;  %v609_v21 = vld [vmem:[%s20344_s0 + $0x740] sm:$0xff]  ;;  %v17098_v28 = vsub.f32 %v610_v44, %v8144_v9  ;;  %v17100_v31 = vsub.f32 %v612_v58, %v8148_v19  ;;  %v3256_v35 = vand.u32 4294901760, %v500_v34  ;;  %v23371_v29 = vld [vmem:[#allocation244_spill] sm:$0xff] }
 0x28b   :  { %10720 = vmatprep.subr.bf16.mxu1 %v23359_v7  ;;  %23360 = vst [vmem:[#allocation144_spill] sm:$0xff] %v17079_v40  ;;  %v611_v37 = vld [vmem:[%s20344_s0 + $0x750] sm:$0xff]  ;;  %v497_v48 = vld [vmem:[%s20344_s0 + $0x3c0] sm:$0xff]  ;;  %v23364_v40 = vld [vmem:[#allocation64_spill] sm:$0xff]  ;;  %v8146_v53 = vand.u32 4294901760, %v609_v21 }
 0x28c   :  { %v23363_v7 = vld [vmem:[#allocation237_spill] sm:$0xff]  ;;  %11486 = vmatpush1.bf16.msra.mxu0 %v23364_v40  ;;  %23365 = vst [vmem:[#allocation282_spill] sm:$0xff] %v17096_v49  ;;  %23366 = vst [vmem:[#allocation287_spill] sm:$0xff] %v17098_v28  ;;  %v499_v23 = vld [vmem:[%s20344_s0 + $0x3d0] sm:$0xff]  ;;  %v8150_v50 = vand.u32 4294901760, %v611_v37  ;;  %v3254_v40 = vand.u32 4294901760, %v497_v48 }
 0x28d   :  { %7663 = vmatprep.mubr.f32.mxu0 %v23363_v7  ;;  %23367 = vst [vmem:[#allocation149_spill] sm:$0xff] %v17100_v31  ;;  %v23368_v0 = vld [vmem:[#allocation239_spill] sm:$0xff]  ;;  %v17107_v7 = vsub.f32 %v498_v54, %v3252_v3  ;;  %v23372_v44 = vld [vmem:[#allocation73_spill] sm:$0xff]  ;;  %v17111_v19 = vsub.f32 %v609_v21, %v8146_v53  ;;  %v3258_v58 = vand.u32 4294901760, %v499_v23  ;;  %v614_v9 = vld [vmem:[%s20344_s0 + $0x768] sm:$0xff] }
 0x28e   :  { %2741 = vmatmul.mubr.f32.gmra.mrb[12].mxu1 %v23368_v0  ;;  %v23369_v14 = vld [vmem:[#allocation71_spill] sm:$0xff]  ;;  %v502_v54 = vld [vmem:[%s20344_s0 + $0x3e8] sm:$0xff]  ;;  %v17133_v28 = vpack.c.bf16 %v8150_v50, %v8146_v53  ;;  %v17135_v49 = vsub.f32 %v611_v37, %v8150_v50  ;;  %v8152_v0 = vand.u32 4294901760, %v614_v9  ;;  %v504_v27 = vld [vmem:[%s20344_s0 + $0x3f8] sm:$0xff]  ;;  %v17150_v50 = vsub.f32 %v500_v34, %v3256_v35 }
 0x28f   :  { %11488 = vmatprep.subr.bf16.mxu0 %v23369_v14  ;;  %23370 = vst [vmem:[#allocation150_spill] sm:$0xff] %v17107_v7  ;;  %2747 = vmatprep.mubr.f32.mxu1 %v23371_v29  ;;  %23373 = vst [vmem:[#allocation152_spill] sm:$0xff] %v17111_v19  ;;  %v616_v14 = vld [vmem:[%s20344_s0 + $0x778] sm:$0xff]  ;;  %v17125_v7 = vld [vmem:[%s20345_s1] sm:$0xff]  ;;  %v17137_v29 = vpack.c.bf16 %v3256_v35, %v3252_v3  ;;  %v17152_v37 = vpack.c.bf16 %v3258_v58, %v3254_v40  ;;  %v3264_v35 = vand.u32 4294901760, %v504_v27 }
 0x290   :  { %10722 = vmatpush1.bf16.msra.mxu1 %v23372_v44  ;;  %v17128_v21 = vrot.slane %v17125_v7, %v191_v20  ;;  %v207_v44 = vsub.s32 7, %v23357_v56  ;;  %v23374_v19 = vld [vmem:[#allocation241_spill] sm:$0xff]  ;;  %v23375_v31 = vld [vmem:[#allocation79_spill] sm:$0xff]  ;;  %23376 = vst [vmem:[#allocation153_spill] sm:$0xff] %v17133_v28  ;;  %23377 = vst [vmem:[#allocation283_spill] sm:$0xff] %v17135_v49  ;;  %v17154_v3 = vsub.f32 %v497_v48, %v3254_v40  ;;  %v8156_v49 = vand.u32 4294901760, %v616_v14 }
 0x291   :  { %7665 = vmatmul.mubr.f32.gmra.mrb[12].mxu0 %v23374_v19  ;;  %10724 = vmatprep.subr.bf16.mxu1 %v23375_v31  ;;  %23378 = vst [vmem:[#allocation288_spill] sm:$0xff] %v17137_v29  ;;  %v613_v20 = vld [vmem:[%s20344_s0 + $0x760] sm:$0xff]  ;;  %v615_v19 = vld [vmem:[%s20344_s0 + $0x770] sm:$0xff]  ;;  %v23380_v53 = vld [vmem:[#allocation76_spill] sm:$0xff]  ;;  %v17161_v30 = vsub.f32 %v499_v23, %v3258_v58 }
 0x292   :  { %v23379_v31 = vld [vmem:[#allocation245_spill] sm:$0xff]  ;;  %11490 = vmatpush1.bf16.msra.mxu0 %v23380_v53  ;;  %23381 = vst [vmem:[#allocation154_spill] sm:$0xff] %v17150_v50  ;;  %23382 = vst [vmem:[#allocation156_spill] sm:$0xff] %v17152_v37  ;;  %v23384_v28 = vld [vmem:[#allocation246_spill] sm:$0xff]  ;;  %v3260_v53 = vand.u32 4294901760, %v502_v54  ;;  %v17172_v50 = vsub.f32 %v616_v14, %v8156_v49  ;;  %v8154_v37 = vand.u32 4294901760, %v613_v20 }
 0x293   :  { %7671 = vmatprep.mubr.f32.mxu0 %v23379_v31  ;;  %23383 = vst [vmem:[#allocation158_spill] sm:$0xff] %v17154_v3  ;;  %v501_v29 = vld [vmem:[%s20344_s0 + $0x3e0] sm:$0xff]  ;;  %2749 = vmatmul.mubr.f32.gmra.mrb[14].mxu1 %v23384_v28  ;;  %23386 = vst [vmem:[#allocation159_spill] sm:$0xff] %v17161_v30  ;;  %v17163_v31 = vsub.f32 %v614_v9, %v8152_v0  ;;  %v503_v48 = vld [vmem:[%s20344_s0 + $0x3f0] sm:$0xff]  ;;  %v17170_v3 = vpack.c.bf16 %v8156_v49, %v8152_v0 }
 0x294   :  { %11492 = vmatprep.subr.bf16.mxu0 %v23385_v47  ;;  %v23388_v34 = vld [vmem:[#allocation252_spill] sm:$0xff]  ;;  %v23389_v40 = vld [vmem:[#allocation85_spill] sm:$0xff]  ;;  %23391 = vst [vmem:[#allocation164_spill] sm:$0xff] %v17172_v50  ;;  %v8158_v47 = vand.u32 4294901760, %v615_v19  ;;  %v23393_v9 = vld [vmem:[#allocation91_spill] sm:$0xff]  ;;  %v17181_v30 = vsub.f32 %v502_v54, %v3260_v53  ;;  %v3262_v0 = vand.u32 4294901760, %v501_v29  ;;  %v17189_v50 = vsub.f32 %v613_v20, %v8154_v37 }
 0x295   :  { %23387 = vst [vmem:[#allocation290_spill] sm:$0xff] %v17163_v31  ;;  %2755 = vmatprep.mubr.f32.mxu1 %v23388_v34  ;;  %10726 = vmatpush1.bf16.msra.mxu1 %v23389_v40  ;;  %23390 = vst [vmem:[#allocation293_spill] sm:$0xff] %v17170_v3  ;;  %v18_v23 = vld [vmem:[%s20346_s2 + $0x18] sm:$0xff]  ;;  %v17179_v31 = vpack.c.bf16 %v3264_v35, %v3260_v53  ;;  %v17183_v34 = vsub.f32 %v504_v27, %v3264_v35  ;;  %v23397_v40 = vld [vmem:[#allocation254_spill] sm:$0xff] }
 0x296   :  { %v23392_v58 = vld [vmem:[#allocation248_spill] sm:$0xff]  ;;  %10728 = vmatprep.subr.bf16.mxu1 %v23393_v9  ;;  %23395 = vst [vmem:[#allocation291_spill] sm:$0xff] %v17181_v30  ;;  %v17187_v14 = vpack.c.bf16 %v8158_v47, %v8154_v37  ;;  %23400 = vst [vmem:[#allocation162_spill] sm:$0xff] %v17189_v50  ;;  %v17191_v3 = vsub.f32 %v615_v19, %v8158_v47  ;;  %v23402_v54 = vld [vmem:[#allocation255_spill] sm:$0xff]  ;;  %v17198_v53 = vsub.f32 %v501_v29, %v3262_v0 }
 0x297   :  { %7673 = vmatmul.mubr.f32.gmra.mrb[14].mxu0 %v23392_v58  ;;  %23394 = vst [vmem:[#allocation165_spill] sm:$0xff] %v17179_v31  ;;  %23396 = vst [vmem:[#allocation296_spill] sm:$0xff] %v17183_v34  ;;  %v23398_v49 = vld [vmem:[#allocation88_spill] sm:$0xff]  ;;  %v3266_v58 = vand.u32 4294901760, %v503_v48  ;;  %2757 = vmatmul.mubr.f32.gmra.mrb[16].mxu1 %v23402_v54  ;;  %v23403_v27 = vld [vmem:[#allocation95_spill] sm:$0xff]  ;;  %v220_v35 = vmul.f32 %v17128_v21, %v18_v23 }
 0x298   :  { %7679 = vmatprep.mubr.f32.mxu0 %v23397_v40  ;;  %11494 = vmatpush1.bf16.msra.mxu0 %v23398_v49  ;;  %23399 = vst [vmem:[#allocation161_spill] sm:$0xff] %v17187_v14  ;;  %23401 = vst [vmem:[#allocation166_spill] sm:$0xff] %v17191_v3  ;;  %v22_v9 = vld [vmem:[%s20346_s2 + $0x38] sm:$0xff]  ;;  %v17202_v49 = vrot.slane %v17125_v7, %v207_v44  ;;  %v23406_v19 = vld [vmem:[#allocation97_spill] sm:$0xff]  ;;  %v187_v3 = vsub.s32 2, %v23357_v56 }
 0x299   :  { %11496 = vmatprep.subr.bf16.mxu0 %v23403_v27  ;;  %23404 = vst [vmem:[#allocation168_spill] sm:$0xff] %v17198_v53  ;;  %v23405_v20 = vld [vmem:[#allocation260_spill] sm:$0xff]  ;;  %10730 = vmatpush1.bf16.msra.mxu1 %v23406_v19  ;;  %v17206_v37 = vpack.c.bf16 %v3266_v58, %v3262_v0  ;;  %v17208_v47 = vsub.f32 %v503_v48, %v3266_v58  ;;  %v23409_v50 = vld [vmem:[#allocation6_spill] sm:$0xff]  ;;  %v23411_v53 = vld [vmem:[#allocation103_spill] sm:$0xff]  ;;  %v17214_v23 = vand.u32 4294901760, %v220_v35  ;;  %v203_v48 = vsub.s32 6, %v23357_v56 }
 0x29a   :  { %2763 = vmatprep.mubr.f32.mxu1 %v23405_v20  ;;  %v23410_v29 = vld [vmem:[#allocation258_spill] sm:$0xff]  ;;  %10732 = vmatprep.subr.bf16.mxu1 %v23411_v53  ;;  %v224_v44 = vmul.f32 %v17202_v49, %v22_v9  ;;  %v17_v19 = vld [vmem:[%s20346_s2 + $0x10] sm:$0xff]  ;;  %v23413_v0 = vld [vmem:[#allocation8_spill] sm:$0xff]  ;;  %v17225_v27 = vrot.slane %v17125_v7, %v187_v3  ;;  %v23416_v53 = vand.u32 4294901760, %v23409_v50 }
 0x29b   :  { %23407 = vst [vmem:[#allocation297_spill] sm:$0xff] %v17206_v37  ;;  %23408 = vst [vmem:[#allocation301_spill] sm:$0xff] %v17208_v47  ;;  %7681 = vmatmul.mubr.f32.gmra.mrb[16].mxu0 %v23410_v29  ;;  %v23414_v58 = vld [vmem:[#allocation262_spill] sm:$0xff]  ;;  %v23415_v47 = vld [vmem:[#allocation100_spill] sm:$0xff]  ;;  %v23420_v14 = vand.u32 4294901760, %v23413_v0 }
 0x29c   :  { %23412 = vst [vmem:[#allocation170_spill] sm:$0xff] %v17214_v23  ;;  %7687 = vmatprep.mubr.f32.mxu0 %v23414_v58  ;;  %11498 = vmatpush1.bf16.msra.mxu0 %v23415_v47  ;;  %v3592_v30 = vsub.f32 %v23409_v50, %v23416_v53  ;;  %v21_v9 = vld [vmem:[%s20346_s2 + $0x30] sm:$0xff]  ;;  %v23417_v56 = vld [vmem:[#allocation264_spill] sm:$0xff]  ;;  %v17238_v47 = vsub.f32 %v220_v35, %v17214_v23  ;;  %v619_v3 = vsel %vm617_vm0, %v224_v44, 0  ;;  %v23422_v37 = vld [vmem:[#allocation109_spill] sm:$0xff]  ;;  %v23424_v35 = vand.u32 4294901760, %v16307_v16 }
 0x29d   :  { %2765 = vmatmul.mubr.f32.gmra.mrb[18].mxu1 %v23417_v56  ;;  %v23418_v31 = vld [vmem:[#allocation107_spill] sm:$0xff]  ;;  %v3604_v53 = vsub.f32 %v23413_v0, %v23420_v14  ;;  %v17245_v50 = vrot.slane %v17125_v7, %v203_v48  ;;  %v23421_v58 = vld [vmem:[#allocation268_spill] sm:$0xff]  ;;  %v17249_v34 = vand.u32 4294901760, %v619_v3  ;;  %v23425_v23 = vld [vmem:[#allocation266_spill] sm:$0xff] }
 0x29e   :  { %11500 = vmatprep.subr.bf16.mxu0 %v23418_v31  ;;  %23419 = vst [vmem:[#allocation171_spill] sm:$0xff] %v17238_v47  ;;  %2771 = vmatprep.mubr.f32.mxu1 %v23421_v58  ;;  %v219_v31 = vmul.f32 %v17225_v27, %v17_v19  ;;  %v3593_v56 = vand.u32 4294901760, %v3592_v30  ;;  %v8500_v44 = vsub.f32 %v16307_v16, %v23424_v35  ;;  %v23426_v29 = vld [vmem:[#allocation115_spill] sm:$0xff]  ;;  %v23428_v58 = vld [vmem:[#allocation269_spill] sm:$0xff]  ;;  %v23429_v30 = vld [vmem:[#allocation112_spill] sm:$0xff] }
 0x29f   :  { %10734 = vmatpush1.bf16.msra.mxu1 %v23422_v37  ;;  %23423 = vst [vmem:[#allocation299_spill] sm:$0xff] %v17249_v34  ;;  %7689 = vmatmul.mubr.f32.gmra.mrb[18].mxu0 %v23425_v23  ;;  %v3605_v14 = vand.u32 4294901760, %v3604_v53  ;;  %v223_v48 = vmul.f32 %v17245_v50, %v21_v9  ;;  %v23427_v37 = vand.u32 4294901760, %v16344_v13  ;;  %v17265_v19 = vsub.f32 %v619_v3, %v17249_v34  ;;  %v23433_v7 = vld [vmem:[#allocation271_spill] sm:$0xff]  ;;  %v23439_v34 = vld [vmem:[#allocation276_spill] sm:$0xff] }
 0x2a0   :  { %10736 = vmatprep.subr.bf16.mxu1 %v23426_v29  ;;  %7695 = vmatprep.mubr.f32.mxu0 %v23428_v58  ;;  %v17267_v35 = vand.u32 4294901760, %v219_v31  ;;  %v8501_v16 = vand.u32 4294901760, %v8500_v44  ;;  %v23432_v29 = vld [vmem:[#allocation10_spill] sm:$0xff]  ;;  %v23434_v53 = vld [vmem:[#allocation119_spill] sm:$0xff]  ;;  %v23435_v9 = vand.u32 4294901760, %v17238_v47  ;;  %v23440_v58 = vld [vmem:[#allocation121_spill] sm:$0xff] }
 0x2a1   :  { %v8512_v0 = vsub.f32 %v16344_v13, %v23427_v37  ;;  %11502 = vmatpush1.bf16.msra.mxu0 %v23429_v30  ;;  %23430 = vst [vmem:[#allocation173_spill] sm:$0xff] %v17265_v19  ;;  %2773 = vmatmul.mubr.f32.gmra.mrb[20].mxu1 %v23433_v7  ;;  %v17277_v13 = vpack.c.bf16 %v3605_v14, %v3593_v56  ;;  %v17279_v30 = vand.u32 4294901760, %v223_v48  ;;  %v26_v56 = vld [vmem:[%s20346_s2 + $0x58] sm:$0xff]  ;;  %v23445_v14 = vld [vmem:[#allocation127_spill] sm:$0xff] }
 0x2a2   :  { %23431 = vst [vmem:[#allocation174_spill] sm:$0xff] %v17267_v35  ;;  %11504 = vmatprep.subr.bf16.mxu0 %v23434_v53  ;;  %v17275_v37 = vsub.f32 %v17238_v47, %v23435_v9  ;;  %2779 = vmatprep.mubr.f32.mxu1 %v23439_v34  ;;  %v17285_v23 = vsub.f32 %v219_v31, %v17267_v35  ;;  %v23442_v53 = vand.u32 4294901760, %v23432_v29  ;;  %v23443_v9 = vld [vmem:[#allocation12_spill] sm:$0xff]  ;;  %v23448_v35 = vld [vmem:[#allocation13_spill] sm:$0xff] }
 0x2a3   :  { %23437 = vst [vmem:[#allocation177_spill] sm:$0xff] %v17277_v13  ;;  %23438 = vst [vmem:[#allocation303_spill] sm:$0xff] %v17279_v30  ;;  %v8513_v3 = vand.u32 4294901760, %v8512_v0  ;;  %10738 = vmatpush1.bf16.msra.mxu1 %v23440_v58  ;;  %v23444_v0 = vld [vmem:[#allocation274_spill] sm:$0xff]  ;;  %v17298_v44 = vsub.f32 %v223_v48, %v17279_v30  ;;  %v23449_v47 = vld [vmem:[#allocation277_spill] sm:$0xff] }
 0x2a4   :  { %23436 = vst [vmem:[#allocation176_spill] sm:$0xff] %v17275_v37  ;;  %23441 = vst [vmem:[#allocation178_spill] sm:$0xff] %v17285_v23  ;;  %v3598_v7 = vsub.f32 %v23432_v29, %v23442_v53  ;;  %7697 = vmatmul.mubr.f32.gmra.mrb[20].mxu0 %v23444_v0  ;;  %10740 = vmatprep.subr.bf16.mxu1 %v23445_v14  ;;  %v30_v53 = vld [vmem:[%s20346_s2 + $0x78] sm:$0xff]  ;;  %v23451_v0 = vand.u32 4294901760, %v17265_v19  ;;  %v23454_v13 = vld [vmem:[#allocation278_spill] sm:$0xff]  ;;  %v23460_v37 = vand.u32 4294901760, %v17285_v23 }
 0x2a5   :  { %23446 = vst [vmem:[#allocation181_spill] sm:$0xff] %v17298_v44  ;;  %v17300_v31 = vpack.c.bf16 %v8513_v3, %v8501_v16  ;;  %7703 = vmatprep.mubr.f32.mxu0 %v23449_v47  ;;  %v23450_v29 = vld [vmem:[#allocation124_spill] sm:$0xff]  ;;  %v23453_v16 = vand.u32 4294901760, %v23443_v9  ;;  %2781 = vmatmul.mubr.f32.gmra.mrb[22].mxu1 %v23454_v13  ;;  %v23455_v30 = vld [vmem:[#allocation131_spill] sm:$0xff]  ;;  %v23464_v13 = vand.u32 4294901760, %v17298_v44 }
 0x2a6   :  { %11506 = vmatpush1.bf16.msra.mxu0 %v23450_v29  ;;  %v17311_v14 = vsub.f32 %v17265_v19, %v23451_v0  ;;  %v3599_v58 = vand.u32 4294901760, %v3598_v7  ;;  %v23456_v29 = vand.u32 4294901760, %v23448_v35  ;;  %v23457_v47 = vld [vmem:[#allocation15_spill] sm:$0xff]  ;;  %v228_v19 = vmul.f32 %v17128_v21, %v26_v56  ;;  %v23458_v48 = vld [vmem:[#allocation284_spill] sm:$0xff] }
 0x2a7   :  { %23447 = vst [vmem:[#allocation305_spill] sm:$0xff] %v17300_v31  ;;  %v3610_v3 = vsub.f32 %v23443_v9, %v23453_v16  ;;  %11508 = vmatprep.subr.bf16.mxu0 %v23455_v30  ;;  %v25_v7 = vld [vmem:[%s20346_s2 + $0x50] sm:$0xff]  ;;  %2787 = vmatprep.mubr.f32.mxu1 %v23458_v48  ;;  %v23459_v16 = vld [vmem:[#allocation133_spill] sm:$0xff]  ;;  %v17334_v9 = vsub.f32 %v17285_v23, %v23460_v37  ;;  %v23466_v30 = vand.u32 4294901760, %v23457_v47 }
 0x2a8   :  { %23452 = vst [vmem:[#allocation183_spill] sm:$0xff] %v17311_v14  ;;  %v8506_v31 = vsub.f32 %v23448_v35, %v23456_v29  ;;  %10742 = vmatpush1.bf16.msra.mxu1 %v23459_v16  ;;  %v232_v0 = vmul.f32 %v17202_v49, %v30_v53  ;;  %v23462_v35 = vld [vmem:[#allocation280_spill] sm:$0xff]  ;;  %v23463_v56 = vld [vmem:[#allocation139_spill] sm:$0xff]  ;;  %v17342_v48 = vsub.f32 %v17298_v44, %v23464_v13  ;;  %v17347_v34 = vand.u32 4294901760, %v228_v19  ;;  %v23468_v53 = vld [vmem:[#allocation285_spill] sm:$0xff] }
 0x2a9   :  { %23461 = vst [vmem:[#allocation184_spill] sm:$0xff] %v17334_v9  ;;  %v3611_v29 = vand.u32 4294901760, %v3610_v3  ;;  %7705 = vmatmul.mubr.f32.gmra.mrb[22].mxu0 %v23462_v35  ;;  %10744 = vmatprep.subr.bf16.mxu1 %v23463_v56  ;;  %v8518_v14 = vsub.f32 %v23457_v47, %v23466_v30  ;;  %v29_v37 = vld [vmem:[%s20346_s2 + $0x70] sm:$0xff]  ;;  %v23469_v3 = vld [vmem:[#allocation136_spill] sm:$0xff]  ;;  %v23471_v44 = vld [vmem:[#allocation286_spill] sm:$0xff] }
 0x2aa   :  { %23465 = vst [vmem:[#allocation186_spill] sm:$0xff] %v17342_v48  ;;  %v8507_v16 = vand.u32 4294901760, %v8506_v31  ;;  %23467 = vst [vmem:[#allocation187_spill] sm:$0xff] %v17347_v34  ;;  %7711 = vmatprep.mubr.f32.mxu0 %v23468_v53  ;;  %11510 = vmatpush1.bf16.msra.mxu0 %v23469_v3  ;;  %v622_v13 = vsel %vm617_vm0, %v232_v0, 0  ;;  %v227_v31 = vmul.f32 %v17225_v27, %v25_v7  ;;  %v23472_v30 = vld [vmem:[#allocation143_spill] sm:$0xff]  ;;  %v23475_v3 = vld [vmem:[#allocation292_spill] sm:$0xff] }
 0x2ab   :  { %v17355_v23 = vpack.c.bf16 %v3611_v29, %v3599_v58  ;;  %2789 = vmatmul.mubr.f32.gmra.mrb[24].mxu1 %v23471_v44  ;;  %11512 = vmatprep.subr.bf16.mxu0 %v23472_v30  ;;  %v8519_v35 = vand.u32 4294901760, %v8518_v14  ;;  %v17363_v20 = vsub.f32 %v228_v19, %v17347_v34  ;;  %v17365_v53 = vand.u32 4294901760, %v622_v13  ;;  %v23476_v58 = vld [vmem:[#allocation145_spill] sm:$0xff]  ;;  %v23478_v7 = vld [vmem:[#allocation16_spill] sm:$0xff]  ;;  %v23481_v14 = vld [vmem:[#allocation151_spill] sm:$0xff] }
 0x2ac   :  { %2795 = vmatprep.mubr.f32.mxu1 %v23475_v3  ;;  %10746 = vmatpush1.bf16.msra.mxu1 %v23476_v58  ;;  %v17369_v29 = vand.u32 4294901760, %v227_v31  ;;  %v231_v0 = vmul.f32 %v17245_v50, %v29_v37  ;;  %v23480_v9 = vld [vmem:[#allocation289_spill] sm:$0xff]  ;;  %v23485_v3 = vld [vmem:[#allocation294_spill] sm:$0xff]  ;;  %v23486_v37 = vld [vmem:[#allocation148_spill] sm:$0xff] }
 0x2ad   :  { %23470 = vst [vmem:[#allocation310_spill] sm:$0xff] %v17355_v23  ;;  %23473 = vst [vmem:[#allocation307_spill] sm:$0xff] %v17363_v20  ;;  %v23479_v23 = vld [vmem:[#allocation192_spill] sm:$0xff]  ;;  %7713 = vmatmul.mubr.f32.gmra.mrb[24].mxu0 %v23480_v9  ;;  %10748 = vmatprep.subr.bf16.mxu1 %v23481_v14  ;;  %v17376_v19 = vpack.c.bf16 %v8519_v35, %v8507_v16  ;;  %v17380_v34 = vsub.f32 %v622_v13, %v17365_v53  ;;  %v23484_v58 = vld [vmem:[#allocation193_spill] sm:$0xff]  ;;  %v23489_v14 = vand.u32 4294901760, %v23478_v7 }
 0x2ae   :  { %23474 = vst [vmem:[#allocation5_spill] sm:$0xff] %v17365_v53  ;;  %23477 = vst [vmem:[#allocation322_spill] sm:$0xff] %v17369_v29  ;;  %7719 = vmatprep.mubr.f32.mxu0 %v23485_v3  ;;  %11514 = vmatpush1.bf16.msra.mxu0 %v23486_v37  ;;  %v17386_v56 = vsub.f32 %v227_v31, %v17369_v29  ;;  %v17388_v30 = vand.u32 4294901760, %v231_v0  ;;  %v23490_v16 = vand.u32 4294901760, %v23479_v23  ;;  %v23491_v47 = vld [vmem:[#allocation295_spill] sm:$0xff]  ;;  %v23493_v53 = vand.u32 4294901760, %v17363_v20 }
 0x2af   :  { %23482 = vst [vmem:[#allocation9_spill] sm:$0xff] %v17376_v19  ;;  %23483 = vst [vmem:[#allocation328_spill] sm:$0xff] %v17380_v34  ;;  %v3616_v35 = vsub.f32 %v23478_v7, %v23489_v14  ;;  %2797 = vmatmul.mubr.f32.gmra.mrb[26].mxu1 %v23491_v47  ;;  %v23492_v48 = vld [vmem:[#allocation155_spill] sm:$0xff]  ;;  %v23495_v29 = vand.u32 4294901760, %v23484_v58  ;;  %v23496_v14 = vld [vmem:[#allocation194_spill] sm:$0xff] }
 0x2b0   :  { %23487 = vst [vmem:[#allocation330_spill] sm:$0xff] %v17386_v56  ;;  %23488 = vst [vmem:[#allocation333_spill] sm:$0xff] %v17388_v30  ;;  %v3628_v13 = vsub.f32 %v23479_v23, %v23490_v16  ;;  %11516 = vmatprep.subr.bf16.mxu0 %v23492_v48  ;;  %v17401_v37 = vsub.f32 %v17363_v20, %v23493_v53  ;;  %v34_v16 = vld [vmem:[%s20346_s2 + $0x98] sm:$0xff]  ;;  %v23498_v48 = vld [vmem:[#allocation157_spill] sm:$0xff]  ;;  %v17415_v53 = vsub.f32 %v231_v0, %v17388_v30 }
 0x2b1   :  { %v3622_v19 = vsub.f32 %v23484_v58, %v23495_v29  ;;  %v23497_v23 = vld [vmem:[#allocation300_spill] sm:$0xff]  ;;  %10750 = vmatpush1.bf16.msra.mxu1 %v23498_v48  ;;  %v3617_v31 = vand.u32 4294901760, %v3616_v35  ;;  %v23500_v7 = vld [vmem:[#allocation298_spill] sm:$0xff]  ;;  %v23501_v58 = vld [vmem:[#allocation163_spill] sm:$0xff]  ;;  %v23504_v0 = vand.u32 4294901760, %v23496_v14 }
 0x2b2   :  { %23494 = vst [vmem:[#allocation331_spill] sm:$0xff] %v17401_v37  ;;  %2803 = vmatprep.mubr.f32.mxu1 %v23497_v23  ;;  %23499 = vst [vmem:[#allocation336_spill] sm:$0xff] %v17415_v53  ;;  %v3629_v20 = vand.u32 4294901760, %v3628_v13  ;;  %v38_v29 = vld [vmem:[%s20346_s2 + $0xb8] sm:$0xff]  ;;  %7721 = vmatmul.mubr.f32.gmra.mrb[26].mxu0 %v23500_v7  ;;  %v23502_v23 = vand.u32 4294901760, %v17380_v34  ;;  %v23505_v13 = vld [vmem:[#allocation302_spill] sm:$0xff] }
 0x2b3   :  { %10752 = vmatprep.subr.bf16.mxu1 %v23501_v58  ;;  %v3623_v47 = vand.u32 4294901760, %v3622_v19  ;;  %v3634_v35 = vsub.f32 %v23496_v14, %v23504_v0  ;;  %7727 = vmatprep.mubr.f32.mxu0 %v23505_v13  ;;  %v23506_v30 = vld [vmem:[#allocation160_spill] sm:$0xff]  ;;  %v23507_v7 = vand.u32 4294901760, %v17386_v56  ;;  %v33_v19 = vld [vmem:[%s20346_s2 + $0x90] sm:$0xff] }
 0x2b4   :  { %v17426_v48 = vsub.f32 %v17380_v34, %v23502_v23  ;;  %11518 = vmatpush1.bf16.msra.mxu0 %v23506_v30  ;;  %v17439_v37 = vpack.c.bf16 %v3629_v20, %v3617_v31  ;;  %v236_v23 = vmul.f32 %v17128_v21, %v34_v16  ;;  %v23510_v0 = vld [vmem:[#allocation304_spill] sm:$0xff]  ;;  %v23511_v34 = vld [vmem:[#allocation167_spill] sm:$0xff]  ;;  %v23514_v20 = vld [vmem:[#allocation169_spill] sm:$0xff]  ;;  %v23515_v16 = vand.u32 4294901760, %v17415_v53 }
 0x2b5   :  { %v17436_v58 = vsub.f32 %v17386_v56, %v23507_v7  ;;  %2805 = vmatmul.mubr.f32.gmra.mrb[28].mxu1 %v23510_v0  ;;  %11520 = vmatprep.subr.bf16.mxu0 %v23511_v34  ;;  %v3635_v14 = vand.u32 4294901760, %v3634_v35  ;;  %v240_v7 = vmul.f32 %v17202_v49, %v38_v29  ;;  %v23512_v56 = vld [vmem:[#allocation197_spill] sm:$0xff]  ;;  %v23513_v3 = vld [vmem:[#allocation308_spill] sm:$0xff]  ;;  %v23518_v34 = vld [vmem:[#allocation195_spill] sm:$0xff] }
 0x2b6   :  { %23503 = vst [vmem:[#allocation337_spill] sm:$0xff] %v17426_v48  ;;  %23509 = vst [vmem:[#allocation225_spill] sm:$0xff] %v17439_v37  ;;  %2811 = vmatprep.mubr.f32.mxu1 %v23513_v3  ;;  %10754 = vmatpush1.bf16.msra.mxu1 %v23514_v20  ;;  %v17456_v37 = vsub.f32 %v17415_v53, %v23515_v16  ;;  %v17458_v0 = vand.u32 4294901760, %v236_v23  ;;  %v37_v29 = vld [vmem:[%s20346_s2 + $0xb0] sm:$0xff]  ;;  %v23519_v35 = vld [vmem:[#allocation306_spill] sm:$0xff]  ;;  %v235_v53 = vmul.f32 %v17225_v27, %v33_v19 }
 0x2b7   :  { %23508 = vst [vmem:[#allocation341_spill] sm:$0xff] %v17436_v58  ;;  %7729 = vmatmul.mubr.f32.gmra.mrb[28].mxu0 %v23519_v35  ;;  %v23520_v13 = vld [vmem:[#allocation175_spill] sm:$0xff]  ;;  %v17466_v20 = vpack.c.bf16 %v3635_v14, %v3623_v47  ;;  %v625_v31 = vsel %vm617_vm0, %v240_v7, 0  ;;  %v23522_v58 = vand.u32 4294901760, %v23512_v56  ;;  %v23523_v48 = vld [vmem:[#allocation309_spill] sm:$0xff]  ;;  %v23524_v30 = vld [vmem:[#allocation172_spill] sm:$0xff] }
 0x2b8   :  { %23516 = vst [vmem:[#allocation339_spill] sm:$0xff] %v17456_v37  ;;  %23517 = vst [vmem:[#allocation343_spill] sm:$0xff] %v17458_v0  ;;  %10756 = vmatprep.subr.bf16.mxu1 %v23520_v13  ;;  %7735 = vmatprep.mubr.f32.mxu0 %v23523_v48  ;;  %v17477_v35 = vsub.f32 %v236_v23, %v17458_v0  ;;  %v17479_v13 = vand.u32 4294901760, %v625_v31  ;;  %v23527_v47 = vand.u32 4294901760, %v23518_v34  ;;  %v23528_v7 = vld [vmem:[#allocation311_spill] sm:$0xff]  ;;  %v23532_v37 = vld [vmem:[#allocation316_spill] sm:$0xff] }
 0x2b9   :  { %23521 = vst [vmem:[#allocation345_spill] sm:$0xff] %v17466_v20  ;;  %v8524_v16 = vsub.f32 %v23512_v56, %v23522_v58  ;;  %11522 = vmatpush1.bf16.msra.mxu0 %v23524_v30  ;;  %2813 = vmatmul.mubr.f32.gmra.mrb[30].mxu1 %v23528_v7  ;;  %v23529_v58 = vld [vmem:[#allocation180_spill] sm:$0xff]  ;;  %v17486_v56 = vand.u32 4294901760, %v235_v53  ;;  %v239_v30 = vmul.f32 %v17245_v50, %v37_v29  ;;  %v23531_v20 = vld [vmem:[#allocation201_spill] sm:$0xff]  ;;  %v23533_v23 = vld [vmem:[#allocation182_spill] sm:$0xff] }
 0x2ba   :  { %23525 = vst [vmem:[#allocation188_spill] sm:$0xff] %v17477_v35  ;;  %23526 = vst [vmem:[#allocation347_spill] sm:$0xff] %v17479_v13  ;;  %v8536_v14 = vsub.f32 %v23518_v34, %v23527_v47  ;;  %11524 = vmatprep.subr.bf16.mxu0 %v23529_v58  ;;  %v21448_v3 = vand.u32 4294901760, %v23531_v20  ;;  %2819 = vmatprep.mubr.f32.mxu1 %v23532_v37  ;;  %v17494_v48 = vsub.f32 %v625_v31, %v17479_v13  ;;  %v23535_v34 = vld [vmem:[#allocation202_spill] sm:$0xff]  ;;  %v23539_v0 = vld [vmem:[#allocation205_spill] sm:$0xff] }
 0x2bb   :  { %v8525_v19 = vand.u32 4294901760, %v8524_v16  ;;  %23530 = vst [vmem:[#allocation189_spill] sm:$0xff] %v17486_v56  ;;  %10758 = vmatpush1.bf16.msra.mxu1 %v23533_v23  ;;  %v23536_v58 = vld [vmem:[#allocation314_spill] sm:$0xff]  ;;  %v17500_v29 = vsub.f32 %v235_v53, %v17486_v56  ;;  %v17502_v16 = vand.u32 4294901760, %v239_v30  ;;  %v23540_v31 = vld [vmem:[#allocation317_spill] sm:$0xff]  ;;  %v23542_v7 = vand.u32 4294901760, %v17477_v35 }
 0x2bc   :  { %23534 = vst [vmem:[#allocation190_spill] sm:$0xff] %v17494_v48  ;;  %v8537_v47 = vand.u32 4294901760, %v8536_v14  ;;  %7737 = vmatmul.mubr.f32.gmra.mrb[30].mxu0 %v23536_v58  ;;  %10760 = vmatprep.subr.bf16.mxu1 %v16302_v62  ;;  %v8530_v23 = vsub.f32 %v23531_v20, %v21448_v3  ;;  %v23541_v14 = vld [vmem:[#allocation185_spill] sm:$0xff]  ;;  %v23545_v56 = vand.u32 4294901760, %v23535_v34  ;;  %v42_v3 = vld [vmem:[%s20346_s2 + $0xd8] sm:$0xff]  ;;  %v23546_v37 = vld [vmem:[#allocation318_spill] sm:$0xff] }
 0x2bd   :  { %23537 = vst [vmem:[#allocation11_spill] sm:$0xff] %v17500_v29  ;;  %23538 = vst [vmem:[#allocation196_spill] sm:$0xff] %v17502_v16  ;;  %7743 = vmatprep.mubr.f32.mxu0 %v23540_v31  ;;  %11526 = vmatpush1.bf16.msra.mxu0 %v23541_v14  ;;  %v17513_v13 = vsub.f32 %v17477_v35, %v23542_v7  ;;  %v17528_v7 = vsub.f32 %v239_v30, %v17502_v16  ;;  %v23549_v35 = vld [vmem:[#allocation324_spill] sm:$0xff]  ;;  %v23554_v30 = vand.u32 4294901760, %v17500_v29  ;;  %v23556_v14 = vld [vmem:[#allocation325_spill] sm:$0xff] }
 0x2be   :  { %v17516_v62 = vpack.c.bf16 %v8537_v47, %v8525_v19  ;;  %v8542_v58 = vsub.f32 %v23535_v34, %v23545_v56  ;;  %2821 = vmatmul.mubr.f32.gmra.mrb[32].mxu1 %v23546_v37  ;;  %11528 = vmatprep.subr.bf16.mxu0 %v16318_v55  ;;  %v8531_v53 = vand.u32 4294901760, %v8530_v23  ;;  %v23548_v19 = vand.u32 4294901760, %v23539_v0  ;;  %v23553_v37 = vld [vmem:[#allocation320_spill] sm:$0xff] }
 0x2bf   :  { %23543 = vst [vmem:[#allocation191_spill] sm:$0xff] %v17513_v13  ;;  %23547 = vst [vmem:[#allocation14_spill] sm:$0xff] %v17528_v7  ;;  %2827 = vmatprep.mubr.f32.mxu1 %v23549_v35  ;;  %v23550_v34 = vand.u32 4294901760, %v17494_v48  ;;  %v17545_v23 = vsub.f32 %v17500_v29, %v23554_v30  ;;  %v244_v56 = vmul.f32 %v17128_v21, %v42_v3  ;;  %v45_v29 = vld [vmem:[%s20346_s2 + $0xf0] sm:$0xff]  ;;  %v23560_v13 = vld [vmem:[#allocation326_spill] sm:$0xff] }
 0x2c0   :  { %23544 = vst [vmem:[#allocation17_spill] sm:$0xff] %v17516_v62  ;;  %v3640_v47 = vsub.f32 %v23539_v0, %v23548_v19  ;;  %v8543_v55 = vand.u32 4294901760, %v8542_v58  ;;  %v23552_v62 = vld [vmem:[#allocation203_spill] sm:$0xff]  ;;  %7745 = vmatmul.mubr.f32.gmra.mrb[32].mxu0 %v23553_v37  ;;  %v23559_v19 = vld [vmem:[#allocation209_spill] sm:$0xff]  ;;  %v23579_v35 = vld [vmem:[#allocation338_spill] sm:$0xff] }
 0x2c1   :  { %v17538_v20 = vsub.f32 %v17494_v48, %v23550_v34  ;;  %23555 = vst [vmem:[#allocation199_spill] sm:$0xff] %v17545_v23  ;;  %v46_v34 = vld [vmem:[%s20346_s2 + $0xf8] sm:$0xff]  ;;  %v41_v58 = vld [vmem:[%s20346_s2 + $0xd0] sm:$0xff]  ;;  %7751 = vmatprep.mubr.f32.mxu0 %v23556_v14  ;;  %v23558_v30 = vand.u32 4294901760, %v23552_v62  ;;  %v23561_v14 = vand.u32 4294901760, %v17528_v7  ;;  %v23567_v23 = vld [vmem:[#allocation329_spill] sm:$0xff] }
 0x2c2   :  { %v3641_v16 = vand.u32 4294901760, %v3640_v47  ;;  %v17557_v0 = vpack.c.bf16 %v8543_v55, %v8531_v53  ;;  %2829 = vmatmul.mubr.f32.gmra.mrb[34].mxu1 %v23560_v13  ;;  %v17573_v55 = vand.u32 4294901760, %v244_v56  ;;  %v23564_v53 = vld [vmem:[#allocation210_spill] sm:$0xff]  ;;  %v248_v13 = vmul.f32 %v17202_v49, %v46_v34 }
 0x2c3   :  { %23551 = vst [vmem:[#allocation198_spill] sm:$0xff] %v17538_v20  ;;  %v3652_v47 = vsub.f32 %v23552_v62, %v23558_v30  ;;  %v17571_v48 = vsub.f32 %v17528_v7, %v23561_v14  ;;  %v23565_v30 = vld [vmem:[#allocation332_spill] sm:$0xff]  ;;  %v23566_v62 = vand.u32 4294901760, %v23559_v19  ;;  %v243_v37 = vmul.f32 %v17225_v27, %v41_v58  ;;  %v23569_v34 = vld [vmem:[#allocation334_spill] sm:$0xff] }
 0x2c4   :  { %23557 = vst [vmem:[#allocation18_spill] sm:$0xff] %v17557_v0  ;;  %23563 = vst [vmem:[#allocation204_spill] sm:$0xff] %v17573_v55  ;;  %v21472_v0 = vand.u32 4294901760, %v23564_v53  ;;  %2835 = vmatprep.mubr.f32.mxu1 %v23565_v30  ;;  %7753 = vmatmul.mubr.f32.gmra.mrb[34].mxu0 %v23567_v23  ;;  %v17585_v7 = vsub.f32 %v244_v56, %v17573_v55  ;;  %v628_v14 = vsel %vm617_vm0, %v248_v13, 0  ;;  %v23572_v56 = vld [vmem:[#allocation335_spill] sm:$0xff]  ;;  %v23575_v23 = vld [vmem:[#allocation340_spill] sm:$0xff] }
 0x2c5   :  { %23562 = vst [vmem:[#allocation19_spill] sm:$0xff] %v17571_v48  ;;  %v3653_v3 = vand.u32 4294901760, %v3652_v47  ;;  %v3646_v20 = vsub.f32 %v23559_v19, %v23566_v62  ;;  %v247_v47 = vmul.f32 %v17245_v50, %v45_v29  ;;  %v50_v62 = vld [vmem:[%s20346_s2 + $0x118] sm:$0xff]  ;;  %7759 = vmatprep.mubr.f32.mxu0 %v23569_v34  ;;  %v17598_v48 = vand.u32 4294901760, %v243_v37 }
 0x2c6   :  { %23568 = vst [vmem:[#allocation200_spill] sm:$0xff] %v17585_v7  ;;  %v3658_v30 = vsub.f32 %v23564_v53, %v21472_v0  ;;  %2837 = vmatmul.mubr.f32.gmra.mrb[36].mxu1 %v23572_v56  ;;  %v21476_v55 = vand.u32 4294901760, %v17585_v7  ;;  %v17602_v53 = vand.u32 4294901760, %v628_v14 }
 0x2c7   :  { %v17595_v58 = vpack.c.bf16 %v3653_v3, %v3641_v16  ;;  %v3647_v19 = vand.u32 4294901760, %v3646_v20  ;;  %23571 = vst [vmem:[#allocation20_spill] sm:$0xff] %v17598_v48  ;;  %v17604_v29 = vand.u32 4294901760, %v247_v47  ;;  %2843 = vmatprep.mubr.f32.mxu1 %v23575_v23  ;;  %v17608_v34 = vsub.f32 %v243_v37, %v17598_v48  ;;  %v23577_v16 = vld [vmem:[#allocation213_spill] sm:$0xff]  ;;  %v23578_v3 = vld [vmem:[#allocation211_spill] sm:$0xff]  ;;  %v23583_v20 = vld [vmem:[#allocation342_spill] sm:$0xff] }
 0x2c8   :  { %v3659_v0 = vand.u32 4294901760, %v3658_v30  ;;  %23573 = vst [vmem:[#allocation206_spill] sm:$0xff] %v17602_v53  ;;  %7761 = vmatmul.mubr.f32.gmra.mrb[36].mxu0 %v23579_v35  ;;  %v17617_v30 = vsub.f32 %v17585_v7, %v21476_v55  ;;  %v17622_v23 = vsub.f32 %v628_v14, %v17602_v53  ;;  %v23585_v35 = vand.u32 4294901760, %v23578_v3 }
 0x2c9   :  { %23570 = vst [vmem:[#allocation21_spill] sm:$0xff] %v17595_v58  ;;  %23574 = vst [vmem:[#allocation207_spill] sm:$0xff] %v17604_v29  ;;  %v252_v58 = vmul.f32 %v17128_v21, %v50_v62  ;;  %v17625_v37 = vsub.f32 %v247_v47, %v17604_v29  ;;  %7767 = vmatprep.mubr.f32.mxu0 %v23583_v20  ;;  %v23584_v62 = vand.u32 4294901760, %v23577_v16  ;;  %v23588_v29 = vld [vmem:[#allocation215_spill] sm:$0xff]  ;;  %v23591_v47 = vld [vmem:[#allocation346_spill] sm:$0xff] }
 0x2ca   :  { %23576 = vst [vmem:[#allocation22_spill] sm:$0xff] %v17608_v34  ;;  %v17619_v56 = vpack.c.bf16 %v3659_v0, %v3647_v19  ;;  %23581 = vst [vmem:[#allocation25_spill] sm:$0xff] %v17622_v23  ;;  %v8560_v55 = vsub.f32 %v23578_v3, %v23585_v35  ;;  %v23587_v19 = vld [vmem:[#allocation344_spill] sm:$0xff]  ;;  %v23589_v35 = vand.u32 4294901760, %v17608_v34  ;;  %v23592_v13 = vand.u32 4294901760, %v17622_v23 }
 0x2cb   :  { %23582 = vst [vmem:[#allocation208_spill] sm:$0xff] %v17625_v37  ;;  %v8548_v48 = vsub.f32 %v23577_v16, %v23584_v62  ;;  %v17635_v0 = vand.u32 4294901760, %v252_v58  ;;  %2845 = vmatmul.mubr.f32.gmra.mrb[38].mxu1 %v23587_v19  ;;  %v54_v62 = vld [vmem:[%s20346_s2 + $0x138] sm:$0xff] }
 0x2cc   :  { %23580 = vst [vmem:[#allocation212_spill] sm:$0xff] %v17619_v56  ;;  %2980 = vmatprep.mubr.f32.mxu1 %v23238_v2  ;;  %v17649_v53 = vsub.f32 %v17608_v34, %v23589_v35  ;;  %v8561_v16 = vand.u32 4294901760, %v8560_v55  ;;  %7769 = vmatmul.mubr.f32.gmra.mrb[38].mxu0 %v23591_v47  ;;  %v17658_v7 = vsub.f32 %v17622_v23, %v23592_v13  ;;  %v23593_v56 = vand.u32 4294901760, %v17625_v37  ;;  %v23595_v55 = vld [vmem:[#allocation218_spill] sm:$0xff] }
 0x2cd   :  { %23586 = vst [vmem:[#allocation31_spill] sm:$0xff] %v17635_v0  ;;  %v8549_v3 = vand.u32 4294901760, %v8548_v48  ;;  %v17652_v14 = vsub.f32 %v252_v58, %v17635_v0  ;;  %v23594_v35 = vand.u32 4294901760, %v23588_v29  ;;  %7904 = vmatprep.mubr.f32.mxu0 %v23250_v63  ;;  %v256_v23 = vmul.f32 %v17202_v49, %v54_v62  ;;  %v23597_v62 = vld [vmem:[#allocation221_spill] sm:$0xff] }
 0x2ce   :  { %v17663_v2 = vsub.f32 %v17625_v37, %v23593_v56  ;;  %v49_v56 = vld [vmem:[%s20346_s2 + $0x110] sm:$0xff]  ;;  %v23596_v63 = vand.u32 4294901760, %v23595_v55  ;;  %v21499_v58 = vand.u32 4294901760, %v23597_v62 }
 0x2cf   :  { %23590 = vst [vmem:[#allocation214_spill] sm:$0xff] %v17652_v14  ;;  %v3664_v48 = vsub.f32 %v23588_v29, %v23594_v35  ;;  %v17671_v0 = vpack.c.bf16 %v8561_v16, %v8549_v3  ;;  %v21496_v13 = vand.u32 4294901760, %v17652_v14  ;;  %2982 = vmatmul.mubr.f32.vlgmr.msra.gmra.mrb[0].mxu1 %v23257_v8  ;;  %v631_v8 = vsel %vm617_vm0, %v256_v23, 0  ;;  %v23598_v35 = vld [vmem:[#allocation219_spill] sm:$0xff] }
 0x2d0   :  { %v3676_v16 = vsub.f32 %v23595_v55, %v23596_v63  ;;  %10762 = vmatpush1.bf16.msra.mxu1 %v16392_v26  ;;  %2988 = vmatprep.mubr.f32.mxu1 %v23265_v61  ;;  %v21502_v34 = vand.u32 4294901760, %v23598_v35  ;;  %v17696_v63 = vand.u32 4294901760, %v631_v8  ;;  %v251_v61 = vmul.f32 %v17225_v27, %v49_v56  ;;  %v23600_v26 = vld [vmem:[#allocation223_spill] sm:$0xff]  ;;  %v62_v55 = vld [vmem:[%s20346_s2 + $0x178] sm:$0xff] }
 0x2d1   :  { %v3665_v37 = vand.u32 4294901760, %v3664_v48  ;;  %v17689_v3 = vsub.f32 %v17652_v14, %v21496_v13  ;;  %7906 = vmatmul.mubr.f32.vlgmr.msra.gmra.mrb[0].mxu0 %v23269_v12  ;;  %10764 = vmatprep.subr.bf16.mxu1 %v16442_v17  ;;  %v53_v13 = vld [vmem:[%s20346_s2 + $0x130] sm:$0xff]  ;;  %v8554_v12 = vsub.f32 %v23597_v62, %v21499_v58  ;;  %v58_v14 = vld [vmem:[%s20346_s2 + $0x158] sm:$0xff] }
 0x2d2   :  { %v3677_v48 = vand.u32 4294901760, %v3676_v16  ;;  %23599 = vst [vmem:[#allocation28_spill] sm:$0xff] %v17696_v63  ;;  %11530 = vmatpush1.bf16.msra.mxu0 %v16398_v36  ;;  %7912 = vmatprep.mubr.f32.mxu0 %v23274_v52  ;;  %v8566_v56 = vsub.f32 %v23598_v35, %v21502_v34  ;;  %v23601_v16 = vld [vmem:[#allocation231_spill] sm:$0xff]  ;;  %v17721_v23 = vsub.f32 %v631_v8, %v17696_v63  ;;  %v17723_v58 = vand.u32 4294901760, %v251_v61  ;;  %v23745_v35 = vld [vmem:[#allocation130_spill] sm:$0xff]  ;;  %v23755_v62 = vld [vmem:[#allocation292_spill] sm:$0xff] }
 0x2d3   :  { %2990 = vmatmul.mubr.f32.gmra.mrb[2].mxu1 %v23278_v4  ;;  %11532 = vmatprep.subr.bf16.mxu0 %v16492_v51  ;;  %v23604_v36 = vand.u32 4294901760, %v23600_v26  ;;  %v8555_v4 = vand.u32 4294901760, %v8554_v12  ;;  %v255_v51 = vmul.f32 %v17245_v50, %v53_v13 }
 0x2d4   :  { %v17718_v52 = vpack.c.bf16 %v3677_v48, %v3665_v37  ;;  %23602 = vst [vmem:[#allocation216_spill] sm:$0xff] %v17721_v23  ;;  %23603 = vst [vmem:[#allocation34_spill] sm:$0xff] %v17723_v58  ;;  %10766 = vmatpush1.bf16.msra.mxu1 %v16448_v45  ;;  %2996 = vmatprep.mubr.f32.mxu1 %v23284_v39  ;;  %v8567_v37 = vand.u32 4294901760, %v8566_v56  ;;  %v23605_v48 = vand.u32 4294901760, %v23601_v16  ;;  %v21509_v45 = vand.u32 4294901760, %v17721_v23 }
 0x2d5   :  { %v3670_v34 = vsub.f32 %v23600_v26, %v23604_v36  ;;  %v57_v36 = vld [vmem:[%s20346_s2 + $0x150] sm:$0xff]  ;;  %7914 = vmatmul.mubr.f32.gmra.mrb[2].mxu0 %v23287_v24  ;;  %10768 = vmatprep.subr.bf16.mxu1 %v16541_v43  ;;  %v17744_v39 = vsub.f32 %v251_v61, %v17723_v58  ;;  %v260_v56 = vmul.f32 %v17128_v21, %v58_v14  ;;  %v17751_v17 = vand.u32 4294901760, %v255_v51 }
 0x2d6   :  { %v3682_v8 = vsub.f32 %v23601_v16, %v23605_v48  ;;  %7920 = vmatprep.mubr.f32.mxu0 %v23292_v25  ;;  %11534 = vmatpush1.bf16.msra.mxu0 %v16507_v1  ;;  %v17749_v13 = vpack.c.bf16 %v8567_v37, %v8555_v4  ;;  %v264_v24 = vmul.f32 %v17202_v49, %v62_v55  ;;  %v23610_v37 = vld [vmem:[#allocation227_spill] sm:$0xff]  ;;  %v23716_v16 = vld [vmem:[#allocation138_spill] sm:$0xff] }
 0x2d7   :  { %23606 = vst [vmem:[#allocation220_spill] sm:$0xff] %v17744_v39  ;;  %v3671_v12 = vand.u32 4294901760, %v3670_v34  ;;  %23607 = vst [vmem:[#allocation38_spill] sm:$0xff] %v17751_v17  ;;  %2998 = vmatmul.mubr.f32.gmra.mrb[4].mxu1 %v23296_v57  ;;  %11536 = vmatprep.subr.bf16.mxu0 %v16595_v32  ;;  %v17759_v34 = vsub.f32 %v17721_v23, %v21509_v45  ;;  %v21510_v25 = vand.u32 4294901760, %v17744_v39  ;;  %v17762_v14 = vand.u32 4294901760, %v260_v56  ;;  %v61_v45 = vld [vmem:[%s20346_s2 + $0x170] sm:$0xff] }
 0x2d8   :  { %v3683_v48 = vand.u32 4294901760, %v3682_v8  ;;  %v259_v61 = vmul.f32 %v17225_v27, %v57_v36  ;;  %3004 = vmatprep.mubr.f32.mxu1 %v23301_v15  ;;  %10770 = vmatpush1.bf16.msra.mxu1 %v16547_v41  ;;  %v17770_v57 = vsub.f32 %v255_v51, %v17751_v17  ;;  %v634_v4 = vsel %vm617_vm0, %v264_v24, 0  ;;  %v23614_v15 = vld [vmem:[#allocation232_spill] sm:$0xff]  ;;  %v23639_v32 = vld [vmem:[#allocation250_spill] sm:$0xff]  ;;  %v23654_v58 = vld [vmem:[#allocation239_spill] sm:$0xff] }
 0x2d9   :  { %23608 = vst [vmem:[#allocation217_spill] sm:$0xff] %v17762_v14  ;;  %v21513_v8 = vand.u32 4294901760, %v23610_v37  ;;  %7922 = vmatmul.mubr.f32.gmra.mrb[4].mxu0 %v23305_v5  ;;  %10772 = vmatprep.subr.bf16.mxu1 %v16629_v18  ;;  %v17783_v36 = vsub.f32 %v17744_v39, %v21510_v25  ;;  %v17786_v51 = vsub.f32 %v260_v56, %v17762_v14  ;;  %v23637_v18 = vld [vmem:[#allocation72_spill] sm:$0xff] }
 0x2da   :  { %v17767_v55 = vpack.c.bf16 %v3683_v48, %v3671_v12  ;;  %23609 = vst [vmem:[#allocation43_spill] sm:$0xff] %v17770_v57  ;;  %v17788_v12 = vand.u32 4294901760, %v634_v4  ;;  %7928 = vmatprep.mubr.f32.mxu0 %v23308_v22  ;;  %11538 = vmatpush1.bf16.msra.mxu0 %v16635_v33  ;;  %v17793_v48 = vand.u32 4294901760, %v259_v61  ;;  %v263_v5 = vmul.f32 %v17245_v50, %v61_v45 }
 0x2db   :  { %23611 = vst [vmem:[#allocation222_spill] sm:$0xff] %v17786_v51  ;;  %v3688_v24 = vsub.f32 %v23610_v37, %v21513_v8  ;;  %3006 = vmatmul.mubr.f32.gmra.mrb[6].mxu1 %v23313_v46  ;;  %11540 = vmatprep.subr.bf16.mxu0 %v16684_v11  ;;  %v23616_v8 = vand.u32 4294901760, %v17770_v57  ;;  %v23618_v22 = vand.u32 4294901760, %v23614_v15  ;;  %v23619_v45 = vand.u32 4294901760, %v17786_v51  ;;  %v23623_v11 = vld [vmem:[#allocation224_spill] sm:$0xff]  ;;  %v23715_v37 = vld [vmem:[#allocation269_spill] sm:$0xff] }
 0x2dc   :  { %23612 = vst [vmem:[#allocation40_spill] sm:$0xff] %v17788_v12  ;;  %23613 = vst [vmem:[#allocation47_spill] sm:$0xff] %v17793_v48  ;;  %v17804_v39 = vsub.f32 %v634_v4, %v17788_v12  ;;  %3012 = vmatprep.mubr.f32.mxu1 %v23318_v59  ;;  %10774 = vmatpush1.bf16.msra.mxu1 %v16653_v38  ;;  %v17815_v46 = vsub.f32 %v259_v61, %v17793_v48  ;;  %v23629_v38 = vld [vmem:[#allocation60_spill] sm:$0xff]  ;;  %v23648_v48 = vld [vmem:[#allocation234_spill] sm:$0xff] }
 0x2dd   :  { %v17812_v25 = vsub.f32 %v17770_v57, %v23616_v8  ;;  %v3689_v56 = vand.u32 4294901760, %v3688_v24  ;;  %v3700_v4 = vsub.f32 %v23614_v15, %v23618_v22  ;;  %7930 = vmatmul.mubr.f32.gmra.mrb[6].mxu0 %v23323_v6  ;;  %10776 = vmatprep.subr.bf16.mxu1 %v16678_v42  ;;  %v17825_v59 = vsub.f32 %v17786_v51, %v23619_v45  ;;  %v23621_v24 = vld [vmem:[#allocation62_spill] sm:$0xff]  ;;  %v23628_v6 = vld [vmem:[#allocation228_spill] sm:$0xff]  ;;  %v23649_v12 = vld [vmem:[#allocation75_spill] sm:$0xff] }
 0x2de   :  { %23615 = vst [vmem:[#allocation49_spill] sm:$0xff] %v17804_v39  ;;  %23617 = vst [vmem:[#allocation55_spill] sm:$0xff] %v17815_v46  ;;  %v17828_v57 = vand.u32 4294901760, %v263_v5  ;;  %7936 = vmatprep.mubr.f32.mxu0 %v23328_v60  ;;  %11542 = vmatpush1.bf16.msra.mxu0 %v23621_v24  ;;  %v23622_v42 = vld [vmem:[#allocation242_spill] sm:$0xff]  ;;  %v23625_v51 = vand.u32 4294901760, %v17804_v39  ;;  %v23627_v22 = vand.u32 4294901760, %v16312_v10 }
 0x2df   :  { %v3701_v23 = vand.u32 4294901760, %v3700_v4  ;;  %3014 = vmatmul.mubr.f32.gmra.mrb[8].mxu1 %v23623_v11  ;;  %v23624_v45 = vld [vmem:[#allocation70_spill] sm:$0xff]  ;;  %v23630_v11 = vand.u32 4294901760, %v17815_v46  ;;  %v23636_v24 = vld [vmem:[#allocation229_spill] sm:$0xff] }
 0x2e0   :  { %23620 = vst [vmem:[#allocation52_spill] sm:$0xff] %v17828_v57  ;;  %11544 = vmatprep.subr.bf16.mxu0 %v23624_v45  ;;  %v17842_v61 = vsub.f32 %v17804_v39, %v23625_v51  ;;  %v17845_v60 = vsub.f32 %v263_v5, %v17828_v57  ;;  %v8572_v4 = vsub.f32 %v16312_v10, %v23627_v22  ;;  %v23631_v51 = vand.u32 4294901760, %v23622_v42  ;;  %v23632_v39 = vld [vmem:[#allocation243_spill] sm:$0xff]  ;;  %v66_v22 = vld [vmem:[%s20346_s2 + $0x198] sm:$0xff]  ;;  %v23706_v15 = vld [vmem:[#allocation106_spill] sm:$0xff] }
 0x2e1   :  { %3020 = vmatprep.mubr.f32.mxu1 %v23628_v6  ;;  %10778 = vmatpush1.bf16.msra.mxu1 %v23629_v38  ;;  %v17855_v8 = vsub.f32 %v17815_v46, %v23630_v11  ;;  %v17857_v45 = vpack.c.bf16 %v3701_v23, %v3689_v56  ;;  %v23633_v6 = vld [vmem:[#allocation226_spill] sm:$0xff]  ;;  %v23634_v38 = vld [vmem:[#allocation63_spill] sm:$0xff]  ;;  %v23635_v56 = vld [vmem:[#allocation249_spill] sm:$0xff]  ;;  %v268_v57 = vmul.f32 %v17128_v21, %v66_v22 }
 0x2e2   :  { %23626 = vst [vmem:[#allocation59_spill] sm:$0xff] %v17845_v60  ;;  %v8584_v5 = vsub.f32 %v23622_v42, %v23631_v51  ;;  %7938 = vmatmul.mubr.f32.gmra.mrb[8].mxu0 %v23633_v6  ;;  %10780 = vmatprep.subr.bf16.mxu1 %v23634_v38  ;;  %v8573_v23 = vand.u32 4294901760, %v8572_v4  ;;  %v70_v51 = vld [vmem:[%s20346_s2 + $0x1b8] sm:$0xff]  ;;  %v23638_v38 = vand.u32 4294901760, %v23632_v39  ;;  %v23640_v4 = vld [vmem:[#allocation230_spill] sm:$0xff]  ;;  %v23642_v1 = vand.u32 4294901760, %v17845_v60 }
 0x2e3   :  { %7944 = vmatprep.mubr.f32.mxu0 %v23636_v24  ;;  %11546 = vmatpush1.bf16.msra.mxu0 %v23637_v18  ;;  %v23641_v46 = vld [vmem:[#allocation78_spill] sm:$0xff]  ;;  %v23643_v24 = vand.u32 4294901760, %v23635_v56  ;;  %v23645_v11 = vld [vmem:[#allocation236_spill] sm:$0xff]  ;;  %v272_v22 = vmul.f32 %v17202_v49, %v70_v51 }
 0x2e4   :  { %v8585_v6 = vand.u32 4294901760, %v8584_v5  ;;  %v3694_v33 = vsub.f32 %v23632_v39, %v23638_v38  ;;  %3022 = vmatmul.mubr.f32.gmra.mrb[10].mxu1 %v23640_v4  ;;  %11548 = vmatprep.subr.bf16.mxu0 %v23641_v46  ;;  %v17886_v43 = vsub.f32 %v17845_v60, %v23642_v1  ;;  %v23644_v5 = vld [vmem:[#allocation253_spill] sm:$0xff]  ;;  %v65_v38 = vld [vmem:[%s20346_s2 + $0x190] sm:$0xff]  ;;  %v23741_v42 = vld [vmem:[#allocation284_spill] sm:$0xff] }
 0x2e5   :  { %v3706_v41 = vsub.f32 %v23635_v56, %v23643_v24  ;;  %v69_v4 = vld [vmem:[%s20346_s2 + $0x1b0] sm:$0xff]  ;;  %3028 = vmatprep.mubr.f32.mxu1 %v23645_v11  ;;  %v23646_v1 = vld [vmem:[#allocation69_spill] sm:$0xff]  ;;  %v23647_v24 = vand.u32 4294901760, %v23639_v32  ;;  %v23650_v11 = vand.u32 4294901760, %v23644_v5  ;;  %v637_v51 = vsel %vm617_vm0, %v272_v22, 0 }
 0x2e6   :  { %10782 = vmatpush1.bf16.msra.mxu1 %v23646_v1  ;;  %v17901_v60 = vpack.c.bf16 %v8585_v6, %v8573_v23  ;;  %v3695_v46 = vand.u32 4294901760, %v3694_v33  ;;  %7946 = vmatmul.mubr.f32.gmra.mrb[10].mxu0 %v23648_v48  ;;  %v17913_v23 = vand.u32 4294901760, %v268_v57  ;;  %v23652_v33 = vld [vmem:[#allocation237_spill] sm:$0xff]  ;;  %v23653_v6 = vld [vmem:[#allocation92_spill] sm:$0xff]  ;;  %v267_v48 = vmul.f32 %v17225_v27, %v65_v38  ;;  %v23663_v56 = vld [vmem:[#allocation319_spill] sm:$0xff] }
 0x2e7   :  { %v8578_v18 = vsub.f32 %v23639_v32, %v23647_v24  ;;  %10784 = vmatprep.subr.bf16.mxu1 %v23649_v12  ;;  %v3707_v14 = vand.u32 4294901760, %v3706_v41  ;;  %v8590_v1 = vsub.f32 %v23644_v5, %v23650_v11  ;;  %7952 = vmatprep.mubr.f32.mxu0 %v23652_v33  ;;  %v271_v12 = vmul.f32 %v17245_v50, %v69_v4  ;;  %v23655_v41 = vld [vmem:[#allocation96_spill] sm:$0xff]  ;;  %v23662_v4 = vld [vmem:[#allocation313_spill] sm:$0xff] }
 0x2e8   :  { %23651 = vst [vmem:[#allocation61_spill] sm:$0xff] %v17913_v23  ;;  %11550 = vmatpush1.bf16.msra.mxu0 %v23653_v6  ;;  %3030 = vmatmul.mubr.f32.gmra.mrb[12].mxu1 %v23654_v58  ;;  %v17925_v63 = vsub.f32 %v268_v57, %v17913_v23  ;;  %v17927_v33 = vand.u32 4294901760, %v637_v51  ;;  %v23658_v6 = vld [vmem:[#allocation244_spill] sm:$0xff]  ;;  %v17931_v22 = vand.u32 4294901760, %v267_v48  ;;  %v23668_v39 = vld [vmem:[#allocation245_spill] sm:$0xff] }
 0x2e9   :  { %v8579_v24 = vand.u32 4294901760, %v8578_v18  ;;  %11552 = vmatprep.subr.bf16.mxu0 %v23655_v41  ;;  %v17922_v17 = vpack.c.bf16 %v3707_v14, %v3695_v46  ;;  %v8591_v11 = vand.u32 4294901760, %v8590_v1  ;;  %3036 = vmatprep.mubr.f32.mxu1 %v23658_v6  ;;  %v23659_v18 = vld [vmem:[#allocation80_spill] sm:$0xff]  ;;  %v17933_v38 = vand.u32 4294901760, %v271_v12  ;;  %v23664_v14 = vld [vmem:[#allocation241_spill] sm:$0xff]  ;;  %v23665_v46 = vld [vmem:[#allocation87_spill] sm:$0xff] }
 0x2ea   :  { %23656 = vst [vmem:[#allocation179_spill] sm:$0xff] %v17925_v63  ;;  %23657 = vst [vmem:[#allocation67_spill] sm:$0xff] %v17927_v33  ;;  %10786 = vmatpush1.bf16.msra.mxu1 %v23659_v18  ;;  %7954 = vmatmul.mubr.f32.gmra.mrb[12].mxu0 %v23664_v14  ;;  %v17943_v6 = vsub.f32 %v637_v51, %v17927_v33  ;;  %v23667_v18 = vld [vmem:[#allocation315_spill] sm:$0xff]  ;;  %v23669_v5 = vld [vmem:[#allocation256_spill] sm:$0xff]  ;;  %v17949_v58 = vsub.f32 %v267_v48, %v17931_v22 }
 0x2eb   :  { %23660 = vst [vmem:[#allocation64_spill] sm:$0xff] %v17931_v22  ;;  %23661 = vst [vmem:[#allocation71_spill] sm:$0xff] %v17933_v38  ;;  %10788 = vmatprep.subr.bf16.mxu1 %v23665_v46  ;;  %v17939_v57 = vpack.c.bf16 %v8591_v11, %v8579_v24  ;;  %7960 = vmatprep.mubr.f32.mxu0 %v23668_v39  ;;  %v17952_v14 = vsub.f32 %v271_v12, %v17933_v38  ;;  %v23672_v24 = vand.u32 4294901760, %v23662_v4  ;;  %v23673_v41 = vld [vmem:[#allocation323_spill] sm:$0xff]  ;;  %v23674_v51 = vld [vmem:[#allocation110_spill] sm:$0xff] }
 0x2ec   :  { %23666 = vst [vmem:[#allocation73_spill] sm:$0xff] %v17943_v6  ;;  %11554 = vmatpush1.bf16.msra.mxu0 %v23669_v5  ;;  %23670 = vst [vmem:[#allocation79_spill] sm:$0xff] %v17949_v58  ;;  %3038 = vmatmul.mubr.f32.gmra.mrb[14].mxu1 %v23384_v28  ;;  %v23675_v39 = vand.u32 4294901760, %v17925_v63  ;;  %v23676_v12 = vand.u32 4294901760, %v23663_v56  ;;  %v23677_v46 = vand.u32 4294901760, %v23667_v18  ;;  %v74_v28 = vld [vmem:[%s20346_s2 + $0x1d8] sm:$0xff] }
 0x2ed   :  { %23671 = vst [vmem:[#allocation76_spill] sm:$0xff] %v17952_v14  ;;  %v3712_v11 = vsub.f32 %v23662_v4, %v23672_v24  ;;  %11556 = vmatprep.subr.bf16.mxu0 %v23674_v51  ;;  %v23678_v1 = vld [vmem:[#allocation252_spill] sm:$0xff]  ;;  %v23679_v51 = vld [vmem:[#allocation93_spill] sm:$0xff]  ;;  %v23680_v38 = vand.u32 4294901760, %v23673_v41  ;;  %v23695_v4 = vld [vmem:[#allocation262_spill] sm:$0xff] }
 0x2ee   :  { %v17963_v23 = vsub.f32 %v17925_v63, %v23675_v39  ;;  %v3724_v5 = vsub.f32 %v23663_v56, %v23676_v12  ;;  %v3718_v24 = vsub.f32 %v23667_v18, %v23677_v46  ;;  %3044 = vmatprep.mubr.f32.mxu1 %v23678_v1  ;;  %10790 = vmatpush1.bf16.msra.mxu1 %v23679_v51  ;;  %v78_v46 = vld [vmem:[%s20346_s2 + $0x1f8] sm:$0xff]  ;;  %v23682_v33 = vld [vmem:[#allocation89_spill] sm:$0xff]  ;;  %v23683_v51 = vand.u32 4294901760, %v17943_v6 }
 0x2ef   :  { %v3713_v63 = vand.u32 4294901760, %v3712_v11  ;;  %v3730_v12 = vsub.f32 %v23673_v41, %v23680_v38  ;;  %v23681_v22 = vld [vmem:[#allocation248_spill] sm:$0xff]  ;;  %10792 = vmatprep.subr.bf16.mxu1 %v23682_v33  ;;  %v23685_v41 = vand.u32 4294901760, %v17949_v58 }
 0x2f0   :  { %7962 = vmatmul.mubr.f32.gmra.mrb[14].mxu0 %v23681_v22  ;;  %v17991_v39 = vsub.f32 %v17943_v6, %v23683_v51  ;;  %v3725_v11 = vand.u32 4294901760, %v3724_v5  ;;  %v3719_v48 = vand.u32 4294901760, %v3718_v24  ;;  %v23684_v38 = vld [vmem:[#allocation116_spill] sm:$0xff]  ;;  %v23686_v22 = vand.u32 4294901760, %v17952_v14  ;;  %v73_v5 = vld [vmem:[%s20346_s2 + $0x1d0] sm:$0xff]  ;;  %3046 = vmatmul.mubr.f32.gmra.mrb[16].mxu1 %v23402_v54 }
 0x2f1   :  { %7968 = vmatprep.mubr.f32.mxu0 %v23397_v40  ;;  %11558 = vmatpush1.bf16.msra.mxu0 %v23684_v38  ;;  %v17998_v18 = vsub.f32 %v17949_v58, %v23685_v41  ;;  %v3731_v33 = vand.u32 4294901760, %v3730_v12  ;;  %v276_v51 = vmul.f32 %v17128_v21, %v74_v28  ;;  %v23687_v40 = vld [vmem:[#allocation122_spill] sm:$0xff]  ;;  %v280_v38 = vmul.f32 %v17202_v49, %v78_v46  ;;  %v23688_v58 = vld [vmem:[#allocation23_spill] sm:$0xff]  ;;  %v23689_v12 = vld [vmem:[#allocation260_spill] sm:$0xff] }
 0x2f2   :  { %v18003_v1 = vsub.f32 %v17952_v14, %v23686_v22  ;;  %11560 = vmatprep.subr.bf16.mxu0 %v23687_v40  ;;  %v18012_v41 = vpack.c.bf16 %v3725_v11, %v3713_v63  ;;  %v21582_v22 = vand.u32 4294901760, %v23688_v58  ;;  %v77_v28 = vld [vmem:[%s20346_s2 + $0x1f0] sm:$0xff]  ;;  %3052 = vmatprep.mubr.f32.mxu1 %v23689_v12  ;;  %v23692_v11 = vld [vmem:[#allocation258_spill] sm:$0xff]  ;;  %v23694_v56 = vld [vmem:[#allocation24_spill] sm:$0xff]  ;;  %v275_v54 = vmul.f32 %v17225_v27, %v73_v5 }
 0x2f3   :  { %v23690_v14 = vld [vmem:[#allocation251_spill] sm:$0xff]  ;;  %v18023_v6 = vpack.c.bf16 %v3731_v33, %v3719_v48  ;;  %v18025_v63 = vand.u32 4294901760, %v276_v51  ;;  %v23693_v46 = vld [vmem:[#allocation102_spill] sm:$0xff]  ;;  %v640_v24 = vsel %vm617_vm0, %v280_v38, 0  ;;  %v279_v40 = vmul.f32 %v17245_v50, %v77_v28  ;;  %v23700_v32 = vld [vmem:[#allocation264_spill] sm:$0xff] }
 0x2f4   :  { %10794 = vmatpush1.bf16.msra.mxu1 %v23690_v14  ;;  %7970 = vmatmul.mubr.f32.gmra.mrb[16].mxu0 %v23692_v11  ;;  %v8596_v12 = vsub.f32 %v23688_v58, %v21582_v22  ;;  %v23696_v33 = vld [vmem:[#allocation267_spill] sm:$0xff]  ;;  %v18040_v11 = vand.u32 4294901760, %v640_v24  ;;  %v23701_v22 = vld [vmem:[#allocation272_spill] sm:$0xff]  ;;  %v23702_v5 = vand.u32 4294901760, %v23694_v56  ;;  %v18049_v58 = vand.u32 4294901760, %v275_v54 }
 0x2f5   :  { %23691 = vst [vmem:[#allocation246_spill] sm:$0xff] %v18025_v63  ;;  %10796 = vmatprep.subr.bf16.mxu1 %v23693_v46  ;;  %7976 = vmatprep.mubr.f32.mxu0 %v23695_v4  ;;  %v18038_v48 = vsub.f32 %v276_v51, %v18025_v63  ;;  %v23699_v38 = vld [vmem:[#allocation27_spill] sm:$0xff]  ;;  %v23705_v63 = vld [vmem:[#allocation268_spill] sm:$0xff] }
 0x2f6   :  { %11562 = vmatpush1.bf16.msra.mxu0 %v23696_v33  ;;  %23698 = vst [vmem:[#allocation85_spill] sm:$0xff] %v18040_v11  ;;  %3054 = vmatmul.mubr.f32.gmra.mrb[18].mxu1 %v23700_v32  ;;  %v8597_v14 = vand.u32 4294901760, %v8596_v12  ;;  %v8608_v4 = vsub.f32 %v23694_v56, %v23702_v5  ;;  %23703 = vst [vmem:[#allocation91_spill] sm:$0xff] %v18049_v58  ;;  %v23704_v33 = vld [vmem:[#allocation33_spill] sm:$0xff]  ;;  %v18056_v46 = vsub.f32 %v640_v24, %v18040_v11  ;;  %v23710_v5 = vld [vmem:[#allocation266_spill] sm:$0xff] }
 0x2f7   :  { %23697 = vst [vmem:[#allocation83_spill] sm:$0xff] %v18038_v48  ;;  %11564 = vmatprep.subr.bf16.mxu0 %v23701_v22  ;;  %3060 = vmatprep.mubr.f32.mxu1 %v23705_v63  ;;  %v18058_v32 = vand.u32 4294901760, %v279_v40  ;;  %v23709_v12 = vand.u32 4294901760, %v23699_v38  ;;  %v23711_v56 = vld [vmem:[#allocation113_spill] sm:$0xff]  ;;  %v18066_v63 = vsub.f32 %v275_v54, %v18049_v58  ;;  %v23719_v11 = vld [vmem:[#allocation271_spill] sm:$0xff] }
 0x2f8   :  { %10798 = vmatpush1.bf16.msra.mxu1 %v23706_v15  ;;  %23707 = vst [vmem:[#allocation254_spill] sm:$0xff] %v18056_v46  ;;  %7978 = vmatmul.mubr.f32.gmra.mrb[18].mxu0 %v23710_v5  ;;  %v8609_v51 = vand.u32 4294901760, %v8608_v4  ;;  %v23713_v15 = vand.u32 4294901760, %v23704_v33  ;;  %v23714_v24 = vld [vmem:[#allocation29_spill] sm:$0xff]  ;;  %v81_v58 = vld [vmem:[%s20346_s2 + $0x210] sm:$0xff] }
 0x2f9   :  { %23708 = vst [vmem:[#allocation88_spill] sm:$0xff] %v18058_v32  ;;  %v8602_v22 = vsub.f32 %v23699_v38, %v23709_v12  ;;  %10800 = vmatprep.subr.bf16.mxu1 %v23711_v56  ;;  %23712 = vst [vmem:[#allocation255_spill] sm:$0xff] %v18066_v63  ;;  %7984 = vmatprep.mubr.f32.mxu0 %v23715_v37  ;;  %v23717_v12 = vand.u32 4294901760, %v18038_v48  ;;  %v18081_v54 = vsub.f32 %v279_v40, %v18058_v32  ;;  %v23720_v37 = vld [vmem:[#allocation282_spill] sm:$0xff]  ;;  %v23722_v40 = vld [vmem:[#allocation276_spill] sm:$0xff] }
 0x2fa   :  { %v8614_v28 = vsub.f32 %v23704_v33, %v23713_v15  ;;  %11566 = vmatpush1.bf16.msra.mxu0 %v23716_v16  ;;  %v82_v15 = vld [vmem:[%s20346_s2 + $0x218] sm:$0xff]  ;;  %3062 = vmatmul.mubr.f32.gmra.mrb[20].mxu1 %v23719_v11  ;;  %v18088_v16 = vpack.c.bf16 %v8609_v51, %v8597_v14  ;;  %v23724_v33 = vand.u32 4294901760, %v18056_v46 }
 0x2fb   :  { %v18077_v5 = vsub.f32 %v18038_v48, %v23717_v12  ;;  %23718 = vst [vmem:[#allocation95_spill] sm:$0xff] %v18081_v54  ;;  %v8603_v56 = vand.u32 4294901760, %v8602_v22  ;;  %11568 = vmatprep.subr.bf16.mxu0 %v23720_v37  ;;  %v23721_v48 = vand.u32 4294901760, %v23714_v24  ;;  %3068 = vmatprep.mubr.f32.mxu1 %v23722_v40  ;;  %v23723_v22 = vld [vmem:[#allocation118_spill] sm:$0xff]  ;;  %v23726_v51 = vld [vmem:[#allocation36_spill] sm:$0xff]  ;;  %v284_v14 = vmul.f32 %v17128_v21, %v82_v15  ;;  %v23736_v15 = vld [vmem:[#allocation37_spill] sm:$0xff] }
 0x2fc   :  { %v8615_v12 = vand.u32 4294901760, %v8614_v28  ;;  %10802 = vmatpush1.bf16.msra.mxu1 %v23723_v22  ;;  %v18100_v11 = vsub.f32 %v18056_v46, %v23724_v33  ;;  %v86_v28 = vld [vmem:[%s20346_s2 + $0x238] sm:$0xff]  ;;  %v23728_v40 = vld [vmem:[#allocation126_spill] sm:$0xff]  ;;  %v23729_v22 = vand.u32 4294901760, %v18066_v63  ;;  %v23731_v46 = vld [vmem:[#allocation277_spill] sm:$0xff]  ;;  %v23743_v10 = vand.u32 4294901760, %v23736_v15 }
 0x2fd   :  { %v3736_v4 = vsub.f32 %v23714_v24, %v23721_v48  ;;  %v23727_v48 = vld [vmem:[#allocation274_spill] sm:$0xff]  ;;  %10804 = vmatprep.subr.bf16.mxu1 %v23728_v40  ;;  %v23732_v24 = vld [vmem:[#allocation153_spill] sm:$0xff]  ;;  %v23733_v40 = vand.u32 4294901760, %v18081_v54  ;;  %v18138_v38 = vand.u32 4294901760, %v284_v14  ;;  %v288_v26 = vmul.f32 %v17202_v49, %v86_v28 }
 0x2fe   :  { %23725 = vst [vmem:[#allocation97_spill] sm:$0xff] %v18100_v11  ;;  %7986 = vmatmul.mubr.f32.gmra.mrb[20].mxu0 %v23727_v48  ;;  %v18112_v32 = vsub.f32 %v18066_v63, %v23729_v22  ;;  %v18114_v37 = vpack.c.bf16 %v8615_v12, %v8603_v56  ;;  %v23735_v56 = vand.u32 4294901760, %v23726_v51  ;;  %v85_v63 = vld [vmem:[%s20346_s2 + $0x230] sm:$0xff]  ;;  %v23744_v48 = vld [vmem:[#allocation280_spill] sm:$0xff] }
 0x2ff   :  { %v3737_v33 = vand.u32 4294901760, %v3736_v4  ;;  %7992 = vmatprep.mubr.f32.mxu0 %v23731_v46  ;;  %11570 = vmatpush1.bf16.msra.mxu0 %v23732_v24  ;;  %v18126_v22 = vsub.f32 %v18081_v54, %v23733_v40  ;;  %v23737_v46 = vld [vmem:[#allocation278_spill] sm:$0xff]  ;;  %v23738_v24 = vld [vmem:[#allocation293_spill] sm:$0xff]  ;;  %23739 = vst [vmem:[#allocation107_spill] sm:$0xff] %v18138_v38  ;;  %v23740_v40 = vld [vmem:[#allocation39_spill] sm:$0xff]  ;;  %v18152_v54 = vsub.f32 %v284_v14, %v18138_v38  ;;  %v643_v12 = vsel %vm617_vm0, %v288_v26, 0 }
 0x300   :  { %23730 = vst [vmem:[#allocation103_spill] sm:$0xff] %v18112_v32  ;;  %v3748_v4 = vsub.f32 %v23726_v51, %v23735_v56  ;;  %3070 = vmatmul.mubr.f32.gmra.mrb[22].mxu1 %v23737_v46  ;;  %11572 = vmatprep.subr.bf16.mxu0 %v23738_v24  ;;  %v23742_v56 = vld [vmem:[#allocation128_spill] sm:$0xff]  ;;  %v3742_v46 = vsub.f32 %v23736_v15, %v23743_v10  ;;  %v23752_v26 = vld [vmem:[#allocation305_spill] sm:$0xff] }
 0x301   :  { %23734 = vst [vmem:[#allocation100_spill] sm:$0xff] %v18126_v22  ;;  %3076 = vmatprep.mubr.f32.mxu1 %v23741_v42  ;;  %10806 = vmatpush1.bf16.msra.mxu1 %v23742_v56  ;;  %v283_v24 = vmul.f32 %v17225_v27, %v81_v58  ;;  %23746 = vst [vmem:[#allocation109_spill] sm:$0xff] %v18152_v54  ;;  %v23747_v42 = vand.u32 4294901760, %v23740_v40  ;;  %v90_v10 = vld [vmem:[%s20346_s2 + $0x258] sm:$0xff]  ;;  %v23748_v58 = vld [vmem:[#allocation285_spill] sm:$0xff]  ;;  %v18166_v56 = vand.u32 4294901760, %v643_v12 }
 0x302   :  { %v3749_v51 = vand.u32 4294901760, %v3748_v4  ;;  %7994 = vmatmul.mubr.f32.gmra.mrb[22].mxu0 %v23744_v48  ;;  %10808 = vmatprep.subr.bf16.mxu1 %v23745_v35  ;;  %v287_v4 = vmul.f32 %v17245_v50, %v85_v63  ;;  %v23749_v48 = vld [vmem:[#allocation161_spill] sm:$0xff]  ;;  %v3743_v14 = vand.u32 4294901760, %v3742_v46  ;;  %v21620_v63 = vand.u32 4294901760, %v18152_v54  ;;  %v23785_v22 = vld [vmem:[#allocation308_spill] sm:$0xff] }
 0x303   :  { %v3754_v28 = vsub.f32 %v23740_v40, %v23747_v42  ;;  %8000 = vmatprep.mubr.f32.mxu0 %v23748_v58  ;;  %11574 = vmatpush1.bf16.msra.mxu0 %v23749_v48  ;;  %23750 = vst [vmem:[#allocation115_spill] sm:$0xff] %v18166_v56  ;;  %v18168_v38 = vand.u32 4294901760, %v283_v24  ;;  %v23754_v15 = vld [vmem:[#allocation45_spill] sm:$0xff] }
 0x304   :  { %v18164_v35 = vpack.c.bf16 %v3749_v51, %v3737_v33  ;;  %3078 = vmatmul.mubr.f32.gmra.mrb[24].mxu1 %v23471_v44  ;;  %11576 = vmatprep.subr.bf16.mxu0 %v23752_v26  ;;  %v18173_v40 = vand.u32 4294901760, %v287_v4  ;;  %v23756_v51 = vld [vmem:[#allocation273_spill] sm:$0xff]  ;;  %v18179_v33 = vsub.f32 %v643_v12, %v18166_v56  ;;  %v292_v26 = vmul.f32 %v17128_v21, %v90_v10  ;;  %v23770_v10 = vld [vmem:[#allocation300_spill] sm:$0xff] }
 0x305   :  { %23751 = vst [vmem:[#allocation112_spill] sm:$0xff] %v18168_v38  ;;  %v3755_v42 = vand.u32 4294901760, %v3754_v28  ;;  %3084 = vmatprep.mubr.f32.mxu1 %v23755_v62  ;;  %10810 = vmatpush1.bf16.msra.mxu1 %v23756_v51  ;;  %v18182_v46 = vsub.f32 %v283_v24, %v18168_v38  ;;  %v23759_v44 = vld [vmem:[#allocation41_spill] sm:$0xff]  ;;  %v18191_v62 = vsub.f32 %v18152_v54, %v21620_v63  ;;  %v23763_v24 = vld [vmem:[#allocation42_spill] sm:$0xff]  ;;  %v23765_v48 = vand.u32 4294901760, %v23754_v15 }
 0x306   :  { %23753 = vst [vmem:[#allocation119_spill] sm:$0xff] %v18173_v40  ;;  %23757 = vst [vmem:[#allocation121_spill] sm:$0xff] %v18179_v33  ;;  %8002 = vmatmul.mubr.f32.gmra.mrb[24].mxu0 %v23480_v9  ;;  %v23760_v28 = vld [vmem:[#allocation281_spill] sm:$0xff]  ;;  %v18196_v12 = vsub.f32 %v287_v4, %v18173_v40  ;;  %v23764_v38 = vld [vmem:[#allocation294_spill] sm:$0xff]  ;;  %v23766_v63 = vand.u32 4294901760, %v23759_v44  ;;  %v18211_v54 = vand.u32 4294901760, %v292_v26 }
 0x307   :  { %23758 = vst [vmem:[#allocation127_spill] sm:$0xff] %v18182_v46  ;;  %10812 = vmatprep.subr.bf16.mxu1 %v23760_v28  ;;  %23761 = vst [vmem:[#allocation124_spill] sm:$0xff] %v18191_v62  ;;  %v18193_v58 = vpack.c.bf16 %v3755_v42, %v3743_v14  ;;  %8008 = vmatprep.mubr.f32.mxu0 %v23764_v38  ;;  %v8620_v28 = vsub.f32 %v23754_v15, %v23765_v48  ;;  %v23767_v42 = vld [vmem:[#allocation295_spill] sm:$0xff]  ;;  %v23769_v38 = vand.u32 4294901760, %v23763_v24  ;;  %v94_v48 = vld [vmem:[%s20346_s2 + $0x278] sm:$0xff] }
 0x308   :  { %23762 = vst [vmem:[#allocation131_spill] sm:$0xff] %v18196_v12  ;;  %v8632_v14 = vsub.f32 %v23759_v44, %v23766_v63  ;;  %3086 = vmatmul.mubr.f32.gmra.mrb[26].mxu1 %v23767_v42  ;;  %23768 = vst [vmem:[#allocation133_spill] sm:$0xff] %v18211_v54  ;;  %v23771_v40 = vld [vmem:[#allocation144_spill] sm:$0xff]  ;;  %v23772_v63 = vand.u32 4294901760, %v18179_v33  ;;  %v23774_v4 = vand.u32 4294901760, %v18182_v46  ;;  %v18239_v15 = vsub.f32 %v292_v26, %v18211_v54  ;;  %v23784_v54 = vld [vmem:[#allocation51_spill] sm:$0xff] }
 0x309   :  { %v3760_v9 = vsub.f32 %v23763_v24, %v23769_v38  ;;  %3092 = vmatprep.mubr.f32.mxu1 %v23770_v10  ;;  %10814 = vmatpush1.bf16.msra.mxu1 %v23771_v40  ;;  %v8621_v56 = vand.u32 4294901760, %v8620_v28  ;;  %v23776_v24 = vld [vmem:[#allocation298_spill] sm:$0xff]  ;;  %v23777_v44 = vld [vmem:[#allocation288_spill] sm:$0xff]  ;;  %v23778_v10 = vand.u32 4294901760, %v18196_v12  ;;  %v89_v28 = vld [vmem:[%s20346_s2 + $0x250] sm:$0xff] }
 0x30a   :  { %v18224_v42 = vsub.f32 %v18179_v33, %v23772_v63  ;;  %v18229_v51 = vsub.f32 %v18182_v46, %v23774_v4  ;;  %v8633_v38 = vand.u32 4294901760, %v8632_v14  ;;  %8010 = vmatmul.mubr.f32.gmra.mrb[26].mxu0 %v23776_v24  ;;  %10816 = vmatprep.subr.bf16.mxu1 %v23777_v44  ;;  %23780 = vst [vmem:[#allocation143_spill] sm:$0xff] %v18239_v15  ;;  %v23781_v33 = vld [vmem:[#allocation50_spill] sm:$0xff]  ;;  %v23786_v24 = vld [vmem:[#allocation156_spill] sm:$0xff]  ;;  %v23788_v4 = vld [vmem:[#allocation53_spill] sm:$0xff] }
 0x30b   :  { %v18236_v40 = vsub.f32 %v18196_v12, %v23778_v10  ;;  %v3761_v63 = vand.u32 4294901760, %v3760_v9  ;;  %v21641_v29 = vand.u32 4294901760, %v23781_v33  ;;  %v23782_v14 = vld [vmem:[#allocation302_spill] sm:$0xff]  ;;  %v296_v10 = vmul.f32 %v17202_v49, %v94_v48  ;;  %v23783_v12 = vld [vmem:[#allocation304_spill] sm:$0xff]  ;;  %v23790_v9 = vld [vmem:[#allocation165_spill] sm:$0xff] }
 0x30c   :  { %23773 = vst [vmem:[#allocation139_spill] sm:$0xff] %v18224_v42  ;;  %23775 = vst [vmem:[#allocation136_spill] sm:$0xff] %v18229_v51  ;;  %8016 = vmatprep.mubr.f32.mxu0 %v23782_v14  ;;  %v18248_v44 = vpack.c.bf16 %v8633_v38, %v8621_v56  ;;  %3094 = vmatmul.mubr.f32.gmra.mrb[28].mxu1 %v23783_v12  ;;  %v23787_v38 = vld [vmem:[#allocation57_spill] sm:$0xff]  ;;  %v291_v12 = vmul.f32 %v17225_v27, %v89_v28  ;;  %v93_v51 = vld [vmem:[%s20346_s2 + $0x270] sm:$0xff] }
 0x30d   :  { %23779 = vst [vmem:[#allocation286_spill] sm:$0xff] %v18236_v40  ;;  %v3772_v46 = vsub.f32 %v23781_v33, %v21641_v29  ;;  %3100 = vmatprep.mubr.f32.mxu1 %v23785_v22  ;;  %10818 = vmatpush1.bf16.msra.mxu1 %v23786_v24  ;;  %v646_v56 = vsel %vm617_vm0, %v296_v10, 0  ;;  %v23789_v40 = vld [vmem:[#allocation306_spill] sm:$0xff]  ;;  %v23791_v29 = vand.u32 4294901760, %v18239_v15  ;;  %v23794_v10 = vand.u32 4294901760, %v23784_v54  ;;  %v23795_v24 = vld [vmem:[#allocation309_spill] sm:$0xff] }
 0x30e   :  { %8018 = vmatmul.mubr.f32.gmra.mrb[28].mxu0 %v23789_v40  ;;  %10820 = vmatprep.subr.bf16.mxu1 %v23790_v9  ;;  %v18271_v33 = vand.u32 4294901760, %v646_v56  ;;  %v23796_v28 = vand.u32 4294901760, %v23787_v38  ;;  %v18280_v26 = vand.u32 4294901760, %v291_v12  ;;  %v23798_v9 = vand.u32 4294901760, %v23788_v4  ;;  %v23802_v42 = vld [vmem:[#allocation316_spill] sm:$0xff]  ;;  %v23803_v62 = vld [vmem:[#allocation297_spill] sm:$0xff] }
 0x30f   :  { %v18269_v14 = vsub.f32 %v18239_v15, %v23791_v29  ;;  %v3773_v22 = vand.u32 4294901760, %v3772_v46  ;;  %v8626_v48 = vsub.f32 %v23784_v54, %v23794_v10  ;;  %8024 = vmatprep.mubr.f32.mxu0 %v23795_v24  ;;  %v23799_v15 = vld [vmem:[#allocation68_spill] sm:$0xff] }
 0x310   :  { %23793 = vst [vmem:[#allocation289_spill] sm:$0xff] %v18271_v33  ;;  %v8638_v40 = vsub.f32 %v23787_v38, %v23796_v28  ;;  %23797 = vst [vmem:[#allocation151_spill] sm:$0xff] %v18280_v26  ;;  %v3766_v29 = vsub.f32 %v23788_v4, %v23798_v9  ;;  %v98_v24 = vld [vmem:[%s20346_s2 + $0x298] sm:$0xff]  ;;  %v23800_v28 = vld [vmem:[#allocation311_spill] sm:$0xff]  ;;  %v18300_v9 = vsub.f32 %v646_v56, %v18271_v33 }
 0x311   :  { %23792 = vst [vmem:[#allocation145_spill] sm:$0xff] %v18269_v14  ;;  %v102_v10 = vld [vmem:[%s20346_s2 + $0x2b8] sm:$0xff]  ;;  %3102 = vmatmul.mubr.f32.gmra.mrb[30].mxu1 %v23800_v28  ;;  %v18297_v54 = vpack.c.bf16 %v3773_v22, %v3761_v63  ;;  %v8627_v46 = vand.u32 4294901760, %v8626_v48  ;;  %v97_v4 = vld [vmem:[%s20346_s2 + $0x290] sm:$0xff]  ;;  %v18308_v11 = vsub.f32 %v291_v12, %v18280_v26  ;;  %v23805_v63 = vand.u32 4294901760, %v23799_v15  ;;  %v23806_v56 = vld [vmem:[#allocation314_spill] sm:$0xff] }
 0x312   :  { %23801 = vst [vmem:[#allocation148_spill] sm:$0xff] %v18300_v9  ;;  %3108 = vmatprep.mubr.f32.mxu1 %v23802_v42  ;;  %10822 = vmatpush1.bf16.msra.mxu1 %v23803_v62  ;;  %v8639_v32 = vand.u32 4294901760, %v8638_v40  ;;  %v3767_v28 = vand.u32 4294901760, %v3766_v29  ;;  %v23807_v48 = vld [vmem:[#allocation177_spill] sm:$0xff]  ;;  %v21655_v38 = vand.u32 4294901760, %v18300_v9  ;;  %v295_v33 = vmul.f32 %v17245_v50, %v93_v51 }
 0x313   :  { %23804 = vst [vmem:[#allocation155_spill] sm:$0xff] %v18308_v11  ;;  %v3778_v22 = vsub.f32 %v23799_v15, %v23805_v63  ;;  %8026 = vmatmul.mubr.f32.gmra.mrb[30].mxu0 %v23806_v56  ;;  %10824 = vmatprep.subr.bf16.mxu1 %v23807_v48  ;;  %v300_v42 = vmul.f32 %v17128_v21, %v98_v24  ;;  %v21656_v29 = vand.u32 4294901760, %v18308_v11  ;;  %v23808_v56 = vld [vmem:[#allocation318_spill] sm:$0xff] }
 0x314   :  { %v304_v40 = vmul.f32 %v17202_v49, %v102_v10  ;;  %8032 = vmatprep.mubr.f32.mxu0 %v23540_v31  ;;  %v18320_v12 = vpack.c.bf16 %v8639_v32, %v8627_v46  ;;  %v299_v63 = vmul.f32 %v17225_v27, %v97_v4  ;;  %v18328_v48 = vsub.f32 %v18300_v9, %v21655_v38  ;;  %v23812_v32 = vld [vmem:[#allocation324_spill] sm:$0xff] }
 0x315   :  { %v3779_v62 = vand.u32 4294901760, %v3778_v22  ;;  %3110 = vmatmul.mubr.f32.gmra.mrb[32].mxu1 %v23808_v56  ;;  %v18330_v51 = vand.u32 4294901760, %v295_v33  ;;  %v18332_v24 = vand.u32 4294901760, %v300_v42  ;;  %v18339_v46 = vsub.f32 %v18308_v11, %v21656_v29  ;;  %v101_v56 = vld [vmem:[%s20346_s2 + $0x2b0] sm:$0xff]  ;;  %v23816_v38 = vld [vmem:[#allocation320_spill] sm:$0xff]  ;;  %v23820_v11 = vld [vmem:[#allocation325_spill] sm:$0xff] }
 0x316   :  { %23809 = vst [vmem:[#allocation157_spill] sm:$0xff] %v18328_v48  ;;  %v649_v31 = vsel %vm617_vm0, %v304_v40, 0  ;;  %3116 = vmatprep.mubr.f32.mxu1 %v23812_v32  ;;  %v18345_v22 = vand.u32 4294901760, %v299_v63  ;;  %v23824_v48 = vld [vmem:[#allocation326_spill] sm:$0xff]  ;;  %v303_v9 = vmul.f32 %v17245_v50, %v101_v56 }
 0x317   :  { %23810 = vst [vmem:[#allocation163_spill] sm:$0xff] %v18330_v51  ;;  %23811 = vst [vmem:[#allocation160_spill] sm:$0xff] %v18332_v24  ;;  %v18341_v4 = vpack.c.bf16 %v3779_v62, %v3767_v28  ;;  %v18343_v10 = vand.u32 4294901760, %v649_v31  ;;  %8034 = vmatmul.mubr.f32.gmra.mrb[32].mxu0 %v23816_v38  ;;  %v18353_v32 = vsub.f32 %v295_v33, %v18330_v51  ;;  %v23819_v62 = vld [vmem:[#allocation65_spill] sm:$0xff]  ;;  %v23823_v38 = vld [vmem:[#allocation66_spill] sm:$0xff] }
 0x318   :  { %23813 = vst [vmem:[#allocation167_spill] sm:$0xff] %v18339_v46  ;;  %23815 = vst [vmem:[#allocation175_spill] sm:$0xff] %v18345_v22  ;;  %v18356_v29 = vsub.f32 %v300_v42, %v18332_v24  ;;  %v21671_v28 = vand.u32 4294901760, %v23819_v62  ;;  %8040 = vmatprep.mubr.f32.mxu0 %v23820_v11  ;;  %v18365_v15 = vsub.f32 %v299_v63, %v18345_v22  ;;  %v21674_v40 = vand.u32 4294901760, %v23823_v38  ;;  %v23825_v51 = vld [vmem:[#allocation332_spill] sm:$0xff]  ;;  %v23826_v22 = vld [vmem:[#allocation74_spill] sm:$0xff] }
 0x319   :  { %23814 = vst [vmem:[#allocation169_spill] sm:$0xff] %v18343_v10  ;;  %23817 = vst [vmem:[#allocation172_spill] sm:$0xff] %v18353_v32  ;;  %v18362_v26 = vsub.f32 %v649_v31, %v18343_v10  ;;  %3118 = vmatmul.mubr.f32.gmra.mrb[34].mxu1 %v23824_v48  ;;  %v23827_v10 = vld [vmem:[#allocation329_spill] sm:$0xff]  ;;  %v23828_v42 = vand.u32 4294901760, %v18353_v32  ;;  %v18393_v63 = vand.u32 4294901760, %v303_v9  ;;  %v23833_v24 = vld [vmem:[#allocation334_spill] sm:$0xff] }
 0x31a   :  { %23818 = vst [vmem:[#allocation180_spill] sm:$0xff] %v18356_v29  ;;  %23822 = vst [vmem:[#allocation317_spill] sm:$0xff] %v18365_v15  ;;  %v3784_v11 = vsub.f32 %v23819_v62, %v21671_v28  ;;  %3124 = vmatprep.mubr.f32.mxu1 %v23825_v51  ;;  %v3796_v48 = vsub.f32 %v23823_v38, %v21674_v40  ;;  %v23830_v56 = vand.u32 4294901760, %v18356_v29  ;;  %v23838_v38 = vand.u32 4294901760, %v23826_v22  ;;  %v23847_v46 = vld [vmem:[#allocation82_spill] sm:$0xff] }
 0x31b   :  { %23821 = vst [vmem:[#allocation182_spill] sm:$0xff] %v18362_v26  ;;  %8042 = vmatmul.mubr.f32.gmra.mrb[34].mxu0 %v23827_v10  ;;  %v18386_v28 = vsub.f32 %v18353_v32, %v23828_v42  ;;  %23832 = vst [vmem:[#allocation344_spill] sm:$0xff] %v18393_v63  ;;  %v23834_v40 = vand.u32 4294901760, %v18362_v26  ;;  %v23836_v10 = vand.u32 4294901760, %v18365_v15  ;;  %v18413_v62 = vsub.f32 %v303_v9, %v18393_v63 }
 0x31c   :  { %v18391_v51 = vsub.f32 %v18356_v29, %v23830_v56  ;;  %v3785_v31 = vand.u32 4294901760, %v3784_v11  ;;  %8048 = vmatprep.mubr.f32.mxu0 %v23833_v24  ;;  %v3797_v32 = vand.u32 4294901760, %v3796_v48  ;;  %v8644_v56 = vsub.f32 %v23826_v22, %v23838_v38  ;;  %v23839_v11 = vld [vmem:[#allocation335_spill] sm:$0xff]  ;;  %v110_v48 = vld [vmem:[%s20346_s2 + $0x2f8] sm:$0xff]  ;;  %v23849_v29 = vld [vmem:[#allocation86_spill] sm:$0xff] }
 0x31d   :  { %23829 = vst [vmem:[#allocation185_spill] sm:$0xff] %v18386_v28  ;;  %v18399_v33 = vsub.f32 %v18362_v26, %v23834_v40  ;;  %v18404_v42 = vsub.f32 %v18365_v15, %v23836_v10  ;;  %3126 = vmatmul.mubr.f32.gmra.mrb[36].mxu1 %v23839_v11  ;;  %23840 = vst [vmem:[#allocation228_spill] sm:$0xff] %v18413_v62  ;;  %v23841_v40 = vld [vmem:[#allocation81_spill] sm:$0xff]  ;;  %v106_v10 = vld [vmem:[%s20346_s2 + $0x2d8] sm:$0xff]  ;;  %v21693_v26 = vand.u32 4294901760, %v18413_v62  ;;  %v21697_v14 = vand.u32 4294901760, %v23847_v46 }
 0x31e   :  { %23831 = vst [vmem:[#allocation342_spill] sm:$0xff] %v18391_v51  ;;  %v23842_v38 = vld [vmem:[#allocation340_spill] sm:$0xff]  ;;  %v18425_v24 = vpack.c.bf16 %v3797_v32, %v3785_v31  ;;  %v8645_v9 = vand.u32 4294901760, %v8644_v56  ;;  %v23844_v15 = vld [vmem:[#allocation338_spill] sm:$0xff]  ;;  %v23845_v63 = vand.u32 4294901760, %v23841_v40  ;;  %v23846_v28 = vld [vmem:[#allocation77_spill] sm:$0xff]  ;;  %v308_v31 = vmul.f32 %v17128_v21, %v106_v10 }
 0x31f   :  { %23835 = vst [vmem:[#allocation346_spill] sm:$0xff] %v18399_v33  ;;  %23837 = vst [vmem:[#allocation224_spill] sm:$0xff] %v18404_v42  ;;  %3132 = vmatprep.mubr.f32.mxu1 %v23842_v38  ;;  %8050 = vmatmul.mubr.f32.gmra.mrb[36].mxu0 %v23844_v15  ;;  %v21696_v51 = vand.u32 4294901760, %v23846_v28  ;;  %v23848_v38 = vld [vmem:[#allocation84_spill] sm:$0xff]  ;;  %v312_v15 = vmul.f32 %v17202_v49, %v110_v48  ;;  %v3802_v32 = vsub.f32 %v23847_v46, %v21697_v14  ;;  %v23856_v46 = vld [vmem:[#allocation183_spill] sm:$0xff] }
 0x320   :  { %23843 = vst [vmem:[#allocation226_spill] sm:$0xff] %v18425_v24  ;;  %v8656_v22 = vsub.f32 %v23841_v40, %v23845_v63  ;;  %8056 = vmatprep.mubr.f32.mxu0 %v23583_v20  ;;  %v18443_v63 = vsub.f32 %v18413_v62, %v21693_v26  ;;  %v23851_v11 = vld [vmem:[#allocation176_spill] sm:$0xff]  ;;  %v23853_v48 = vand.u32 4294901760, %v23848_v38  ;;  %v23854_v40 = vand.u32 4294901760, %v23849_v29 }
 0x321   :  { %3134 = vmatmul.mubr.f32.gmra.mrb[38].mxu1 %v23587_v19  ;;  %v3790_v20 = vsub.f32 %v23846_v28, %v21696_v51  ;;  %v23852_v10 = vand.u32 4294901760, %v23851_v11  ;;  %v652_v62 = vsel %vm617_vm0, %v312_v15, 0  ;;  %v105_v51 = vld [vmem:[%s20346_s2 + $0x2d0] sm:$0xff]  ;;  %v23857_v28 = vand.u32 4294901760, %v23856_v46  ;;  %v23860_v33 = vld [vmem:[#allocation184_spill] sm:$0xff]  ;;  %v23863_v46 = vld [vmem:[#allocation310_spill] sm:$0xff] }
 0x322   :  { %23850 = vst [vmem:[#allocation229_spill] sm:$0xff] %v18443_v63  ;;  %v8657_v56 = vand.u32 4294901760, %v8656_v22  ;;  %v8650_v19 = vsub.f32 %v23848_v38, %v23853_v48  ;;  %v8662_v26 = vsub.f32 %v23849_v29, %v23854_v40  ;;  %v18459_v22 = vand.u32 4294901760, %v308_v31  ;;  %v109_v11 = vld [vmem:[%s20346_s2 + $0x2f0] sm:$0xff]  ;;  %v23892_v63 = vld [vmem:[#allocation21_spill] sm:$0xff] }
 0x323   :  { %3273 = vmatprep.mubr.f32.mxu1 %v23852_v10  ;;  %8058 = vmatmul.mubr.f32.gmra.mrb[38].mxu0 %v23591_v47  ;;  %v3791_v14 = vand.u32 4294901760, %v3790_v20  ;;  %v3803_v40 = vand.u32 4294901760, %v3802_v32  ;;  %v18477_v42 = vand.u32 4294901760, %v652_v62  ;;  %v23861_v24 = vand.u32 4294901760, %v23860_v33  ;;  %v23862_v32 = vld [vmem:[#allocation90_spill] sm:$0xff] }
 0x324   :  { %23855 = vst [vmem:[#allocation230_spill] sm:$0xff] %v18459_v22  ;;  %v18470_v48 = vpack.c.bf16 %v8657_v56, %v8645_v9  ;;  %8181 = vmatprep.mubr.f32.mxu0 %v23857_v28  ;;  %v8651_v15 = vand.u32 4294901760, %v8650_v19  ;;  %v8663_v29 = vand.u32 4294901760, %v8662_v26  ;;  %v18475_v38 = vsub.f32 %v308_v31, %v18459_v22  ;;  %v23864_v28 = vld [vmem:[#allocation331_spill] sm:$0xff] }
 0x325   :  { %23859 = vst [vmem:[#allocation234_spill] sm:$0xff] %v18477_v42  ;;  %3279 = vmatmul.mubr.f32.vlgmr.msra.gmra.mrb[0].mxu1 %v23861_v24  ;;  %v18481_v47 = vpack.c.bf16 %v3803_v40, %v3791_v14  ;;  %v307_v9 = vmul.f32 %v17225_v27, %v105_v51  ;;  %v311_v56 = vmul.f32 %v17245_v50, %v109_v11  ;;  %v21708_v20 = vand.u32 4294901760, %v23862_v32  ;;  %v23867_v14 = vld [vmem:[#allocation94_spill] sm:$0xff]  ;;  %v23870_v11 = vld [vmem:[#allocation225_spill] sm:$0xff]  ;;  %v23878_v22 = vld [vmem:[#allocation99_spill] sm:$0xff] }
 0x326   :  { %23858 = vst [vmem:[#allocation236_spill] sm:$0xff] %v18475_v38  ;;  %10826 = vmatpush1.bf16.msra.mxu1 %v23863_v46  ;;  %v23865_v26 = vand.u32 4294901760, %v23864_v28  ;;  %v18489_v31 = vpack.c.bf16 %v8663_v29, %v8651_v15  ;;  %v18493_v33 = vsub.f32 %v652_v62, %v18477_v42  ;;  %v21711_v24 = vand.u32 4294901760, %v23867_v14  ;;  %v23868_v40 = vld [vmem:[#allocation186_spill] sm:$0xff]  ;;  %v23875_v62 = vld [vmem:[#allocation337_spill] sm:$0xff] }
 0x327   :  { %v23869_v51 = vand.u32 4294901760, %v23868_v40  ;;  %10828 = vmatprep.subr.bf16.mxu1 %v23870_v11  ;;  %v18499_v10 = vand.u32 4294901760, %v307_v9  ;;  %v18501_v46 = vand.u32 4294901760, %v311_v56  ;;  %v3808_v29 = vsub.f32 %v23862_v32, %v21708_v20  ;;  %v23873_v15 = vld [vmem:[#allocation98_spill] sm:$0xff]  ;;  %v23879_v28 = vld [vmem:[#allocation341_spill] sm:$0xff] }
 0x328   :  { %3289 = vmatprep.mubr.f32.mxu1 %v23865_v26  ;;  %23866 = vst [vmem:[#allocation237_spill] sm:$0xff] %v18493_v33  ;;  %v23874_v26 = vld [vmem:[#allocation9_spill] sm:$0xff]  ;;  %v23876_v19 = vand.u32 4294901760, %v23875_v62  ;;  %v23877_v40 = vand.u32 4294901760, %v18475_v38  ;;  %v3820_v42 = vsub.f32 %v23867_v14, %v21711_v24  ;;  %v23880_v62 = vand.u32 4294901760, %v23879_v28  ;;  %v118_v14 = vld [vmem:[%s20346_s2 + $0x338] sm:$0xff] }
 0x329   :  { %8187 = vmatmul.mubr.f32.vlgmr.msra.gmra.mrb[0].mxu0 %v23869_v51  ;;  %23871 = vst [vmem:[#allocation239_spill] sm:$0xff] %v18499_v10  ;;  %23872 = vst [vmem:[#allocation244_spill] sm:$0xff] %v18501_v46  ;;  %v18530_v11 = vsub.f32 %v311_v56, %v18501_v46  ;;  %v23884_v24 = vand.u32 4294901760, %v23873_v15  ;;  %v23885_v32 = vld [vmem:[#allocation345_spill] sm:$0xff]  ;;  %v23886_v28 = vld [vmem:[#allocation191_spill] sm:$0xff]  ;;  %v23889_v46 = vand.u32 4294901760, %v23878_v22 }
 0x32a   :  { %11578 = vmatpush1.bf16.msra.mxu0 %v23874_v26  ;;  %8197 = vmatprep.mubr.f32.mxu0 %v23876_v19  ;;  %v18513_v51 = vsub.f32 %v18475_v38, %v23877_v40  ;;  %v114_v26 = vld [vmem:[%s20346_s2 + $0x318] sm:$0xff]  ;;  %v23881_v19 = vld [vmem:[#allocation17_spill] sm:$0xff]  ;;  %v18527_v40 = vsub.f32 %v307_v9, %v18499_v10  ;;  %v3809_v38 = vand.u32 4294901760, %v3808_v29  ;;  %v3821_v29 = vand.u32 4294901760, %v3820_v42  ;;  %v23890_v10 = vld [vmem:[#allocation339_spill] sm:$0xff] }
 0x32b   :  { %3295 = vmatmul.mubr.f32.gmra.mrb[2].mxu1 %v23880_v62  ;;  %11580 = vmatprep.subr.bf16.mxu0 %v23881_v19  ;;  %23883 = vst [vmem:[#allocation245_spill] sm:$0xff] %v18530_v11  ;;  %v3814_v20 = vsub.f32 %v23873_v15, %v23884_v24  ;;  %v23887_v62 = vand.u32 4294901760, %v23886_v28  ;;  %v23888_v19 = vand.u32 4294901760, %v18493_v33  ;;  %v3826_v24 = vsub.f32 %v23878_v22, %v23889_v46  ;;  %v113_v42 = vld [vmem:[%s20346_s2 + $0x310] sm:$0xff]  ;;  %v23895_v46 = vld [vmem:[#allocation18_spill] sm:$0xff] }
 0x32c   :  { %23882 = vst [vmem:[#allocation241_spill] sm:$0xff] %v18527_v40  ;;  %10830 = vmatpush1.bf16.msra.mxu1 %v23885_v32  ;;  %v23891_v15 = vand.u32 4294901760, %v23890_v10  ;;  %v316_v9 = vmul.f32 %v17128_v21, %v114_v26  ;;  %v320_v32 = vmul.f32 %v17202_v49, %v118_v14  ;;  %v23896_v28 = vld [vmem:[#allocation199_spill] sm:$0xff]  ;;  %v23898_v26 = vand.u32 4294901760, %v18527_v40 }
 0x32d   :  { %3305 = vmatprep.mubr.f32.mxu1 %v23887_v62  ;;  %v18545_v56 = vsub.f32 %v18493_v33, %v23888_v19  ;;  %10832 = vmatprep.subr.bf16.mxu1 %v23892_v63  ;;  %v3815_v62 = vand.u32 4294901760, %v3814_v20  ;;  %v23893_v19 = vld [vmem:[#allocation198_spill] sm:$0xff]  ;;  %v3827_v63 = vand.u32 4294901760, %v3826_v24  ;;  %v23897_v20 = vand.u32 4294901760, %v23896_v28  ;;  %v117_v14 = vld [vmem:[%s20346_s2 + $0x330] sm:$0xff]  ;;  %v23903_v28 = vld [vmem:[#allocation212_spill] sm:$0xff] }
 0x32e   :  { %8203 = vmatmul.mubr.f32.gmra.mrb[2].mxu0 %v23891_v15  ;;  %v23894_v33 = vand.u32 4294901760, %v23893_v19  ;;  %v18563_v15 = vpack.c.bf16 %v3821_v29, %v3809_v38  ;;  %v18572_v22 = vsub.f32 %v18527_v40, %v23898_v26  ;;  %v18579_v38 = vand.u32 4294901760, %v316_v9  ;;  %v23901_v29 = vld [vmem:[#allocation104_spill] sm:$0xff]  ;;  %v23904_v26 = vld [vmem:[#allocation105_spill] sm:$0xff] }
 0x32f   :  { %11582 = vmatpush1.bf16.msra.mxu0 %v23895_v46  ;;  %3311 = vmatmul.mubr.f32.gmra.mrb[4].mxu1 %v23897_v20  ;;  %v18588_v46 = vpack.c.bf16 %v3827_v63, %v3815_v62  ;;  %v655_v20 = vsel %vm617_vm0, %v320_v32, 0  ;;  %v315_v10 = vmul.f32 %v17225_v27, %v113_v42  ;;  %v23909_v32 = vand.u32 4294901760, %v17658_v7 }
 0x330   :  { %8213 = vmatprep.mubr.f32.mxu0 %v23894_v33  ;;  %11584 = vmatprep.subr.bf16.mxu0 %v17671_v0  ;;  %v23899_v33 = vand.u32 4294901760, %v18530_v11  ;;  %23900 = vst [vmem:[#allocation252_spill] sm:$0xff] %v18579_v38  ;;  %v23902_v0 = vand.u32 4294901760, %v17617_v30  ;;  %v18601_v62 = vand.u32 4294901760, %v655_v20  ;;  %v23910_v42 = vand.u32 4294901760, %v23901_v29 }
 0x331   :  { %10834 = vmatpush1.bf16.msra.mxu1 %v23903_v28  ;;  %v23912_v63 = vand.u32 4294901760, %v17649_v53  ;;  %v23914_v28 = vld [vmem:[#allocation101_spill] sm:$0xff] }
 0x332   :  { %v18577_v19 = vsub.f32 %v18530_v11, %v23899_v33  ;;  %3321 = vmatprep.mubr.f32.mxu1 %v23902_v0  ;;  %v21727_v33 = vand.u32 4294901760, %v23904_v26  ;;  %v23905_v11 = vld [vmem:[#allocation19_spill] sm:$0xff]  ;;  %10836 = vmatprep.subr.bf16.mxu1 %v17718_v52  ;;  %v18599_v0 = vsub.f32 %v316_v9, %v18579_v38  ;;  %23908 = vst [vmem:[#allocation260_spill] sm:$0xff] %v18601_v62 }
 0x333   :  { %v23906_v40 = vand.u32 4294901760, %v23905_v11  ;;  %11586 = vmatpush1.bf16.msra.mxu0 %v17749_v13  ;;  %v8668_v11 = vsub.f32 %v23901_v29, %v23910_v42  ;;  %v319_v9 = vmul.f32 %v17245_v50, %v117_v14  ;;  %3327 = vmatmul.mubr.f32.gmra.mrb[6].mxu1 %v23912_v63  ;;  %v18620_v13 = vsub.f32 %v655_v20, %v18601_v62  ;;  %v23915_v42 = vld [vmem:[#allocation257_spill] sm:$0xff] }
 0x334   :  { %23907 = vst [vmem:[#allocation248_spill] sm:$0xff] %v18599_v0  ;;  %v8680_v52 = vsub.f32 %v23904_v26, %v21727_v33  ;;  %11588 = vmatprep.subr.bf16.mxu0 %v17901_v60  ;;  %v21728_v7 = vand.u32 4294901760, %v18599_v0  ;;  %v21729_v30 = vand.u32 4294901760, %v23915_v42  ;;  %v23916_v33 = vand.u32 4294901760, %v17689_v3 }
 0x335   :  { %8219 = vmatmul.mubr.f32.gmra.mrb[4].mxu0 %v23906_v40  ;;  %v18612_v40 = vand.u32 4294901760, %v315_v10  ;;  %23913 = vst [vmem:[#allocation262_spill] sm:$0xff] %v18620_v13  ;;  %10838 = vmatpush1.bf16.msra.mxu1 %v17767_v55  ;;  %v8669_v14 = vand.u32 4294901760, %v8668_v11  ;;  %v18630_v60 = vand.u32 4294901760, %v319_v9  ;;  %v23919_v63 = vand.u32 4294901760, %v17663_v2 }
 0x336   :  { %8229 = vmatprep.mubr.f32.mxu0 %v23909_v32  ;;  %v21732_v32 = vand.u32 4294901760, %v23914_v28  ;;  %3337 = vmatprep.mubr.f32.mxu1 %v23916_v33  ;;  %v8681_v24 = vand.u32 4294901760, %v8680_v52  ;;  %v18638_v20 = vsub.f32 %v18599_v0, %v21728_v7  ;;  %v21730_v3 = vand.u32 4294901760, %v18620_v13  ;;  %v23922_v52 = vld [vmem:[#allocation108_spill] sm:$0xff] }
 0x337   :  { %23911 = vst [vmem:[#allocation258_spill] sm:$0xff] %v18612_v40  ;;  %v18628_v53 = vsub.f32 %v315_v10, %v18612_v40  ;;  %23918 = vst [vmem:[#allocation268_spill] sm:$0xff] %v18630_v60  ;;  %10840 = vmatprep.subr.bf16.mxu1 %v17857_v45  ;;  %v8686_v10 = vsub.f32 %v23915_v42, %v21729_v30  ;;  %v23920_v2 = vand.u32 4294901760, %v17759_v34  ;;  %11590 = vmatpush1.bf16.msra.mxu0 %v17939_v57  ;;  %v122_v7 = vld [vmem:[%s20346_s2 + $0x358] sm:$0xff]  ;;  %v125_v34 = vld [vmem:[%s20346_s2 + $0x370] sm:$0xff] }
 0x338   :  { %v8674_v55 = vsub.f32 %v23914_v28, %v21732_v32  ;;  %v18650_v45 = vpack.c.bf16 %v8681_v24, %v8669_v14  ;;  %v18654_v11 = vsub.f32 %v319_v9, %v18630_v60  ;;  %v23923_v30 = vand.u32 4294901760, %v17783_v36  ;;  %11592 = vmatprep.subr.bf16.mxu0 %v18088_v16 }
 0x339   :  { %23917 = vst [vmem:[#allocation264_spill] sm:$0xff] %v18628_v53  ;;  %8235 = vmatmul.mubr.f32.gmra.mrb[6].mxu0 %v23919_v63  ;;  %v21731_v33 = vand.u32 4294901760, %v18628_v53  ;;  %v21733_v63 = vand.u32 4294901760, %v23922_v52  ;;  %v18667_v57 = vsub.f32 %v18620_v13, %v21730_v3  ;;  %v8687_v9 = vand.u32 4294901760, %v8686_v10  ;;  %10842 = vmatpush1.bf16.msra.mxu1 %v17922_v17 }
 0x33a   :  { %8245 = vmatprep.mubr.f32.mxu0 %v23920_v2  ;;  %23921 = vst [vmem:[#allocation266_spill] sm:$0xff] %v18654_v11  ;;  %3343 = vmatmul.mubr.f32.gmra.mrb[8].mxu1 %v23923_v30  ;;  %v8675_v24 = vand.u32 4294901760, %v8674_v55  ;;  %v23924_v14 = vand.u32 4294901760, %v17825_v59  ;;  %v21734_v16 = vand.u32 4294901760, %v18654_v11  ;;  %v23925_v2 = vld [vmem:[#allocation261_spill] sm:$0xff]  ;;  %v126_v59 = vld [vmem:[%s20346_s2 + $0x378] sm:$0xff] }
 0x33b   :  { %v18675_v36 = vsub.f32 %v18628_v53, %v21731_v33  ;;  %v3832_v30 = vsub.f32 %v23922_v52, %v21733_v63  ;;  %v21735_v3 = vand.u32 4294901760, %v23925_v2  ;;  %v23926_v55 = vand.u32 4294901760, %v17812_v25  ;;  %10844 = vmatprep.subr.bf16.mxu1 %v18012_v41  ;;  %v23927_v33 = vld [vmem:[#allocation111_spill] sm:$0xff]  ;;  %11594 = vmatpush1.bf16.msra.mxu0 %v18114_v37  ;;  %v23967_v53 = vld [vmem:[#allocation145_spill] sm:$0xff] }
 0x33c   :  { %3353 = vmatprep.mubr.f32.mxu1 %v23924_v14  ;;  %v18689_v10 = vpack.c.bf16 %v8687_v9, %v8675_v24  ;;  %v324_v14 = vmul.f32 %v17128_v21, %v122_v7  ;;  %v21736_v32 = vand.u32 4294901760, %v23927_v33  ;;  %v121_v63 = vld [vmem:[%s20346_s2 + $0x350] sm:$0xff]  ;;  %v23928_v25 = vand.u32 4294901760, %v17842_v61  ;;  %11596 = vmatprep.subr.bf16.mxu0 %v18248_v44 }
 0x33d   :  { %8251 = vmatmul.mubr.f32.gmra.mrb[8].mxu0 %v23926_v55  ;;  %v18706_v7 = vsub.f32 %v18654_v11, %v21734_v16  ;;  %v3833_v24 = vand.u32 4294901760, %v3832_v30  ;;  %v3844_v9 = vsub.f32 %v23925_v2, %v21735_v3  ;;  %v23929_v55 = vand.u32 4294901760, %v17855_v8  ;;  %10846 = vmatpush1.bf16.msra.mxu1 %v18023_v6 }
 0x33e   :  { %8261 = vmatprep.mubr.f32.mxu0 %v23928_v25  ;;  %v18714_v61 = vand.u32 4294901760, %v324_v14  ;;  %v3838_v37 = vsub.f32 %v23927_v33, %v21736_v32  ;;  %v23931_v25 = vld [vmem:[#allocation259_spill] sm:$0xff]  ;;  %v328_v16 = vmul.f32 %v17202_v49, %v126_v59  ;;  %v23932_v30 = vand.u32 4294901760, %v17963_v23  ;;  %10848 = vmatprep.subr.bf16.mxu1 %v18164_v35 }
 0x33f   :  { %3359 = vmatmul.mubr.f32.gmra.mrb[10].mxu1 %v23929_v55  ;;  %v21737_v41 = vand.u32 4294901760, %v23931_v25  ;;  %v3845_v55 = vand.u32 4294901760, %v3844_v9  ;;  %v323_v44 = vmul.f32 %v17225_v27, %v121_v63  ;;  %v327_v3 = vmul.f32 %v17245_v50, %v125_v34  ;;  %11598 = vmatpush1.bf16.msra.mxu0 %v18320_v12 }
 0x340   :  { %23930 = vst [vmem:[#allocation269_spill] sm:$0xff] %v18714_v61  ;;  %3369 = vmatprep.mubr.f32.mxu1 %v23932_v30  ;;  %v23933_v17 = vand.u32 4294901760, %v17886_v43  ;;  %v18731_v32 = vsub.f32 %v324_v14, %v18714_v61  ;;  %v3839_v59 = vand.u32 4294901760, %v3838_v37  ;;  %v658_v6 = vsel %vm617_vm0, %v328_v16, 0  ;;  %11600 = vmatprep.subr.bf16.mxu0 %v18470_v48  ;;  %v23941_v30 = vld [vmem:[#allocation263_spill] sm:$0xff]  ;;  %v24069_v61 = vld [vmem:[#allocation290_spill] sm:$0xff] }
 0x341   :  { %v3850_v23 = vsub.f32 %v23931_v25, %v21737_v41  ;;  %v23935_v9 = vand.u32 4294901760, %v17991_v39  ;;  %v18740_v63 = vpack.c.bf16 %v3845_v55, %v3833_v24  ;;  %v18742_v43 = vand.u32 4294901760, %v658_v6  ;;  %v23940_v39 = vld [vmem:[#allocation117_spill] sm:$0xff]  ;;  %10850 = vmatpush1.bf16.msra.mxu1 %v18193_v58 }
 0x342   :  { %8267 = vmatmul.mubr.f32.gmra.mrb[10].mxu0 %v23933_v17  ;;  %23934 = vst [vmem:[#allocation271_spill] sm:$0xff] %v18731_v32  ;;  %v18744_v35 = vand.u32 4294901760, %v323_v44  ;;  %v18746_v34 = vand.u32 4294901760, %v327_v3  ;;  %v23939_v17 = vand.u32 4294901760, %v17998_v18  ;;  %v21738_v16 = vand.u32 4294901760, %v18731_v32  ;;  %10852 = vmatprep.subr.bf16.mxu1 %v18297_v54  ;;  %v23949_v41 = vld [vmem:[#allocation97_spill] sm:$0xff] }
 0x343   :  { %8277 = vmatprep.mubr.f32.mxu0 %v23935_v9  ;;  %23936 = vst [vmem:[#allocation276_spill] sm:$0xff] %v18742_v43  ;;  %v3851_v14 = vand.u32 4294901760, %v3850_v23  ;;  %v21739_v37 = vand.u32 4294901760, %v23940_v39  ;;  %v21740_v12 = vand.u32 4294901760, %v23941_v30  ;;  %v23942_v24 = vand.u32 4294901760, %v18077_v5  ;;  %v130_v23 = vld [vmem:[%s20346_s2 + $0x398] sm:$0xff]  ;;  %11602 = vmatpush1.bf16.msra.mxu0 %v18489_v31 }
 0x344   :  { %23937 = vst [vmem:[#allocation274_spill] sm:$0xff] %v18744_v35  ;;  %23938 = vst [vmem:[#allocation277_spill] sm:$0xff] %v18746_v34  ;;  %3375 = vmatmul.mubr.f32.gmra.mrb[12].mxu1 %v23939_v17  ;;  %v18758_v55 = vsub.f32 %v658_v6, %v18742_v43  ;;  %v18761_v18 = vsub.f32 %v323_v44, %v18744_v35  ;;  %v18764_v48 = vsub.f32 %v327_v3, %v18746_v34  ;;  %v23946_v9 = vld [vmem:[#allocation114_spill] sm:$0xff]  ;;  %v23948_v6 = vld [vmem:[#allocation265_spill] sm:$0xff] }
 0x345   :  { %3385 = vmatprep.mubr.f32.mxu1 %v23942_v24  ;;  %v21741_v17 = vand.u32 4294901760, %v23946_v9  ;;  %v23947_v5 = vand.u32 4294901760, %v18003_v1  ;;  %v18776_v58 = vsub.f32 %v18731_v32, %v21738_v16  ;;  %v18778_v44 = vpack.c.bf16 %v3851_v14, %v3839_v59  ;;  %v134_v14 = vld [vmem:[%s20346_s2 + $0x3b8] sm:$0xff]  ;;  %v23951_v16 = vld [vmem:[#allocation103_spill] sm:$0xff]  ;;  %11604 = vmatprep.subr.bf16.mxu0 %v18650_v45 }
 0x346   :  { %23943 = vst [vmem:[#allocation278_spill] sm:$0xff] %v18758_v55  ;;  %23944 = vst [vmem:[#allocation284_spill] sm:$0xff] %v18761_v18  ;;  %v8692_v3 = vsub.f32 %v23940_v39, %v21739_v37  ;;  %v23950_v8 = vand.u32 4294901760, %v23949_v41  ;;  %v21742_v1 = vand.u32 4294901760, %v18758_v55  ;;  %v21745_v54 = vand.u32 4294901760, %v18761_v18  ;;  %10854 = vmatpush1.bf16.msra.mxu1 %v18341_v4  ;;  %v23958_v4 = vld [vmem:[#allocation226_spill] sm:$0xff] }
 0x347   :  { %23945 = vst [vmem:[#allocation280_spill] sm:$0xff] %v18764_v48  ;;  %8283 = vmatmul.mubr.f32.gmra.mrb[12].mxu0 %v23947_v5  ;;  %v8704_v59 = vsub.f32 %v23941_v30, %v21740_v12  ;;  %v23952_v37 = vand.u32 4294901760, %v23951_v16  ;;  %v3856_v24 = vsub.f32 %v23946_v9, %v21741_v17  ;;  %v23953_v5 = vld [vmem:[#allocation124_spill] sm:$0xff]  ;;  %10856 = vmatprep.subr.bf16.mxu1 %v23958_v4  ;;  %v23960_v31 = vand.u32 4294901760, %v23948_v6 }
 0x348   :  { %8293 = vmatprep.mubr.f32.mxu0 %v23950_v8  ;;  %v8693_v41 = vand.u32 4294901760, %v8692_v3  ;;  %v332_v8 = vmul.f32 %v17128_v21, %v130_v23  ;;  %v23954_v12 = vand.u32 4294901760, %v23953_v5  ;;  %v18810_v16 = vsub.f32 %v18758_v55, %v21742_v1  ;;  %v23956_v5 = vld [vmem:[#allocation100_spill] sm:$0xff]  ;;  %11606 = vmatpush1.bf16.msra.mxu0 %v18689_v10 }
 0x349   :  { %3391 = vmatmul.mubr.f32.gmra.mrb[14].mxu1 %v23952_v37  ;;  %v18815_v45 = vsub.f32 %v18761_v18, %v21745_v54  ;;  %v23955_v37 = vand.u32 4294901760, %v18764_v48  ;;  %v8705_v3 = vand.u32 4294901760, %v8704_v59  ;;  %v3857_v1 = vand.u32 4294901760, %v3856_v24  ;;  %v23963_v18 = vld [vmem:[#allocation136_spill] sm:$0xff]  ;;  %v23970_v24 = vld [vmem:[#allocation270_spill] sm:$0xff] }
 0x34a   :  { %3401 = vmatprep.mubr.f32.mxu1 %v23954_v12  ;;  %v23957_v12 = vand.u32 4294901760, %v23956_v5  ;;  %v18825_v17 = vand.u32 4294901760, %v332_v8  ;;  %v3868_v55 = vsub.f32 %v23948_v6, %v23960_v31  ;;  %v336_v54 = vmul.f32 %v17202_v49, %v134_v14  ;;  %10858 = vmatpush1.bf16.msra.mxu1 %v18481_v47  ;;  %v23974_v5 = vld [vmem:[#allocation125_spill] sm:$0xff] }
 0x34b   :  { %v18820_v23 = vsub.f32 %v18764_v48, %v23955_v37  ;;  %v129_v37 = vld [vmem:[%s20346_s2 + $0x390] sm:$0xff]  ;;  %v11607_v4 = vpack.c.bf16 %v8705_v3, %v8693_v41  ;;  %v23964_v31 = vand.u32 4294901760, %v23963_v18  ;;  %v23968_v10 = vand.u32 4294901760, %v23967_v53  ;;  %10860 = vmatprep.subr.bf16.mxu1 %v18563_v15  ;;  %v23975_v41 = vld [vmem:[#allocation157_spill] sm:$0xff] }
 0x34c   :  { %8299 = vmatmul.mubr.f32.gmra.mrb[14].mxu0 %v23957_v12  ;;  %23959 = vst [vmem:[#allocation285_spill] sm:$0xff] %v18825_v17  ;;  %v23961_v48 = vld [vmem:[#allocation139_spill] sm:$0xff]  ;;  %v18843_v14 = vsub.f32 %v332_v8, %v18825_v17  ;;  %v3869_v11 = vand.u32 4294901760, %v3868_v55  ;;  %v661_v32 = vsel %vm617_vm0, %v336_v54, 0  ;;  %v331_v18 = vmul.f32 %v17225_v27, %v129_v37  ;;  %v23972_v54 = vld [vmem:[#allocation286_spill] sm:$0xff] }
 0x34d   :  { %v23962_v59 = vand.u32 4294901760, %v23961_v48  ;;  %3407 = vmatmul.mubr.f32.gmra.mrb[16].mxu1 %v23964_v31  ;;  %v23966_v48 = vld [vmem:[#allocation120_spill] sm:$0xff]  ;;  %v18850_v12 = vand.u32 4294901760, %v661_v32  ;;  %v23971_v3 = vld [vmem:[#allocation123_spill] sm:$0xff]  ;;  %v23973_v8 = vand.u32 4294901760, %v23972_v54  ;;  %v21766_v37 = vand.u32 4294901760, %v23974_v5  ;;  %11608 = vmatprep.subr.bf16.mxu0 %v11607_v4 }
 0x34e   :  { %23965 = vst [vmem:[#allocation305_spill] sm:$0xff] %v18843_v14  ;;  %3417 = vmatprep.mubr.f32.mxu1 %v23968_v10  ;;  %v133_v55 = vld [vmem:[%s20346_s2 + $0x3b0] sm:$0xff]  ;;  %v21765_v53 = vand.u32 4294901760, %v18843_v14  ;;  %v10867_v47 = vpack.c.bf16 %v3869_v11, %v3857_v1  ;;  %v23976_v31 = vand.u32 4294901760, %v23975_v41  ;;  %v23978_v54 = vand.u32 4294901760, %v23970_v24  ;;  %10862 = vmatpush1.bf16.msra.mxu1 %v18588_v46 }
 0x34f   :  { %8309 = vmatprep.mubr.f32.mxu0 %v23962_v59  ;;  %v21758_v59 = vand.u32 4294901760, %v23966_v48  ;;  %23969 = vst [vmem:[#allocation292_spill] sm:$0xff] %v18850_v12  ;;  %v18869_v13 = vsub.f32 %v661_v32, %v18850_v12  ;;  %v23980_v11 = vand.u32 4294901760, %v23971_v3  ;;  %v23981_v41 = vld [vmem:[#allocation167_spill] sm:$0xff]  ;;  %v335_v0 = vmul.f32 %v17245_v50, %v133_v55  ;;  %v23983_v12 = vld [vmem:[#allocation342_spill] sm:$0xff]  ;;  %10864 = vmatprep.subr.bf16.mxu1 %v18740_v63 }
 0x350   :  { %8315 = vmatmul.mubr.f32.gmra.mrb[16].mxu0 %v23973_v8  ;;  %v8710_v15 = vsub.f32 %v23970_v24, %v23978_v54  ;;  %v18874_v8 = vand.u32 4294901760, %v331_v18  ;;  %v18887_v32 = vsub.f32 %v18843_v14, %v21765_v53  ;;  %v3874_v54 = vsub.f32 %v23974_v5, %v21766_v37  ;;  %v137_v55 = vld [vmem:[%s20346_s2 + $0x3d0] sm:$0xff]  ;;  %v23986_v37 = vld [vmem:[#allocation185_spill] sm:$0xff]  ;;  %v24094_v5 = vld [vmem:[#allocation8_spill] sm:$0xff] }
 0x351   :  { %v8698_v10 = vsub.f32 %v23966_v48, %v21758_v59  ;;  %8325 = vmatprep.mubr.f32.mxu0 %v23976_v31  ;;  %23977 = vst [vmem:[#allocation294_spill] sm:$0xff] %v18869_v13  ;;  %v3862_v1 = vsub.f32 %v23971_v3, %v23980_v11  ;;  %v138_v59 = vld [vmem:[%s20346_s2 + $0x3d8] sm:$0xff]  ;;  %v23982_v31 = vand.u32 4294901760, %v23981_v41  ;;  %v23984_v34 = vand.u32 4294901760, %v23983_v12  ;;  %v23989_v41 = vld [vmem:[#allocation346_spill] sm:$0xff] }
 0x352   :  { %23979 = vst [vmem:[#allocation295_spill] sm:$0xff] %v18874_v8  ;;  %v142_v11 = vld [vmem:[%s20346_s2 + $0x3f8] sm:$0xff]  ;;  %v23987_v14 = vand.u32 4294901760, %v23986_v37  ;;  %v3875_v12 = vand.u32 4294901760, %v3874_v54  ;;  %v18910_v46 = vand.u32 4294901760, %v335_v0  ;;  %10866 = vmatpush1.bf16.msra.mxu1 %v18778_v44 }
 0x353   :  { %3423 = vmatmul.mubr.f32.gmra.mrb[18].mxu1 %v23982_v31  ;;  %v8699_v4 = vand.u32 4294901760, %v8698_v10  ;;  %v8711_v31 = vand.u32 4294901760, %v8710_v15  ;;  %v18901_v10 = vsub.f32 %v331_v18, %v18874_v8  ;;  %v3863_v53 = vand.u32 4294901760, %v3862_v1  ;;  %v23992_v37 = vld [vmem:[#allocation224_spill] sm:$0xff]  ;;  %10868 = vmatprep.subr.bf16.mxu1 %v10867_v47 }
 0x354   :  { %3433 = vmatprep.mubr.f32.mxu1 %v23984_v34  ;;  %8331 = vmatmul.mubr.f32.gmra.mrb[18].mxu0 %v23987_v14  ;;  %23988 = vst [vmem:[#allocation298_spill] sm:$0xff] %v18910_v46  ;;  %v340_v15 = vmul.f32 %v17128_v21, %v138_v59  ;;  %v23990_v18 = vand.u32 4294901760, %v23989_v41  ;;  %v23991_v1 = vand.u32 4294901760, %v18869_v13  ;;  %v344_v63 = vmul.f32 %v17202_v49, %v142_v11  ;;  %v24004_v47 = vld [vmem:[#allocation132_spill] sm:$0xff] }
 0x355   :  { %23985 = vst [vmem:[#allocation300_spill] sm:$0xff] %v18901_v10  ;;  %v11609_v17 = vpack.c.bf16 %v8711_v31, %v8699_v4  ;;  %v21775_v14 = vand.u32 4294901760, %v18901_v10  ;;  %v23993_v34 = vand.u32 4294901760, %v23992_v37  ;;  %v10869_v54 = vpack.c.bf16 %v3875_v12, %v3863_v53  ;;  %v23997_v31 = vld [vmem:[#allocation129_spill] sm:$0xff] }
 0x356   :  { %8341 = vmatprep.mubr.f32.mxu0 %v23990_v18  ;;  %v18918_v8 = vsub.f32 %v18869_v13, %v23991_v1  ;;  %v18925_v35 = vsub.f32 %v335_v0, %v18910_v46  ;;  %v18927_v59 = vand.u32 4294901760, %v340_v15  ;;  %v339_v41 = vmul.f32 %v17225_v27, %v137_v55  ;;  %v141_v18 = vld [vmem:[%s20346_s2 + $0x3f0] sm:$0xff] }
 0x357   :  { %3439 = vmatmul.mubr.f32.gmra.mrb[20].mxu1 %v23993_v34  ;;  %v23996_v4 = vand.u32 4294901760, %v18513_v51  ;;  %v18940_v0 = vsub.f32 %v18901_v10, %v21775_v14  ;;  %v664_v53 = vsel %vm617_vm0, %v344_v63, 0  ;;  %v21776_v55 = vand.u32 4294901760, %v23997_v31  ;;  %v23998_v34 = vld [vmem:[#allocation229_spill] sm:$0xff]  ;;  %11610 = vmatpush1.bf16.msra.mxu0 %v11609_v17 }
 0x358   :  { %23994 = vst [vmem:[#allocation302_spill] sm:$0xff] %v18925_v35  ;;  %23995 = vst [vmem:[#allocation304_spill] sm:$0xff] %v18927_v59  ;;  %v23999_v12 = vand.u32 4294901760, %v23998_v34  ;;  %v21777_v51 = vand.u32 4294901760, %v18925_v35  ;;  %v18948_v1 = vsub.f32 %v340_v15, %v18927_v59  ;;  %v18950_v44 = vand.u32 4294901760, %v664_v53  ;;  %10870 = vmatpush1.bf16.msra.mxu1 %v10869_v54 }
 0x359   :  { %3449 = vmatprep.mubr.f32.mxu1 %v23996_v4  ;;  %v18952_v37 = vand.u32 4294901760, %v339_v41  ;;  %v24003_v4 = vand.u32 4294901760, %v18545_v56  ;;  %v3880_v34 = vsub.f32 %v23997_v31, %v21776_v55  ;;  %v343_v14 = vmul.f32 %v17245_v50, %v141_v18 }
 0x35a   :  { %8347 = vmatmul.mubr.f32.gmra.mrb[20].mxu0 %v23999_v12  ;;  %24000 = vst [vmem:[#allocation308_spill] sm:$0xff] %v18948_v1  ;;  %24001 = vst [vmem:[#allocation306_spill] sm:$0xff] %v18950_v44  ;;  %v21778_v12 = vand.u32 4294901760, %v24004_v47  ;;  %v24005_v15 = vand.u32 4294901760, %v18572_v22  ;;  %v18967_v11 = vsub.f32 %v18925_v35, %v21777_v51  ;;  %v18971_v17 = vsub.f32 %v664_v53, %v18950_v44  ;;  %v24010_v51 = vld [vmem:[#allocation134_spill] sm:$0xff] }
 0x35b   :  { %24002 = vst [vmem:[#allocation309_spill] sm:$0xff] %v18952_v37  ;;  %8357 = vmatprep.mubr.f32.mxu0 %v24003_v4  ;;  %v18974_v4 = vsub.f32 %v339_v41, %v18952_v37  ;;  %v24008_v55 = vand.u32 4294901760, %v18638_v20  ;;  %v3881_v18 = vand.u32 4294901760, %v3880_v34  ;;  %v21785_v63 = vand.u32 4294901760, %v24010_v51 }
 0x35c   :  { %3455 = vmatmul.mubr.f32.gmra.mrb[22].mxu1 %v24005_v15  ;;  %24006 = vst [vmem:[#allocation311_spill] sm:$0xff] %v18971_v17  ;;  %v3892_v22 = vsub.f32 %v24004_v47, %v21778_v12  ;;  %v18981_v15 = vand.u32 4294901760, %v343_v14  ;;  %v24011_v56 = vand.u32 4294901760, %v18577_v19  ;;  %v24012_v41 = vand.u32 4294901760, %v18948_v1 }
 0x35d   :  { %24007 = vst [vmem:[#allocation316_spill] sm:$0xff] %v18974_v4  ;;  %3465 = vmatprep.mubr.f32.mxu1 %v24008_v55  ;;  %v21786_v54 = vand.u32 4294901760, %v18971_v17  ;;  %v24013_v34 = vand.u32 4294901760, %v18667_v57  ;;  %v8716_v19 = vsub.f32 %v24010_v51, %v21785_v63  ;;  %v24016_v10 = vand.u32 4294901760, %v18675_v36 }
 0x35e   :  { %24009 = vst [vmem:[#allocation314_spill] sm:$0xff] %v18981_v15  ;;  %8363 = vmatmul.mubr.f32.gmra.mrb[22].mxu0 %v24011_v56  ;;  %v3511_v20 = vsub.f32 %v18948_v1, %v24012_v41  ;;  %v3893_v12 = vand.u32 4294901760, %v3892_v22  ;;  %v18995_v35 = vsub.f32 %v343_v14, %v18981_v15  ;;  %v24015_v56 = vld [vmem:[#allocation135_spill] sm:$0xff]  ;;  %v24017_v57 = vand.u32 4294901760, %v18974_v4 }
 0x35f   :  { %8373 = vmatprep.mubr.f32.mxu0 %v24013_v34  ;;  %v8419_v55 = vsub.f32 %v18971_v17, %v21786_v54  ;;  %v24018_v14 = vld [vmem:[#allocation279_spill] sm:$0xff]  ;;  %v24019_v1 = vand.u32 4294901760, %v18776_v58  ;;  %v8717_v36 = vand.u32 4294901760, %v8716_v19  ;;  %v146_v54 = vld [vmem:[%s20346_s2 + $0x418] sm:$0xff]  ;;  %v24021_v34 = vand.u32 4294901760, %v18706_v7  ;;  %v24023_v19 = vld [vmem:[#allocation137_spill] sm:$0xff] }
 0x360   :  { %24014 = vst [vmem:[#allocation177_spill] sm:$0xff] %v18995_v35  ;;  %3471 = vmatmul.mubr.f32.gmra.mrb[24].mxu1 %v24016_v10  ;;  %v3512_v41 = vand.u32 4294901760, %v3511_v20  ;;  %v19009_v22 = vsub.f32 %v18974_v4, %v24017_v57  ;;  %v10871_v63 = vpack.c.bf16 %v3893_v12, %v3881_v18  ;;  %v24020_v10 = vand.u32 4294901760, %v24015_v56  ;;  %v150_v57 = vld [vmem:[%s20346_s2 + $0x438] sm:$0xff] }
 0x361   :  { %3481 = vmatprep.mubr.f32.mxu1 %v24019_v1  ;;  %v8420_v58 = vand.u32 4294901760, %v8419_v55  ;;  %v24022_v12 = vand.u32 4294901760, %v24018_v14  ;;  %v24024_v53 = vand.u32 4294901760, %v18810_v16  ;;  %v24025_v4 = vand.u32 4294901760, %v18995_v35  ;;  %v24026_v7 = vld [vmem:[#allocation140_spill] sm:$0xff]  ;;  %v24027_v55 = vld [vmem:[#allocation141_spill] sm:$0xff] }
 0x362   :  { %v8728_v20 = vsub.f32 %v24015_v56, %v24020_v10  ;;  %8379 = vmatmul.mubr.f32.gmra.mrb[24].mxu0 %v24021_v34  ;;  %v3518_v1 = vand.u32 4294901760, %v19009_v22  ;;  %10872 = vmatprep.subr.bf16.mxu1 %v10871_v63  ;;  %v145_v22 = vld [vmem:[%s20346_s2 + $0x410] sm:$0xff]  ;;  %v24029_v16 = vand.u32 4294901760, %v24023_v19  ;;  %v24030_v15 = vand.u32 4294901760, %v18887_v32 }
 0x363   :  { %v3886_v18 = vsub.f32 %v24018_v14, %v24022_v12  ;;  %8389 = vmatprep.mubr.f32.mxu0 %v24024_v53  ;;  %v8425_v17 = vsub.f32 %v18995_v35, %v24025_v4  ;;  %v24028_v12 = vand.u32 4294901760, %v18815_v45  ;;  %v348_v53 = vmul.f32 %v17128_v21, %v146_v54 }
 0x364   :  { %v8729_v13 = vand.u32 4294901760, %v8728_v20  ;;  %v3898_v63 = vsub.f32 %v24023_v19, %v24029_v16  ;;  %v352_v4 = vmul.f32 %v17202_v49, %v150_v57  ;;  %v149_v20 = vld [vmem:[%s20346_s2 + $0x430] sm:$0xff]  ;;  %v24031_v45 = vand.u32 4294901760, %v24026_v7 }
 0x365   :  { %3487 = vmatmul.mubr.f32.gmra.mrb[26].mxu1 %v24028_v12  ;;  %v3887_v10 = vand.u32 4294901760, %v3886_v18  ;;  %v8426_v34 = vand.u32 4294901760, %v8425_v17  ;;  %v24032_v12 = vand.u32 4294901760, %v24027_v55  ;;  %v24033_v54 = vand.u32 4294901760, %v18820_v23 }
 0x366   :  { %3497 = vmatprep.mubr.f32.mxu1 %v24030_v15  ;;  %v11611_v35 = vpack.c.bf16 %v8729_v13, %v8717_v36  ;;  %v8722_v18 = vsub.f32 %v24026_v7, %v24031_v45  ;;  %v3899_v57 = vand.u32 4294901760, %v3898_v63  ;;  %v19061_v37 = vand.u32 4294901760, %v348_v53 }
 0x367   :  { %v8734_v16 = vsub.f32 %v24027_v55, %v24032_v12  ;;  %8395 = vmatmul.mubr.f32.gmra.mrb[26].mxu0 %v24033_v54  ;;  %v667_v44 = vsel %vm617_vm0, %v352_v4, 0  ;;  %v347_v32 = vmul.f32 %v17225_v27, %v145_v22  ;;  %v24035_v13 = vand.u32 4294901760, %v18918_v8  ;;  %v24040_v22 = vld [vmem:[#allocation275_spill] sm:$0xff] }
 0x368   :  { %24034 = vst [vmem:[#allocation318_spill] sm:$0xff] %v19061_v37  ;;  %11612 = vmatprep.subr.bf16.mxu0 %v11611_v35  ;;  %v8723_v17 = vand.u32 4294901760, %v8722_v18  ;;  %v19067_v36 = vand.u32 4294901760, %v667_v44  ;;  %v351_v45 = vmul.f32 %v17245_v50, %v149_v20  ;;  %v24037_v23 = vand.u32 4294901760, %v18940_v0 }
 0x369   :  { %8405 = vmatprep.mubr.f32.mxu0 %v24035_v13  ;;  %v8735_v15 = vand.u32 4294901760, %v8734_v16  ;;  %v10873_v63 = vpack.c.bf16 %v3899_v57, %v3887_v10  ;;  %v19073_v12 = vsub.f32 %v348_v53, %v19061_v37  ;;  %v19075_v4 = vand.u32 4294901760, %v347_v32  ;;  %v24043_v16 = vld [vmem:[#allocation142_spill] sm:$0xff]  ;;  %v24052_v37 = vld [vmem:[#allocation149_spill] sm:$0xff] }
 0x36a   :  { %24036 = vst [vmem:[#allocation324_spill] sm:$0xff] %v19067_v36  ;;  %3503 = vmatmul.mubr.f32.gmra.mrb[28].mxu1 %v24037_v23  ;;  %v21802_v54 = vand.u32 4294901760, %v24040_v22  ;;  %v19079_v35 = vsub.f32 %v667_v44, %v19067_v36  ;;  %v19081_v18 = vand.u32 4294901760, %v351_v45  ;;  %v21801_v20 = vand.u32 4294901760, %v24043_v16  ;;  %v24046_v57 = vld [vmem:[#allocation146_spill] sm:$0xff]  ;;  %v154_v23 = vld [vmem:[%s20346_s2 + $0x458] sm:$0xff] }
 0x36b   :  { %24038 = vst [vmem:[#allocation320_spill] sm:$0xff] %v19073_v12  ;;  %24039 = vst [vmem:[#allocation325_spill] sm:$0xff] %v19075_v4  ;;  %3513 = vmatprep.mubr.f32.mxu1 %v3512_v41  ;;  %v11613_v8 = vpack.c.bf16 %v8735_v15, %v8723_v17  ;;  %v24044_v0 = vand.u32 4294901760, %v18967_v11  ;;  %10874 = vmatpush1.bf16.msra.mxu1 %v10873_v63  ;;  %v21803_v10 = vand.u32 4294901760, %v19073_v12  ;;  %v21804_v44 = vand.u32 4294901760, %v24046_v57  ;;  %v24048_v15 = vld [vmem:[#allocation147_spill] sm:$0xff] }
 0x36c   :  { %24041 = vst [vmem:[#allocation326_spill] sm:$0xff] %v19079_v35  ;;  %24042 = vst [vmem:[#allocation332_spill] sm:$0xff] %v19081_v18  ;;  %v19088_v53 = vsub.f32 %v347_v32, %v19075_v4  ;;  %v3904_v41 = vsub.f32 %v24040_v22, %v21802_v54  ;;  %v21807_v13 = vand.u32 4294901760, %v19079_v35  ;;  %v19096_v17 = vsub.f32 %v351_v45, %v19081_v18 }
 0x36d   :  { %8411 = vmatmul.mubr.f32.gmra.mrb[28].mxu0 %v24044_v0  ;;  %v3916_v11 = vsub.f32 %v24043_v16, %v21801_v20  ;;  %v21808_v32 = vand.u32 4294901760, %v24048_v15  ;;  %v3910_v45 = vsub.f32 %v24046_v57, %v21804_v44 }
 0x36e   :  { %24045 = vst [vmem:[#allocation329_spill] sm:$0xff] %v19088_v53  ;;  %8421 = vmatprep.mubr.f32.mxu0 %v8420_v58  ;;  %11614 = vmatpush1.bf16.msra.mxu0 %v11613_v8  ;;  %24047 = vst [vmem:[#allocation334_spill] sm:$0xff] %v19096_v17  ;;  %v3527_v58 = vsub.f32 %v19073_v12, %v21803_v10  ;;  %v21815_v63 = vand.u32 4294901760, %v19088_v53  ;;  %v3905_v8 = vand.u32 4294901760, %v3904_v41  ;;  %v158_v10 = vld [vmem:[%s20346_s2 + $0x478] sm:$0xff] }
 0x36f   :  { %3519 = vmatmul.mubr.f32.gmra.mrb[30].mxu1 %v3518_v1  ;;  %v8435_v0 = vsub.f32 %v19079_v35, %v21807_v13  ;;  %v3917_v54 = vand.u32 4294901760, %v3916_v11  ;;  %v3922_v1 = vsub.f32 %v24048_v15, %v21808_v32  ;;  %v3911_v12 = vand.u32 4294901760, %v3910_v45  ;;  %v153_v11 = vld [vmem:[%s20346_s2 + $0x450] sm:$0xff] }
 0x370   :  { %v3528_v41 = vand.u32 4294901760, %v3527_v58  ;;  %v3533_v44 = vsub.f32 %v19088_v53, %v21815_v63  ;;  %v356_v13 = vmul.f32 %v17128_v21, %v154_v23  ;;  %v24049_v32 = vand.u32 4294901760, %v19096_v17  ;;  %v24051_v63 = vld [vmem:[#allocation287_spill] sm:$0xff] }
 0x371   :  { %8427 = vmatmul.mubr.f32.gmra.mrb[30].mxu0 %v8426_v34  ;;  %v8436_v20 = vand.u32 4294901760, %v8435_v0  ;;  %v10875_v18 = vpack.c.bf16 %v3917_v54, %v3905_v8  ;;  %v3923_v4 = vand.u32 4294901760, %v3922_v1  ;;  %v157_v34 = vld [vmem:[%s20346_s2 + $0x470] sm:$0xff]  ;;  %v360_v23 = vmul.f32 %v17202_v49, %v158_v10 }
 0x372   :  { %v8441_v35 = vsub.f32 %v19096_v17, %v24049_v32  ;;  %3529 = vmatprep.mubr.f32.mxu1 %v3528_v41  ;;  %v3534_v58 = vand.u32 4294901760, %v3533_v44  ;;  %v19135_v45 = vand.u32 4294901760, %v356_v13  ;;  %v21823_v53 = vand.u32 4294901760, %v24051_v63  ;;  %v24062_v17 = vld [vmem:[#allocation150_spill] sm:$0xff] }
 0x373   :  { %8437 = vmatprep.mubr.f32.mxu0 %v8436_v20  ;;  %10876 = vmatprep.subr.bf16.mxu1 %v10875_v18  ;;  %v10877_v36 = vpack.c.bf16 %v3923_v4, %v3911_v12  ;;  %v21822_v32 = vand.u32 4294901760, %v24052_v37  ;;  %v355_v54 = vmul.f32 %v17225_v27, %v153_v11  ;;  %v670_v44 = vsel %vm617_vm0, %v360_v23, 0  ;;  %v24056_v18 = vld [vmem:[#allocation152_spill] sm:$0xff] }
 0x374   :  { %24050 = vst [vmem:[#allocation335_spill] sm:$0xff] %v19135_v45  ;;  %v8442_v0 = vand.u32 4294901760, %v8441_v35  ;;  %3535 = vmatmul.mubr.f32.gmra.mrb[32].mxu1 %v3534_v58  ;;  %v19142_v8 = vsub.f32 %v356_v13, %v19135_v45  ;;  %v8740_v10 = vsub.f32 %v24051_v63, %v21823_v53  ;;  %v359_v1 = vmul.f32 %v17245_v50, %v157_v34  ;;  %v24058_v58 = vld [vmem:[#allocation283_spill] sm:$0xff] }
 0x375   :  { %10878 = vmatpush1.bf16.msra.mxu1 %v10877_v36  ;;  %v19149_v35 = vand.u32 4294901760, %v670_v44  ;;  %v8752_v12 = vsub.f32 %v24052_v37, %v21822_v32  ;;  %v19154_v4 = vand.u32 4294901760, %v355_v54  ;;  %v21828_v20 = vand.u32 4294901760, %v24056_v18 }
 0x376   :  { %24053 = vst [vmem:[#allocation340_spill] sm:$0xff] %v19142_v8  ;;  %8443 = vmatmul.mubr.f32.gmra.mrb[32].mxu0 %v8442_v0  ;;  %v21833_v13 = vand.u32 4294901760, %v19142_v8  ;;  %v8741_v41 = vand.u32 4294901760, %v8740_v10  ;;  %v19158_v11 = vand.u32 4294901760, %v359_v1  ;;  %v21836_v23 = vand.u32 4294901760, %v24058_v58 }
 0x377   :  { %24054 = vst [vmem:[#allocation338_spill] sm:$0xff] %v19149_v35  ;;  %24055 = vst [vmem:[#allocation176_spill] sm:$0xff] %v19154_v4  ;;  %v19162_v34 = vsub.f32 %v670_v44, %v19149_v35  ;;  %v8753_v36 = vand.u32 4294901760, %v8752_v12  ;;  %v19165_v0 = vsub.f32 %v355_v54, %v19154_v4  ;;  %v8746_v32 = vsub.f32 %v24056_v18, %v21828_v20  ;;  %v162_v54 = vld [vmem:[%s20346_s2 + $0x498] sm:$0xff] }
 0x378   :  { %24057 = vst [vmem:[#allocation183_spill] sm:$0xff] %v19158_v11  ;;  %v3543_v53 = vsub.f32 %v19142_v8, %v21833_v13  ;;  %v19174_v10 = vsub.f32 %v359_v1, %v19158_v11  ;;  %v8758_v44 = vsub.f32 %v24058_v58, %v21836_v23  ;;  %v21841_v12 = vand.u32 4294901760, %v24062_v17 }
 0x379   :  { %24059 = vst [vmem:[#allocation184_spill] sm:$0xff] %v19162_v34  ;;  %24060 = vst [vmem:[#allocation310_spill] sm:$0xff] %v19165_v0  ;;  %v21842_v4 = vand.u32 4294901760, %v19162_v34  ;;  %v11615_v20 = vpack.c.bf16 %v8753_v36, %v8741_v41  ;;  %v21845_v35 = vand.u32 4294901760, %v19165_v0  ;;  %v8747_v45 = vand.u32 4294901760, %v8746_v32  ;;  %v24063_v36 = vld [vmem:[#allocation154_spill] sm:$0xff] }
 0x37a   :  { %24061 = vst [vmem:[#allocation331_spill] sm:$0xff] %v19174_v10  ;;  %v3544_v13 = vand.u32 4294901760, %v3543_v53  ;;  %v21852_v1 = vand.u32 4294901760, %v19174_v10  ;;  %v8759_v8 = vand.u32 4294901760, %v8758_v44  ;;  %v3928_v23 = vsub.f32 %v24062_v17, %v21841_v12  ;;  %v166_v32 = vld [vmem:[%s20346_s2 + $0x4b8] sm:$0xff] }
 0x37b   :  { %v8451_v11 = vsub.f32 %v19162_v34, %v21842_v4  ;;  %11616 = vmatprep.subr.bf16.mxu0 %v11615_v20  ;;  %v3549_v41 = vsub.f32 %v19165_v0, %v21845_v35  ;;  %v364_v53 = vmul.f32 %v17128_v21, %v162_v54  ;;  %v24064_v20 = vld [vmem:[#allocation158_spill] sm:$0xff]  ;;  %v161_v35 = vld [vmem:[%s20346_s2 + $0x490] sm:$0xff] }
 0x37c   :  { %3545 = vmatprep.mubr.f32.mxu1 %v3544_v13  ;;  %v8457_v44 = vsub.f32 %v19174_v10, %v21852_v1  ;;  %v11617_v12 = vpack.c.bf16 %v8759_v8, %v8747_v45  ;;  %v3929_v4 = vand.u32 4294901760, %v3928_v23  ;;  %v21857_v34 = vand.u32 4294901760, %v24064_v20  ;;  %v165_v54 = vld [vmem:[%s20346_s2 + $0x4b0] sm:$0xff] }
 0x37d   :  { %v8452_v46 = vand.u32 4294901760, %v8451_v11  ;;  %v3550_v0 = vand.u32 4294901760, %v3549_v41  ;;  %v24065_v13 = vand.u32 4294901760, %v24063_v36  ;;  %v19213_v43 = vand.u32 4294901760, %v364_v53  ;;  %v24067_v23 = vld [vmem:[#allocation159_spill] sm:$0xff] }
 0x37e   :  { %v8458_v45 = vand.u32 4294901760, %v8457_v44  ;;  %11618 = vmatpush1.bf16.msra.mxu0 %v11617_v12  ;;  %v3934_v8 = vsub.f32 %v24064_v20, %v21857_v34  ;;  %v21860_v1 = vand.u32 4294901760, %v24067_v23  ;;  %v368_v10 = vmul.f32 %v17202_v49, %v166_v32 }
 0x37f   :  { %v3940_v59 = vsub.f32 %v24063_v36, %v24065_v13  ;;  %24066 = vst [vmem:[#allocation186_spill] sm:$0xff] %v19213_v43  ;;  %8453 = vmatprep.mubr.f32.mxu0 %v8452_v46  ;;  %3551 = vmatmul.mubr.f32.gmra.mrb[34].mxu1 %v3550_v0  ;;  %v19221_v41 = vsub.f32 %v364_v53, %v19213_v43  ;;  %v21867_v32 = vand.u32 4294901760, %v24069_v61  ;;  %v170_v46 = vld [vmem:[%s20346_s2 + $0x4d8] sm:$0xff] }
 0x380   :  { %v363_v13 = vmul.f32 %v17225_v27, %v161_v35  ;;  %v367_v60 = vmul.f32 %v17245_v50, %v165_v54  ;;  %8459 = vmatmul.mubr.f32.gmra.mrb[34].mxu0 %v8458_v45  ;;  %v3935_v12 = vand.u32 4294901760, %v3934_v8  ;;  %v3946_v44 = vsub.f32 %v24067_v23, %v21860_v1  ;;  %v24073_v8 = vld [vmem:[#allocation164_spill] sm:$0xff] }
 0x381   :  { %v3941_v11 = vand.u32 4294901760, %v3940_v59  ;;  %24068 = vst [vmem:[#allocation225_spill] sm:$0xff] %v19221_v41  ;;  %v673_v34 = vsel %vm617_vm0, %v368_v10, 0  ;;  %v21868_v0 = vand.u32 4294901760, %v19221_v41  ;;  %v8764_v10 = vsub.f32 %v24069_v61, %v21867_v32 }
 0x382   :  { %v19234_v35 = vand.u32 4294901760, %v673_v34  ;;  %v19236_v53 = vand.u32 4294901760, %v363_v13  ;;  %v3947_v54 = vand.u32 4294901760, %v3946_v44  ;;  %v19238_v45 = vand.u32 4294901760, %v367_v60 }
 0x383   :  { %v10879_v59 = vpack.c.bf16 %v3941_v11, %v3929_v4  ;;  %v21873_v1 = vand.u32 4294901760, %v24073_v8  ;;  %v3559_v4 = vsub.f32 %v19221_v41, %v21868_v0  ;;  %v372_v44 = vmul.f32 %v17128_v21, %v170_v46  ;;  %v174_v0 = vld [vmem:[%s20346_s2 + $0x4f8] sm:$0xff] }
 0x384   :  { %24070 = vst [vmem:[#allocation9_spill] sm:$0xff] %v19234_v35  ;;  %24071 = vst [vmem:[#allocation337_spill] sm:$0xff] %v19236_v53  ;;  %v19248_v11 = vsub.f32 %v673_v34, %v19234_v35  ;;  %v19251_v43 = vsub.f32 %v363_v13, %v19236_v53  ;;  %v10881_v40 = vpack.c.bf16 %v3947_v54, %v3935_v12  ;;  %v8765_v32 = vand.u32 4294901760, %v8764_v10  ;;  %v24078_v12 = vld [vmem:[#allocation291_spill] sm:$0xff]  ;;  %v24079_v54 = vld [vmem:[#allocation296_spill] sm:$0xff] }
 0x385   :  { %24072 = vst [vmem:[#allocation341_spill] sm:$0xff] %v19238_v45  ;;  %10880 = vmatprep.subr.bf16.mxu1 %v10879_v59  ;;  %v19255_v62 = vsub.f32 %v367_v60, %v19238_v45  ;;  %v8776_v59 = vsub.f32 %v24073_v8, %v21873_v1  ;;  %v3560_v34 = vand.u32 4294901760, %v3559_v4  ;;  %v19265_v53 = vand.u32 4294901760, %v372_v44 }
 0x386   :  { %24074 = vst [vmem:[#allocation17_spill] sm:$0xff] %v19248_v11  ;;  %24075 = vst [vmem:[#allocation345_spill] sm:$0xff] %v19251_v43  ;;  %v21876_v41 = vand.u32 4294901760, %v19248_v11  ;;  %v21879_v13 = vand.u32 4294901760, %v19251_v43  ;;  %10882 = vmatpush1.bf16.msra.mxu1 %v10881_v40  ;;  %v376_v40 = vmul.f32 %v17202_v49, %v174_v0 }
 0x387   :  { %24076 = vst [vmem:[#allocation191_spill] sm:$0xff] %v19255_v62  ;;  %24077 = vst [vmem:[#allocation339_spill] sm:$0xff] %v19265_v53  ;;  %v21882_v21 = vand.u32 4294901760, %v19255_v62  ;;  %v8777_v60 = vand.u32 4294901760, %v8776_v59  ;;  %3561 = vmatprep.mubr.f32.mxu1 %v3560_v34  ;;  %v19277_v45 = vsub.f32 %v372_v44, %v19265_v53  ;;  %v24081_v34 = vand.u32 4294901760, %v24078_v12  ;;  %v169_v44 = vld [vmem:[%s20346_s2 + $0x4d0] sm:$0xff] }
 0x388   :  { %v8467_v1 = vsub.f32 %v19248_v11, %v21876_v41  ;;  %v3565_v4 = vsub.f32 %v19251_v43, %v21879_v13  ;;  %v24082_v41 = vand.u32 4294901760, %v24079_v54  ;;  %v676_v0 = vsel %vm617_vm0, %v376_v40, 0  ;;  %v24088_v40 = vld [vmem:[#allocation301_spill] sm:$0xff] }
 0x389   :  { %24080 = vst [vmem:[#allocation21_spill] sm:$0xff] %v19277_v45  ;;  %v8473_v59 = vsub.f32 %v19255_v62, %v21882_v21  ;;  %v11619_v46 = vpack.c.bf16 %v8777_v60, %v8765_v32  ;;  %v3952_v10 = vsub.f32 %v24078_v12, %v24081_v34  ;;  %v21889_v49 = vand.u32 4294901760, %v19277_v45  ;;  %v24084_v34 = vld [vmem:[#allocation162_spill] sm:$0xff] }
 0x38a   :  { %v3964_v11 = vsub.f32 %v24079_v54, %v24082_v41  ;;  %v8468_v13 = vand.u32 4294901760, %v8467_v1  ;;  %v3566_v43 = vand.u32 4294901760, %v3565_v4  ;;  %v19294_v62 = vand.u32 4294901760, %v676_v0  ;;  %v24085_v1 = vld [vmem:[#allocation166_spill] sm:$0xff] }
 0x38b   :  { %v8474_v21 = vand.u32 4294901760, %v8473_v59  ;;  %11620 = vmatprep.subr.bf16.mxu0 %v11619_v46  ;;  %v3953_v32 = vand.u32 4294901760, %v3952_v10  ;;  %v3575_v41 = vsub.f32 %v19277_v45, %v21889_v49  ;;  %v21892_v53 = vand.u32 4294901760, %v24084_v34  ;;  %v173_v46 = vld [vmem:[%s20346_s2 + $0x4f0] sm:$0xff]  ;;  %s12763_s2 = smov [#allocation2]  }
 0x38c   :  { %v3965_v60 = vand.u32 4294901760, %v3964_v11  ;;  %24083 = vst [vmem:[#allocation198_spill] sm:$0xff] %v19294_v62  ;;  %8469 = vmatprep.mubr.f32.mxu0 %v8468_v13  ;;  %3567 = vmatmul.mubr.f32.gmra.mrb[36].mxu1 %v3566_v43  ;;  %v371_v35 = vmul.f32 %v17225_v27, %v169_v44  ;;  %v19306_v10 = vsub.f32 %v676_v0, %v19294_v62  ;;  %v24087_v43 = vld [vmem:[#allocation168_spill] sm:$0xff]  ;;  %v21900_v59 = vand.u32 4294901760, %v24088_v40  ;;  %s10364_s21 = sshll.u32 %s12763_s2, 4  ;;  %s10365_s21 = int_to_ptr.vmem [resolvable:$true] %s10364_s21 }
 0x38d   :  { %8475 = vmatmul.mubr.f32.gmra.mrb[36].mxu0 %v8474_v21  ;;  %v21898_v13 = vand.u32 4294901760, %v24087_v43  ;;  %v3576_v49 = vand.u32 4294901760, %v3575_v41  ;;  %v8770_v4 = vsub.f32 %v24084_v34, %v21892_v53  ;;  %v24089_v27 = vand.u32 4294901760, %v24085_v1  ;;  %s12739_s22 = scalar_lea.vmem %s10365_s21, 5120  ;;  %p12744_p1 = scmp.lt.s32.totalorder %s10365_s21, %s10365_s21 }
 0x38e   :  { %v10883_v11 = vpack.c.bf16 %v3965_v60, %v3953_v32  ;;  %24086 = vst [vmem:[#allocation18_spill] sm:$0xff] %v19306_v10  ;;  %v19316_v45 = vand.u32 4294901760, %v371_v35  ;;  %v21904_v21 = vand.u32 4294901760, %v19306_v10  ;;  %v3970_v32 = vsub.f32 %v24088_v40, %v21900_v59  ;;  %v24093_v59 = vld [vmem:[#allocation6_spill] sm:$0xff]  ;;  %p12740_p0 = scmp.ne.s32.totalorder %s10365_s21, %s12739_s22  ;;  %p12745_p2 = scmp.lt.s32.totalorder %s12739_s22, %s12739_s22 }
 0x38f   :  { %v8782_v44 = vsub.f32 %v24085_v1, %v24089_v27  ;;  %v3958_v0 = vsub.f32 %v24087_v43, %v21898_v13  ;;  %v375_v60 = vmul.f32 %v17245_v50, %v173_v46  ;;  %3577 = vmatprep.mubr.f32.mxu1 %v3576_v49  ;;  %v8771_v41 = vand.u32 4294901760, %v8770_v4  ;;  %v24095_v49 = vld [vmem:[#allocation238_spill] sm:$0xff]  ;;  %v24096_v4 = vld [vmem:[#allocation247_spill] sm:$0xff] }
 0x390   :  { %24090 = vst [vmem:[#allocation199_spill] sm:$0xff] %v19316_v45  ;;  %10884 = vmatprep.subr.bf16.mxu1 %v10883_v11  ;;  %v19327_v27 = vsub.f32 %v371_v35, %v19316_v45  ;;  %v8483_v11 = vsub.f32 %v19306_v10, %v21904_v21  ;;  %v3971_v38 = vand.u32 4294901760, %v3970_v32  ;;  %v10887_v50 = vpack.c.bf16 %v24094_v5, %v24093_v59  ;;  %v24101_v21 = vld [vmem:[#allocation16_spill] sm:$0xff]  ;;  %v24112_v10 = vld [vmem:[#allocation201_spill] sm:$0xff]  ;;  %p12746_p3 = por %p12745_p2, %p12744_p1 }
 0x391   :  { %v8783_v53 = vand.u32 4294901760, %v8782_v44  ;;  %v3959_v62 = vand.u32 4294901760, %v3958_v0  ;;  %v19332_v47 = vand.u32 4294901760, %v375_v60  ;;  %v11623_v46 = vpack.c.bf16 %v24096_v4, %v24095_v49  ;;  %v24117_v59 = vld [vmem:[#allocation209_spill] sm:$0xff] }
 0x392   :  { %24091 = vst [vmem:[#allocation104_spill] sm:$0xff] %v19327_v27  ;;  %v21905_v31 = vand.u32 4294901760, %v19327_v27  ;;  %v8484_v44 = vand.u32 4294901760, %v8483_v11  ;;  %p12747_p4 = pnand %p12746_p3, %p12740_p0 }
 0x393   :  { %24092 = vst [vmem:[#allocation212_spill] sm:$0xff] %v19332_v47  ;;  %v11621_v13 = vpack.c.bf16 %v8783_v53, %v8771_v41  ;;  %v10885_v35 = vpack.c.bf16 %v3971_v38, %v3959_v62  ;;  %v19340_v45 = vsub.f32 %v375_v60, %v19332_v47  ;;  %v24098_v62 = vld [vmem:[#allocation170_spill] sm:$0xff]  ;;  %v24100_v60 = vld [vmem:[#allocation12_spill] sm:$0xff] }
 0x394   :  { %v3581_v0 = vsub.f32 %v19327_v27, %v21905_v31  ;;  %8485 = vmatprep.mubr.f32.mxu0 %v8484_v44  ;;  %v24102_v31 = vld [vmem:[#allocation192_spill] sm:$0xff] }
 0x395   :  { %24097 = vst [vmem:[#allocation105_spill] sm:$0xff] %v19340_v45  ;;  %11622 = vmatpush1.bf16.msra.mxu0 %v11621_v13  ;;  %10886 = vmatpush1.bf16.msra.mxu1 %v10885_v35  ;;  %v21908_v53 = vand.u32 4294901760, %v19340_v45  ;;  %v24099_v13 = vld [vmem:[#allocation10_spill] sm:$0xff]  ;;  %v10891_v44 = vpack.c.bf16 %v24102_v31, %v24101_v21  ;;  %v24103_v35 = vld [vmem:[#allocation299_spill] sm:$0xff]  ;;  %v24114_v21 = vld [vmem:[#allocation205_spill] sm:$0xff] }
 0x396   :  { %v3582_v32 = vand.u32 4294901760, %v3581_v0  ;;  %10888 = vmatprep.subr.bf16.mxu1 %v10887_v50  ;;  %11624 = vmatprep.subr.bf16.mxu0 %v11623_v46  ;;  %v10889_v11 = vpack.c.bf16 %v24100_v60, %v24099_v13  ;;  %v24104_v0 = vld [vmem:[#allocation174_spill] sm:$0xff]  ;;  %v24105_v50 = vld [vmem:[#allocation13_spill] sm:$0xff]  ;;  %v24106_v46 = vld [vmem:[#allocation15_spill] sm:$0xff] }
 0x397   :  { %v8489_v41 = vsub.f32 %v19340_v45, %v21908_v53  ;;  %v11625_v27 = vpack.c.bf16 %v24106_v46, %v24105_v50  ;;  %v24107_v53 = vld [vmem:[#allocation187_spill] sm:$0xff]  ;;  %v24110_v45 = vld [vmem:[#allocation193_spill] sm:$0xff]  ;;  %v24111_v60 = vld [vmem:[#allocation194_spill] sm:$0xff] }
 0x398   :  { %3583 = vmatmul.mubr.f32.gmra.mrb[38].mxu1 %v3582_v32  ;;  %v24108_v32 = vld [vmem:[#allocation197_spill] sm:$0xff]  ;;  %v10893_v13 = vpack.c.bf16 %v24111_v60, %v24110_v45  ;;  %v24113_v31 = vld [vmem:[#allocation202_spill] sm:$0xff]  ;;  %v24137_v60 = vld [vmem:[#allocation227_spill] sm:$0xff] }
 0x399   :  { %v8490_v38 = vand.u32 4294901760, %v8489_v41  ;;  %3974 = vmatprep.mubr.f32.mxu1 %v24098_v62  ;;  %v24109_v41 = vld [vmem:[#allocation195_spill] sm:$0xff]  ;;  %v24118_v46 = vld [vmem:[#allocation210_spill] sm:$0xff]  ;;  %v24119_v50 = vld [vmem:[#allocation213_spill] sm:$0xff] }
 0x39a   :  { %v11627_v62 = vpack.c.bf16 %v24109_v41, %v24108_v32  ;;  %v24121_v45 = vld [vmem:[#allocation5_spill] sm:$0xff] }
 0x39b   :  { %8491 = vmatmul.mubr.f32.gmra.mrb[38].mxu0 %v8490_v38  ;;  %v11629_v38 = vpack.c.bf16 %v24113_v31, %v24112_v10  ;;  %v24123_v31 = vld [vmem:[#allocation343_spill] sm:$0xff]  ;;  %v24133_v10 = vld [vmem:[#allocation204_spill] sm:$0xff] }
 0x39c   :  { %8802 = vmatprep.mubr.f32.mxu0 %v24103_v35  ;;  %3976 = vmatmul.mubr.f32.vlgmr.msra.gmra.mrb[0].mxu1 %v24104_v0  ;;  %v24115_v35 = vld [vmem:[#allocation203_spill] sm:$0xff] }
 0x39d   :  { %10890 = vmatpush1.bf16.msra.mxu1 %v10889_v11  ;;  %3982 = vmatprep.mubr.f32.mxu1 %v24107_v53  ;;  %v10895_v5 = vpack.c.bf16 %v24115_v35, %v24114_v21  ;;  %v24116_v0 = vld [vmem:[#allocation303_spill] sm:$0xff]  ;;  %v10897_v11 = vpack.c.bf16 %v24118_v46, %v24117_v59  ;;  %v24122_v59 = vld [vmem:[#allocation322_spill] sm:$0xff]  ;;  %v24136_v35 = vld [vmem:[#allocation196_spill] sm:$0xff] }
 0x39e   :  { %10892 = vmatprep.subr.bf16.mxu1 %v10891_v44  ;;  %v24120_v53 = vld [vmem:[#allocation211_spill] sm:$0xff]  ;;  %v24139_v21 = vld [vmem:[#allocation206_spill] sm:$0xff] }
 0x39f   :  { %8804 = vmatmul.mubr.f32.vlgmr.msra.gmra.mrb[0].mxu0 %v24116_v0  ;;  %v11631_v4 = vpack.c.bf16 %v24120_v53, %v24119_v50  ;;  %v24125_v44 = vld [vmem:[#allocation215_spill] sm:$0xff]  ;;  %v24128_v0 = vld [vmem:[#allocation221_spill] sm:$0xff] }
 0x3a0   :  { %11626 = vmatpush1.bf16.msra.mxu0 %v11625_v27  ;;  %8810 = vmatprep.mubr.f32.mxu0 %v24121_v45  ;;  %v24126_v27 = vld [vmem:[#allocation218_spill] sm:$0xff]  ;;  %v24129_v46 = vld [vmem:[#allocation219_spill] sm:$0xff]  ;;  %v24130_v50 = vld [vmem:[#allocation189_spill] sm:$0xff] }
 0x3a1   :  { %3984 = vmatmul.mubr.f32.gmra.mrb[2].mxu1 %v24122_v59  ;;  %11628 = vmatprep.subr.bf16.mxu0 %v11627_v62  ;;  %v24124_v59 = vld [vmem:[#allocation333_spill] sm:$0xff]  ;;  %v10899_v45 = vpack.c.bf16 %v24126_v27, %v24125_v44  ;;  %v11633_v53 = vpack.c.bf16 %v24129_v46, %v24128_v0  ;;  %v24131_v62 = vld [vmem:[#allocation235_spill] sm:$0xff]  ;;  %v24142_v0 = vld [vmem:[#allocation20_spill] sm:$0xff] }
 0x3a2   :  { %10894 = vmatpush1.bf16.msra.mxu1 %v10893_v13  ;;  %3990 = vmatprep.mubr.f32.mxu1 %v24123_v31  ;;  %v24127_v31 = vld [vmem:[#allocation347_spill] sm:$0xff] }
 0x3a3   :  { %8812 = vmatmul.mubr.f32.gmra.mrb[2].mxu0 %v24124_v59  ;;  %10896 = vmatprep.subr.bf16.mxu1 %v10895_v5  ;;  %v24132_v5 = vld [vmem:[#allocation242_spill] sm:$0xff]  ;;  %v24134_v27 = vld [vmem:[#allocation223_spill] sm:$0xff] }
 0x3a4   :  { %8818 = vmatprep.mubr.f32.mxu0 %v24127_v31  ;;  %11630 = vmatpush1.bf16.msra.mxu0 %v11629_v38  ;;  %v11635_v59 = vpack.c.bf16 %v24132_v5, %v24131_v62  ;;  %v24135_v13 = vld [vmem:[#allocation231_spill] sm:$0xff]  ;;  %v24138_v38 = vld [vmem:[#allocation232_spill] sm:$0xff] }
 0x3a5   :  { %3992 = vmatmul.mubr.f32.gmra.mrb[4].mxu1 %v24130_v50  ;;  %11632 = vmatprep.subr.bf16.mxu0 %v11631_v4  ;;  %v10901_v44 = vpack.c.bf16 %v24135_v13, %v24134_v27  ;;  %v10903_v31 = vpack.c.bf16 %v24138_v38, %v24137_v60  ;;  %v24140_v50 = vld [vmem:[#allocation250_spill] sm:$0xff]  ;;  %v24141_v4 = vld [vmem:[#allocation253_spill] sm:$0xff]  ;;  %v24145_v62 = vld [vmem:[#allocation31_spill] sm:$0xff] }
 0x3a6   :  { %3998 = vmatprep.mubr.f32.mxu1 %v24133_v10  ;;  %10898 = vmatpush1.bf16.msra.mxu1 %v10897_v11  ;;  %v11637_v46 = vpack.c.bf16 %v24141_v4, %v24140_v50  ;;  %v24143_v10 = vld [vmem:[#allocation23_spill] sm:$0xff]  ;;  %v24144_v11 = vld [vmem:[#allocation24_spill] sm:$0xff]  ;;  %v24154_v50 = vld [vmem:[#allocation34_spill] sm:$0xff] }
 0x3a7   :  { %8820 = vmatmul.mubr.f32.gmra.mrb[4].mxu0 %v24136_v35  ;;  %10900 = vmatprep.subr.bf16.mxu1 %v10899_v45  ;;  %v11639_v5 = vpack.c.bf16 %v24144_v11, %v24143_v10  ;;  %v24146_v35 = vld [vmem:[#allocation243_spill] sm:$0xff]  ;;  %v24147_v45 = vld [vmem:[#allocation249_spill] sm:$0xff]  ;;  %v24151_v60 = vld [vmem:[#allocation28_spill] sm:$0xff] }
 0x3a8   :  { %8826 = vmatprep.mubr.f32.mxu0 %v24139_v21  ;;  %11634 = vmatpush1.bf16.msra.mxu0 %v11633_v53  ;;  %v10905_v13 = vpack.c.bf16 %v24147_v45, %v24146_v35  ;;  %v24148_v27 = vld [vmem:[#allocation207_spill] sm:$0xff]  ;;  %v24149_v21 = vld [vmem:[#allocation313_spill] sm:$0xff]  ;;  %v24160_v35 = vld [vmem:[#allocation38_spill] sm:$0xff] }
 0x3a9   :  { %4000 = vmatmul.mubr.f32.gmra.mrb[6].mxu1 %v24142_v0  ;;  %11636 = vmatprep.subr.bf16.mxu0 %v11635_v59  ;;  %v24150_v53 = vld [vmem:[#allocation319_spill] sm:$0xff]  ;;  %v24153_v59 = vld [vmem:[#allocation33_spill] sm:$0xff] }
 0x3aa   :  { %4006 = vmatprep.mubr.f32.mxu1 %v24145_v62  ;;  %10902 = vmatpush1.bf16.msra.mxu1 %v10901_v44  ;;  %v10907_v38 = vpack.c.bf16 %v24150_v53, %v24149_v21  ;;  %v24152_v0 = vld [vmem:[#allocation27_spill] sm:$0xff]  ;;  %v24155_v62 = vld [vmem:[#allocation45_spill] sm:$0xff]  ;;  %v24163_v21 = vld [vmem:[#allocation40_spill] sm:$0xff] }
 0x3ab   :  { %8828 = vmatmul.mubr.f32.gmra.mrb[6].mxu0 %v24148_v27  ;;  %10904 = vmatprep.subr.bf16.mxu1 %v10903_v31  ;;  %v11641_v4 = vpack.c.bf16 %v24153_v59, %v24152_v0  ;;  %v24156_v44 = vld [vmem:[#allocation41_spill] sm:$0xff]  ;;  %v24158_v27 = vld [vmem:[#allocation315_spill] sm:$0xff] }
 0x3ac   :  { %8834 = vmatprep.mubr.f32.mxu0 %v24151_v60  ;;  %11638 = vmatpush1.bf16.msra.mxu0 %v11637_v46  ;;  %v11643_v11 = vpack.c.bf16 %v24156_v44, %v24155_v62  ;;  %v24157_v10 = vld [vmem:[#allocation217_spill] sm:$0xff]  ;;  %v24159_v31 = vld [vmem:[#allocation323_spill] sm:$0xff]  ;;  %v24162_v46 = vld [vmem:[#allocation36_spill] sm:$0xff] }
 0x3ad   :  { %4008 = vmatmul.mubr.f32.gmra.mrb[8].mxu1 %v24154_v50  ;;  %11640 = vmatprep.subr.bf16.mxu0 %v11639_v5  ;;  %v10909_v45 = vpack.c.bf16 %v24159_v31, %v24158_v27  ;;  %v24161_v60 = vld [vmem:[#allocation29_spill] sm:$0xff]  ;;  %v24164_v50 = vld [vmem:[#allocation51_spill] sm:$0xff]  ;;  %v24172_v27 = vld [vmem:[#allocation52_spill] sm:$0xff] }
 0x3ae   :  { %4014 = vmatprep.mubr.f32.mxu1 %v24157_v10  ;;  %10906 = vmatpush1.bf16.msra.mxu1 %v10905_v13  ;;  %v10911_v53 = vpack.c.bf16 %v24162_v46, %v24161_v60  ;;  %v24165_v5 = vld [vmem:[#allocation57_spill] sm:$0xff]  ;;  %v24166_v0 = vld [vmem:[#allocation47_spill] sm:$0xff]  ;;  %v24167_v10 = vld [vmem:[#allocation74_spill] sm:$0xff] }
 0x3af   :  { %8836 = vmatmul.mubr.f32.gmra.mrb[8].mxu0 %v24160_v35  ;;  %10908 = vmatprep.subr.bf16.mxu1 %v10907_v38  ;;  %v11645_v59 = vpack.c.bf16 %v24165_v5, %v24164_v50  ;;  %v24168_v13 = vld [vmem:[#allocation81_spill] sm:$0xff]  ;;  %v24171_v38 = vld [vmem:[#allocation39_spill] sm:$0xff]  ;;  %v24178_v50 = vld [vmem:[#allocation64_spill] sm:$0xff] }
 0x3b0   :  { %8842 = vmatprep.mubr.f32.mxu0 %v24163_v21  ;;  %11642 = vmatpush1.bf16.msra.mxu0 %v11641_v4  ;;  %v11647_v44 = vpack.c.bf16 %v24168_v13, %v24167_v10  ;;  %v24169_v62 = vld [vmem:[#allocation61_spill] sm:$0xff]  ;;  %v24173_v21 = vld [vmem:[#allocation42_spill] sm:$0xff]  ;;  %v24175_v60 = vld [vmem:[#allocation67_spill] sm:$0xff] }
 0x3b1   :  { %4016 = vmatmul.mubr.f32.gmra.mrb[10].mxu1 %v24166_v0  ;;  %11644 = vmatprep.subr.bf16.mxu0 %v11643_v11  ;;  %v24170_v35 = vld [vmem:[#allocation37_spill] sm:$0xff]  ;;  %v24174_v4 = vld [vmem:[#allocation50_spill] sm:$0xff]  ;;  %v24176_v0 = vld [vmem:[#allocation84_spill] sm:$0xff] }
 0x3b2   :  { %4022 = vmatprep.mubr.f32.mxu1 %v24169_v62  ;;  %10910 = vmatpush1.bf16.msra.mxu1 %v10909_v45  ;;  %v10913_v31 = vpack.c.bf16 %v24171_v38, %v24170_v35  ;;  %v10915_v46 = vpack.c.bf16 %v24174_v4, %v24173_v21  ;;  %v24177_v11 = vld [vmem:[#allocation86_spill] sm:$0xff]  ;;  %v11651_v45 = vpack.c.bf16 %v23904_v26, %v23901_v29  ;;  %v24182_v35 = vld [vmem:[#allocation71_spill] sm:$0xff]  ;;  %v24185_v21 = vld [vmem:[#allocation85_spill] sm:$0xff] }
 0x3b3   :  { %8844 = vmatmul.mubr.f32.gmra.mrb[10].mxu0 %v24172_v27  ;;  %10912 = vmatprep.subr.bf16.mxu1 %v10911_v53  ;;  %v11649_v5 = vpack.c.bf16 %v24177_v11, %v24176_v0  ;;  %v24179_v62 = vld [vmem:[#allocation246_spill] sm:$0xff]  ;;  %v24180_v27 = vld [vmem:[#allocation53_spill] sm:$0xff]  ;;  %v24181_v53 = vld [vmem:[#allocation68_spill] sm:$0xff] }
 0x3b4   :  { %8850 = vmatprep.mubr.f32.mxu0 %v24175_v60  ;;  %11646 = vmatpush1.bf16.msra.mxu0 %v11645_v59  ;;  %v10917_v38 = vpack.c.bf16 %v24181_v53, %v24180_v27  ;;  %v24183_v60 = vld [vmem:[#allocation65_spill] sm:$0xff]  ;;  %v24184_v59 = vld [vmem:[#allocation66_spill] sm:$0xff]  ;;  %v24190_v27 = vld [vmem:[#allocation88_spill] sm:$0xff] }
 0x3b5   :  { %4024 = vmatmul.mubr.f32.gmra.mrb[12].mxu1 %v24178_v50  ;;  %11648 = vmatprep.subr.bf16.mxu0 %v11647_v44  ;;  %v10919_v4 = vpack.c.bf16 %v24184_v59, %v24183_v60  ;;  %v11653_v44 = vpack.c.bf16 %v23915_v42, %v23914_v28  ;;  %v24186_v50 = vld [vmem:[#allocation91_spill] sm:$0xff] }
 0x3b6   :  { %4030 = vmatprep.mubr.f32.mxu1 %v24179_v62  ;;  %10914 = vmatpush1.bf16.msra.mxu1 %v10913_v31  ;;  %v11655_v31 = vpack.c.bf16 %v23941_v30, %v23940_v39  ;;  %v24187_v62 = vld [vmem:[#allocation107_spill] sm:$0xff] }
 0x3b7   :  { %8852 = vmatmul.mubr.f32.gmra.mrb[12].mxu0 %v24182_v35  ;;  %10916 = vmatprep.subr.bf16.mxu1 %v10915_v46  ;;  %v24188_v35 = vld [vmem:[#allocation77_spill] sm:$0xff]  ;;  %v24189_v46 = vld [vmem:[#allocation82_spill] sm:$0xff]  ;;  %v24193_v60 = vld [vmem:[#allocation115_spill] sm:$0xff] }
 0x3b8   :  { %8858 = vmatprep.mubr.f32.mxu0 %v24185_v21  ;;  %11650 = vmatpush1.bf16.msra.mxu0 %v11649_v5  ;;  %v10921_v53 = vpack.c.bf16 %v24189_v46, %v24188_v35  ;;  %v24191_v21 = vld [vmem:[#allocation90_spill] sm:$0xff]  ;;  %v24197_v46 = vld [vmem:[#allocation99_spill] sm:$0xff] }
 0x3b9   :  { %4032 = vmatmul.mubr.f32.gmra.mrb[14].mxu1 %v24186_v50  ;;  %11652 = vmatprep.subr.bf16.mxu0 %v11651_v45  ;;  %v24192_v5 = vld [vmem:[#allocation94_spill] sm:$0xff]  ;;  %v11657_v45 = vpack.c.bf16 %v23970_v24, %v23966_v48  ;;  %v24194_v50 = vld [vmem:[#allocation112_spill] sm:$0xff]  ;;  %v24412_v48 = vld [vmem:[#allocation15_spill] sm:$0xff] }
 0x3ba   :  { %4038 = vmatprep.mubr.f32.mxu1 %v24187_v62  ;;  %10918 = vmatpush1.bf16.msra.mxu1 %v10917_v38  ;;  %v10923_v59 = vpack.c.bf16 %v24192_v5, %v24191_v21  ;;  %v24195_v62 = vld [vmem:[#allocation133_spill] sm:$0xff]  ;;  %v24196_v38 = vld [vmem:[#allocation98_spill] sm:$0xff] }
 0x3bb   :  { %8860 = vmatmul.mubr.f32.gmra.mrb[14].mxu0 %v24190_v27  ;;  %10920 = vmatprep.subr.bf16.mxu1 %v10919_v4  ;;  %v10925_v35 = vpack.c.bf16 %v24197_v46, %v24196_v38  ;;  %v24198_v27 = vld [vmem:[#allocation119_spill] sm:$0xff]  ;;  %v10927_v4 = vpack.c.bf16 %v23925_v2, %v23922_v52  ;;  %v24329_v52 = vld [vmem:[#allocation102_spill] sm:$0xff]  ;;  %v24333_v38 = vld [vmem:[#allocation272_spill] sm:$0xff] }
 0x3bc   :  { %8866 = vmatprep.mubr.f32.mxu0 %v24193_v60  ;;  %11654 = vmatpush1.bf16.msra.mxu0 %v11653_v44  ;;  %v24199_v60 = vld [vmem:[#allocation289_spill] sm:$0xff]  ;;  %v24200_v44 = vld [vmem:[#allocation151_spill] sm:$0xff] }
 0x3bd   :  { %4040 = vmatmul.mubr.f32.gmra.mrb[16].mxu1 %v24194_v50  ;;  %11656 = vmatprep.subr.bf16.mxu0 %v11655_v31  ;;  %v24201_v31 = vpack.c.bf16 %v24015_v56, %v24010_v51  ;;  %v24212_v50 = vld [vmem:[#allocation132_spill] sm:$0xff]  ;;  %v24327_v2 = vld [vmem:[#allocation251_spill] sm:$0xff]  ;;  %v24335_v56 = vld [vmem:[#allocation106_spill] sm:$0xff] }
 0x3be   :  { %4046 = vmatprep.mubr.f32.mxu1 %v24195_v62  ;;  %10922 = vmatpush1.bf16.msra.mxu1 %v10921_v53  ;;  %v24202_v62 = vld [vmem:[#allocation160_spill] sm:$0xff]  ;;  %v10929_v53 = vpack.c.bf16 %v23931_v25, %v23927_v33  ;;  %v24317_v33 = vld [vmem:[#allocation110_spill] sm:$0xff]  ;;  %v24331_v46 = vld [vmem:[#allocation267_spill] sm:$0xff] }
 0x3bf   :  { %8868 = vmatmul.mubr.f32.gmra.mrb[16].mxu0 %v24198_v27  ;;  %10924 = vmatprep.subr.bf16.mxu1 %v10923_v59  ;;  %v24203_v27 = vld [vmem:[#allocation163_spill] sm:$0xff]  ;;  %v10931_v59 = vpack.c.bf16 %v23948_v6, %v23946_v9  ;;  %v24213_v9 = vld [vmem:[#allocation234_spill] sm:$0xff]  ;;  %v24315_v25 = vld [vmem:[#allocation256_spill] sm:$0xff] }
 0x3c0   :  { %8874 = vmatprep.mubr.f32.mxu0 %v24199_v60  ;;  %11658 = vmatpush1.bf16.msra.mxu0 %v11657_v45  ;;  %v24204_v60 = vld [vmem:[#allocation169_spill] sm:$0xff]  ;;  %v24205_v45 = vpack.c.bf16 %v24027_v55, %v24026_v7  ;;  %v24323_v55 = vld [vmem:[#allocation116_spill] sm:$0xff]  ;;  %v24325_v7 = vld [vmem:[#allocation122_spill] sm:$0xff] }
 0x3c1   :  { %4048 = vmatmul.mubr.f32.gmra.mrb[18].mxu1 %v24200_v44  ;;  %11660 = vmatprep.subr.bf16.mxu0 %v24201_v31  ;;  %v24206_v44 = vld [vmem:[#allocation175_spill] sm:$0xff]  ;;  %v24208_v31 = vld [vmem:[#allocation230_spill] sm:$0xff] }
 0x3c2   :  { %4054 = vmatprep.mubr.f32.mxu1 %v24202_v62  ;;  %10926 = vmatpush1.bf16.msra.mxu1 %v10925_v35  ;;  %v24207_v35 = vpack.c.bf16 %v24052_v37, %v24051_v63  ;;  %v24210_v62 = vld [vmem:[#allocation344_spill] sm:$0xff]  ;;  %v24319_v37 = vld [vmem:[#allocation93_spill] sm:$0xff] }
 0x3c3   :  { %8876 = vmatmul.mubr.f32.gmra.mrb[18].mxu0 %v24203_v27  ;;  %10928 = vmatprep.subr.bf16.mxu1 %v10927_v4  ;;  %v24209_v4 = vld [vmem:[#allocation125_spill] sm:$0xff] }
 0x3c4   :  { %8882 = vmatprep.mubr.f32.mxu0 %v24204_v60  ;;  %11662 = vmatpush1.bf16.msra.mxu0 %v24205_v45  ;;  %v10933_v27 = vpack.c.bf16 %v24209_v4, %v23971_v3  ;;  %v24211_v60 = vld [vmem:[#allocation129_spill] sm:$0xff]  ;;  %v24214_v45 = vpack.c.bf16 %v24058_v58, %v24056_v18  ;;  %v24305_v3 = vld [vmem:[#allocation75_spill] sm:$0xff]  ;;  %v24311_v58 = vld [vmem:[#allocation80_spill] sm:$0xff] }
 0x3c5   :  { %4056 = vmatmul.mubr.f32.gmra.mrb[20].mxu1 %v24206_v44  ;;  %11664 = vmatprep.subr.bf16.mxu0 %v24207_v35  ;;  %v10935_v6 = vpack.c.bf16 %v24212_v50, %v24211_v60  ;;  %v24215_v44 = vld [vmem:[#allocation239_spill] sm:$0xff]  ;;  %v24217_v35 = vld [vmem:[#allocation252_spill] sm:$0xff]  ;;  %v24301_v60 = vld [vmem:[#allocation78_spill] sm:$0xff] }
 0x3c6   :  { %4062 = vmatprep.mubr.f32.mxu1 %v24208_v31  ;;  %10930 = vmatpush1.bf16.msra.mxu1 %v10929_v53  ;;  %v24216_v53 = vpack.c.bf16 %v24073_v8, %v24069_v61  ;;  %v24221_v31 = vld [vmem:[#allocation258_spill] sm:$0xff]  ;;  %v24299_v50 = vld [vmem:[#allocation72_spill] sm:$0xff]  ;;  %v24303_v4 = vld [vmem:[#allocation69_spill] sm:$0xff] }
 0x3c7   :  { %8884 = vmatmul.mubr.f32.gmra.mrb[20].mxu0 %v24210_v62  ;;  %10932 = vmatprep.subr.bf16.mxu1 %v10931_v59  ;;  %v24218_v62 = vld [vmem:[#allocation244_spill] sm:$0xff]  ;;  %v24313_v18 = vld [vmem:[#allocation87_spill] sm:$0xff]  ;;  %v24321_v63 = vld [vmem:[#allocation89_spill] sm:$0xff] }
 0x3c8   :  { %8890 = vmatprep.mubr.f32.mxu0 %v24213_v9  ;;  %11666 = vmatpush1.bf16.msra.mxu0 %v24214_v45  ;;  %v24219_v59 = vld [vmem:[#allocation260_spill] sm:$0xff]  ;;  %v24220_v9 = vpack.c.bf16 %v24085_v1, %v24084_v34  ;;  %v24297_v34 = vld [vmem:[#allocation63_spill] sm:$0xff] }
 0x3c9   :  { %4064 = vmatmul.mubr.f32.gmra.mrb[22].mxu1 %v24215_v44  ;;  %11668 = vmatprep.subr.bf16.mxu0 %v24216_v53  ;;  %v24222_v45 = vld [vmem:[#allocation240_spill] sm:$0xff]  ;;  %v24223_v44 = vld [vmem:[#allocation269_spill] sm:$0xff]  ;;  %v24224_v53 = vpack.c.bf16 %v24023_v19, %v24018_v14  ;;  %v24291_v19 = vld [vmem:[#allocation62_spill] sm:$0xff] }
 0x3ca   :  { %4070 = vmatprep.mubr.f32.mxu1 %v24217_v35  ;;  %10934 = vmatpush1.bf16.msra.mxu1 %v10933_v27  ;;  %v24225_v27 = vld [vmem:[#allocation268_spill] sm:$0xff]  ;;  %v24234_v35 = vld [vmem:[#allocation295_spill] sm:$0xff]  ;;  %v24293_v14 = vld [vmem:[#allocation70_spill] sm:$0xff] }
 0x3cb   :  { %8892 = vmatmul.mubr.f32.gmra.mrb[22].mxu0 %v24218_v62  ;;  %10936 = vmatprep.subr.bf16.mxu1 %v10935_v6  ;;  %v24226_v6 = vpack.c.bf16 %v24043_v16, %v24040_v22  ;;  %v24228_v62 = vld [vmem:[#allocation274_spill] sm:$0xff]  ;;  %v24287_v16 = vld [vmem:[#allocation56_spill] sm:$0xff] }
 0x3cc   :  { %8898 = vmatprep.mubr.f32.mxu0 %v24219_v59  ;;  %11670 = vmatpush1.bf16.msra.mxu0 %v24220_v9  ;;  %v24227_v59 = vld [vmem:[#allocation276_spill] sm:$0xff]  ;;  %v24229_v9 = vld [vmem:[#allocation285_spill] sm:$0xff]  ;;  %v24289_v22 = vld [vmem:[#allocation54_spill] sm:$0xff] }
 0x3cd   :  { %4072 = vmatmul.mubr.f32.gmra.mrb[24].mxu1 %v24221_v31  ;;  %11672 = vmatprep.subr.bf16.mxu0 %v24222_v45  ;;  %v24230_v31 = vpack.c.bf16 %v24048_v15, %v24046_v57  ;;  %v24282_v15 = vld [vmem:[#allocation25_spill] sm:$0xff]  ;;  %v24283_v57 = vld [vmem:[#allocation48_spill] sm:$0xff]  ;;  %v24285_v45 = vld [vmem:[#allocation58_spill] sm:$0xff] }
 0x3ce   :  { %4078 = vmatprep.mubr.f32.mxu1 %v24223_v44  ;;  %10938 = vmatpush1.bf16.msra.mxu1 %v24224_v53  ;;  %v24231_v44 = vld [vmem:[#allocation277_spill] sm:$0xff]  ;;  %v24232_v53 = vpack.c.bf16 %v24063_v36, %v24062_v17  ;;  %v24278_v36 = vld [vmem:[#allocation200_spill] sm:$0xff]  ;;  %v24279_v17 = vld [vmem:[#allocation35_spill] sm:$0xff] }
 0x3cf   :  { %8900 = vmatmul.mubr.f32.gmra.mrb[24].mxu0 %v24225_v27  ;;  %10940 = vmatprep.subr.bf16.mxu1 %v24226_v6  ;;  %v24233_v27 = vld [vmem:[#allocation292_spill] sm:$0xff] }
 0x3d0   :  { %8906 = vmatprep.mubr.f32.mxu0 %v24227_v59  ;;  %v24235_v6 = vld [vmem:[#allocation304_spill] sm:$0xff]  ;;  %v24240_v59 = vld [vmem:[#allocation309_spill] sm:$0xff] }
 0x3d1   :  { %4080 = vmatmul.mubr.f32.gmra.mrb[26].mxu1 %v24228_v62  ;;  %v24236_v62 = vpack.c.bf16 %v24067_v23, %v24064_v20  ;;  %v24274_v23 = vld [vmem:[#allocation190_spill] sm:$0xff]  ;;  %v24275_v20 = vld [vmem:[#allocation32_spill] sm:$0xff] }
 0x3d2   :  { %4086 = vmatprep.mubr.f32.mxu1 %v24229_v9  ;;  %10942 = vmatpush1.bf16.msra.mxu1 %v24230_v31  ;;  %v24237_v9 = vld [vmem:[#allocation298_spill] sm:$0xff]  ;;  %v24238_v31 = vpack.c.bf16 %v24079_v54, %v24078_v12  ;;  %v24247_v54 = vld [vmem:[#allocation335_spill] sm:$0xff]  ;;  %v24272_v12 = vld [vmem:[#allocation336_spill] sm:$0xff] }
 0x3d3   :  { %8908 = vmatmul.mubr.f32.gmra.mrb[26].mxu0 %v24231_v44  ;;  %10944 = vmatprep.subr.bf16.mxu1 %v24232_v53  ;;  %v24239_v44 = vld [vmem:[#allocation306_spill] sm:$0xff]  ;;  %v24295_v1 = vld [vmem:[#allocation60_spill] sm:$0xff] }
 0x3d4   :  { %8914 = vmatprep.mubr.f32.mxu0 %v24233_v27  ;;  %v24241_v53 = vld [vmem:[#allocation318_spill] sm:$0xff]  ;;  %v24244_v27 = vld [vmem:[#allocation233_spill] sm:$0xff]  ;;  %v24307_v8 = vld [vmem:[#allocation92_spill] sm:$0xff] }
 0x3d5   :  { %4088 = vmatmul.mubr.f32.gmra.mrb[28].mxu1 %v24234_v35  ;;  %v24242_v35 = vpack.c.bf16 %v24088_v40, %v24087_v43  ;;  %v24252_v40 = vld [vmem:[#allocation183_spill] sm:$0xff]  ;;  %v24271_v43 = vld [vmem:[#allocation188_spill] sm:$0xff] }
 0x3d6   :  { %4094 = vmatprep.mubr.f32.mxu1 %v24235_v6  ;;  %10946 = vmatpush1.bf16.msra.mxu1 %v24236_v62  ;;  %v24243_v6 = vld [vmem:[#allocation314_spill] sm:$0xff]  ;;  %v24245_v62 = vld [vmem:[#allocation324_spill] sm:$0xff] }
 0x3d7   :  { %8916 = vmatmul.mubr.f32.gmra.mrb[28].mxu0 %v24237_v9  ;;  %10948 = vmatprep.subr.bf16.mxu1 %v24238_v31  ;;  %v24246_v9 = vld [vmem:[#allocation325_spill] sm:$0xff]  ;;  %v24248_v31 = vld [vmem:[#allocation332_spill] sm:$0xff] }
 0x3d8   :  { %8922 = vmatprep.mubr.f32.mxu0 %v24239_v44  ;;  %v24249_v44 = vld [vmem:[#allocation338_spill] sm:$0xff]  ;;  %v24309_v61 = vld [vmem:[#allocation96_spill] sm:$0xff] }
 0x3d9   :  { %4096 = vmatmul.mubr.f32.gmra.mrb[30].mxu1 %v24240_v59  ;;  %v24250_v59 = vld [vmem:[#allocation176_spill] sm:$0xff] }
 0x3da   :  { %4102 = vmatprep.mubr.f32.mxu1 %v24241_v53  ;;  %10950 = vmatpush1.bf16.msra.mxu1 %v24242_v35  ;;  %v24251_v53 = vld [vmem:[#allocation186_spill] sm:$0xff]  ;;  %v24253_v35 = vld [vmem:[#allocation9_spill] sm:$0xff] }
 0x3db   :  { %8924 = vmatmul.mubr.f32.gmra.mrb[30].mxu0 %v24243_v6  ;;  %10952 = vmatprep.subr.bf16.mxu1 %v24244_v27  ;;  %v24254_v6 = vld [vmem:[#allocation337_spill] sm:$0xff]  ;;  %v24255_v27 = vld [vmem:[#allocation339_spill] sm:$0xff] }
 0x3dc   :  { %8930 = vmatprep.mubr.f32.mxu0 %v24245_v62  ;;  %v24256_v62 = vld [vmem:[#allocation341_spill] sm:$0xff] }
 0x3dd   :  { %4104 = vmatmul.mubr.f32.gmra.mrb[32].mxu1 %v24246_v9  ;;  %v24257_v9 = vld [vmem:[#allocation198_spill] sm:$0xff] }
 0x3de   :  { %4110 = vmatprep.mubr.f32.mxu1 %v24247_v54  ;;  %v24258_v54 = vld [vmem:[#allocation199_spill] sm:$0xff] }
 0x3df   :  { %8932 = vmatmul.mubr.f32.gmra.mrb[32].mxu0 %v24248_v31  ;;  %v24259_v31 = vld [vmem:[#allocation171_spill] sm:$0xff] }
 0x3e0   :  { %8938 = vmatprep.mubr.f32.mxu0 %v24249_v44  ;;  %v24269_v44 = vld [vmem:[#allocation26_spill] sm:$0xff] }
 0x3e1   :  { %4112 = vmatmul.mubr.f32.gmra.mrb[34].mxu1 %v24250_v59  ;;  %v24260_v59 = vld [vmem:[#allocation173_spill] sm:$0xff] }
 0x3e2   :  { %4118 = vmatprep.mubr.f32.mxu1 %v24251_v53  ;;  %v24261_v53 = vld [vmem:[#allocation178_spill] sm:$0xff] }
 0x3e3   :  { %8940 = vmatmul.mubr.f32.gmra.mrb[34].mxu0 %v24252_v40  ;;  %v24262_v40 = vld [vmem:[#allocation7_spill] sm:$0xff] }
 0x3e4   :  { %8946 = vmatprep.mubr.f32.mxu0 %v24253_v35  ;;  %v24263_v35 = vld [vmem:[#allocation307_spill] sm:$0xff] }
 0x3e5   :  { %4120 = vmatmul.mubr.f32.gmra.mrb[36].mxu1 %v24254_v6  ;;  %v24264_v6 = vld [vmem:[#allocation181_spill] sm:$0xff] }
 0x3e6   :  { %4126 = vmatprep.mubr.f32.mxu1 %v24255_v27  ;;  %v24265_v27 = vld [vmem:[#allocation321_spill] sm:$0xff] }
 0x3e7   :  { %8948 = vmatmul.mubr.f32.gmra.mrb[36].mxu0 %v24256_v62  ;;  %v24266_v62 = vld [vmem:[#allocation312_spill] sm:$0xff] }
 0x3e8   :  { %8954 = vmatprep.mubr.f32.mxu0 %v24257_v9  ;;  %v24267_v9 = vld [vmem:[#allocation328_spill] sm:$0xff] }
 0x3e9   :  { %4128 = vmatmul.mubr.f32.gmra.mrb[38].mxu1 %v24258_v54  ;;  %v24268_v54 = vld [vmem:[#allocation330_spill] sm:$0xff] }
 0x3ea   :  { %4328 = vmatprep.mubr.f32.mxu1 %v24259_v31 }
 0x3eb   :  { %8956 = vmatmul.mubr.f32.gmra.mrb[38].mxu0 %v19332_v47  ;;  %v24270_v47 = vld [vmem:[#allocation327_spill] sm:$0xff] }
 0x3ec   :  { %9124 = vmatprep.mubr.f32.mxu0 %v24260_v59 }
 0x3ed   :  { %4331 = vmatmul.mubr.f32.vlgmr.msra.gmra.mrb[0].mxu1 %v24261_v53 }
 0x3ee   :  { %10954 = vmatpush1.bf16.msra.mxu1 %v24262_v40  ;;  %4338 = vmatprep.mubr.f32.mxu1 %v24263_v35  ;;  %v24273_v40 = vld [vmem:[#allocation30_spill] sm:$0xff] }
 0x3ef   :  { %9127 = vmatmul.mubr.f32.vlgmr.msra.gmra.mrb[0].mxu0 %v24264_v6  ;;  %10956 = vmatprep.subr.bf16.mxu1 %v24265_v27  ;;  %v24276_v27 = vld [vmem:[#allocation11_spill] sm:$0xff] }
 0x3f0   :  { %11674 = vmatpush1.bf16.msra.mxu0 %v24266_v62  ;;  %9134 = vmatprep.mubr.f32.mxu0 %v24267_v9  ;;  %v24277_v62 = vld [vmem:[#allocation44_spill] sm:$0xff] }
 0x3f1   :  { %4341 = vmatmul.mubr.f32.gmra.mrb[2].mxu1 %v24268_v54  ;;  %11676 = vmatprep.subr.bf16.mxu0 %v24269_v44  ;;  %v24280_v44 = vld [vmem:[#allocation14_spill] sm:$0xff] }
 0x3f2   :  { %10958 = vmatpush1.bf16.msra.mxu1 %v24270_v47  ;;  %4348 = vmatprep.mubr.f32.mxu1 %v24271_v43  ;;  %v24281_v47 = vld [vmem:[#allocation46_spill] sm:$0xff] }
 0x3f3   :  { %9137 = vmatmul.mubr.f32.gmra.mrb[2].mxu0 %v24272_v12  ;;  %10960 = vmatprep.subr.bf16.mxu1 %v24273_v40  ;;  %v24284_v40 = vld [vmem:[#allocation22_spill] sm:$0xff] }
 0x3f4   :  { %9144 = vmatprep.mubr.f32.mxu0 %v24274_v23  ;;  %11678 = vmatpush1.bf16.msra.mxu0 %v24275_v20  ;;  %v24286_v20 = vld [vmem:[#allocation214_spill] sm:$0xff] }
 0x3f5   :  { %4351 = vmatmul.mubr.f32.gmra.mrb[4].mxu1 %v24276_v27  ;;  %11680 = vmatprep.subr.bf16.mxu0 %v24277_v62  ;;  %v24288_v62 = vld [vmem:[#allocation208_spill] sm:$0xff] }
 0x3f6   :  { %4358 = vmatprep.mubr.f32.mxu1 %v24278_v36  ;;  %10962 = vmatpush1.bf16.msra.mxu1 %v24279_v17  ;;  %v24290_v17 = vld [vmem:[#allocation216_spill] sm:$0xff] }
 0x3f7   :  { %9147 = vmatmul.mubr.f32.gmra.mrb[4].mxu0 %v24280_v44  ;;  %10964 = vmatprep.subr.bf16.mxu1 %v24281_v47  ;;  %v24292_v47 = vld [vmem:[#allocation220_spill] sm:$0xff] }
 0x3f8   :  { %9154 = vmatprep.mubr.f32.mxu0 %v24282_v15  ;;  %11682 = vmatpush1.bf16.msra.mxu0 %v24283_v57  ;;  %v24294_v57 = vld [vmem:[#allocation222_spill] sm:$0xff] }
 0x3f9   :  { %4361 = vmatmul.mubr.f32.gmra.mrb[6].mxu1 %v24284_v40  ;;  %11684 = vmatprep.subr.bf16.mxu0 %v24285_v45  ;;  %v24296_v45 = vld [vmem:[#allocation43_spill] sm:$0xff] }
 0x3fa   :  { %4368 = vmatprep.mubr.f32.mxu1 %v24286_v20  ;;  %10966 = vmatpush1.bf16.msra.mxu1 %v24287_v16  ;;  %v24298_v16 = vld [vmem:[#allocation49_spill] sm:$0xff] }
 0x3fb   :  { %9157 = vmatmul.mubr.f32.gmra.mrb[6].mxu0 %v24288_v62  ;;  %10968 = vmatprep.subr.bf16.mxu1 %v24289_v22  ;;  %v24300_v22 = vld [vmem:[#allocation55_spill] sm:$0xff] }
 0x3fc   :  { %9164 = vmatprep.mubr.f32.mxu0 %v24290_v17  ;;  %11686 = vmatpush1.bf16.msra.mxu0 %v24291_v19  ;;  %v24302_v19 = vld [vmem:[#allocation179_spill] sm:$0xff] }
 0x3fd   :  { %4371 = vmatmul.mubr.f32.gmra.mrb[8].mxu1 %v24292_v47  ;;  %11688 = vmatprep.subr.bf16.mxu0 %v24293_v14  ;;  %v24304_v14 = vld [vmem:[#allocation59_spill] sm:$0xff] }
 0x3fe   :  { %4378 = vmatprep.mubr.f32.mxu1 %v24294_v57  ;;  %10970 = vmatpush1.bf16.msra.mxu1 %v24295_v1  ;;  %v24306_v1 = vld [vmem:[#allocation73_spill] sm:$0xff] }
 0x3ff   :  { %9167 = vmatmul.mubr.f32.gmra.mrb[8].mxu0 %v24296_v45  ;;  %10972 = vmatprep.subr.bf16.mxu1 %v24297_v34  ;;  %v24308_v34 = vld [vmem:[#allocation79_spill] sm:$0xff] }
 0x400   :  { %9174 = vmatprep.mubr.f32.mxu0 %v24298_v16  ;;  %11690 = vmatpush1.bf16.msra.mxu0 %v24299_v50  ;;  %v24310_v50 = vld [vmem:[#allocation83_spill] sm:$0xff] }
 0x401   :  { %4381 = vmatmul.mubr.f32.gmra.mrb[10].mxu1 %v24300_v22  ;;  %11692 = vmatprep.subr.bf16.mxu0 %v24301_v60  ;;  %v24312_v60 = vld [vmem:[#allocation76_spill] sm:$0xff] }
 0x402   :  { %4388 = vmatprep.mubr.f32.mxu1 %v24302_v19  ;;  %10974 = vmatpush1.bf16.msra.mxu1 %v24303_v4  ;;  %v24314_v4 = vld [vmem:[#allocation254_spill] sm:$0xff] }
 0x403   :  { %9177 = vmatmul.mubr.f32.gmra.mrb[10].mxu0 %v24304_v14  ;;  %10976 = vmatprep.subr.bf16.mxu1 %v24305_v3  ;;  %v24316_v3 = vld [vmem:[#allocation255_spill] sm:$0xff] }
 0x404   :  { %9184 = vmatprep.mubr.f32.mxu0 %v24306_v1  ;;  %11694 = vmatpush1.bf16.msra.mxu0 %v24307_v8  ;;  %v24318_v8 = vld [vmem:[#allocation109_spill] sm:$0xff] }
 0x405   :  { %4391 = vmatmul.mubr.f32.gmra.mrb[12].mxu1 %v24308_v34  ;;  %11696 = vmatprep.subr.bf16.mxu0 %v24309_v61  ;;  %v24320_v61 = vld [vmem:[#allocation95_spill] sm:$0xff] }
 0x406   :  { %4398 = vmatprep.mubr.f32.mxu1 %v24310_v50  ;;  %10978 = vmatpush1.bf16.msra.mxu1 %v24311_v58  ;;  %v24322_v58 = vld [vmem:[#allocation121_spill] sm:$0xff] }
 0x407   :  { %9187 = vmatmul.mubr.f32.gmra.mrb[12].mxu0 %v24312_v60  ;;  %10980 = vmatprep.subr.bf16.mxu1 %v24313_v18  ;;  %v24324_v18 = vld [vmem:[#allocation127_spill] sm:$0xff] }
 0x408   :  { %9194 = vmatprep.mubr.f32.mxu0 %v24314_v4  ;;  %11698 = vmatpush1.bf16.msra.mxu0 %v24315_v25  ;;  %v24326_v25 = vld [vmem:[#allocation143_spill] sm:$0xff] }
 0x409   :  { %4401 = vmatmul.mubr.f32.gmra.mrb[14].mxu1 %v24316_v3  ;;  %11700 = vmatprep.subr.bf16.mxu0 %v24317_v33  ;;  %v24328_v33 = vld [vmem:[#allocation131_spill] sm:$0xff] }
 0x40a   :  { %4408 = vmatprep.mubr.f32.mxu1 %v24318_v8  ;;  %10982 = vmatpush1.bf16.msra.mxu1 %v24319_v37  ;;  %v24330_v37 = vld [vmem:[#allocation148_spill] sm:$0xff] }
 0x40b   :  { %9197 = vmatmul.mubr.f32.gmra.mrb[14].mxu0 %v24320_v61  ;;  %10984 = vmatprep.subr.bf16.mxu1 %v24321_v63  ;;  %v24332_v63 = vld [vmem:[#allocation155_spill] sm:$0xff] }
 0x40c   :  { %9204 = vmatprep.mubr.f32.mxu0 %v24322_v58  ;;  %11702 = vmatpush1.bf16.msra.mxu0 %v24323_v55  ;;  %v24334_v55 = vld [vmem:[#allocation180_spill] sm:$0xff] }
 0x40d   :  { %4411 = vmatmul.mubr.f32.gmra.mrb[16].mxu1 %v24324_v18  ;;  %11704 = vmatprep.subr.bf16.mxu0 %v24325_v7  ;;  %v24336_v7 = vld [vmem:[#allocation172_spill] sm:$0xff] }
 0x40e   :  { %4418 = vmatprep.mubr.f32.mxu1 %v24326_v25  ;;  %10986 = vmatpush1.bf16.msra.mxu1 %v24327_v2  ;;  %v24337_v25 = vld [vmem:[#allocation113_spill] sm:$0xff]  ;;  %v24338_v2 = vld [vmem:[#allocation182_spill] sm:$0xff]  ;;  %v24407_v18 = vld [vmem:[#allocation192_spill] sm:$0xff] }
 0x40f   :  { %9207 = vmatmul.mubr.f32.gmra.mrb[16].mxu0 %v24328_v33  ;;  %10988 = vmatprep.subr.bf16.mxu1 %v24329_v52  ;;  %v24339_v33 = vld [vmem:[#allocation138_spill] sm:$0xff]  ;;  %v24340_v52 = vld [vmem:[#allocation317_spill] sm:$0xff] }
 0x410   :  { %9214 = vmatprep.mubr.f32.mxu0 %v24330_v37  ;;  %11706 = vmatpush1.bf16.msra.mxu0 %v24331_v46  ;;  %v24341_v37 = vld [vmem:[#allocation282_spill] sm:$0xff]  ;;  %v24342_v46 = vld [vmem:[#allocation236_spill] sm:$0xff] }
 0x411   :  { %4421 = vmatmul.mubr.f32.gmra.mrb[18].mxu1 %v24332_v63  ;;  %11708 = vmatprep.subr.bf16.mxu0 %v24333_v38  ;;  %v24343_v63 = vld [vmem:[#allocation118_spill] sm:$0xff]  ;;  %v24344_v38 = vld [vmem:[#allocation228_spill] sm:$0xff] }
 0x412   :  { %4428 = vmatprep.mubr.f32.mxu1 %v24334_v55  ;;  %10990 = vmatpush1.bf16.msra.mxu1 %v24335_v56  ;;  %v24345_v55 = vld [vmem:[#allocation126_spill] sm:$0xff]  ;;  %v24346_v56 = vld [vmem:[#allocation237_spill] sm:$0xff] }
 0x413   :  { %9217 = vmatmul.mubr.f32.gmra.mrb[18].mxu0 %v24336_v7  ;;  %10992 = vmatprep.subr.bf16.mxu1 %v24337_v25  ;;  %v24347_v7 = vld [vmem:[#allocation153_spill] sm:$0xff] }
 0x414   :  { %9224 = vmatprep.mubr.f32.mxu0 %v24338_v2  ;;  %11710 = vmatpush1.bf16.msra.mxu0 %v24339_v33  ;;  %v24348_v25 = vld [vmem:[#allocation241_spill] sm:$0xff]  ;;  %v24350_v33 = vand.u32 4294901760, %v24095_v49 }
 0x415   :  { %4431 = vmatmul.mubr.f32.gmra.mrb[20].mxu1 %v24340_v52  ;;  %11712 = vmatprep.subr.bf16.mxu0 %v24341_v37  ;;  %v24349_v2 = vld [vmem:[#allocation293_spill] sm:$0xff]  ;;  %v24351_v52 = vld [vmem:[#allocation247_spill] sm:$0xff] }
 0x416   :  { %4438 = vmatprep.mubr.f32.mxu1 %v24342_v46  ;;  %10994 = vmatpush1.bf16.msra.mxu1 %v24343_v63  ;;  %v24352_v37 = vand.u32 4294901760, %v24351_v52  ;;  %v24353_v46 = vld [vmem:[#allocation248_spill] sm:$0xff]  ;;  %v24361_v49 = vld [vmem:[#allocation273_spill] sm:$0xff] }
 0x417   :  { %9227 = vmatmul.mubr.f32.gmra.mrb[20].mxu0 %v24344_v38  ;;  %10996 = vmatprep.subr.bf16.mxu1 %v24345_v55  ;;  %v24354_v63 = vld [vmem:[#allocation128_spill] sm:$0xff]  ;;  %v24355_v38 = vld [vmem:[#allocation245_spill] sm:$0xff]  ;;  %v24356_v55 = vld [vmem:[#allocation130_spill] sm:$0xff] }
 0x418   :  { %9234 = vmatprep.mubr.f32.mxu0 %v24346_v56  ;;  %11714 = vmatpush1.bf16.msra.mxu0 %v24347_v7  ;;  %v11719_v51 = vpack.c.bf16 %v24352_v37, %v24350_v33  ;;  %v24357_v56 = vld [vmem:[#allocation262_spill] sm:$0xff]  ;;  %v24358_v7 = vld [vmem:[#allocation161_spill] sm:$0xff] }
 0x419   :  { %4441 = vmatmul.mubr.f32.gmra.mrb[22].mxu1 %v24348_v25  ;;  %11716 = vmatprep.subr.bf16.mxu0 %v24349_v2  ;;  %v24359_v25 = vld [vmem:[#allocation264_spill] sm:$0xff]  ;;  %v24360_v2 = vld [vmem:[#allocation271_spill] sm:$0xff]  ;;  %v24362_v33 = vld [vmem:[#allocation266_spill] sm:$0xff] }
 0x41a   :  { %4448 = vmatprep.mubr.f32.mxu1 %v24353_v46  ;;  %10998 = vmatpush1.bf16.msra.mxu1 %v24354_v63  ;;  %v24363_v52 = vld [vmem:[#allocation281_spill] sm:$0xff]  ;;  %v24364_v37 = vld [vmem:[#allocation278_spill] sm:$0xff]  ;;  %v24365_v63 = vld [vmem:[#allocation284_spill] sm:$0xff] }
 0x41b   :  { %9237 = vmatmul.mubr.f32.gmra.mrb[22].mxu0 %v24355_v38  ;;  %11000 = vmatprep.subr.bf16.mxu1 %v24356_v55  ;;  %v24366_v55 = vld [vmem:[#allocation305_spill] sm:$0xff]  ;;  %v24378_v38 = vld [vmem:[#allocation8_spill] sm:$0xff] }
 0x41c   :  { %9244 = vmatprep.mubr.f32.mxu0 %v24357_v56  ;;  %11718 = vmatpush1.bf16.msra.mxu0 %v24358_v7  ;;  %v24367_v56 = vld [vmem:[#allocation144_spill] sm:$0xff] }
 0x41d   :  { %4451 = vmatmul.mubr.f32.gmra.mrb[24].mxu1 %v24359_v25  ;;  %11720 = vmatprep.subr.bf16.mxu0 %v11719_v51  ;;  %v24368_v7 = vld [vmem:[#allocation280_spill] sm:$0xff]  ;;  %v24370_v51 = vld [vmem:[#allocation294_spill] sm:$0xff] }
 0x41e   :  { %4458 = vmatprep.mubr.f32.mxu1 %v24360_v2  ;;  %11002 = vmatpush1.bf16.msra.mxu1 %v24361_v49  ;;  %v24369_v25 = vld [vmem:[#allocation288_spill] sm:$0xff] }
 0x41f   :  { %9247 = vmatmul.mubr.f32.gmra.mrb[24].mxu0 %v24362_v33  ;;  %11004 = vmatprep.subr.bf16.mxu1 %v24363_v52  ;;  %v24371_v2 = vld [vmem:[#allocation300_spill] sm:$0xff]  ;;  %v24374_v52 = vld [vmem:[#allocation302_spill] sm:$0xff] }
 0x420   :  { %9254 = vmatprep.mubr.f32.mxu0 %v24364_v37  ;;  %v24372_v49 = vld [vmem:[#allocation308_spill] sm:$0xff]  ;;  %v24375_v37 = vld [vmem:[#allocation165_spill] sm:$0xff] }
 0x421   :  { %4461 = vmatmul.mubr.f32.gmra.mrb[26].mxu1 %v24365_v63  ;;  %v24373_v33 = vld [vmem:[#allocation156_spill] sm:$0xff]  ;;  %v24376_v63 = vld [vmem:[#allocation6_spill] sm:$0xff] }
 0x422   :  { %4468 = vmatprep.mubr.f32.mxu1 %v24366_v55  ;;  %11006 = vmatpush1.bf16.msra.mxu1 %v24367_v56  ;;  %v24377_v55 = vand.u32 4294901760, %v24376_v63  ;;  %v24379_v56 = vand.u32 4294901760, %v24378_v38  ;;  %v24388_v63 = vld [vmem:[#allocation334_spill] sm:$0xff]  ;;  %v24391_v38 = vld [vmem:[#allocation225_spill] sm:$0xff] }
 0x423   :  { %9257 = vmatmul.mubr.f32.gmra.mrb[26].mxu0 %v24368_v7  ;;  %11008 = vmatprep.subr.bf16.mxu1 %v24369_v25  ;;  %v24380_v7 = vld [vmem:[#allocation311_spill] sm:$0xff]  ;;  %v24381_v25 = vld [vmem:[#allocation316_spill] sm:$0xff] }
 0x424   :  { %9264 = vmatprep.mubr.f32.mxu0 %v24370_v51  ;;  %v11015_v46 = vpack.c.bf16 %v24379_v56, %v24377_v55  ;;  %v24382_v51 = vld [vmem:[#allocation320_spill] sm:$0xff]  ;;  %v24390_v55 = vld [vmem:[#allocation310_spill] sm:$0xff] }
 0x425   :  { %4471 = vmatmul.mubr.f32.gmra.mrb[28].mxu1 %v24371_v2  ;;  %v24383_v2 = vld [vmem:[#allocation297_spill] sm:$0xff]  ;;  %v24389_v56 = vld [vmem:[#allocation184_spill] sm:$0xff] }
 0x426   :  { %4478 = vmatprep.mubr.f32.mxu1 %v24372_v49  ;;  %11010 = vmatpush1.bf16.msra.mxu1 %v24373_v33  ;;  %v24384_v49 = vld [vmem:[#allocation177_spill] sm:$0xff]  ;;  %v24385_v33 = vld [vmem:[#allocation326_spill] sm:$0xff] }
 0x427   :  { %9267 = vmatmul.mubr.f32.gmra.mrb[28].mxu0 %v24374_v52  ;;  %11012 = vmatprep.subr.bf16.mxu1 %v24375_v37  ;;  %v24386_v52 = vld [vmem:[#allocation329_spill] sm:$0xff]  ;;  %v24387_v37 = vld [vmem:[#allocation340_spill] sm:$0xff] }
 0x428   :  { %9274 = vmatprep.mubr.f32.mxu0 %v24380_v7  ;;  %v24404_v7 = vld [vmem:[#allocation105_spill] sm:$0xff] }
 0x429   :  { %4481 = vmatmul.mubr.f32.gmra.mrb[30].mxu1 %v24381_v25 }
 0x42a   :  { %4488 = vmatprep.mubr.f32.mxu1 %v24382_v51  ;;  %11014 = vmatpush1.bf16.msra.mxu1 %v24383_v2  ;;  %v24392_v51 = vld [vmem:[#allocation331_spill] sm:$0xff]  ;;  %v24393_v2 = vld [vmem:[#allocation17_spill] sm:$0xff] }
 0x42b   :  { %9277 = vmatmul.mubr.f32.gmra.mrb[30].mxu0 %v24384_v49  ;;  %11016 = vmatprep.subr.bf16.mxu1 %v11015_v46  ;;  %v24394_v49 = vld [vmem:[#allocation345_spill] sm:$0xff] }
 0x42c   :  { %9284 = vmatprep.mubr.f32.mxu0 %v24385_v33  ;;  %v24395_v46 = vld [vmem:[#allocation21_spill] sm:$0xff]  ;;  %v24396_v33 = vld [vmem:[#allocation191_spill] sm:$0xff] }
 0x42d   :  { %4491 = vmatmul.mubr.f32.gmra.mrb[32].mxu1 %v24386_v52  ;;  %v24397_v52 = vld [vmem:[#allocation18_spill] sm:$0xff] }
 0x42e   :  { %4498 = vmatprep.mubr.f32.mxu1 %v24387_v37  ;;  %v24398_v37 = vld [vmem:[#allocation104_spill] sm:$0xff] }
 0x42f   :  { %9287 = vmatmul.mubr.f32.gmra.mrb[32].mxu0 %v24388_v63 }
 0x430   :  { %9294 = vmatprep.mubr.f32.mxu0 %v24389_v56  ;;  %v24399_v56 = vand.u32 4294901760, %v24259_v31  ;;  %v24413_v31 = vand.u32 4294901760, %v24412_v48  ;;  %v24422_v48 = vand.u32 4294901760, %v24264_v6  ;;  %v24433_v6 = vld [vmem:[#allocation213_spill] sm:$0xff] }
 0x431   :  { %4501 = vmatmul.mubr.f32.gmra.mrb[34].mxu1 %v24390_v55  ;;  %v24400_v55 = vld [vmem:[#allocation10_spill] sm:$0xff] }
 0x432   :  { %4508 = vmatprep.mubr.f32.mxu1 %v24391_v38  ;;  %v24401_v63 = vand.u32 4294901760, %v24400_v55  ;;  %v24402_v38 = vld [vmem:[#allocation12_spill] sm:$0xff]  ;;  %v24414_v55 = vand.u32 4294901760, %v24261_v53  ;;  %v24423_v53 = vld [vmem:[#allocation205_spill] sm:$0xff] }
 0x433   :  { %9297 = vmatmul.mubr.f32.gmra.mrb[34].mxu0 %v24392_v51  ;;  %v24403_v25 = vand.u32 4294901760, %v24402_v38 }
 0x434   :  { %9304 = vmatprep.mubr.f32.mxu0 %v24393_v2  ;;  %v24405_v2 = vld [vmem:[#allocation16_spill] sm:$0xff] }
 0x435   :  { %4511 = vmatmul.mubr.f32.gmra.mrb[36].mxu1 %v24394_v49  ;;  %v11017_v51 = vpack.c.bf16 %v24403_v25, %v24401_v63  ;;  %v24406_v49 = vand.u32 4294901760, %v24405_v2  ;;  %v24415_v25 = vand.u32 4294901760, %v24108_v32  ;;  %v24416_v63 = vand.u32 4294901760, %v24109_v41 }
 0x436   :  { %4518 = vmatprep.mubr.f32.mxu1 %v24395_v46  ;;  %v24408_v46 = vand.u32 4294901760, %v24407_v18  ;;  %v24417_v2 = vand.u32 4294901760, %v24263_v35  ;;  %v24418_v18 = vld [vmem:[#allocation193_spill] sm:$0xff]  ;;  %v24427_v41 = vand.u32 4294901760, %v24267_v9 }
 0x437   :  { %9307 = vmatmul.mubr.f32.gmra.mrb[36].mxu0 %v24396_v33  ;;  %v24409_v33 = vand.u32 4294901760, %v24260_v59  ;;  %v11723_v38 = vpack.c.bf16 %v24416_v63, %v24415_v25  ;;  %v24419_v59 = vand.u32 4294901760, %v24418_v18  ;;  %v24428_v35 = vld [vmem:[#allocation201_spill] sm:$0xff]  ;;  %v24435_v18 = vld [vmem:[#allocation211_spill] sm:$0xff] }
 0x438   :  { %9314 = vmatprep.mubr.f32.mxu0 %v24397_v52  ;;  %v11019_v24 = vpack.c.bf16 %v24408_v46, %v24406_v49  ;;  %v24410_v52 = vld [vmem:[#allocation13_spill] sm:$0xff]  ;;  %v24420_v49 = vld [vmem:[#allocation194_spill] sm:$0xff]  ;;  %v24425_v46 = vld [vmem:[#allocation203_spill] sm:$0xff] }
 0x439   :  { %4521 = vmatmul.mubr.f32.gmra.mrb[38].mxu1 %v24398_v37  ;;  %v24411_v37 = vand.u32 4294901760, %v24410_v52  ;;  %v24426_v32 = vand.u32 4294901760, %v24425_v46  ;;  %v24438_v9 = vld [vmem:[#allocation209_spill] sm:$0xff]  ;;  %v24442_v46 = vand.u32 4294901760, %v24272_v12  ;;  %v24453_v12 = vld [vmem:[#allocation235_spill] sm:$0xff] }
 0x43a   :  { %4658 = vmatprep.mubr.f32.mxu1 %v24399_v56 }
 0x43b   :  { %9317 = vmatmul.mubr.f32.gmra.mrb[38].mxu0 %v24404_v7  ;;  %v11721_v56 = vpack.c.bf16 %v24413_v31, %v24411_v37  ;;  %v24424_v37 = vand.u32 4294901760, %v24423_v53 }
 0x43c   :  { %9438 = vmatprep.mubr.f32.mxu0 %v24409_v33  ;;  %v24421_v33 = vand.u32 4294901760, %v24420_v49 }
 0x43d   :  { %4662 = vmatmul.mubr.f32.vlgmr.msra.gmra.mrb[0].mxu1 %v24414_v55  ;;  %v11023_v31 = vpack.c.bf16 %v24426_v32, %v24424_v37  ;;  %v24430_v55 = vld [vmem:[#allocation202_spill] sm:$0xff] }
 0x43e   :  { %11018 = vmatpush1.bf16.msra.mxu1 %v11017_v51  ;;  %4670 = vmatprep.mubr.f32.mxu1 %v24417_v2  ;;  %v11021_v52 = vpack.c.bf16 %v24421_v33, %v24419_v59  ;;  %v24429_v51 = vand.u32 4294901760, %v24428_v35  ;;  %v24431_v25 = vand.u32 4294901760, %v24430_v55  ;;  %v24432_v2 = vand.u32 4294901760, %v24268_v54  ;;  %v24443_v54 = vld [vmem:[#allocation215_spill] sm:$0xff]  ;;  %v24445_v32 = vld [vmem:[#allocation218_spill] sm:$0xff] }
 0x43f   :  { %9442 = vmatmul.mubr.f32.vlgmr.msra.gmra.mrb[0].mxu0 %v24422_v48  ;;  %11020 = vmatprep.subr.bf16.mxu1 %v11019_v24  ;;  %v24434_v24 = vand.u32 4294901760, %v24433_v6  ;;  %v24436_v59 = vand.u32 4294901760, %v24435_v18  ;;  %v24439_v33 = vand.u32 4294901760, %v24438_v9  ;;  %v24440_v48 = vld [vmem:[#allocation210_spill] sm:$0xff]  ;;  %v24450_v55 = vld [vmem:[#allocation219_spill] sm:$0xff]  ;;  %v24452_v6 = vand.u32 4294901760, %v24276_v27 }
 0x440   :  { %11722 = vmatpush1.bf16.msra.mxu0 %v11721_v56  ;;  %9450 = vmatprep.mubr.f32.mxu0 %v24427_v41  ;;  %v11725_v63 = vpack.c.bf16 %v24431_v25, %v24429_v51  ;;  %v24437_v56 = vand.u32 4294901760, %v24271_v43  ;;  %v24441_v53 = vand.u32 4294901760, %v24440_v48  ;;  %v24446_v41 = vand.u32 4294901760, %v24445_v32  ;;  %v24448_v43 = vld [vmem:[#allocation221_spill] sm:$0xff]  ;;  %v24460_v9 = vld [vmem:[#allocation231_spill] sm:$0xff] }
 0x441   :  { %4674 = vmatmul.mubr.f32.gmra.mrb[2].mxu1 %v24432_v2  ;;  %11724 = vmatprep.subr.bf16.mxu0 %v11723_v38  ;;  %v11727_v49 = vpack.c.bf16 %v24436_v59, %v24434_v24  ;;  %v24444_v38 = vand.u32 4294901760, %v24443_v54  ;;  %v24447_v51 = vand.u32 4294901760, %v24274_v23  ;;  %v24451_v25 = vand.u32 4294901760, %v24450_v55  ;;  %v24455_v24 = vld [vmem:[#allocation242_spill] sm:$0xff]  ;;  %v24458_v23 = vld [vmem:[#allocation223_spill] sm:$0xff]  ;;  %v24475_v55 = vld [vmem:[#allocation24_spill] sm:$0xff] }
 0x442   :  { %11022 = vmatpush1.bf16.msra.mxu1 %v11021_v52  ;;  %4682 = vmatprep.mubr.f32.mxu1 %v24437_v56  ;;  %v11025_v37 = vpack.c.bf16 %v24441_v53, %v24439_v33  ;;  %v24449_v52 = vand.u32 4294901760, %v24448_v43  ;;  %v24456_v18 = vand.u32 4294901760, %v24455_v24  ;;  %v24457_v56 = vand.u32 4294901760, %v24278_v36  ;;  %v24463_v27 = vld [vmem:[#allocation227_spill] sm:$0xff]  ;;  %v24468_v36 = vld [vmem:[#allocation250_spill] sm:$0xff] }
 0x443   :  { %9454 = vmatmul.mubr.f32.gmra.mrb[2].mxu0 %v24442_v46  ;;  %11024 = vmatprep.subr.bf16.mxu1 %v11023_v31  ;;  %v11027_v35 = vpack.c.bf16 %v24446_v41, %v24444_v38  ;;  %v24454_v31 = vand.u32 4294901760, %v24453_v12  ;;  %v24461_v33 = vand.u32 4294901760, %v24460_v9  ;;  %v24462_v53 = vand.u32 4294901760, %v24280_v44  ;;  %v24465_v46 = vld [vmem:[#allocation232_spill] sm:$0xff]  ;;  %v24470_v41 = vld [vmem:[#allocation253_spill] sm:$0xff]  ;;  %v24473_v44 = vld [vmem:[#allocation23_spill] sm:$0xff] }
 0x444   :  { %9462 = vmatprep.mubr.f32.mxu0 %v24447_v51  ;;  %11726 = vmatpush1.bf16.msra.mxu0 %v11725_v63  ;;  %v11729_v2 = vpack.c.bf16 %v24451_v25, %v24449_v52  ;;  %v24459_v63 = vand.u32 4294901760, %v24458_v23  ;;  %v24466_v54 = vand.u32 4294901760, %v24465_v46  ;;  %v24467_v32 = vand.u32 4294901760, %v24282_v15  ;;  %v24478_v15 = vld [vmem:[#allocation243_spill] sm:$0xff] }
 0x445   :  { %4686 = vmatmul.mubr.f32.gmra.mrb[4].mxu1 %v24452_v6  ;;  %11728 = vmatprep.subr.bf16.mxu0 %v11727_v49  ;;  %v11731_v59 = vpack.c.bf16 %v24456_v18, %v24454_v31  ;;  %v24464_v49 = vand.u32 4294901760, %v24463_v27  ;;  %v24471_v51 = vand.u32 4294901760, %v24470_v41  ;;  %v24472_v52 = vand.u32 4294901760, %v24284_v40  ;;  %v24480_v31 = vld [vmem:[#allocation249_spill] sm:$0xff]  ;;  %v24485_v23 = vld [vmem:[#allocation319_spill] sm:$0xff] }
 0x446   :  { %4694 = vmatprep.mubr.f32.mxu1 %v24457_v56  ;;  %11026 = vmatpush1.bf16.msra.mxu1 %v11025_v37  ;;  %v11029_v48 = vpack.c.bf16 %v24461_v33, %v24459_v63  ;;  %v24469_v37 = vand.u32 4294901760, %v24468_v36  ;;  %v24476_v25 = vand.u32 4294901760, %v24475_v55  ;;  %v24477_v12 = vand.u32 4294901760, %v24286_v20  ;;  %v24483_v40 = vld [vmem:[#allocation313_spill] sm:$0xff]  ;;  %v24488_v20 = vld [vmem:[#allocation27_spill] sm:$0xff]  ;;  %v24505_v55 = vld [vmem:[#allocation36_spill] sm:$0xff] }
 0x447   :  { %9466 = vmatmul.mubr.f32.gmra.mrb[4].mxu0 %v24462_v53  ;;  %11028 = vmatprep.subr.bf16.mxu1 %v11027_v35  ;;  %v11031_v38 = vpack.c.bf16 %v24466_v54, %v24464_v49  ;;  %v24474_v35 = vand.u32 4294901760, %v24473_v44  ;;  %v24481_v24 = vand.u32 4294901760, %v24480_v31  ;;  %v24482_v56 = vand.u32 4294901760, %v24288_v62  ;;  %v24490_v53 = vld [vmem:[#allocation33_spill] sm:$0xff] }
 0x448   :  { %9474 = vmatprep.mubr.f32.mxu0 %v24467_v32  ;;  %11730 = vmatpush1.bf16.msra.mxu0 %v11729_v2  ;;  %v11733_v43 = vpack.c.bf16 %v24471_v51, %v24469_v37  ;;  %v24479_v2 = vand.u32 4294901760, %v24478_v15  ;;  %v24486_v63 = vand.u32 4294901760, %v24485_v23  ;;  %v24487_v33 = vand.u32 4294901760, %v24290_v17  ;;  %v24493_v62 = vld [vmem:[#allocation45_spill] sm:$0xff]  ;;  %v24498_v17 = vld [vmem:[#allocation315_spill] sm:$0xff] }
 0x449   :  { %4698 = vmatmul.mubr.f32.gmra.mrb[6].mxu1 %v24472_v52  ;;  %11732 = vmatprep.subr.bf16.mxu0 %v11731_v59  ;;  %v11735_v6 = vpack.c.bf16 %v24476_v25, %v24474_v35  ;;  %v24484_v59 = vand.u32 4294901760, %v24483_v40  ;;  %v24491_v27 = vand.u32 4294901760, %v24490_v53  ;;  %v24492_v46 = vand.u32 4294901760, %v24292_v47  ;;  %v24500_v51 = vld [vmem:[#allocation323_spill] sm:$0xff]  ;;  %v24503_v47 = vld [vmem:[#allocation29_spill] sm:$0xff]  ;;  %v24523_v53 = vld [vmem:[#allocation50_spill] sm:$0xff] }
 0x44a   :  { %4706 = vmatprep.mubr.f32.mxu1 %v24477_v12  ;;  %11030 = vmatpush1.bf16.msra.mxu1 %v11029_v48  ;;  %v11033_v18 = vpack.c.bf16 %v24481_v24, %v24479_v2  ;;  %v24489_v48 = vand.u32 4294901760, %v24488_v20  ;;  %v24494_v54 = vand.u32 4294901760, %v24493_v62  ;;  %v24497_v37 = vand.u32 4294901760, %v24294_v57  ;;  %v24508_v57 = vld [vmem:[#allocation51_spill] sm:$0xff]  ;;  %v24510_v2 = vld [vmem:[#allocation57_spill] sm:$0xff] }
 0x44b   :  { %9478 = vmatmul.mubr.f32.gmra.mrb[6].mxu0 %v24482_v56  ;;  %11032 = vmatprep.subr.bf16.mxu1 %v11031_v38  ;;  %v11035_v9 = vpack.c.bf16 %v24486_v63, %v24484_v59  ;;  %v24495_v38 = vld [vmem:[#allocation41_spill] sm:$0xff]  ;;  %v24499_v41 = vand.u32 4294901760, %v24498_v17  ;;  %v24502_v44 = vand.u32 4294901760, %v24296_v45  ;;  %v24504_v35 = vand.u32 4294901760, %v24503_v47  ;;  %v24518_v63 = vld [vmem:[#allocation39_spill] sm:$0xff] }
 0x44c   :  { %9486 = vmatprep.mubr.f32.mxu0 %v24487_v33  ;;  %11734 = vmatpush1.bf16.msra.mxu0 %v11733_v43  ;;  %v11737_v49 = vpack.c.bf16 %v24491_v27, %v24489_v48  ;;  %v24496_v32 = vand.u32 4294901760, %v24495_v38  ;;  %v24501_v43 = vand.u32 4294901760, %v24500_v51  ;;  %v24506_v25 = vand.u32 4294901760, %v24505_v55  ;;  %v24539_v51 = vld [vmem:[#allocation66_spill] sm:$0xff] }
 0x44d   :  { %4710 = vmatmul.mubr.f32.gmra.mrb[8].mxu1 %v24492_v46  ;;  %11736 = vmatprep.subr.bf16.mxu0 %v11735_v6  ;;  %v24507_v12 = vand.u32 4294901760, %v24298_v16  ;;  %v24509_v15 = vand.u32 4294901760, %v24508_v57  ;;  %v24511_v31 = vand.u32 4294901760, %v24510_v2  ;;  %v24513_v45 = vand.u32 4294901760, %v24167_v10  ;;  %v24516_v16 = vld [vmem:[#allocation37_spill] sm:$0xff] }
 0x44e   :  { %v11739_v36 = vpack.c.bf16 %v24496_v32, %v24494_v54  ;;  %4718 = vmatprep.mubr.f32.mxu1 %v24497_v37  ;;  %11034 = vmatpush1.bf16.msra.mxu1 %v11033_v18  ;;  %v11037_v52 = vpack.c.bf16 %v24501_v43, %v24499_v41  ;;  %v11039_v6 = vpack.c.bf16 %v24506_v25, %v24504_v35  ;;  %v24512_v18 = vand.u32 4294901760, %v24300_v22  ;;  %v24521_v22 = vld [vmem:[#allocation42_spill] sm:$0xff]  ;;  %v24534_v37 = vld [vmem:[#allocation68_spill] sm:$0xff] }
 0x44f   :  { %9490 = vmatmul.mubr.f32.gmra.mrb[8].mxu0 %v24502_v44  ;;  %11036 = vmatprep.subr.bf16.mxu1 %v11035_v9  ;;  %v11741_v24 = vpack.c.bf16 %v24511_v31, %v24509_v15  ;;  %v24514_v56 = vand.u32 4294901760, %v24168_v13  ;;  %v24515_v59 = vand.u32 4294901760, %v24302_v19  ;;  %v24517_v23 = vand.u32 4294901760, %v24516_v16  ;;  %v24558_v31 = vld [vmem:[#allocation270_spill] sm:$0xff] }
 0x450   :  { %9498 = vmatprep.mubr.f32.mxu0 %v24507_v12  ;;  %11738 = vmatpush1.bf16.msra.mxu0 %v11737_v49  ;;  %v24519_v9 = vand.u32 4294901760, %v24518_v63  ;;  %v24520_v20 = vand.u32 4294901760, %v24304_v14  ;;  %v24522_v48 = vand.u32 4294901760, %v24521_v22  ;;  %v24524_v10 = vand.u32 4294901760, %v24523_v53  ;;  %v24550_v12 = vld [vmem:[#allocation82_spill] sm:$0xff]  ;;  %v24572_v22 = vld [vmem:[#allocation131_spill] sm:$0xff] }
 0x451   :  { %4722 = vmatmul.mubr.f32.gmra.mrb[10].mxu1 %v24512_v18  ;;  %11740 = vmatprep.subr.bf16.mxu0 %v11739_v36  ;;  %v11743_v40 = vpack.c.bf16 %v24514_v56, %v24513_v45  ;;  %v24525_v13 = vand.u32 4294901760, %v24306_v1  ;;  %v24526_v19 = vand.u32 4294901760, %v24176_v0  ;;  %v24527_v49 = vand.u32 4294901760, %v24177_v11  ;;  %v24532_v1 = vld [vmem:[#allocation53_spill] sm:$0xff]  ;;  %v24560_v45 = vld [vmem:[#allocation127_spill] sm:$0xff]  ;;  %v24574_v53 = vld [vmem:[#allocation108_spill] sm:$0xff] }
 0x452   :  { %4730 = vmatprep.mubr.f32.mxu1 %v24515_v59  ;;  %11038 = vmatpush1.bf16.msra.mxu1 %v11037_v52  ;;  %v11041_v33 = vpack.c.bf16 %v24519_v9, %v24517_v23  ;;  %v11043_v27 = vpack.c.bf16 %v24524_v10, %v24522_v48  ;;  %v24528_v62 = vand.u32 4294901760, %v24308_v34  ;;  %v24529_v14 = vand.u32 4294901760, %v23901_v29  ;;  %v24537_v34 = vld [vmem:[#allocation65_spill] sm:$0xff]  ;;  %v24564_v59 = vld [vmem:[#allocation135_spill] sm:$0xff] }
 0x453   :  { %9502 = vmatmul.mubr.f32.gmra.mrb[10].mxu0 %v24520_v20  ;;  %11040 = vmatprep.subr.bf16.mxu1 %v11039_v6  ;;  %v11745_v46 = vpack.c.bf16 %v24527_v49, %v24526_v19  ;;  %v24530_v54 = vand.u32 4294901760, %v23904_v26  ;;  %v24531_v32 = vand.u32 4294901760, %v24310_v50  ;;  %v24533_v36 = vand.u32 4294901760, %v24532_v1  ;;  %v24570_v9 = vld [vmem:[#allocation99_spill] sm:$0xff]  ;;  %v24578_v49 = vld [vmem:[#allocation148_spill] sm:$0xff] }
 0x454   :  { %9510 = vmatprep.mubr.f32.mxu0 %v24525_v13  ;;  %11742 = vmatpush1.bf16.msra.mxu0 %v11741_v24  ;;  %v24535_v0 = vand.u32 4294901760, %v24534_v37  ;;  %v24536_v11 = vand.u32 4294901760, %v24312_v60  ;;  %v24538_v41 = vand.u32 4294901760, %v24537_v34  ;;  %v24540_v29 = vand.u32 4294901760, %v24539_v51  ;;  %v24584_v1 = vld [vmem:[#allocation155_spill] sm:$0xff] }
 0x455   :  { %4734 = vmatmul.mubr.f32.gmra.mrb[12].mxu1 %v24528_v62  ;;  %11744 = vmatprep.subr.bf16.mxu0 %v11743_v40  ;;  %v11747_v38 = vpack.c.bf16 %v24530_v54, %v24529_v14  ;;  %v24541_v26 = vand.u32 4294901760, %v24314_v4  ;;  %v24542_v50 = vand.u32 4294901760, %v23914_v28  ;;  %v24543_v52 = vand.u32 4294901760, %v23915_v42  ;;  %v24548_v4 = vld [vmem:[#allocation77_spill] sm:$0xff]  ;;  %v24580_v62 = vld [vmem:[#allocation140_spill] sm:$0xff]  ;;  %v24586_v37 = vld [vmem:[#allocation287_spill] sm:$0xff] }
 0x456   :  { %4742 = vmatprep.mubr.f32.mxu1 %v24531_v32  ;;  %11042 = vmatpush1.bf16.msra.mxu1 %v11041_v33  ;;  %v11045_v17 = vpack.c.bf16 %v24535_v0, %v24533_v36  ;;  %v11047_v43 = vpack.c.bf16 %v24540_v29, %v24538_v41  ;;  %v24544_v47 = vand.u32 4294901760, %v24316_v3  ;;  %v24545_v60 = vand.u32 4294901760, %v23940_v39  ;;  %v24582_v54 = vld [vmem:[#allocation141_spill] sm:$0xff]  ;;  %v24590_v41 = vld [vmem:[#allocation180_spill] sm:$0xff]  ;;  %v24592_v29 = vld [vmem:[#allocation111_spill] sm:$0xff] }
 0x457   :  { %9514 = vmatmul.mubr.f32.gmra.mrb[12].mxu0 %v24536_v11  ;;  %11044 = vmatprep.subr.bf16.mxu1 %v11043_v27  ;;  %v11749_v44 = vpack.c.bf16 %v24543_v52, %v24542_v50  ;;  %v24546_v35 = vand.u32 4294901760, %v23941_v30  ;;  %v24547_v25 = vand.u32 4294901760, %v24318_v8  ;;  %v24549_v6 = vand.u32 4294901760, %v24548_v4  ;;  %v24556_v8 = vld [vmem:[#allocation120_spill] sm:$0xff]  ;;  %v24576_v27 = vld [vmem:[#allocation261_spill] sm:$0xff] }
 0x458   :  { %9522 = vmatprep.mubr.f32.mxu0 %v24541_v26  ;;  %11746 = vmatpush1.bf16.msra.mxu0 %v11745_v46  ;;  %v24551_v28 = vand.u32 4294901760, %v24550_v12  ;;  %v24552_v42 = vand.u32 4294901760, %v24320_v61  ;;  %v24553_v3 = vand.u32 4294901760, %v24191_v21  ;;  %v24554_v39 = vand.u32 4294901760, %v24192_v5  ;;  %v24562_v61 = vld [vmem:[#allocation134_spill] sm:$0xff]  ;;  %v24566_v5 = vld [vmem:[#allocation143_spill] sm:$0xff] }
 0x459   :  { %4746 = vmatmul.mubr.f32.gmra.mrb[14].mxu1 %v24544_v47  ;;  %11748 = vmatprep.subr.bf16.mxu0 %v11747_v38  ;;  %v11751_v55 = vpack.c.bf16 %v24546_v35, %v24545_v60  ;;  %v24555_v30 = vand.u32 4294901760, %v24322_v58  ;;  %v24557_v2 = vand.u32 4294901760, %v24556_v8  ;;  %v24559_v24 = vand.u32 4294901760, %v24558_v31  ;;  %v24568_v58 = vld [vmem:[#allocation98_spill] sm:$0xff]  ;;  %v24594_v26 = vld [vmem:[#allocation259_spill] sm:$0xff]  ;;  %v24612_v31 = vld [vmem:[#allocation164_spill] sm:$0xff] }
 0x45a   :  { %4754 = vmatprep.mubr.f32.mxu1 %v24547_v25  ;;  %11046 = vmatpush1.bf16.msra.mxu1 %v11045_v17  ;;  %v11049_v57 = vpack.c.bf16 %v24551_v28, %v24549_v6  ;;  %v11051_v15 = vpack.c.bf16 %v24554_v39, %v24553_v3  ;;  %v24561_v56 = vand.u32 4294901760, %v24560_v45  ;;  %v24563_v40 = vand.u32 4294901760, %v24562_v61  ;;  %v24588_v17 = vld [vmem:[#allocation149_spill] sm:$0xff]  ;;  %v24598_v60 = vld [vmem:[#allocation114_spill] sm:$0xff]  ;;  %v24604_v28 = vld [vmem:[#allocation152_spill] sm:$0xff] }
 0x45b   :  { %9526 = vmatmul.mubr.f32.gmra.mrb[14].mxu0 %v24552_v42  ;;  %11048 = vmatprep.subr.bf16.mxu1 %v11047_v43  ;;  %v11753_v18 = vpack.c.bf16 %v24559_v24, %v24557_v2  ;;  %v24565_v21 = vand.u32 4294901760, %v24564_v59  ;;  %v24567_v23 = vand.u32 4294901760, %v24566_v5  ;;  %v24569_v63 = vand.u32 4294901760, %v24568_v58  ;;  %v24602_v6 = vld [vmem:[#allocation182_spill] sm:$0xff]  ;;  %v24606_v42 = vld [vmem:[#allocation283_spill] sm:$0xff]  ;;  %v24614_v45 = vld [vmem:[#allocation236_spill] sm:$0xff] }
 0x45c   :  { %9534 = vmatprep.mubr.f32.mxu0 %v24555_v30  ;;  %11750 = vmatpush1.bf16.msra.mxu0 %v11749_v44  ;;  %v24571_v33 = vand.u32 4294901760, %v24570_v9  ;;  %v24573_v48 = vand.u32 4294901760, %v24572_v22  ;;  %v24575_v10 = vand.u32 4294901760, %v24574_v53  ;;  %v24577_v13 = vand.u32 4294901760, %v24576_v27  ;;  %v24596_v44 = vld [vmem:[#allocation172_spill] sm:$0xff]  ;;  %v24610_v8 = vld [vmem:[#allocation290_spill] sm:$0xff] }
 0x45d   :  { %4758 = vmatmul.mubr.f32.gmra.mrb[16].mxu1 %v24561_v56  ;;  %11752 = vmatprep.subr.bf16.mxu0 %v11751_v55  ;;  %v11755_v16 = vpack.c.bf16 %v24565_v21, %v24563_v40  ;;  %v24579_v46 = vand.u32 4294901760, %v24578_v49  ;;  %v24581_v14 = vand.u32 4294901760, %v24580_v62  ;;  %v24583_v38 = vand.u32 4294901760, %v24582_v54  ;;  %v24600_v55 = vld [vmem:[#allocation265_spill] sm:$0xff]  ;;  %v24616_v61 = vld [vmem:[#allocation123_spill] sm:$0xff]  ;;  %v24620_v5 = vld [vmem:[#allocation228_spill] sm:$0xff] }
 0x45e   :  { %4766 = vmatprep.mubr.f32.mxu1 %v24567_v23  ;;  %11050 = vmatpush1.bf16.msra.mxu1 %v11049_v57  ;;  %v11053_v20 = vpack.c.bf16 %v24571_v33, %v24569_v63  ;;  %v11055_v19 = vpack.c.bf16 %v24577_v13, %v24575_v10  ;;  %v24585_v36 = vand.u32 4294901760, %v24584_v1  ;;  %v24587_v0 = vand.u32 4294901760, %v24586_v37  ;;  %v24618_v59 = vld [vmem:[#allocation125_spill] sm:$0xff]  ;;  %v24624_v9 = vld [vmem:[#allocation132_spill] sm:$0xff]  ;;  %v24628_v53 = vld [vmem:[#allocation162_spill] sm:$0xff] }
 0x45f   :  { %9538 = vmatmul.mubr.f32.gmra.mrb[16].mxu0 %v24573_v48  ;;  %11052 = vmatprep.subr.bf16.mxu1 %v11051_v15  ;;  %v11757_v32 = vpack.c.bf16 %v24583_v38, %v24581_v14  ;;  %v24589_v11 = vand.u32 4294901760, %v24588_v17  ;;  %v24591_v51 = vand.u32 4294901760, %v24590_v41  ;;  %v24593_v43 = vand.u32 4294901760, %v24592_v29  ;;  %v24608_v15 = vld [vmem:[#allocation317_spill] sm:$0xff]  ;;  %v24630_v27 = vld [vmem:[#allocation166_spill] sm:$0xff]  ;;  %v24634_v62 = vld [vmem:[#allocation248_spill] sm:$0xff] }
 0x460   :  { %9546 = vmatprep.mubr.f32.mxu0 %v24579_v46  ;;  %11754 = vmatpush1.bf16.msra.mxu0 %v11753_v18  ;;  %v24595_v50 = vand.u32 4294901760, %v24594_v26  ;;  %v24597_v47 = vand.u32 4294901760, %v24596_v44  ;;  %v24599_v35 = vand.u32 4294901760, %v24598_v60  ;;  %v24601_v25 = vand.u32 4294901760, %v24600_v55  ;;  %v24622_v58 = vld [vmem:[#allocation129_spill] sm:$0xff]  ;;  %v24636_v54 = vld [vmem:[#allocation279_spill] sm:$0xff] }
 0x461   :  { %4770 = vmatmul.mubr.f32.gmra.mrb[18].mxu1 %v24585_v36  ;;  %11756 = vmatprep.subr.bf16.mxu0 %v11755_v16  ;;  %v11759_v34 = vpack.c.bf16 %v24589_v11, %v24587_v0  ;;  %v24603_v12 = vand.u32 4294901760, %v24602_v6  ;;  %v24605_v57 = vand.u32 4294901760, %v24604_v28  ;;  %v24607_v3 = vand.u32 4294901760, %v24606_v42  ;;  %v24626_v22 = vld [vmem:[#allocation237_spill] sm:$0xff]  ;;  %v24642_v17 = vld [vmem:[#allocation275_spill] sm:$0xff]  ;;  %v24646_v29 = vld [vmem:[#allocation262_spill] sm:$0xff] }
 0x462   :  { %4778 = vmatprep.mubr.f32.mxu1 %v24591_v51  ;;  %11054 = vmatpush1.bf16.msra.mxu1 %v11053_v20  ;;  %v11057_v52 = vpack.c.bf16 %v24595_v50, %v24593_v43  ;;  %v11059_v4 = vpack.c.bf16 %v24601_v25, %v24599_v35  ;;  %v24609_v30 = vand.u32 4294901760, %v24608_v15  ;;  %v24611_v2 = vand.u32 4294901760, %v24610_v8  ;;  %v24632_v49 = vld [vmem:[#allocation241_spill] sm:$0xff]  ;;  %v24648_v26 = vld [vmem:[#allocation264_spill] sm:$0xff]  ;;  %v24651_v44 = vld [vmem:[#allocation271_spill] sm:$0xff] }
 0x463   :  { %9550 = vmatmul.mubr.f32.gmra.mrb[18].mxu0 %v24597_v47  ;;  %11056 = vmatprep.subr.bf16.mxu1 %v11055_v19  ;;  %v11761_v39 = vpack.c.bf16 %v24607_v3, %v24605_v57  ;;  %v24613_v24 = vand.u32 4294901760, %v24612_v31  ;;  %v24615_v56 = vand.u32 4294901760, %v24614_v45  ;;  %v24617_v40 = vand.u32 4294901760, %v24616_v61  ;;  %v24640_v37 = vld [vmem:[#allocation245_spill] sm:$0xff]  ;;  %v24653_v60 = vld [vmem:[#allocation146_spill] sm:$0xff]  ;;  %v24655_v55 = vld [vmem:[#allocation147_spill] sm:$0xff] }
 0x464   :  { %9558 = vmatprep.mubr.f32.mxu0 %v24603_v12  ;;  %11758 = vmatpush1.bf16.msra.mxu0 %v11757_v32  ;;  %v24619_v21 = vand.u32 4294901760, %v24618_v59  ;;  %v24621_v23 = vand.u32 4294901760, %v24620_v5  ;;  %v24623_v63 = vand.u32 4294901760, %v24622_v58  ;;  %v24625_v33 = vand.u32 4294901760, %v24624_v9  ;;  %v24638_v32 = vld [vmem:[#allocation137_spill] sm:$0xff]  ;;  %v24657_v6 = vld [vmem:[#allocation266_spill] sm:$0xff] }
 0x465   :  { %4782 = vmatmul.mubr.f32.gmra.mrb[20].mxu1 %v24609_v30  ;;  %11760 = vmatprep.subr.bf16.mxu0 %v11759_v34  ;;  %v11763_v18 = vpack.c.bf16 %v24613_v24, %v24611_v2  ;;  %v24627_v48 = vand.u32 4294901760, %v24626_v22  ;;  %v24629_v10 = vand.u32 4294901760, %v24628_v53  ;;  %v24631_v13 = vand.u32 4294901760, %v24630_v27  ;;  %v24644_v34 = vld [vmem:[#allocation142_spill] sm:$0xff]  ;;  %v24665_v8 = vld [vmem:[#allocation284_spill] sm:$0xff]  ;;  %v24667_v31 = vld [vmem:[#allocation305_spill] sm:$0xff] }
 0x466   :  { %4790 = vmatprep.mubr.f32.mxu1 %v24615_v56  ;;  %11058 = vmatpush1.bf16.msra.mxu1 %v11057_v52  ;;  %v11061_v16 = vpack.c.bf16 %v24619_v21, %v24617_v40  ;;  %v11063_v20 = vpack.c.bf16 %v24625_v33, %v24623_v63  ;;  %v24633_v46 = vand.u32 4294901760, %v24632_v49  ;;  %v24635_v14 = vand.u32 4294901760, %v24634_v62  ;;  %v24650_v52 = vld [vmem:[#allocation240_spill] sm:$0xff]  ;;  %v24659_v28 = vld [vmem:[#allocation150_spill] sm:$0xff]  ;;  %v24671_v56 = vld [vmem:[#allocation159_spill] sm:$0xff] }
 0x467   :  { %9562 = vmatmul.mubr.f32.gmra.mrb[20].mxu0 %v24621_v23  ;;  %11060 = vmatprep.subr.bf16.mxu1 %v11059_v4  ;;  %v11765_v19 = vpack.c.bf16 %v24631_v13, %v24629_v10  ;;  %v24637_v38 = vand.u32 4294901760, %v24636_v54  ;;  %v24639_v1 = vand.u32 4294901760, %v24638_v32  ;;  %v24641_v0 = vand.u32 4294901760, %v24640_v37  ;;  %v24661_v42 = vld [vmem:[#allocation154_spill] sm:$0xff]  ;;  %v24673_v59 = vld [vmem:[#allocation280_spill] sm:$0xff]  ;;  %v24687_v13 = vld [vmem:[#allocation301_spill] sm:$0xff] }
 0x468   :  { %9570 = vmatprep.mubr.f32.mxu0 %v24627_v48  ;;  %11762 = vmatpush1.bf16.msra.mxu0 %v11761_v39  ;;  %v24643_v11 = vand.u32 4294901760, %v24642_v17  ;;  %v24645_v41 = vand.u32 4294901760, %v24644_v34  ;;  %v24647_v43 = vand.u32 4294901760, %v24646_v29  ;;  %v24649_v50 = vand.u32 4294901760, %v24648_v26  ;;  %v24663_v15 = vld [vmem:[#allocation278_spill] sm:$0xff]  ;;  %v24677_v23 = vld [vmem:[#allocation296_spill] sm:$0xff] }
 0x469   :  { %4794 = vmatmul.mubr.f32.gmra.mrb[22].mxu1 %v24633_v46  ;;  %11764 = vmatprep.subr.bf16.mxu0 %v11763_v18  ;;  %v11065_v36 = vpack.c.bf16 %v24639_v1, %v24637_v38  ;;  %v24652_v47 = vand.u32 4294901760, %v24651_v44  ;;  %v24654_v35 = vand.u32 4294901760, %v24653_v60  ;;  %v24656_v25 = vand.u32 4294901760, %v24655_v55  ;;  %v24669_v18 = vld [vmem:[#allocation158_spill] sm:$0xff]  ;;  %v24683_v48 = vld [vmem:[#allocation308_spill] sm:$0xff]  ;;  %v24697_v37 = vld [vmem:[#allocation177_spill] sm:$0xff] }
 0x46a   :  { %4802 = vmatprep.mubr.f32.mxu1 %v24635_v14  ;;  %11062 = vmatpush1.bf16.msra.mxu1 %v11061_v16  ;;  %v11067_v51 = vpack.c.bf16 %v24645_v41, %v24643_v11  ;;  %v24658_v12 = vand.u32 4294901760, %v24657_v6  ;;  %v24660_v57 = vand.u32 4294901760, %v24659_v28  ;;  %v24662_v3 = vand.u32 4294901760, %v24661_v42  ;;  %v24675_v16 = vld [vmem:[#allocation291_spill] sm:$0xff]  ;;  %v24679_v9 = vld [vmem:[#allocation294_spill] sm:$0xff]  ;;  %v24685_v10 = vld [vmem:[#allocation168_spill] sm:$0xff] }
 0x46b   :  { %9574 = vmatmul.mubr.f32.gmra.mrb[22].mxu0 %v24641_v0  ;;  %11064 = vmatprep.subr.bf16.mxu1 %v11063_v20  ;;  %v11069_v4 = vpack.c.bf16 %v24656_v25, %v24654_v35  ;;  %v24664_v30 = vand.u32 4294901760, %v24663_v15  ;;  %v24666_v2 = vand.u32 4294901760, %v24665_v8  ;;  %v24668_v24 = vand.u32 4294901760, %v24667_v31  ;;  %v24681_v20 = vld [vmem:[#allocation300_spill] sm:$0xff]  ;;  %v24689_v46 = vld [vmem:[#allocation302_spill] sm:$0xff]  ;;  %v24691_v14 = vld [vmem:[#allocation311_spill] sm:$0xff] }
 0x46c   :  { %9582 = vmatprep.mubr.f32.mxu0 %v24647_v43  ;;  %11766 = vmatpush1.bf16.msra.mxu0 %v11765_v19  ;;  %v11071_v39 = vpack.c.bf16 %v24662_v3, %v24660_v57  ;;  %v24670_v45 = vand.u32 4294901760, %v24669_v18  ;;  %v24672_v61 = vand.u32 4294901760, %v24671_v56  ;;  %v24674_v21 = vand.u32 4294901760, %v24673_v59  ;;  %v24693_v38 = vld [vmem:[#allocation316_spill] sm:$0xff]  ;;  %v24699_v17 = vld [vmem:[#allocation233_spill] sm:$0xff]  ;;  %v24700_v11 = vld [vmem:[#allocation326_spill] sm:$0xff] }
 0x46d   :  { %4806 = vmatmul.mubr.f32.gmra.mrb[24].mxu1 %v24649_v50  ;;  %11768 = vmatprep.subr.bf16.mxu0 %v24650_v52  ;;  %v24676_v5 = vand.u32 4294901760, %v24675_v16  ;;  %v24678_v58 = vand.u32 4294901760, %v24677_v23  ;;  %v24680_v33 = vand.u32 4294901760, %v24679_v9  ;;  %v24682_v22 = vand.u32 4294901760, %v24681_v20  ;;  %v24695_v1 = vld [vmem:[#allocation320_spill] sm:$0xff]  ;;  %v24702_v41 = vld [vmem:[#allocation329_spill] sm:$0xff] }
 0x46e   :  { %4814 = vmatprep.mubr.f32.mxu1 %v24652_v47  ;;  %11066 = vmatpush1.bf16.msra.mxu1 %v11065_v36  ;;  %v11073_v40 = vpack.c.bf16 %v24672_v61, %v24670_v45  ;;  %v24684_v53 = vand.u32 4294901760, %v24683_v48  ;;  %v24686_v27 = vand.u32 4294901760, %v24685_v10  ;;  %v24688_v19 = vand.u32 4294901760, %v24687_v13  ;;  %v24704_v29 = vld [vmem:[#allocation340_spill] sm:$0xff]  ;;  %v24706_v26 = vld [vmem:[#allocation334_spill] sm:$0xff]  ;;  %v24712_v35 = vld [vmem:[#allocation225_spill] sm:$0xff] }
 0x46f   :  { %9586 = vmatmul.mubr.f32.gmra.mrb[24].mxu0 %v24658_v12  ;;  %11068 = vmatprep.subr.bf16.mxu1 %v11067_v51  ;;  %v11075_v63 = vpack.c.bf16 %v24678_v58, %v24676_v5  ;;  %v24690_v62 = vand.u32 4294901760, %v24689_v46  ;;  %v24692_v54 = vand.u32 4294901760, %v24691_v14  ;;  %v24694_v32 = vand.u32 4294901760, %v24693_v38  ;;  %v24708_v52 = vld [vmem:[#allocation184_spill] sm:$0xff]  ;;  %v24710_v47 = vld [vmem:[#allocation310_spill] sm:$0xff]  ;;  %v24714_v25 = vld [vmem:[#allocation331_spill] sm:$0xff] }
 0x470   :  { %9594 = vmatprep.mubr.f32.mxu0 %v24664_v30  ;;  %v11077_v49 = vpack.c.bf16 %v24688_v19, %v24686_v27  ;;  %v24696_v36 = vand.u32 4294901760, %v24695_v1  ;;  %v24698_v0 = vand.u32 4294901760, %v24697_v37  ;;  %v24701_v34 = vand.u32 4294901760, %v24700_v11  ;;  %v24716_v6 = vld [vmem:[#allocation17_spill] sm:$0xff]  ;;  %v24724_v30 = vld [vmem:[#allocation18_spill] sm:$0xff]  ;;  %v24730_v45 = vld [vmem:[#allocation299_spill] sm:$0xff] }
 0x471   :  { %4818 = vmatmul.mubr.f32.gmra.mrb[26].mxu1 %v24666_v2  ;;  %v24703_v51 = vand.u32 4294901760, %v24702_v41  ;;  %v24705_v43 = vand.u32 4294901760, %v24704_v29  ;;  %v24707_v50 = vand.u32 4294901760, %v24706_v26  ;;  %v24709_v44 = vand.u32 4294901760, %v24708_v52  ;;  %v24718_v28 = vld [vmem:[#allocation345_spill] sm:$0xff]  ;;  %v24726_v2 = vld [vmem:[#allocation104_spill] sm:$0xff] }
 0x472   :  { %4826 = vmatprep.mubr.f32.mxu1 %v24668_v24  ;;  %11070 = vmatpush1.bf16.msra.mxu1 %v11069_v4  ;;  %v24711_v60 = vand.u32 4294901760, %v24710_v47  ;;  %v24713_v55 = vand.u32 4294901760, %v24712_v35  ;;  %v24715_v4 = vand.u32 4294901760, %v24714_v25  ;;  %v24717_v12 = vand.u32 4294901760, %v24716_v6  ;;  %v24720_v42 = vld [vmem:[#allocation21_spill] sm:$0xff]  ;;  %v24728_v24 = vld [vmem:[#allocation170_spill] sm:$0xff] }
 0x473   :  { %9598 = vmatmul.mubr.f32.gmra.mrb[26].mxu0 %v24674_v21  ;;  %11072 = vmatprep.subr.bf16.mxu1 %v11071_v39  ;;  %v24719_v57 = vand.u32 4294901760, %v24718_v28  ;;  %v24721_v3 = vand.u32 4294901760, %v24720_v42  ;;  %v24722_v39 = vld [vmem:[#allocation191_spill] sm:$0xff]  ;;  %v24725_v8 = vand.u32 4294901760, %v24724_v30  ;;  %v24727_v31 = vand.u32 4294901760, %v24726_v2  ;;  %v24731_v56 = vld [vmem:[#allocation174_spill] sm:$0xff] }
 0x474   :  { %9606 = vmatprep.mubr.f32.mxu0 %v24680_v33  ;;  %v24723_v15 = vand.u32 4294901760, %v24722_v39  ;;  %v24729_v18 = vand.u32 4294901760, %v24404_v7  ;;  %v24732_v61 = vld [vmem:[#allocation7_spill] sm:$0xff]  ;;  %v24735_v21 = vld [vmem:[#allocation321_spill] sm:$0xff]  ;;  %v24736_v16 = vld [vmem:[#allocation312_spill] sm:$0xff] }
 0x475   :  { %4830 = vmatmul.mubr.f32.gmra.mrb[28].mxu1 %v24682_v22  ;;  %v24734_v59 = vld [vmem:[#allocation303_spill] sm:$0xff]  ;;  %v24737_v5 = vld [vmem:[#allocation5_spill] sm:$0xff]  ;;  %v24738_v23 = vld [vmem:[#allocation322_spill] sm:$0xff] }
 0x476   :  { %4838 = vmatprep.mubr.f32.mxu1 %v24684_v53  ;;  %11074 = vmatpush1.bf16.msra.mxu1 %v11073_v40  ;;  %v24733_v40 = vld [vmem:[#allocation187_spill] sm:$0xff]  ;;  %v24739_v7 = vld [vmem:[#allocation26_spill] sm:$0xff]  ;;  %v24742_v9 = vld [vmem:[#allocation333_spill] sm:$0xff] }
 0x477   :  { %9610 = vmatmul.mubr.f32.gmra.mrb[28].mxu0 %v24690_v62  ;;  %11076 = vmatprep.subr.bf16.mxu1 %v11075_v63  ;;  %v24740_v58 = vld [vmem:[#allocation327_spill] sm:$0xff]  ;;  %v24743_v33 = vld [vmem:[#allocation30_spill] sm:$0xff]  ;;  %v24745_v22 = vld [vmem:[#allocation32_spill] sm:$0xff] }
 0x478   :  { %9618 = vmatprep.mubr.f32.mxu0 %v24692_v54  ;;  %v24741_v63 = vld [vmem:[#allocation343_spill] sm:$0xff]  ;;  %v24746_v48 = vld [vmem:[#allocation189_spill] sm:$0xff]  ;;  %v24747_v53 = vld [vmem:[#allocation44_spill] sm:$0xff] }
 0x479   :  { %4842 = vmatmul.mubr.f32.gmra.mrb[30].mxu1 %v24694_v32  ;;  %v24744_v20 = vld [vmem:[#allocation347_spill] sm:$0xff]  ;;  %v24748_v10 = vld [vmem:[#allocation204_spill] sm:$0xff]  ;;  %v24751_v19 = vld [vmem:[#allocation46_spill] sm:$0xff] }
 0x47a   :  { %4850 = vmatprep.mubr.f32.mxu1 %v24696_v36  ;;  %11078 = vmatpush1.bf16.msra.mxu1 %v11077_v49  ;;  %v24749_v27 = vld [vmem:[#allocation35_spill] sm:$0xff]  ;;  %v24750_v13 = vld [vmem:[#allocation196_spill] sm:$0xff]  ;;  %v24752_v49 = vld [vmem:[#allocation206_spill] sm:$0xff] }
 0x47b   :  { %9622 = vmatmul.mubr.f32.gmra.mrb[30].mxu0 %v24698_v0  ;;  %11080 = vmatprep.subr.bf16.mxu1 %v24699_v17  ;;  %v24753_v46 = vld [vmem:[#allocation48_spill] sm:$0xff]  ;;  %v24755_v14 = vld [vmem:[#allocation58_spill] sm:$0xff]  ;;  %v24756_v54 = vld [vmem:[#allocation31_spill] sm:$0xff] }
 0x47c   :  { %9630 = vmatprep.mubr.f32.mxu0 %v24701_v34  ;;  %v24754_v62 = vld [vmem:[#allocation20_spill] sm:$0xff]  ;;  %v24758_v32 = vld [vmem:[#allocation207_spill] sm:$0xff]  ;;  %v24759_v1 = vld [vmem:[#allocation54_spill] sm:$0xff] }
 0x47d   :  { %4854 = vmatmul.mubr.f32.gmra.mrb[32].mxu1 %v24703_v51  ;;  %v24757_v38 = vld [vmem:[#allocation56_spill] sm:$0xff]  ;;  %v24761_v37 = vld [vmem:[#allocation62_spill] sm:$0xff]  ;;  %v24764_v11 = vld [vmem:[#allocation217_spill] sm:$0xff] }
 0x47e   :  { %4862 = vmatprep.mubr.f32.mxu1 %v24705_v43  ;;  %v24760_v36 = vld [vmem:[#allocation28_spill] sm:$0xff]  ;;  %v24762_v0 = vld [vmem:[#allocation34_spill] sm:$0xff]  ;;  %v24767_v51 = vld [vmem:[#allocation63_spill] sm:$0xff] }
 0x47f   :  { %9634 = vmatmul.mubr.f32.gmra.mrb[32].mxu0 %v24707_v50  ;;  %v24763_v17 = vld [vmem:[#allocation70_spill] sm:$0xff]  ;;  %v24765_v34 = vld [vmem:[#allocation60_spill] sm:$0xff]  ;;  %v24770_v26 = vld [vmem:[#allocation47_spill] sm:$0xff] }
 0x480   :  { %9642 = vmatprep.mubr.f32.mxu0 %v24709_v44  ;;  %v24766_v41 = vld [vmem:[#allocation38_spill] sm:$0xff]  ;;  %v24768_v29 = vld [vmem:[#allocation40_spill] sm:$0xff]  ;;  %v24772_v52 = vld [vmem:[#allocation61_spill] sm:$0xff] }
 0x481   :  { %4866 = vmatmul.mubr.f32.gmra.mrb[34].mxu1 %v24711_v60  ;;  %v24769_v43 = vld [vmem:[#allocation72_spill] sm:$0xff]  ;;  %v24771_v50 = vld [vmem:[#allocation78_spill] sm:$0xff]  ;;  %v24773_v44 = vld [vmem:[#allocation69_spill] sm:$0xff] }
 0x482   :  { %4874 = vmatprep.mubr.f32.mxu1 %v24713_v55  ;;  %v24774_v47 = vld [vmem:[#allocation52_spill] sm:$0xff]  ;;  %v24775_v60 = vld [vmem:[#allocation75_spill] sm:$0xff]  ;;  %v24780_v6 = vld [vmem:[#allocation246_spill] sm:$0xff] }
 0x483   :  { %9646 = vmatmul.mubr.f32.gmra.mrb[34].mxu0 %v24715_v4  ;;  %v24776_v35 = vld [vmem:[#allocation67_spill] sm:$0xff]  ;;  %v24777_v55 = vld [vmem:[#allocation92_spill] sm:$0xff]  ;;  %v24784_v42 = vld [vmem:[#allocation85_spill] sm:$0xff] }
 0x484   :  { %9654 = vmatprep.mubr.f32.mxu0 %v24717_v12  ;;  %v24778_v25 = vld [vmem:[#allocation64_spill] sm:$0xff]  ;;  %v24782_v28 = vld [vmem:[#allocation71_spill] sm:$0xff] }
 0x485   :  { %4878 = vmatmul.mubr.f32.gmra.mrb[36].mxu1 %v24719_v57  ;;  %v24779_v4 = vld [vmem:[#allocation96_spill] sm:$0xff]  ;;  %v24783_v57 = vld [vmem:[#allocation87_spill] sm:$0xff] }
 0x486   :  { %4886 = vmatprep.mubr.f32.mxu1 %v24721_v3  ;;  %v24781_v12 = vld [vmem:[#allocation80_spill] sm:$0xff]  ;;  %v24786_v39 = vld [vmem:[#allocation91_spill] sm:$0xff] }
 0x487   :  { %9658 = vmatmul.mubr.f32.gmra.mrb[36].mxu0 %v24723_v15  ;;  %v24785_v3 = vld [vmem:[#allocation256_spill] sm:$0xff]  ;;  %v24787_v15 = vld [vmem:[#allocation110_spill] sm:$0xff]  ;;  %v24788_v30 = vld [vmem:[#allocation107_spill] sm:$0xff] }
 0x488   :  { %9666 = vmatprep.mubr.f32.mxu0 %v24725_v8  ;;  %v24789_v8 = vld [vmem:[#allocation93_spill] sm:$0xff]  ;;  %v24790_v2 = vld [vmem:[#allocation88_spill] sm:$0xff] }
 0x489   :  { %4890 = vmatmul.mubr.f32.gmra.mrb[38].mxu1 %v24727_v31  ;;  %v24791_v31 = vld [vmem:[#allocation89_spill] sm:$0xff] }
 0x48a   :  { %5153 = vmatprep.mubr.f32.mxu1 %v24728_v24 }
 0x48b   :  { %9670 = vmatmul.mubr.f32.gmra.mrb[38].mxu0 %v24729_v18  ;;  %v24792_v18 = vld [vmem:[#allocation115_spill] sm:$0xff] }
 0x48c   :  { %9885 = vmatprep.mubr.f32.mxu0 %v24730_v45 }
 0x48d   :  { %5155 = vmatmul.mubr.f32.vlgmr.msra.gmra.mrb[0].mxu1 %v24731_v56 }
 0x48e   :  { %11082 = vmatpush1.bf16.msra.mxu1 %v24732_v61  ;;  %5161 = vmatprep.mubr.f32.mxu1 %v24733_v40  ;;  %v24793_v61 = vld [vmem:[#allocation116_spill] sm:$0xff] }
 0x48f   :  { %9887 = vmatmul.mubr.f32.vlgmr.msra.gmra.mrb[0].mxu0 %v24734_v59  ;;  %11084 = vmatprep.subr.bf16.mxu1 %v24735_v21  ;;  %v24794_v21 = vld [vmem:[#allocation112_spill] sm:$0xff] }
 0x490   :  { %11770 = vmatpush1.bf16.msra.mxu0 %v24736_v16  ;;  %9893 = vmatprep.mubr.f32.mxu0 %v24737_v5  ;;  %v24795_v16 = vld [vmem:[#allocation122_spill] sm:$0xff] }
 0x491   :  { %5163 = vmatmul.mubr.f32.gmra.mrb[2].mxu1 %v24738_v23  ;;  %11772 = vmatprep.subr.bf16.mxu0 %v24739_v7  ;;  %v24796_v7 = vld [vmem:[#allocation133_spill] sm:$0xff] }
 0x492   :  { %11086 = vmatpush1.bf16.msra.mxu1 %v24740_v58  ;;  %5169 = vmatprep.mubr.f32.mxu1 %v24741_v63  ;;  %v24797_v58 = vld [vmem:[#allocation251_spill] sm:$0xff] }
 0x493   :  { %9895 = vmatmul.mubr.f32.gmra.mrb[2].mxu0 %v24742_v9  ;;  %11088 = vmatprep.subr.bf16.mxu1 %v24743_v33  ;;  %v24798_v33 = vld [vmem:[#allocation119_spill] sm:$0xff] }
 0x494   :  { %9901 = vmatprep.mubr.f32.mxu0 %v24744_v20  ;;  %11774 = vmatpush1.bf16.msra.mxu0 %v24745_v22  ;;  %v24799_v22 = vld [vmem:[#allocation102_spill] sm:$0xff] }
 0x495   :  { %5171 = vmatmul.mubr.f32.gmra.mrb[4].mxu1 %v24746_v48  ;;  %11776 = vmatprep.subr.bf16.mxu0 %v24747_v53  ;;  %v24800_v53 = vld [vmem:[#allocation289_spill] sm:$0xff] }
 0x496   :  { %5177 = vmatprep.mubr.f32.mxu1 %v24748_v10  ;;  %11090 = vmatpush1.bf16.msra.mxu1 %v24749_v27  ;;  %v24801_v27 = vld [vmem:[#allocation267_spill] sm:$0xff] }
 0x497   :  { %9903 = vmatmul.mubr.f32.gmra.mrb[4].mxu0 %v24750_v13  ;;  %11092 = vmatprep.subr.bf16.mxu1 %v24751_v19  ;;  %v24802_v19 = vld [vmem:[#allocation151_spill] sm:$0xff] }
 0x498   :  { %9909 = vmatprep.mubr.f32.mxu0 %v24752_v49  ;;  %11778 = vmatpush1.bf16.msra.mxu0 %v24753_v46  ;;  %v24803_v46 = vld [vmem:[#allocation272_spill] sm:$0xff] }
 0x499   :  { %5179 = vmatmul.mubr.f32.gmra.mrb[6].mxu1 %v24754_v62  ;;  %11780 = vmatprep.subr.bf16.mxu0 %v24755_v14  ;;  %v24804_v14 = vld [vmem:[#allocation160_spill] sm:$0xff] }
 0x49a   :  { %5185 = vmatprep.mubr.f32.mxu1 %v24756_v54  ;;  %11094 = vmatpush1.bf16.msra.mxu1 %v24757_v38  ;;  %v24805_v38 = vld [vmem:[#allocation106_spill] sm:$0xff] }
 0x49b   :  { %9911 = vmatmul.mubr.f32.gmra.mrb[6].mxu0 %v24758_v32  ;;  %11096 = vmatprep.subr.bf16.mxu1 %v24759_v1  ;;  %v24806_v1 = vld [vmem:[#allocation163_spill] sm:$0xff] }
 0x49c   :  { %9917 = vmatprep.mubr.f32.mxu0 %v24760_v36  ;;  %11782 = vmatpush1.bf16.msra.mxu0 %v24761_v37  ;;  %v24807_v37 = vld [vmem:[#allocation113_spill] sm:$0xff] }
 0x49d   :  { %5187 = vmatmul.mubr.f32.gmra.mrb[8].mxu1 %v24762_v0  ;;  %11784 = vmatprep.subr.bf16.mxu0 %v24763_v17  ;;  %v24808_v17 = vld [vmem:[#allocation169_spill] sm:$0xff] }
 0x49e   :  { %5193 = vmatprep.mubr.f32.mxu1 %v24764_v11  ;;  %11098 = vmatpush1.bf16.msra.mxu1 %v24765_v34  ;;  %v24809_v34 = vld [vmem:[#allocation138_spill] sm:$0xff] }
 0x49f   :  { %9919 = vmatmul.mubr.f32.gmra.mrb[8].mxu0 %v24766_v41  ;;  %11100 = vmatprep.subr.bf16.mxu1 %v24767_v51  ;;  %v24810_v51 = vld [vmem:[#allocation175_spill] sm:$0xff] }
 0x4a0   :  { %9925 = vmatprep.mubr.f32.mxu0 %v24768_v29  ;;  %11786 = vmatpush1.bf16.msra.mxu0 %v24769_v43  ;;  %v24811_v43 = vld [vmem:[#allocation282_spill] sm:$0xff] }
 0x4a1   :  { %5195 = vmatmul.mubr.f32.gmra.mrb[10].mxu1 %v24770_v26  ;;  %11788 = vmatprep.subr.bf16.mxu0 %v24771_v50  ;;  %v24812_v50 = vld [vmem:[#allocation230_spill] sm:$0xff] }
 0x4a2   :  { %5201 = vmatprep.mubr.f32.mxu1 %v24772_v52  ;;  %11102 = vmatpush1.bf16.msra.mxu1 %v24773_v44  ;;  %v24813_v44 = vld [vmem:[#allocation118_spill] sm:$0xff] }
 0x4a3   :  { %9927 = vmatmul.mubr.f32.gmra.mrb[10].mxu0 %v24774_v47  ;;  %11104 = vmatprep.subr.bf16.mxu1 %v24775_v60  ;;  %v24814_v60 = vld [vmem:[#allocation344_spill] sm:$0xff] }
 0x4a4   :  { %9933 = vmatprep.mubr.f32.mxu0 %v24776_v35  ;;  %11790 = vmatpush1.bf16.msra.mxu0 %v24777_v55  ;;  %v24815_v55 = vld [vmem:[#allocation126_spill] sm:$0xff] }
 0x4a5   :  { %5203 = vmatmul.mubr.f32.gmra.mrb[12].mxu1 %v24778_v25  ;;  %11792 = vmatprep.subr.bf16.mxu0 %v24779_v4  ;;  %v24816_v4 = vld [vmem:[#allocation234_spill] sm:$0xff] }
 0x4a6   :  { %5209 = vmatprep.mubr.f32.mxu1 %v24780_v6  ;;  %11106 = vmatpush1.bf16.msra.mxu1 %v24781_v12  ;;  %v24817_v12 = vld [vmem:[#allocation153_spill] sm:$0xff] }
 0x4a7   :  { %9935 = vmatmul.mubr.f32.gmra.mrb[12].mxu0 %v24782_v28  ;;  %11108 = vmatprep.subr.bf16.mxu1 %v24783_v57  ;;  %v24818_v57 = vld [vmem:[#allocation239_spill] sm:$0xff] }
 0x4a8   :  { %9941 = vmatprep.mubr.f32.mxu0 %v24784_v42  ;;  %11794 = vmatpush1.bf16.msra.mxu0 %v24785_v3  ;;  %v24819_v3 = vld [vmem:[#allocation293_spill] sm:$0xff] }
 0x4a9   :  { %5211 = vmatmul.mubr.f32.gmra.mrb[14].mxu1 %v24786_v39  ;;  %11796 = vmatprep.subr.bf16.mxu0 %v24787_v15  ;;  %v24820_v15 = vld [vmem:[#allocation252_spill] sm:$0xff] }
 0x4aa   :  { %5217 = vmatprep.mubr.f32.mxu1 %v24788_v30  ;;  %11110 = vmatpush1.bf16.msra.mxu1 %v24789_v8  ;;  %v24821_v8 = vld [vmem:[#allocation128_spill] sm:$0xff] }
 0x4ab   :  { %9943 = vmatmul.mubr.f32.gmra.mrb[14].mxu0 %v24790_v2  ;;  %11112 = vmatprep.subr.bf16.mxu1 %v24791_v31  ;;  %v24822_v31 = vld [vmem:[#allocation244_spill] sm:$0xff] }
 0x4ac   :  { %9949 = vmatprep.mubr.f32.mxu0 %v24792_v18  ;;  %11798 = vmatpush1.bf16.msra.mxu0 %v24793_v61  ;;  %v24823_v61 = vld [vmem:[#allocation130_spill] sm:$0xff] }
 0x4ad   :  { %5219 = vmatmul.mubr.f32.gmra.mrb[16].mxu1 %v24794_v21  ;;  %11800 = vmatprep.subr.bf16.mxu0 %v24795_v16  ;;  %v24824_v16 = vld [vmem:[#allocation260_spill] sm:$0xff] }
 0x4ae   :  { %5225 = vmatprep.mubr.f32.mxu1 %v24796_v7  ;;  %11114 = vmatpush1.bf16.msra.mxu1 %v24797_v58  ;;  %v24825_v58 = vld [vmem:[#allocation161_spill] sm:$0xff] }
 0x4af   :  { %9951 = vmatmul.mubr.f32.gmra.mrb[16].mxu0 %v24798_v33  ;;  %11116 = vmatprep.subr.bf16.mxu1 %v24799_v22  ;;  %v24826_v22 = vld [vmem:[#allocation258_spill] sm:$0xff] }
 0x4b0   :  { %9957 = vmatprep.mubr.f32.mxu0 %v24800_v53  ;;  %11802 = vmatpush1.bf16.msra.mxu0 %v24801_v27  ;;  %v24827_v27 = vld [vmem:[#allocation269_spill] sm:$0xff] }
 0x4b1   :  { %5227 = vmatmul.mubr.f32.gmra.mrb[18].mxu1 %v24802_v19  ;;  %11804 = vmatprep.subr.bf16.mxu0 %v24803_v46  ;;  %v24828_v46 = vld [vmem:[#allocation273_spill] sm:$0xff] }
 0x4b2   :  { %5233 = vmatprep.mubr.f32.mxu1 %v24804_v14  ;;  %11118 = vmatpush1.bf16.msra.mxu1 %v24805_v38  ;;  %v24829_v38 = vld [vmem:[#allocation268_spill] sm:$0xff] }
 0x4b3   :  { %9959 = vmatmul.mubr.f32.gmra.mrb[18].mxu0 %v24806_v1  ;;  %11120 = vmatprep.subr.bf16.mxu1 %v24807_v37  ;;  %v24830_v37 = vld [vmem:[#allocation281_spill] sm:$0xff] }
 0x4b4   :  { %9965 = vmatprep.mubr.f32.mxu0 %v24808_v17  ;;  %11806 = vmatpush1.bf16.msra.mxu0 %v24809_v34  ;;  %v24831_v34 = vld [vmem:[#allocation276_spill] sm:$0xff] }
 0x4b5   :  { %5235 = vmatmul.mubr.f32.gmra.mrb[20].mxu1 %v24810_v51  ;;  %11808 = vmatprep.subr.bf16.mxu0 %v24811_v43  ;;  %v24832_v43 = vld [vmem:[#allocation274_spill] sm:$0xff] }
 0x4b6   :  { %5241 = vmatprep.mubr.f32.mxu1 %v24812_v50  ;;  %11122 = vmatpush1.bf16.msra.mxu1 %v24813_v44  ;;  %v24833_v44 = vld [vmem:[#allocation285_spill] sm:$0xff] }
 0x4b7   :  { %9967 = vmatmul.mubr.f32.gmra.mrb[20].mxu0 %v24814_v60  ;;  %11124 = vmatprep.subr.bf16.mxu1 %v24815_v55  ;;  %v24834_v55 = vld [vmem:[#allocation144_spill] sm:$0xff] }
 0x4b8   :  { %9973 = vmatprep.mubr.f32.mxu0 %v24816_v4  ;;  %11810 = vmatpush1.bf16.msra.mxu0 %v24817_v12  ;;  %v24835_v12 = vld [vmem:[#allocation277_spill] sm:$0xff] }
 0x4b9   :  { %5243 = vmatmul.mubr.f32.gmra.mrb[22].mxu1 %v24818_v57  ;;  %11812 = vmatprep.subr.bf16.mxu0 %v24819_v3  ;;  %v24836_v3 = vld [vmem:[#allocation288_spill] sm:$0xff] }
 0x4ba   :  { %5249 = vmatprep.mubr.f32.mxu1 %v24820_v15  ;;  %11126 = vmatpush1.bf16.msra.mxu1 %v24821_v8  ;;  %v24837_v8 = vld [vmem:[#allocation292_spill] sm:$0xff] }
 0x4bb   :  { %9975 = vmatmul.mubr.f32.gmra.mrb[22].mxu0 %v24822_v31  ;;  %11128 = vmatprep.subr.bf16.mxu1 %v24823_v61  ;;  %v24838_v61 = vld [vmem:[#allocation295_spill] sm:$0xff] }
 0x4bc   :  { %9981 = vmatprep.mubr.f32.mxu0 %v24824_v16  ;;  %11814 = vmatpush1.bf16.msra.mxu0 %v24825_v58  ;;  %v24839_v58 = vld [vmem:[#allocation304_spill] sm:$0xff] }
 0x4bd   :  { %5251 = vmatmul.mubr.f32.gmra.mrb[24].mxu1 %v24826_v22 }
 0x4be   :  { %5257 = vmatprep.mubr.f32.mxu1 %v24827_v27  ;;  %11130 = vmatpush1.bf16.msra.mxu1 %v24828_v46  ;;  %v24840_v46 = vld [vmem:[#allocation156_spill] sm:$0xff] }
 0x4bf   :  { %9983 = vmatmul.mubr.f32.gmra.mrb[24].mxu0 %v24829_v38  ;;  %11132 = vmatprep.subr.bf16.mxu1 %v24830_v37  ;;  %v24841_v37 = vld [vmem:[#allocation298_spill] sm:$0xff] }
 0x4c0   :  { %9989 = vmatprep.mubr.f32.mxu0 %v24831_v34  ;;  %v24842_v34 = vld [vmem:[#allocation165_spill] sm:$0xff] }
 0x4c1   :  { %5259 = vmatmul.mubr.f32.gmra.mrb[26].mxu1 %v24832_v43  ;;  %v24843_v43 = vld [vmem:[#allocation306_spill] sm:$0xff] }
 0x4c2   :  { %5265 = vmatprep.mubr.f32.mxu1 %v24833_v44  ;;  %11134 = vmatpush1.bf16.msra.mxu1 %v24834_v55  ;;  %v24844_v44 = vld [vmem:[#allocation309_spill] sm:$0xff]  ;;  %v24845_v55 = vld [vmem:[#allocation318_spill] sm:$0xff] }
 0x4c3   :  { %9991 = vmatmul.mubr.f32.gmra.mrb[26].mxu0 %v24835_v12  ;;  %11136 = vmatprep.subr.bf16.mxu1 %v24836_v3  ;;  %v24846_v12 = vld [vmem:[#allocation297_spill] sm:$0xff]  ;;  %v24847_v3 = vld [vmem:[#allocation314_spill] sm:$0xff] }
 0x4c4   :  { %9997 = vmatprep.mubr.f32.mxu0 %v24837_v8  ;;  %v24848_v8 = vld [vmem:[#allocation324_spill] sm:$0xff] }
 0x4c5   :  { %5267 = vmatmul.mubr.f32.gmra.mrb[28].mxu1 %v24838_v61  ;;  %v24849_v61 = vld [vmem:[#allocation325_spill] sm:$0xff] }
 0x4c6   :  { %5273 = vmatprep.mubr.f32.mxu1 %v24839_v58  ;;  %11138 = vmatpush1.bf16.msra.mxu1 %v24840_v46  ;;  %v24850_v58 = vld [vmem:[#allocation335_spill] sm:$0xff]  ;;  %v24851_v46 = vld [vmem:[#allocation332_spill] sm:$0xff] }
 0x4c7   :  { %9999 = vmatmul.mubr.f32.gmra.mrb[28].mxu0 %v24841_v37  ;;  %11140 = vmatprep.subr.bf16.mxu1 %v24842_v34  ;;  %v24852_v37 = vld [vmem:[#allocation338_spill] sm:$0xff]  ;;  %v24853_v34 = vld [vmem:[#allocation176_spill] sm:$0xff] }
 0x4c8   :  { %10005 = vmatprep.mubr.f32.mxu0 %v24843_v43  ;;  %v24854_v43 = vld [vmem:[#allocation186_spill] sm:$0xff] }
 0x4c9   :  { %5275 = vmatmul.mubr.f32.gmra.mrb[30].mxu1 %v24844_v44  ;;  %v24855_v44 = vld [vmem:[#allocation183_spill] sm:$0xff] }
 0x4ca   :  { %5281 = vmatprep.mubr.f32.mxu1 %v24845_v55  ;;  %11142 = vmatpush1.bf16.msra.mxu1 %v24846_v12  ;;  %v24856_v55 = vld [vmem:[#allocation9_spill] sm:$0xff] }
 0x4cb   :  { %10007 = vmatmul.mubr.f32.gmra.mrb[30].mxu0 %v24847_v3  ;;  %v24857_v12 = vld [vmem:[#allocation337_spill] sm:$0xff]  ;;  %v24858_v3 = vld [vmem:[#allocation339_spill] sm:$0xff] }
 0x4cc   :  { %10013 = vmatprep.mubr.f32.mxu0 %v24848_v8  ;;  %v24859_v8 = vld [vmem:[#allocation341_spill] sm:$0xff] }
 0x4cd   :  { %5283 = vmatmul.mubr.f32.gmra.mrb[32].mxu1 %v24849_v61  ;;  %v24860_v61 = vld [vmem:[#allocation198_spill] sm:$0xff] }
 0x4ce   :  { %5289 = vmatprep.mubr.f32.mxu1 %v24850_v58  ;;  %v24861_v58 = vld [vmem:[#allocation199_spill] sm:$0xff] }
 0x4cf   :  { %10015 = vmatmul.mubr.f32.gmra.mrb[32].mxu0 %v24851_v46 }
 0x4d0   :  { %10021 = vmatprep.mubr.f32.mxu0 %v24852_v37  ;;  %v24862_v37 = vld [vmem:[#allocation212_spill] sm:$0xff] }
 0x4d1   :  { %5291 = vmatmul.mubr.f32.gmra.mrb[34].mxu1 %v24853_v34 }
 0x4d2   :  { %5297 = vmatprep.mubr.f32.mxu1 %v24854_v43 }
 0x4d3   :  { %10023 = vmatmul.mubr.f32.gmra.mrb[34].mxu0 %v24855_v44 }
 0x4d4   :  { %10029 = vmatprep.mubr.f32.mxu0 %v24856_v55 }
 0x4d5   :  { %5299 = vmatmul.mubr.f32.gmra.mrb[36].mxu1 %v24857_v12 }
 0x4d6   :  { %5305 = vmatprep.mubr.f32.mxu1 %v24858_v3 }
 0x4d7   :  { %10031 = vmatmul.mubr.f32.gmra.mrb[36].mxu0 %v24859_v8 }
 0x4d8   :  { %10037 = vmatprep.mubr.f32.mxu0 %v24860_v61 }
 0x4d9   :  { %5307 = vmatmul.mubr.f32.gmra.mrb[38].mxu1 %v24861_v58 }
 0x4da   :  { %5442 = vmatprep.mubr.f32.mxu1 %v24728_v24  ;;  %v24863_v24 = vld [vmem:[#allocation276_spill] sm:$0xff] }
 0x4db   :  { %10039 = vmatmul.mubr.f32.gmra.mrb[38].mxu0 %v24862_v37 }
 0x4dc   :  { %10158 = vmatprep.mubr.f32.mxu0 %v24730_v45  ;;  %v24864_v45 = vld [vmem:[#allocation274_spill] sm:$0xff] }
 0x4dd   :  { %5444 = vmatmul.mubr.f32.vlgmr.msra.gmra.mrb[0].mxu1 %v24731_v56  ;;  %v24865_v56 = vld [vmem:[#allocation285_spill] sm:$0xff] }
 0x4de   :  { %5450 = vmatprep.mubr.f32.mxu1 %v24733_v40  ;;  %v24866_v40 = vld [vmem:[#allocation277_spill] sm:$0xff] }
 0x4df   :  { %10160 = vmatmul.mubr.f32.vlgmr.msra.gmra.mrb[0].mxu0 %v24734_v59  ;;  %v24867_v59 = vld [vmem:[#allocation292_spill] sm:$0xff] }
 0x4e0   :  { %10166 = vmatprep.mubr.f32.mxu0 %v24737_v5  ;;  %v24868_v5 = vld [vmem:[#allocation295_spill] sm:$0xff] }
 0x4e1   :  { %5452 = vmatmul.mubr.f32.gmra.mrb[2].mxu1 %v24738_v23  ;;  %v24869_v23 = vld [vmem:[#allocation304_spill] sm:$0xff] }
 0x4e2   :  { %5458 = vmatprep.mubr.f32.mxu1 %v24741_v63  ;;  %v24870_v63 = vld [vmem:[#allocation298_spill] sm:$0xff] }
 0x4e3   :  { %10168 = vmatmul.mubr.f32.gmra.mrb[2].mxu0 %v24742_v9  ;;  %v24871_v9 = vld [vmem:[#allocation306_spill] sm:$0xff] }
 0x4e4   :  { %10174 = vmatprep.mubr.f32.mxu0 %v24744_v20  ;;  %v24872_v20 = vld [vmem:[#allocation309_spill] sm:$0xff] }
 0x4e5   :  { %5460 = vmatmul.mubr.f32.gmra.mrb[4].mxu1 %v24746_v48  ;;  %v24873_v48 = vld [vmem:[#allocation318_spill] sm:$0xff] }
 0x4e6   :  { %5466 = vmatprep.mubr.f32.mxu1 %v24748_v10  ;;  %v24874_v10 = vld [vmem:[#allocation314_spill] sm:$0xff] }
 0x4e7   :  { %10176 = vmatmul.mubr.f32.gmra.mrb[4].mxu0 %v24750_v13  ;;  %v24875_v13 = vld [vmem:[#allocation324_spill] sm:$0xff] }
 0x4e8   :  { %10182 = vmatprep.mubr.f32.mxu0 %v24752_v49  ;;  %v24876_v49 = vld [vmem:[#allocation325_spill] sm:$0xff] }
 0x4e9   :  { %5468 = vmatmul.mubr.f32.gmra.mrb[6].mxu1 %v24754_v62  ;;  %v24877_v62 = vld [vmem:[#allocation335_spill] sm:$0xff] }
 0x4ea   :  { %5474 = vmatprep.mubr.f32.mxu1 %v24756_v54  ;;  %v24878_v54 = vld [vmem:[#allocation338_spill] sm:$0xff] }
 0x4eb   :  { %10184 = vmatmul.mubr.f32.gmra.mrb[6].mxu0 %v24758_v32 }
 0x4ec   :  { %10190 = vmatprep.mubr.f32.mxu0 %v24760_v36 }
 0x4ed   :  { %5476 = vmatmul.mubr.f32.gmra.mrb[8].mxu1 %v24762_v0 }
 0x4ee   :  { %5482 = vmatprep.mubr.f32.mxu1 %v24764_v11 }
 0x4ef   :  { %10192 = vmatmul.mubr.f32.gmra.mrb[8].mxu0 %v24766_v41 }
 0x4f0   :  { %10198 = vmatprep.mubr.f32.mxu0 %v24768_v29 }
 0x4f1   :  { %5484 = vmatmul.mubr.f32.gmra.mrb[10].mxu1 %v24770_v26 }
 0x4f2   :  { %5490 = vmatprep.mubr.f32.mxu1 %v24772_v52 }
 0x4f3   :  { %10200 = vmatmul.mubr.f32.gmra.mrb[10].mxu0 %v24774_v47 }
 0x4f4   :  { %10206 = vmatprep.mubr.f32.mxu0 %v24776_v35 }
 0x4f5   :  { %5492 = vmatmul.mubr.f32.gmra.mrb[12].mxu1 %v24778_v25 }
 0x4f6   :  { %5498 = vmatprep.mubr.f32.mxu1 %v24780_v6 }
 0x4f7   :  { %10208 = vmatmul.mubr.f32.gmra.mrb[12].mxu0 %v24782_v28 }
 0x4f8   :  { %10214 = vmatprep.mubr.f32.mxu0 %v24784_v42 }
 0x4f9   :  { %5500 = vmatmul.mubr.f32.gmra.mrb[14].mxu1 %v24786_v39 }
 0x4fa   :  { %5506 = vmatprep.mubr.f32.mxu1 %v24788_v30 }
 0x4fb   :  { %10216 = vmatmul.mubr.f32.gmra.mrb[14].mxu0 %v24790_v2 }
 0x4fc   :  { %10222 = vmatprep.mubr.f32.mxu0 %v24792_v18 }
 0x4fd   :  { %5508 = vmatmul.mubr.f32.gmra.mrb[16].mxu1 %v24794_v21 }
 0x4fe   :  { %5514 = vmatprep.mubr.f32.mxu1 %v24796_v7 }
 0x4ff   :  { %10224 = vmatmul.mubr.f32.gmra.mrb[16].mxu0 %v24798_v33 }
 0x500   :  { %10230 = vmatprep.mubr.f32.mxu0 %v24800_v53 }
 0x501   :  { %5516 = vmatmul.mubr.f32.gmra.mrb[18].mxu1 %v24802_v19 }
 0x502   :  { %5522 = vmatprep.mubr.f32.mxu1 %v24804_v14 }
 0x503   :  { %10232 = vmatmul.mubr.f32.gmra.mrb[18].mxu0 %v24806_v1 }
 0x504   :  { %10238 = vmatprep.mubr.f32.mxu0 %v24808_v17 }
 0x505   :  { %5524 = vmatmul.mubr.f32.gmra.mrb[20].mxu1 %v24810_v51 }
 0x506   :  { %5530 = vmatprep.mubr.f32.mxu1 %v24812_v50 }
 0x507   :  { %10240 = vmatmul.mubr.f32.gmra.mrb[20].mxu0 %v24814_v60 }
 0x508   :  { %10246 = vmatprep.mubr.f32.mxu0 %v24816_v4 }
 0x509   :  { %5532 = vmatmul.mubr.f32.gmra.mrb[22].mxu1 %v24818_v57 }
 0x50a   :  { %5538 = vmatprep.mubr.f32.mxu1 %v24820_v15 }
 0x50b   :  { %10248 = vmatmul.mubr.f32.gmra.mrb[22].mxu0 %v24822_v31 }
 0x50c   :  { %10254 = vmatprep.mubr.f32.mxu0 %v24824_v16 }
 0x50d   :  { %5540 = vmatmul.mubr.f32.gmra.mrb[24].mxu1 %v24826_v22 }
 0x50e   :  { %5546 = vmatprep.mubr.f32.mxu1 %v24827_v27 }
 0x50f   :  { %10256 = vmatmul.mubr.f32.gmra.mrb[24].mxu0 %v24829_v38 }
 0x510   :  { %10262 = vmatprep.mubr.f32.mxu0 %v24863_v24 }
 0x511   :  { %5548 = vmatmul.mubr.f32.gmra.mrb[26].mxu1 %v24864_v45 }
 0x512   :  { %5554 = vmatprep.mubr.f32.mxu1 %v24865_v56 }
 0x513   :  { %10264 = vmatmul.mubr.f32.gmra.mrb[26].mxu0 %v24866_v40 }
 0x514   :  { %10270 = vmatprep.mubr.f32.mxu0 %v24867_v59 }
 0x515   :  { %5556 = vmatmul.mubr.f32.gmra.mrb[28].mxu1 %v24868_v5 }
 0x516   :  { %5562 = vmatprep.mubr.f32.mxu1 %v24869_v23 }
 0x517   :  { %10272 = vmatmul.mubr.f32.gmra.mrb[28].mxu0 %v24870_v63 }
 0x518   :  { %10278 = vmatprep.mubr.f32.mxu0 %v24871_v9 }
 0x519   :  { %5564 = vmatmul.mubr.f32.gmra.mrb[30].mxu1 %v24872_v20 }
 0x51a   :  { %5570 = vmatprep.mubr.f32.mxu1 %v24873_v48 }
 0x51b   :  { %10280 = vmatmul.mubr.f32.gmra.mrb[30].mxu0 %v24874_v10 }
 0x51c   :  { %10286 = vmatprep.mubr.f32.mxu0 %v24875_v13 }
 0x51d   :  { %5572 = vmatmul.mubr.f32.gmra.mrb[32].mxu1 %v24876_v49 }
 0x51e   :  { %5578 = vmatprep.mubr.f32.mxu1 %v24877_v62 }
 0x51f   :  { %10288 = vmatmul.mubr.f32.gmra.mrb[32].mxu0 %v24851_v46 }
 0x520   :  { %10294 = vmatprep.mubr.f32.mxu0 %v24878_v54 }
 0x521   :  { %5580 = vmatmul.mubr.f32.gmra.mrb[34].mxu1 %v24853_v34 }
 0x522   :  { %5586 = vmatprep.mubr.f32.mxu1 %v24854_v43 }
 0x523   :  { %10296 = vmatmul.mubr.f32.gmra.mrb[34].mxu0 %v24855_v44 }
 0x524   :  { %10302 = vmatprep.mubr.f32.mxu0 %v24856_v55 }
 0x525   :  { %5588 = vmatmul.mubr.f32.gmra.mrb[36].mxu1 %v24857_v12 }
 0x526   :  { %5594 = vmatprep.mubr.f32.mxu1 %v24858_v3 }
 0x527   :  { %10304 = vmatmul.mubr.f32.gmra.mrb[36].mxu0 %v24859_v8 }
 0x528   :  { %10310 = vmatprep.mubr.f32.mxu0 %v24860_v61 }
 0x529   :  { %5596 = vmatmul.mubr.f32.gmra.mrb[38].mxu1 %v24861_v58 }
 0x52b   :  { %10312 = vmatmul.mubr.f32.gmra.mrb[38].mxu0 %v24862_v37 }
 0x5b0   :  { %v5445_v32 = vpop.f32.mrb[0].mxu1 }
 0x5b1   :  { %v5447_v36 = vpop.f32.mrb[1].mxu1 }
 0x5b2   :  { %v10161_v0 = vpop.f32.mrb[0].mxu0 }
 0x5b3   :  { %v11815_v11 = vadd.f32 %v10161_v0, %v5445_v32  ;;  %v10163_v41 = vpop.f32.mrb[1].mxu0 }
 0x5b4   :  { %v11816_v29 = vadd.f32 %v10163_v41, %v5447_v36  ;;  %v5453_v26 = vpop.f32.mrb[2].mxu1 }
 0x5b5   :  { %10318 = vst [vmem:[#allocation2] sm:$0xff] %v11815_v11  ;;  %v5455_v52 = vpop.f32.mrb[3].mxu1 }
 0x5b6   :  { %10320 = vst.msk [vmem:[#allocation2 + $0x8] sm:$0xff] %vm10319_vm1, %v11816_v29  ;;  %v10169_v47 = vpop.f32.mrb[2].mxu0 }
 0x5b7   :  { %v11817_v35 = vadd.f32 %v10169_v47, %v5453_v26  ;;  %v10171_v25 = vpop.f32.mrb[3].mxu0 }
 0x5b8   :  { %v11818_v6 = vadd.f32 %v10171_v25, %v5455_v52  ;;  %v5461_v28 = vpop.f32.mrb[4].mxu1 }
 0x5b9   :  { %10321 = vst [vmem:[#allocation2 + $0x10] sm:$0xff] %v11817_v35  ;;  %v5463_v42 = vpop.f32.mrb[5].mxu1 }
 0x5ba   :  { %10322 = vst.msk [vmem:[#allocation2 + $0x18] sm:$0xff] %vm10319_vm1, %v11818_v6  ;;  %v10177_v39 = vpop.f32.mrb[4].mxu0 }
 0x5bb   :  { %v11819_v30 = vadd.f32 %v10177_v39, %v5461_v28  ;;  %v10179_v2 = vpop.f32.mrb[5].mxu0 }
 0x5bc   :  { %v11820_v18 = vadd.f32 %v10179_v2, %v5463_v42  ;;  %v5469_v21 = vpop.f32.mrb[6].mxu1 }
 0x5bd   :  { %10323 = vst [vmem:[#allocation2 + $0x20] sm:$0xff] %v11819_v30  ;;  %v5471_v7 = vpop.f32.mrb[7].mxu1 }
 0x5be   :  { %10324 = vst.msk [vmem:[#allocation2 + $0x28] sm:$0xff] %vm10319_vm1, %v11820_v18  ;;  %v10185_v33 = vpop.f32.mrb[6].mxu0 }
 0x5bf   :  { %v11821_v53 = vadd.f32 %v10185_v33, %v5469_v21  ;;  %v10187_v19 = vpop.f32.mrb[7].mxu0 }
 0x5c0   :  { %v11822_v14 = vadd.f32 %v10187_v19, %v5471_v7  ;;  %v5477_v1 = vpop.f32.mrb[8].mxu1 }
 0x5c1   :  { %10325 = vst [vmem:[#allocation2 + $0x30] sm:$0xff] %v11821_v53  ;;  %v5479_v17 = vpop.f32.mrb[9].mxu1 }
 0x5c2   :  { %10326 = vst.msk [vmem:[#allocation2 + $0x38] sm:$0xff] %vm10319_vm1, %v11822_v14  ;;  %v10193_v51 = vpop.f32.mrb[8].mxu0 }
 0x5c3   :  { %v11823_v50 = vadd.f32 %v10193_v51, %v5477_v1  ;;  %v10195_v60 = vpop.f32.mrb[9].mxu0 }
 0x5c4   :  { %v11824_v4 = vadd.f32 %v10195_v60, %v5479_v17  ;;  %v5485_v57 = vpop.f32.mrb[10].mxu1 }
 0x5c5   :  { %10327 = vst [vmem:[#allocation2 + $0x40] sm:$0xff] %v11823_v50  ;;  %v5487_v15 = vpop.f32.mrb[11].mxu1 }
 0x5c6   :  { %10328 = vst.msk [vmem:[#allocation2 + $0x48] sm:$0xff] %vm10319_vm1, %v11824_v4  ;;  %v10201_v31 = vpop.f32.mrb[10].mxu0 }
 0x5c7   :  { %v11825_v16 = vadd.f32 %v10201_v31, %v5485_v57  ;;  %v10203_v22 = vpop.f32.mrb[11].mxu0 }
 0x5c8   :  { %v11826_v27 = vadd.f32 %v10203_v22, %v5487_v15  ;;  %v5493_v38 = vpop.f32.mrb[12].mxu1 }
 0x5c9   :  { %10329 = vst [vmem:[#allocation2 + $0x50] sm:$0xff] %v11825_v16  ;;  %v5495_v43 = vpop.f32.mrb[13].mxu1 }
 0x5ca   :  { %10330 = vst.msk [vmem:[#allocation2 + $0x58] sm:$0xff] %vm10319_vm1, %v11826_v27  ;;  %v10209_v44 = vpop.f32.mrb[12].mxu0 }
 0x5cb   :  { %v11827_v8 = vadd.f32 %v10209_v44, %v5493_v38  ;;  %v10211_v61 = vpop.f32.mrb[13].mxu0 }
 0x5cc   :  { %v11828_v58 = vadd.f32 %v10211_v61, %v5495_v43  ;;  %v5501_v37 = vpop.f32.mrb[14].mxu1 }
 0x5cd   :  { %10331 = vst [vmem:[#allocation2 + $0x60] sm:$0xff] %v11827_v8  ;;  %v5503_v55 = vpop.f32.mrb[15].mxu1 }
 0x5ce   :  { %10332 = vst.msk [vmem:[#allocation2 + $0x68] sm:$0xff] %vm10319_vm1, %v11828_v58  ;;  %v10217_v3 = vpop.f32.mrb[14].mxu0 }
 0x5cf   :  { %v11829_v46 = vadd.f32 %v10217_v3, %v5501_v37  ;;  %v10219_v34 = vpop.f32.mrb[15].mxu0 }
 0x5d0   :  { %v11830_v12 = vadd.f32 %v10219_v34, %v5503_v55  ;;  %v5509_v24 = vpop.f32.mrb[16].mxu1 }
 0x5d1   :  { %10333 = vst [vmem:[#allocation2 + $0x70] sm:$0xff] %v11829_v46  ;;  %v5511_v45 = vpop.f32.mrb[17].mxu1 }
 0x5d2   :  { %10334 = vst.msk [vmem:[#allocation2 + $0x78] sm:$0xff] %vm10319_vm1, %v11830_v12  ;;  %v10225_v56 = vpop.f32.mrb[16].mxu0 }
 0x5d3   :  { %v11831_v40 = vadd.f32 %v10225_v56, %v5509_v24  ;;  %v10227_v59 = vpop.f32.mrb[17].mxu0 }
 0x5d4   :  { %v11832_v5 = vadd.f32 %v10227_v59, %v5511_v45  ;;  %v5517_v23 = vpop.f32.mrb[18].mxu1 }
 0x5d5   :  { %10335 = vst [vmem:[#allocation2 + $0x80] sm:$0xff] %v11831_v40  ;;  %v5519_v63 = vpop.f32.mrb[19].mxu1 }
 0x5d6   :  { %10336 = vst.msk [vmem:[#allocation2 + $0x88] sm:$0xff] %vm10319_vm1, %v11832_v5  ;;  %v10233_v9 = vpop.f32.mrb[18].mxu0 }
 0x5d7   :  { %v11833_v20 = vadd.f32 %v10233_v9, %v5517_v23  ;;  %v10235_v48 = vpop.f32.mrb[19].mxu0 }
 0x5d8   :  { %v11834_v10 = vadd.f32 %v10235_v48, %v5519_v63  ;;  %v5525_v13 = vpop.f32.mrb[20].mxu1 }
 0x5d9   :  { %10337 = vst [vmem:[#allocation2 + $0x90] sm:$0xff] %v11833_v20  ;;  %v5527_v49 = vpop.f32.mrb[21].mxu1 }
 0x5da   :  { %10338 = vst.msk [vmem:[#allocation2 + $0x98] sm:$0xff] %vm10319_vm1, %v11834_v10  ;;  %v10241_v62 = vpop.f32.mrb[20].mxu0 }
 0x5db   :  { %v11835_v54 = vadd.f32 %v10241_v62, %v5525_v13  ;;  %v10243_v32 = vpop.f32.mrb[21].mxu0 }
 0x5dc   :  { %v11836_v36 = vadd.f32 %v10243_v32, %v5527_v49  ;;  %v5533_v0 = vpop.f32.mrb[22].mxu1 }
 0x5dd   :  { %10339 = vst [vmem:[#allocation2 + $0xa0] sm:$0xff] %v11835_v54  ;;  %v5535_v11 = vpop.f32.mrb[23].mxu1 }
 0x5de   :  { %10340 = vst.msk [vmem:[#allocation2 + $0xa8] sm:$0xff] %vm10319_vm1, %v11836_v36  ;;  %v10249_v41 = vpop.f32.mrb[22].mxu0 }
 0x5df   :  { %v11837_v29 = vadd.f32 %v10249_v41, %v5533_v0  ;;  %v10251_v26 = vpop.f32.mrb[23].mxu0 }
 0x5e0   :  { %v11838_v52 = vadd.f32 %v10251_v26, %v5535_v11  ;;  %v5541_v47 = vpop.f32.mrb[24].mxu1 }
 0x5e1   :  { %10341 = vst [vmem:[#allocation2 + $0xb0] sm:$0xff] %v11837_v29  ;;  %v5543_v35 = vpop.f32.mrb[25].mxu1 }
 0x5e2   :  { %10342 = vst.msk [vmem:[#allocation2 + $0xb8] sm:$0xff] %vm10319_vm1, %v11838_v52  ;;  %v10257_v25 = vpop.f32.mrb[24].mxu0 }
 0x5e3   :  { %v11839_v6 = vadd.f32 %v10257_v25, %v5541_v47  ;;  %v10259_v28 = vpop.f32.mrb[25].mxu0 }
 0x5e4   :  { %v11840_v42 = vadd.f32 %v10259_v28, %v5543_v35  ;;  %v5549_v39 = vpop.f32.mrb[26].mxu1 }
 0x5e5   :  { %10343 = vst [vmem:[#allocation2 + $0xc0] sm:$0xff] %v11839_v6  ;;  %v5551_v30 = vpop.f32.mrb[27].mxu1 }
 0x5e6   :  { %10344 = vst.msk [vmem:[#allocation2 + $0xc8] sm:$0xff] %vm10319_vm1, %v11840_v42  ;;  %v10265_v2 = vpop.f32.mrb[26].mxu0 }
 0x5e7   :  { %v11841_v18 = vadd.f32 %v10265_v2, %v5549_v39  ;;  %v10267_v21 = vpop.f32.mrb[27].mxu0 }
 0x5e8   :  { %v11842_v7 = vadd.f32 %v10267_v21, %v5551_v30  ;;  %v5557_v33 = vpop.f32.mrb[28].mxu1 }
 0x5e9   :  { %10345 = vst [vmem:[#allocation2 + $0xd0] sm:$0xff] %v11841_v18  ;;  %v5559_v53 = vpop.f32.mrb[29].mxu1 }
 0x5ea   :  { %10346 = vst.msk [vmem:[#allocation2 + $0xd8] sm:$0xff] %vm10319_vm1, %v11842_v7  ;;  %v10273_v19 = vpop.f32.mrb[28].mxu0 }
 0x5eb   :  { %v11843_v14 = vadd.f32 %v10273_v19, %v5557_v33  ;;  %v10275_v1 = vpop.f32.mrb[29].mxu0 }
 0x5ec   :  { %v11844_v17 = vadd.f32 %v10275_v1, %v5559_v53  ;;  %v5565_v51 = vpop.f32.mrb[30].mxu1 }
 0x5ed   :  { %10347 = vst [vmem:[#allocation2 + $0xe0] sm:$0xff] %v11843_v14  ;;  %v5567_v50 = vpop.f32.mrb[31].mxu1 }
 0x5ee   :  { %10348 = vst.msk [vmem:[#allocation2 + $0xe8] sm:$0xff] %vm10319_vm1, %v11844_v17  ;;  %v10281_v60 = vpop.f32.mrb[30].mxu0 }
 0x5ef   :  { %v11845_v4 = vadd.f32 %v10281_v60, %v5565_v51  ;;  %v10283_v57 = vpop.f32.mrb[31].mxu0 }
 0x5f0   :  { %v11846_v15 = vadd.f32 %v10283_v57, %v5567_v50  ;;  %v5573_v31 = vpop.f32.mrb[32].mxu1 }
 0x5f1   :  { %10349 = vst [vmem:[#allocation2 + $0xf0] sm:$0xff] %v11845_v4  ;;  %v5575_v16 = vpop.f32.mrb[33].mxu1 }
 0x5f2   :  { %10350 = vst.msk [vmem:[#allocation2 + $0xf8] sm:$0xff] %vm10319_vm1, %v11846_v15  ;;  %v10289_v22 = vpop.f32.mrb[32].mxu0 }
 0x5f3   :  { %v11847_v27 = vadd.f32 %v10289_v22, %v5573_v31  ;;  %v10291_v38 = vpop.f32.mrb[33].mxu0 }
 0x5f4   :  { %v11848_v43 = vadd.f32 %v10291_v38, %v5575_v16  ;;  %v5581_v44 = vpop.f32.mrb[34].mxu1 }
 0x5f5   :  { %10351 = vst [vmem:[#allocation2 + $0x100] sm:$0xff] %v11847_v27  ;;  %v5583_v8 = vpop.f32.mrb[35].mxu1 }
 0x5f6   :  { %10352 = vst.msk [vmem:[#allocation2 + $0x108] sm:$0xff] %vm10319_vm1, %v11848_v43  ;;  %v10297_v61 = vpop.f32.mrb[34].mxu0 }
 0x5f7   :  { %v11849_v58 = vadd.f32 %v10297_v61, %v5581_v44  ;;  %v10299_v37 = vpop.f32.mrb[35].mxu0 }
 0x5f8   :  { %v11850_v55 = vadd.f32 %v10299_v37, %v5583_v8  ;;  %v5589_v3 = vpop.f32.mrb[36].mxu1 }
 0x5f9   :  { %10353 = vst [vmem:[#allocation2 + $0x110] sm:$0xff] %v11849_v58  ;;  %v5591_v46 = vpop.f32.mrb[37].mxu1 }
 0x5fa   :  { %10354 = vst.msk [vmem:[#allocation2 + $0x118] sm:$0xff] %vm10319_vm1, %v11850_v55  ;;  %v10305_v34 = vpop.f32.mrb[36].mxu0 }
 0x5fb   :  { %v11851_v12 = vadd.f32 %v10305_v34, %v5589_v3  ;;  %v10307_v24 = vpop.f32.mrb[37].mxu0 }
 0x5fc   :  { %v11852_v45 = vadd.f32 %v10307_v24, %v5591_v46  ;;  %v5597_v56 = vpop.f32.mrb[38].mxu1 }
 0x5fd   :  { %10355 = vst [vmem:[#allocation2 + $0x120] sm:$0xff] %v11851_v12  ;;  %v5599_v40 = vpop.f32.mrb[39].mxu1 }
 0x5fe   :  { %10356 = vst.msk [vmem:[#allocation2 + $0x128] sm:$0xff] %vm10319_vm1, %v11852_v45  ;;  %v10313_v59 = vpop.f32.mrb[38].mxu0 }
 0x5ff   :  { %v11853_v5 = vadd.f32 %v10313_v59, %v5597_v56  ;;  %v10315_v23 = vpop.f32.mrb[39].mxu0 }
 0x600   :  { %v11854_v63 = vadd.f32 %v10315_v23, %v5599_v40 }
 0x601   :  { %10357 = vst [vmem:[#allocation2 + $0x130] sm:$0xff] %v11853_v5 }
 0x602   :  { %10358 = vst.msk [vmem:[#allocation2 + $0x138] sm:$0xff] %vm10319_vm1, %v11854_v63 }
 0x603   :  { %12750 = shalt.err (!%p12747_p4)
}
 0x604   :  { %s12751_s25 = scalar_lea.hbm %s20347_s3, 5120 }
 0x605   :  { %p12752_p5 = scmp.ne.s32.totalorder %s20347_s3, %s12751_s25  ;;  %p12755_p6 = scmp.lt.u32.totalorder %s12751_s25, %s20347_s3 }
 0x607   :  { %p12757_p7 = pnand %p12755_p6, %p12752_p5 }
 0x609   :  { %12760 = shalt.err (!%p12757_p7)
}
 0x60a   :  { %s12764_s29 = smov 256   ;;  %s12765_s30 = smov 16  }
 0x60b   :  { %10370 = dma.vmem_to_hbm [thread:$0]  %s10365_s21, 5120, %s20347_s3, [#allocation3], %s12764_s29, %s12764_s29, %s12765_s30  }
 0x60c   :  { %12761 = dma.done.wait [#allocation3], 5120  }
 0x60d   :  { %12762 = vsyncadd [#allocation3], 4294962176 }
 0x60e   :  { %10374 = vsyncpa [#allocation3], 1 }

</bundles_post_ra>
